<compile_context>
chip_gen: v6e
topology: v6e:2x2x1
jax: 0.10.0
libtpu: 0.0.40
codegen_flags: <defaults>
</compile_context>

<pallas_src>
import functools

import jax
import jax.numpy as jnp
from jax import lax
from jax.experimental import pallas as pl
from jax.experimental.pallas import tpu as pltpu


# ----------------------------- Pallas kernel --------------------------------
def rcab_kernel(x_ref, w1_ref, b1_ref, w2_ref, b2_ref, w3_ref, b3_ref,
                wd_ref, bd_ref, wu_ref, bu_ref, o_ref, cols_ref,
                *, nb, H, W, res_scale):
    # x_ref block: (nb, H*W, C), channels on the lane axis, f32.
    HW = H * W
    M = nb * HW
    x3d = x_ref[...]                                   # (nb, HW, C) f32
    C = x3d.shape[-1]
    mid = w1_ref.shape[-1]

    # Merge batch into the matmul M dimension (HW is a multiple of 8, so this
    # reshape is sublane-tiling compatible, i.e. free).
    x2d = x3d.reshape(M, C)

    # ---- body conv1: 1x1 (C -> mid), bf16 MXU / f32 acc, fused bias+ReLU ----
    h1 = jnp.dot(x2d.astype(jnp.bfloat16), w1_ref[...],
                 preferred_element_type=jnp.float32)
    # Cast to bf16 immediately: everything downstream of conv1 that feeds the
    # im2col relayout is half-width.
    h1 = jnp.maximum(h1 + b1_ref[...], 0.0).astype(jnp.bfloat16)   # (M, mid)

    # ---- body conv2: 3x3 same-pad via bf16 im2col scratch + ONE matmul -----
    # Per-image zero padding (padding must not bleed across merged images).
    h1_img = h1.reshape(nb, H, W, mid)
    h1_pad = jnp.pad(h1_img, ((0, 0), (1, 1), (1, 1), (0, 0)))
    for k in range(9):                                  # static unrolled taps
        i, j = k // 3, k % 3
        tap = h1_pad[:, i:i + H, j:j + W, :].reshape(M, mid)        # bf16
        cols_ref[:, k * mid:(k + 1) * mid] = tap        # lane-offset store
    h2 = jnp.dot(cols_ref[...], w2_ref[...],            # (M, 9*mid)@(9*mid, mid)
                 preferred_element_type=jnp.float32)
    h2 = jnp.maximum(h2 + b2_ref[...], 0.0)             # (M, mid) f32

    # ---- body conv3: 1x1 (mid -> C) -----------------------------------------
    # (Keep operands bf16; switch to f32 if tighter accuracy is ever needed.)
    h3 = jnp.dot(h2.astype(jnp.bfloat16), w3_ref[...],
                 preferred_element_type=jnp.float32) + b3_ref[...]  # (M, C)

    # ---- CALayer: PER-IMAGE mean + squeeze/excite on VPU/XLU/EUP -----------
    h3_img = h3.reshape(nb, HW, C)
    y = jnp.mean(h3_img, axis=1)                                    # (nb, C)
    # z[n,r] = relu(sum_c wd[r,c] * y[n,c] + bd[r])
    z = jnp.maximum(
        jnp.sum(wd_ref[...][None, :, :] * y[:, None, :], axis=-1)
        + bd_ref[...], 0.0)                                         # (nb, cmid)
    # s[n,c] = sigmoid(sum_r z[n,r] * wu[r,c] + bu[c]) ; fold res_scale in.
    s = jax.nn.sigmoid(
        jnp.sum(z[:, :, None] * wu_ref[...][None, :, :], axis=1)
        + bu_ref[...])                                              # (nb, C)
    s = (s * res_scale)[:, None, :]                                 # (nb,1,C)

    # ---- channel attention scaling + residual (f32 elementwise) ------------
    o_ref[...] = (h3_img * s + x3d).astype(o_ref.dtype)


# ------------------------------- wrappers ------------------------------------
def rcab_forward_nhwc(x_nhwc, kernel_params, res_scale=1.0,
                      images_per_block=None):
    """x_nhwc: (N, H, W, C) float32, channels-last.  Returns same shape.

    images_per_block: how many images one grid step processes.
      * None / N  -> grid=(1,), batch merged into M (best on 1-TC v5e/v6e).
      * N // 2    -> 2 parallel grid steps (shards across v7x's 2 TensorCores).
    """
    N, H, W, C = x_nhwc.shape
    w1, b1, w2, b2, w3, b3, wd, bd, wu, bu = kernel_params
    mid = w1.shape[-1]

    nb = N if images_per_block is None else int(images_per_block)
    assert N % nb == 0, "images_per_block must divide the batch"
    grid = (N // nb,)

    x_flat = x_nhwc.reshape(N, H * W, C)              # free, row-major reshape

    def full(a):                                      # whole array, resident
        n = a.ndim
        return pl.BlockSpec(a.shape, lambda b, n=n: (0,) * n)   # 1-D grid only

    out = pl.pallas_call(
        functools.partial(rcab_kernel, nb=nb, H=H, W=W,
                          res_scale=float(res_scale)),
        out_shape=jax.ShapeDtypeStruct((N, H * W, C), x_nhwc.dtype),
        grid=grid,
        in_specs=[
            pl.BlockSpec((nb, H * W, C), lambda b: (b, 0, 0)),   # activations
            full(w1), full(b1),          # conv1 (bf16 weight, f32 bias)
            full(w2), full(b2),          # conv2 im2col weight (9*mid, mid)
            full(w3), full(b3),          # conv3
            full(wd), full(bd),          # CA down (VPU layout)
            full(wu), full(bu),          # CA up   (VPU layout)
        ],
        out_specs=pl.BlockSpec((nb, H * W, C), lambda b: (b, 0, 0)),
        scratch_shapes=[pltpu.VMEM((nb * H * W, 9 * mid), jnp.bfloat16)],
        compiler_params=pltpu.CompilerParams(
            dimension_semantics=("parallel",)),       # shard blocks on v7x TCs
    )(x_flat, w1, b1, w2, b2, w3, b3, wd, bd, wu, bu)
    return out.reshape(N, H, W, C)


def rcab_forward_nchw(x_nchw, kernel_params, res_scale=1.0):
    """Drop-in PyTorch-layout shim (adds 2 transpose passes; prefer NHWC)."""
    out = rcab_forward_nhwc(jnp.transpose(x_nchw, (0, 2, 3, 1)),
                            kernel_params, res_scale)
    return jnp.transpose(out, (0, 3, 1, 2))


def convert_params(torch_params):
    """PyTorch (OIHW) parameters -> layouts the NHWC kernel expects."""
    w1, b1, w2, b2, w3, b3, wd, bd, wu, bu = torch_params
    mid = w1.shape[0]
    bf16 = jnp.bfloat16
    return (
        w1[:, :, 0, 0].T.astype(bf16),                               # (C, mid)
        b1[None, :],                                                 # (1, mid)
        jnp.transpose(w2, (2, 3, 1, 0)).reshape(9 * mid, mid).astype(bf16),
        b2[None, :],                                                 # (1, mid)
        w3[:, :, 0, 0].T.astype(bf16),                               # (mid, C)
        b3[None, :],                                                 # (1, C)
        wd[:, :, 0, 0],                                              # (cmid, C)
        bd[None, :],                                                 # (1, cmid)
        wu[:, :, 0, 0].T,                                            # (cmid, C)
        bu[None, :],                                                 # (1, C)
    )


# ----------------------- pure-JAX reference (NCHW) --------------------------
def rcab_ref(x, torch_params, res_scale=1.0):
    w1, b1, w2, b2, w3, b3, wd, bd, wu, bu = torch_params

    def conv(inp, w, b, pad):
        o = lax.conv_general_dilated(
            inp, w, window_strides=(1, 1),
            padding=[(pad, pad), (pad, pad)],
            dimension_numbers=('NCHW', 'OIHW', 'NCHW'))
        return o + b[None, :, None, None]

    h = jax.nn.relu(conv(x, w1, b1, 0))
    h = jax.nn.relu(conv(h, w2, b2, 1))
    h = conv(h, w3, b3, 0)
    y = jnp.mean(h, axis=(2, 3), keepdims=True)
    y = jax.nn.relu(conv(y, wd, bd, 0))
    y = jax.nn.sigmoid(conv(y, wu, bu, 0))
    return h * y * res_scale + x


if __name__ == "__main__":
    # RCAB(n_feats=64, reduction=16, res_scale=1)
    n_feats, reduction, res_scale = 64, 16, 1.0
    mid = n_feats // 4            # 16
    cmid = n_feats // reduction   # 4
    N, H, W = 2, 16, 16

    key = jax.random.PRNGKey(0)
    ks = jax.random.split(key, 11)
    f32 = jnp.float32

    # Deterministic synthetic parameters in PyTorch (OIHW) layout.
    w1 = 0.1 * jax.random.normal(ks[0], (mid, n_feats, 1, 1), f32)
    b1 = 0.1 * jax.random.normal(ks[1], (mid,), f32)
    w2 = 0.1 * jax.random.normal(ks[2], (mid, mid, 3, 3), f32)
    b2 = 0.1 * jax.random.normal(ks[3], (mid,), f32)
    w3 = 0.1 * jax.random.normal(ks[4], (n_feats, mid, 1, 1), f32)
    b3 = 0.1 * jax.random.normal(ks[5], (n_feats,), f32)
    wd = 0.1 * jax.random.normal(ks[6], (cmid, n_feats, 1, 1), f32)
    bd = 0.1 * jax.random.normal(ks[7], (cmid,), f32)
    wu = 0.1 * jax.random.normal(ks[8], (n_feats, cmid, 1, 1), f32)
    bu = 0.1 * jax.random.normal(ks[9], (n_feats,), f32)
    torch_params = (w1, b1, w2, b2, w3, b3, wd, bd, wu, bu)
    kernel_params = convert_params(torch_params)

    # Input generated directly in NHWC: the kernel path has no transposes.
    x_nhwc = jax.random.normal(ks[10], (N, H, W, n_feats), f32)

    out = jax.block_until_ready(
        rcab_forward_nhwc(x_nhwc, kernel_params, res_scale))

    # Reference runs in NCHW; transpose only on the test path for comparison.
    x_nchw = jnp.transpose(x_nhwc, (0, 3, 1, 2))
    ref = jnp.transpose(rcab_ref(x_nchw, torch_params, res_scale), (0, 2, 3, 1))
    ref = jax.block_until_ready(ref)

    assert out.shape == x_nhwc.shape and out.dtype == x_nhwc.dtype
    max_err = float(jnp.max(jnp.abs(out - ref)))
    # bf16 MXU operands (f32 accumulate) -> looser tolerance vs. f32 reference.
    assert jnp.allclose(out, ref, rtol=5e-2, atol=5e-2), max_err
    print("KERNEL_OK")
</pallas_src>

<mosaic_0001>
module attributes {stable_mosaic.version = 11 : i64} {
  func.func @rcab_kernel(%arg0: i32, %arg1: memref<2x256x64xf32, #tpu.memory_space<vmem>>, %arg2: memref<64x16xbf16, #tpu.memory_space<vmem>>, %arg3: memref<1x16xf32, #tpu.memory_space<vmem>>, %arg4: memref<144x16xbf16, #tpu.memory_space<vmem>>, %arg5: memref<1x16xf32, #tpu.memory_space<vmem>>, %arg6: memref<16x64xbf16, #tpu.memory_space<vmem>>, %arg7: memref<1x64xf32, #tpu.memory_space<vmem>>, %arg8: memref<4x64xf32, #tpu.memory_space<vmem>>, %arg9: memref<1x4xf32, #tpu.memory_space<vmem>>, %arg10: memref<4x64xf32, #tpu.memory_space<vmem>>, %arg11: memref<1x64xf32, #tpu.memory_space<vmem>>, %arg12: memref<2x256x64xf32, #tpu.memory_space<vmem>>, %arg13: memref<512x144xbf16, #tpu.memory_space<vmem>>) attributes {dimension_semantics = [#tpu.dimension_semantics<parallel>], iteration_bounds = array<i64: 1>, scalar_prefetch = 0 : i64, scratch_operands = 1 : i64, tpu.core_type = #tpu.core_type<tc>, window_params = [{transform_indices = @transform_0, window_bounds = array<i64: 2, 256, 64>}, {pipeline_mode = #tpu.pipeline_mode<synchronous>, transform_indices = @transform_1, window_bounds = array<i64: 64, 16>}, {pipeline_mode = #tpu.pipeline_mode<synchronous>, transform_indices = @transform_2, window_bounds = array<i64: 1, 16>}, {pipeline_mode = #tpu.pipeline_mode<synchronous>, transform_indices = @transform_3, window_bounds = array<i64: 144, 16>}, {pipeline_mode = #tpu.pipeline_mode<synchronous>, transform_indices = @transform_4, window_bounds = array<i64: 1, 16>}, {pipeline_mode = #tpu.pipeline_mode<synchronous>, transform_indices = @transform_5, window_bounds = array<i64: 16, 64>}, {pipeline_mode = #tpu.pipeline_mode<synchronous>, transform_indices = @transform_6, window_bounds = array<i64: 1, 64>}, {pipeline_mode = #tpu.pipeline_mode<synchronous>, transform_indices = @transform_7, window_bounds = array<i64: 4, 64>}, {pipeline_mode = #tpu.pipeline_mode<synchronous>, transform_indices = @transform_8, window_bounds = array<i64: 1, 4>}, {pipeline_mode = #tpu.pipeline_mode<synchronous>, transform_indices = @transform_9, window_bounds = array<i64: 4, 64>}, {pipeline_mode = #tpu.pipeline_mode<synchronous>, transform_indices = @transform_10, window_bounds = array<i64: 1, 64>}, {transform_indices = @transform_11, window_bounds = array<i64: 2, 256, 64>}]} {
    %c0 = arith.constant 0 : index
    %c0_0 = arith.constant 0 : index
    %c0_1 = arith.constant 0 : index
    %0 = vector.load %arg1[%c0, %c0_0, %c0_1] : memref<2x256x64xf32, #tpu.memory_space<vmem>>, vector<2x256x64xf32>
    %1 = vector.shape_cast %0 : vector<2x256x64xf32> to vector<512x64xf32>
    %2 = arith.truncf %1 : vector<512x64xf32> to vector<512x64xbf16>
    %c0_2 = arith.constant 0 : index
    %c0_3 = arith.constant 0 : index
    %3 = vector.load %arg2[%c0_2, %c0_3] : memref<64x16xbf16, #tpu.memory_space<vmem>>, vector<64x16xbf16>
    %cst = arith.constant dense<0.000000e+00> : vector<512x16xf32>
    %4 = tpu.matmul %2, %3, %cst {dimension_numbers = #tpu.dot_dimension_numbers<[1], [0], [0], [1], [0, 0, 1, 1], [], []>} : vector<512x64xbf16>, vector<64x16xbf16>, vector<512x16xf32> -> vector<512x16xf32>
    %c0_4 = arith.constant 0 : index
    %c0_5 = arith.constant 0 : index
    %5 = vector.load %arg3[%c0_4, %c0_5] : memref<1x16xf32, #tpu.memory_space<vmem>>, vector<1x16xf32>
    %6 = vector.broadcast %5 : vector<1x16xf32> to vector<512x16xf32>
    %7 = arith.addf %4, %6 : vector<512x16xf32>
    %cst_6 = arith.constant 0.000000e+00 : f32
    %8 = vector.broadcast %cst_6 : f32 to vector<512x16xf32>
    %9 = arith.maximumf %7, %8 : vector<512x16xf32>
    %10 = arith.truncf %9 : vector<512x16xf32> to vector<512x16xbf16>
    %11 = vector.shape_cast %10 : vector<512x16xbf16> to vector<2x16x16x16xbf16>
    %c0_i32 = arith.constant 0 : i32
    %12 = arith.sitofp %c0_i32 : i32 to bf16
    %13 = vector.broadcast %12 : bf16 to vector<2x1x16x16xbf16>
    %14 = tpu.concatenate %13, %11 in 1 : vector<2x1x16x16xbf16>, vector<2x16x16x16xbf16> -> vector<2x17x16x16xbf16>
    %15 = vector.broadcast %12 : bf16 to vector<2x1x16x16xbf16>
    %16 = tpu.concatenate %14, %15 in 1 : vector<2x17x16x16xbf16>, vector<2x1x16x16xbf16> -> vector<2x18x16x16xbf16>
    %17 = vector.broadcast %12 : bf16 to vector<2x18x1x16xbf16>
    %18 = tpu.concatenate %17, %16 in 2 : vector<2x18x1x16xbf16>, vector<2x18x16x16xbf16> -> vector<2x18x17x16xbf16>
    %19 = vector.broadcast %12 : bf16 to vector<2x18x1x16xbf16>
    %20 = tpu.concatenate %18, %19 in 2 : vector<2x18x17x16xbf16>, vector<2x18x1x16xbf16> -> vector<2x18x18x16xbf16>
    %21 = vector.extract_strided_slice %20 {offsets = [0, 0, 0, 0], sizes = [2, 16, 16, 16], strides = [1, 1, 1, 1]} : vector<2x18x18x16xbf16> to vector<2x16x16x16xbf16>
    %22 = vector.shape_cast %21 : vector<2x16x16x16xbf16> to vector<512x16xbf16>
    %c0_7 = arith.constant 0 : index
    %c0_8 = arith.constant 0 : index
    %23 = vector.load %arg13[%c0_7, %c0_8] : memref<512x144xbf16, #tpu.memory_space<vmem>>, vector<512x16xbf16>
    tpu.vector_store %arg13[%c0_7, %c0_8], %22 {strides = array<i32>} : memref<512x144xbf16, #tpu.memory_space<vmem>>, vector<512x16xbf16>,
    %24 = vector.extract_strided_slice %20 {offsets = [0, 0, 1, 0], sizes = [2, 16, 16, 16], strides = [1, 1, 1, 1]} : vector<2x18x18x16xbf16> to vector<2x16x16x16xbf16>
    %25 = vector.shape_cast %24 : vector<2x16x16x16xbf16> to vector<512x16xbf16>
    %c0_9 = arith.constant 0 : index
    %c16 = arith.constant 16 : index
    %26 = vector.load %arg13[%c0_9, %c16] : memref<512x144xbf16, #tpu.memory_space<vmem>>, vector<512x16xbf16>
    tpu.vector_store %arg13[%c0_9, %c16], %25 {strides = array<i32>} : memref<512x144xbf16, #tpu.memory_space<vmem>>, vector<512x16xbf16>,
    %27 = vector.extract_strided_slice %20 {offsets = [0, 0, 2, 0], sizes = [2, 16, 16, 16], strides = [1, 1, 1, 1]} : vector<2x18x18x16xbf16> to vector<2x16x16x16xbf16>
    %28 = vector.shape_cast %27 : vector<2x16x16x16xbf16> to vector<512x16xbf16>
    %c0_10 = arith.constant 0 : index
    %c32 = arith.constant 32 : index
    %29 = vector.load %arg13[%c0_10, %c32] : memref<512x144xbf16, #tpu.memory_space<vmem>>, vector<512x16xbf16>
    tpu.vector_store %arg13[%c0_10, %c32], %28 {strides = array<i32>} : memref<512x144xbf16, #tpu.memory_space<vmem>>, vector<512x16xbf16>,
    %30 = vector.extract_strided_slice %20 {offsets = [0, 1, 0, 0], sizes = [2, 16, 16, 16], strides = [1, 1, 1, 1]} : vector<2x18x18x16xbf16> to vector<2x16x16x16xbf16>
    %31 = vector.shape_cast %30 : vector<2x16x16x16xbf16> to vector<512x16xbf16>
    %c0_11 = arith.constant 0 : index
    %c48 = arith.constant 48 : index
    %32 = vector.load %arg13[%c0_11, %c48] : memref<512x144xbf16, #tpu.memory_space<vmem>>, vector<512x16xbf16>
    tpu.vector_store %arg13[%c0_11, %c48], %31 {strides = array<i32>} : memref<512x144xbf16, #tpu.memory_space<vmem>>, vector<512x16xbf16>,
    %33 = vector.extract_strided_slice %20 {offsets = [0, 1, 1, 0], sizes = [2, 16, 16, 16], strides = [1, 1, 1, 1]} : vector<2x18x18x16xbf16> to vector<2x16x16x16xbf16>
    %34 = vector.shape_cast %33 : vector<2x16x16x16xbf16> to vector<512x16xbf16>
    %c0_12 = arith.constant 0 : index
    %c64 = arith.constant 64 : index
    %35 = vector.load %arg13[%c0_12, %c64] : memref<512x144xbf16, #tpu.memory_space<vmem>>, vector<512x16xbf16>
    tpu.vector_store %arg13[%c0_12, %c64], %34 {strides = array<i32>} : memref<512x144xbf16, #tpu.memory_space<vmem>>, vector<512x16xbf16>,
    %36 = vector.extract_strided_slice %20 {offsets = [0, 1, 2, 0], sizes = [2, 16, 16, 16], strides = [1, 1, 1, 1]} : vector<2x18x18x16xbf16> to vector<2x16x16x16xbf16>
    %37 = vector.shape_cast %36 : vector<2x16x16x16xbf16> to vector<512x16xbf16>
    %c0_13 = arith.constant 0 : index
    %c80 = arith.constant 80 : index
    %38 = vector.load %arg13[%c0_13, %c80] : memref<512x144xbf16, #tpu.memory_space<vmem>>, vector<512x16xbf16>
    tpu.vector_store %arg13[%c0_13, %c80], %37 {strides = array<i32>} : memref<512x144xbf16, #tpu.memory_space<vmem>>, vector<512x16xbf16>,
    %39 = vector.extract_strided_slice %20 {offsets = [0, 2, 0, 0], sizes = [2, 16, 16, 16], strides = [1, 1, 1, 1]} : vector<2x18x18x16xbf16> to vector<2x16x16x16xbf16>
    %40 = vector.shape_cast %39 : vector<2x16x16x16xbf16> to vector<512x16xbf16>
    %c0_14 = arith.constant 0 : index
    %c96 = arith.constant 96 : index
    %41 = vector.load %arg13[%c0_14, %c96] : memref<512x144xbf16, #tpu.memory_space<vmem>>, vector<512x16xbf16>
    tpu.vector_store %arg13[%c0_14, %c96], %40 {strides = array<i32>} : memref<512x144xbf16, #tpu.memory_space<vmem>>, vector<512x16xbf16>,
    %42 = vector.extract_strided_slice %20 {offsets = [0, 2, 1, 0], sizes = [2, 16, 16, 16], strides = [1, 1, 1, 1]} : vector<2x18x18x16xbf16> to vector<2x16x16x16xbf16>
    %43 = vector.shape_cast %42 : vector<2x16x16x16xbf16> to vector<512x16xbf16>
    %c0_15 = arith.constant 0 : index
    %c112 = arith.constant 112 : index
    %44 = vector.load %arg13[%c0_15, %c112] : memref<512x144xbf16, #tpu.memory_space<vmem>>, vector<512x16xbf16>
    tpu.vector_store %arg13[%c0_15, %c112], %43 {strides = array<i32>} : memref<512x144xbf16, #tpu.memory_space<vmem>>, vector<512x16xbf16>,
    %45 = vector.extract_strided_slice %20 {offsets = [0, 2, 2, 0], sizes = [2, 16, 16, 16], strides = [1, 1, 1, 1]} : vector<2x18x18x16xbf16> to vector<2x16x16x16xbf16>
    %46 = vector.shape_cast %45 : vector<2x16x16x16xbf16> to vector<512x16xbf16>
    %c0_16 = arith.constant 0 : index
    %c128 = arith.constant 128 : index
    %47 = vector.load %arg13[%c0_16, %c128] : memref<512x144xbf16, #tpu.memory_space<vmem>>, vector<512x16xbf16>
    tpu.vector_store %arg13[%c0_16, %c128], %46 {strides = array<i32>} : memref<512x144xbf16, #tpu.memory_space<vmem>>, vector<512x16xbf16>,
    %c0_17 = arith.constant 0 : index
    %c0_18 = arith.constant 0 : index
    %48 = vector.load %arg13[%c0_17, %c0_18] : memref<512x144xbf16, #tpu.memory_space<vmem>>, vector<512x144xbf16>
    %c0_19 = arith.constant 0 : index
    %c0_20 = arith.constant 0 : index
    %49 = vector.load %arg4[%c0_19, %c0_20] : memref<144x16xbf16, #tpu.memory_space<vmem>>, vector<144x16xbf16>
    %cst_21 = arith.constant dense<0.000000e+00> : vector<512x16xf32>
    %50 = tpu.matmul %48, %49, %cst_21 {dimension_numbers = #tpu.dot_dimension_numbers<[1], [0], [0], [1], [0, 0, 1, 1], [], []>} : vector<512x144xbf16>, vector<144x16xbf16>, vector<512x16xf32> -> vector<512x16xf32>
    %c0_22 = arith.constant 0 : index
    %c0_23 = arith.constant 0 : index
    %51 = vector.load %arg5[%c0_22, %c0_23] : memref<1x16xf32, #tpu.memory_space<vmem>>, vector<1x16xf32>
    %52 = vector.broadcast %51 : vector<1x16xf32> to vector<512x16xf32>
    %53 = arith.addf %50, %52 : vector<512x16xf32>
    %cst_24 = arith.constant 0.000000e+00 : f32
    %54 = vector.broadcast %cst_24 : f32 to vector<512x16xf32>
    %55 = arith.maximumf %53, %54 : vector<512x16xf32>
    %56 = arith.truncf %55 : vector<512x16xf32> to vector<512x16xbf16>
    %c0_25 = arith.constant 0 : index
    %c0_26 = arith.constant 0 : index
    %57 = vector.load %arg6[%c0_25, %c0_26] : memref<16x64xbf16, #tpu.memory_space<vmem>>, vector<16x64xbf16>
    %cst_27 = arith.constant dense<0.000000e+00> : vector<512x64xf32>
    %58 = tpu.matmul %56, %57, %cst_27 {dimension_numbers = #tpu.dot_dimension_numbers<[1], [0], [0], [1], [0, 0, 1, 1], [], []>} : vector<512x16xbf16>, vector<16x64xbf16>, vector<512x64xf32> -> vector<512x64xf32>
    %c0_28 = arith.constant 0 : index
    %c0_29 = arith.constant 0 : index
    %59 = vector.load %arg7[%c0_28, %c0_29] : memref<1x64xf32, #tpu.memory_space<vmem>>, vector<1x64xf32>
    %60 = vector.broadcast %59 : vector<1x64xf32> to vector<512x64xf32>
    %61 = arith.addf %58, %60 : vector<512x64xf32>
    %62 = vector.shape_cast %61 : vector<512x64xf32> to vector<2x256x64xf32>
    %cst_30 = arith.constant dense<0.000000e+00> : vector<2x64xf32>
    %63 = vector.multi_reduction <add>, %62, %cst_30 [1] : vector<2x256x64xf32> to vector<2x64xf32>
    %cst_31 = arith.constant 2.560000e+02 : f32
    %64 = vector.broadcast %cst_31 : f32 to vector<2x64xf32>
    %65 = arith.divf %63, %64 : vector<2x64xf32>
    %c0_32 = arith.constant 0 : index
    %c0_33 = arith.constant 0 : index
    %66 = vector.load %arg8[%c0_32, %c0_33] : memref<4x64xf32, #tpu.memory_space<vmem>>, vector<4x64xf32>
    %67 = vector.shape_cast %66 : vector<4x64xf32> to vector<1x4x64xf32>
    %68 = vector.shape_cast %65 : vector<2x64xf32> to vector<2x1x64xf32>
    %69 = vector.broadcast %67 : vector<1x4x64xf32> to vector<2x4x64xf32>
    %70 = vector.broadcast %68 : vector<2x1x64xf32> to vector<2x4x64xf32>
    %71 = arith.mulf %69, %70 : vector<2x4x64xf32>
    %cst_34 = arith.constant dense<0.000000e+00> : vector<2x4xf32>
    %72 = vector.multi_reduction <add>, %71, %cst_34 [2] : vector<2x4x64xf32> to vector<2x4xf32>
    %c0_35 = arith.constant 0 : index
    %c0_36 = arith.constant 0 : index
    %73 = vector.load %arg9[%c0_35, %c0_36] : memref<1x4xf32, #tpu.memory_space<vmem>>, vector<1x4xf32>
    %74 = vector.broadcast %73 : vector<1x4xf32> to vector<2x4xf32>
    %75 = arith.addf %72, %74 : vector<2x4xf32>
    %cst_37 = arith.constant 0.000000e+00 : f32
    %76 = vector.broadcast %cst_37 : f32 to vector<2x4xf32>
    %77 = arith.maximumf %75, %76 : vector<2x4xf32>
    %78 = vector.shape_cast %77 : vector<2x4xf32> to vector<2x4x1xf32>
    %c0_38 = arith.constant 0 : index
    %c0_39 = arith.constant 0 : index
    %79 = vector.load %arg10[%c0_38, %c0_39] : memref<4x64xf32, #tpu.memory_space<vmem>>, vector<4x64xf32>
    %80 = vector.shape_cast %79 : vector<4x64xf32> to vector<1x4x64xf32>
    %81 = vector.broadcast %78 : vector<2x4x1xf32> to vector<2x4x64xf32>
    %82 = vector.broadcast %80 : vector<1x4x64xf32> to vector<2x4x64xf32>
    %83 = arith.mulf %81, %82 : vector<2x4x64xf32>
    %cst_40 = arith.constant dense<0.000000e+00> : vector<2x64xf32>
    %84 = vector.multi_reduction <add>, %83, %cst_40 [1] : vector<2x4x64xf32> to vector<2x64xf32>
    %c0_41 = arith.constant 0 : index
    %c0_42 = arith.constant 0 : index
    %85 = vector.load %arg11[%c0_41, %c0_42] : memref<1x64xf32, #tpu.memory_space<vmem>>, vector<1x64xf32>
    %86 = vector.broadcast %85 : vector<1x64xf32> to vector<2x64xf32>
    %87 = arith.addf %84, %86 : vector<2x64xf32>
    %88 = arith.negf %87 : vector<2x64xf32>
    %89 = math.exp %88 : vector<2x64xf32>
    %cst_43 = arith.constant 1.000000e+00 : f32
    %90 = vector.broadcast %cst_43 : f32 to vector<2x64xf32>
    %91 = arith.addf %90, %89 : vector<2x64xf32>
    %92 = arith.divf %90, %91 : vector<2x64xf32>
    %cst_44 = arith.constant 1.000000e+00 : f32
    %93 = vector.broadcast %cst_44 : f32 to vector<2x64xf32>
    %94 = arith.mulf %92, %93 : vector<2x64xf32>
    %95 = vector.shape_cast %94 : vector<2x64xf32> to vector<2x1x64xf32>
    %96 = vector.broadcast %95 : vector<2x1x64xf32> to vector<2x256x64xf32>
    %97 = arith.mulf %62, %96 : vector<2x256x64xf32>
    %98 = arith.addf %97, %0 : vector<2x256x64xf32>
    %c0_45 = arith.constant 0 : index
    %c0_46 = arith.constant 0 : index
    %c0_47 = arith.constant 0 : index
    %99 = vector.load %arg12[%c0_45, %c0_46, %c0_47] : memref<2x256x64xf32, #tpu.memory_space<vmem>>, vector<2x256x64xf32>
    tpu.vector_store %arg12[%c0_45, %c0_46, %c0_47], %98 {strides = array<i32>} : memref<2x256x64xf32, #tpu.memory_space<vmem>>, vector<2x256x64xf32>,
    return
  }
  func.func @transform_0(%arg0: i32) -> (i32, i32, i32) {
    %c0_i32 = arith.constant 0 : i32
    %c0_i32_0 = arith.constant 0 : i32
    %c0_i32_1 = arith.constant 0 : i32
    return %arg0, %c0_i32, %c0_i32_0 : i32, i32, i32
  }
  func.func @transform_1(%arg0: i32) -> (i32, i32) {
    %c0_i32 = arith.constant 0 : i32
    %c0_i32_0 = arith.constant 0 : i32
    %c0_i32_1 = arith.constant 0 : i32
    return %c0_i32, %c0_i32_0 : i32, i32
  }
  func.func @transform_2(%arg0: i32) -> (i32, i32) {
    %c0_i32 = arith.constant 0 : i32
    %c0_i32_0 = arith.constant 0 : i32
    %c0_i32_1 = arith.constant 0 : i32
    return %c0_i32, %c0_i32_0 : i32, i32
  }
  func.func @transform_3(%arg0: i32) -> (i32, i32) {
    %c0_i32 = arith.constant 0 : i32
    %c0_i32_0 = arith.constant 0 : i32
    %c0_i32_1 = arith.constant 0 : i32
    return %c0_i32, %c0_i32_0 : i32, i32
  }
  func.func @transform_4(%arg0: i32) -> (i32, i32) {
    %c0_i32 = arith.constant 0 : i32
    %c0_i32_0 = arith.constant 0 : i32
    %c0_i32_1 = arith.constant 0 : i32
    return %c0_i32, %c0_i32_0 : i32, i32
  }
  func.func @transform_5(%arg0: i32) -> (i32, i32) {
    %c0_i32 = arith.constant 0 : i32
    %c0_i32_0 = arith.constant 0 : i32
    %c0_i32_1 = arith.constant 0 : i32
    return %c0_i32, %c0_i32_0 : i32, i32
  }
  func.func @transform_6(%arg0: i32) -> (i32, i32) {
    %c0_i32 = arith.constant 0 : i32
    %c0_i32_0 = arith.constant 0 : i32
    %c0_i32_1 = arith.constant 0 : i32
    return %c0_i32, %c0_i32_0 : i32, i32
  }
  func.func @transform_7(%arg0: i32) -> (i32, i32) {
    %c0_i32 = arith.constant 0 : i32
    %c0_i32_0 = arith.constant 0 : i32
    %c0_i32_1 = arith.constant 0 : i32
    return %c0_i32, %c0_i32_0 : i32, i32
  }
  func.func @transform_8(%arg0: i32) -> (i32, i32) {
    %c0_i32 = arith.constant 0 : i32
    %c0_i32_0 = arith.constant 0 : i32
    %c0_i32_1 = arith.constant 0 : i32
    return %c0_i32, %c0_i32_0 : i32, i32
  }
  func.func @transform_9(%arg0: i32) -> (i32, i32) {
    %c0_i32 = arith.constant 0 : i32
    %c0_i32_0 = arith.constant 0 : i32
    %c0_i32_1 = arith.constant 0 : i32
    return %c0_i32, %c0_i32_0 : i32, i32
  }
  func.func @transform_10(%arg0: i32) -> (i32, i32) {
    %c0_i32 = arith.constant 0 : i32
    %c0_i32_0 = arith.constant 0 : i32
    %c0_i32_1 = arith.constant 0 : i32
    return %c0_i32, %c0_i32_0 : i32, i32
  }
  func.func @transform_11(%arg0: i32) -> (i32, i32, i32) {
    %c0_i32 = arith.constant 0 : i32
    %c0_i32_0 = arith.constant 0 : i32
    %c0_i32_1 = arith.constant 0 : i32
    return %arg0, %c0_i32, %c0_i32_0 : i32, i32, i32
  }
}

</mosaic_0001>

<bundles_post_ra>
// kernel: tpu_custom_call.1
= control target key start
LH: loop header
LB: loop body
LE: loop exit
PB: predicated region body
PF: predicated region fallthrough
CT: control target
= control target key end

     0   :  { %vm174_vm0 = vcmask 523264   ;;  %vm953_vm1 = vcmask 1040384   ;;  %vm954_vm2 = vsmask.f32 256  ;;  %vm1239_vm4 = vcmask 125952   ;;  %s6517_s23 = smov 48   ;;  %s10819_s1 = inlined_call_operand.vmem [shape: bf16[64,16], index: 1, kind: input, shape index: {}]   ;;  %s10820_s0 = inlined_call_operand.vmem [shape: f32[2,256,64], index: 0, kind: input, shape index: {}]   ;;  %s10821_s2 = inlined_call_operand.vmem [shape: f32[1,16], index: 2, kind: input, shape index: {}]   ;;  %s10822_s3 = inlined_call_operand.vmem [shape: bf16[144,16], index: 3, kind: input, shape index: {}]   ;;  %s10823_s4 = inlined_call_operand.vmem [shape: f32[1,16], index: 4, kind: input, shape index: {}]   ;;  %s10824_s5 = inlined_call_operand.vmem [shape: bf16[16,64], index: 5, kind: input, shape index: {}]   ;;  %s10825_s6 = inlined_call_operand.vmem [shape: f32[1,64], index: 6, kind: input, shape index: {}]   ;;  %s10826_s7 = inlined_call_operand.vmem [shape: f32[4,64], index: 7, kind: input, shape index: {}]   ;;  %s10827_s8 = inlined_call_operand.vmem [shape: f32[1,4], index: 8, kind: input, shape index: {}]   ;;  %s10828_s9 = inlined_call_operand.vmem [shape: f32[4,64], index: 9, kind: input, shape index: {}]   ;;  %s10829_s10 = inlined_call_operand.vmem [shape: f32[1,64], index: 10, kind: input, shape index: {}]   ;;  %s10830_s11 = inlined_call_operand.vmem [shape: f32[2,256,64], index: 11, kind: output, shape index: {}]  }
   0x1   :  { %v6353_v0 = vld [vmem:[%s10819_s1 + $0x18] sm:$0xff]   ;;  %v6354_v1 = vld [vmem:[%s10819_s1 + $0x10] sm:$0xff]   ;;  %v6355_v2 = vld [vmem:[%s10819_s1 + $0x8] sm:$0xff]   ;;  %vm2083_vm5 = vcmask 1046528   ;;  %vm1304_vm6 = vsmask.f32 7424 }
   0x2   :  { %6187 = vmatprep.subr.bf16.mxu0 %v6353_v0  ;;  %v39_v3 = vld [vmem:[%s10820_s0] sm:$0xff]  ;;  %v40_v4 = vld [vmem:[%s10820_s0 + $0x8] sm:$0xff]  ;;  %v41_v7 = vld [vmem:[%s10820_s0 + $0x10] sm:$0xff]  ;;  %s6518_s24 = smov 80   ;;  %s6519_s25 = smov 32   ;;  %vm1987_vm7 = vcmask 257152  }
   0x3   :  { %6188 = vmatpush3.bf16.msra.mxu0 %v6353_v0  ;;  %v103_v5 = vpack.c.bf16 %v40_v4, %v39_v3  ;;  %v6356_v6 = vld [vmem:[%s10819_s1] sm:$0xff]   ;;  %v42_v8 = vld [vmem:[%s10820_s0 + $0x18] sm:$0xff]  ;;  %v44_v10 = vld [vmem:[%s10820_s0 + $0x28] sm:$0xff]  ;;  %s6520_s26 = smov 64   ;;  %s6521_s27 = smov 16   ;;  %vm2487_vm8 = vcmask 388352  }
   0x4   :  { %6189 = vmatprep.subr.bf16.mxu0 %v6354_v1  ;;  %v43_v9 = vld [vmem:[%s10820_s0 + $0x20] sm:$0xff]  ;;  %v104_v11 = vpack.c.bf16 %v42_v8, %v41_v7  ;;  %v45_v13 = vld [vmem:[%s10820_s0 + $0x30] sm:$0xff]  ;;  %v46_v14 = vld [vmem:[%s10820_s0 + $0x38] sm:$0xff]  ;;  %s6522_s28 = smov 96   ;;  %s6524_s14 = smov 112   ;;  %vm2754_vm9 = vcmask 519552  }
   0x5   :  { %6195 = vmatprep.mubr.msk.bf16.mxu0 %vm174_vm0, %v103_v5  ;;  %v105_v12 = vpack.c.bf16 %v44_v10, %v43_v9  ;;  %v47_v15 = vld [vmem:[%s10820_s0 + $0x40] sm:$0xff]  ;;  %v48_v16 = vld [vmem:[%s10820_s0 + $0x48] sm:$0xff]  ;;  %v106_v17 = vpack.c.bf16 %v46_v14, %v45_v13  ;;  %v49_v19 = vld [vmem:[%s10820_s0 + $0x50] sm:$0xff]  ;;  %vm3043_vm10 = vcmask 650752   ;;  %vm3316_vm11 = vcmask 781952  }
   0x6   :  { %v107_v18 = vpack.c.bf16 %v48_v16, %v47_v15  ;;  %v50_v20 = vld [vmem:[%s10820_s0 + $0x58] sm:$0xff]  ;;  %v51_v21 = vld [vmem:[%s10820_s0 + $0x60] sm:$0xff]  ;;  %v52_v22 = vld [vmem:[%s10820_s0 + $0x68] sm:$0xff]  ;;  %vm3567_vm12 = vcmask 913152   ;;  %vm3818_vm13 = vcmask 1044352   ;;  %vm4440_vm14 = vcmask 130048  }
   0x7   :  { %6190 = vmatpush3.bf16.msra.mxu0 %v6354_v1  ;;  %v108_v23 = vpack.c.bf16 %v50_v20, %v49_v19  ;;  %v109_v24 = vpack.c.bf16 %v52_v22, %v51_v21  ;;  %v53_v25 = vld [vmem:[%s10820_s0 + $0x70] sm:$0xff]  ;;  %v54_v26 = vld [vmem:[%s10820_s0 + $0x78] sm:$0xff]  ;;  %v55_v27 = vld [vmem:[%s10820_s0 + $0x80] sm:$0xff]  ;;  %vm5466_vm15 = vcmask 519168  }
   0x8   :  { %6191 = vmatprep.subr.bf16.mxu0 %v6355_v2  ;;  %v56_v28 = vld [vmem:[%s10820_s0 + $0x88] sm:$0xff]  ;;  %v110_v29 = vpack.c.bf16 %v54_v26, %v53_v25  ;;  %v57_v31 = vld [vmem:[%s10820_s0 + $0x90] sm:$0xff]  ;;  %v58_v32 = vld [vmem:[%s10820_s0 + $0x98] sm:$0xff] }
   0x9   :  { %v111_v30 = vpack.c.bf16 %v56_v28, %v55_v27  ;;  %v112_v33 = vpack.c.bf16 %v58_v32, %v57_v31  ;;  %v59_v34 = vld [vmem:[%s10820_s0 + $0xa0] sm:$0xff]  ;;  %v60_v35 = vld [vmem:[%s10820_s0 + $0xa8] sm:$0xff]  ;;  %v61_v36 = vld [vmem:[%s10820_s0 + $0xb0] sm:$0xff] }
   0xa   :  { %v113_v37 = vpack.c.bf16 %v60_v35, %v59_v34  ;;  %v62_v38 = vld [vmem:[%s10820_s0 + $0xb8] sm:$0xff]  ;;  %v63_v40 = vld [vmem:[%s10820_s0 + $0xc0] sm:$0xff]  ;;  %v64_v41 = vld [vmem:[%s10820_s0 + $0xc8] sm:$0xff] }
   0xb   :  { %6192 = vmatpush3.bf16.msra.mxu0 %v6355_v2  ;;  %v114_v39 = vpack.c.bf16 %v62_v38, %v61_v36  ;;  %v115_v42 = vpack.c.bf16 %v64_v41, %v63_v40  ;;  %v65_v43 = vld [vmem:[%s10820_s0 + $0xd0] sm:$0xff]  ;;  %v66_v44 = vld [vmem:[%s10820_s0 + $0xd8] sm:$0xff]  ;;  %v6698_v47 = vld [vmem:[%s10821_s2] ss:$0 sm:$0xff] }
   0xc   :  { %6193 = vmatprep.subr.bf16.mxu0 %v6356_v6  ;;  %v116_v45 = vpack.c.bf16 %v66_v44, %v65_v43  ;;  %vm6705_vm3 = vmand %vm953_vm1, %vm954_vm2 }
   0xf   :  { %6194 = vmatpush3.bf16.msra.mxu0 %v6356_v6 }
  0x12   :  { %6196 = vmatmul.mubr.msk.bf16.vlgmr.msra.gmra.mxu0 %vm174_vm0, %v104_v11 }
  0x13   :  { %6199 = vmatprep.mubr.msk.bf16.mxu0 %vm174_vm0, %v105_v12 }
  0x1a   :  { %6200 = vmatmul.mubr.msk.bf16.gmra.mxu0 %vm174_vm0, %v106_v17 }
  0x1b   :  { %6203 = vmatprep.mubr.msk.bf16.mxu0 %vm174_vm0, %v107_v18 }
  0x22   :  { %6204 = vmatmul.mubr.msk.bf16.gmra.mxu0 %vm174_vm0, %v108_v23 }
  0x23   :  { %6207 = vmatprep.mubr.msk.bf16.mxu0 %vm174_vm0, %v109_v24 }
  0x2a   :  { %6208 = vmatmul.mubr.msk.bf16.gmra.mxu0 %vm174_vm0, %v110_v29 }
  0x2b   :  { %6211 = vmatprep.mubr.msk.bf16.mxu0 %vm174_vm0, %v111_v30 }
  0x32   :  { %6212 = vmatmul.mubr.msk.bf16.gmra.mxu0 %vm174_vm0, %v112_v33 }
  0x33   :  { %6215 = vmatprep.mubr.msk.bf16.mxu0 %vm174_vm0, %v113_v37 }
  0x3a   :  { %6216 = vmatmul.mubr.msk.bf16.gmra.mxu0 %vm174_vm0, %v114_v39 }
  0x3b   :  { %6219 = vmatprep.mubr.msk.bf16.mxu0 %vm174_vm0, %v115_v42 }
  0x42   :  { %6220 = vmatmul.mubr.msk.bf16.gmra.mxu0 %vm174_vm0, %v116_v45 }
  0xd2   :  { %v6197_v46 = vpop.f32.mrf.mxu0 }
  0xd3   :  { %v314_v49 = vadd.f32 %v6197_v46, %v6698_v47 }
  0xd4   :  { %v305_v48 = vpop.f32.mrf.mxu0 }
  0xd5   :  { %v306_v51 = vadd.f32 %v6698_v47, %v305_v48  ;;  %v562_v54 = vmax.f32 %v314_v49, 0.0 }
  0xd6   :  { %v6198_v50 = vpop.f32.mrf.mxu0 }
  0xd7   :  { %v317_v52 = vadd.f32 %v6198_v50, %v6698_v47  ;;  %v560_v58 = vmax.f32 %v306_v51, 0.0 }
  0xd8   :  { %v308_v53 = vpop.f32.mrf.mxu0 }
  0xd9   :  { %v563_v55 = vmax.f32 %v317_v52, 0.0  ;;  %v309_v56 = vadd.f32 %v6698_v47, %v308_v53 }
  0xda   :  { %v6201_v57 = vpop.f32.mrf.mxu0 }
  0xdb   :  { %v625_v59 = vpack.c.bf16 %v563_v55, %v562_v54  ;;  %v561_v60 = vmax.f32 %v309_v56, 0.0  ;;  %v330_v61 = vadd.f32 %v6201_v57, %v6698_v47 }
  0xdc   :  { %v321_v62 = vpop.f32.mrf.mxu0 }
  0xdd   :  { %v671_v63 = vshrl.u32 %v625_v59, 16  ;;  %v624_v0 = vpack.c.bf16 %v561_v60, %v560_v58  ;;  %v674_v1 = vshll.u32 %v625_v59, 16  ;;  %v322_v3 = vadd.f32 %v6698_v47, %v321_v62 }
  0xde   :  { %v6202_v4 = vpop.f32.mrf.mxu0  ;;  %v566_v7 = vmax.f32 %v330_v61, 0.0 }
  0xdf   :  { %v673_v5 = vrot.slane %v671_v63, 7  ;;  %v664_v6 = vshrl.u32 %v624_v0, 16  ;;  %v333_v8 = vadd.f32 %v6202_v4, %v6698_v47  ;;  %v667_v9 = vshll.u32 %v624_v0, 16 }
  0xe0   :  { %v324_v10 = vpop.f32.mrf.mxu0  ;;  %v564_v15 = vmax.f32 %v322_v3, 0.0 }
  0xe1   :  { %v676_v11 = vor.u32 %v674_v1, %v673_v5  ;;  %v991_v12 = vsel %vm6705_vm3, %v673_v5, 0  ;;  %v666_v13 = vrot.slane %v664_v6, 7  ;;  %v567_v14 = vmax.f32 %v333_v8, 0.0 }
  0xe2   :  { %v325_v16 = vadd.f32 %v6698_v47, %v324_v10  ;;  %v6205_v17 = vpop.f32.mrf.mxu0  ;;  %v1337_v21 = vshll.u32 %v991_v12, 16  ;;  %v2091_v25 = vrot.slane %v991_v12, 1 }
  0xe3   :  { %v958_v18 = vsel %vm6705_vm3, 0, %v676_v11  ;;  %v669_v19 = vor.u32 %v667_v9, %v666_v13  ;;  %v627_v20 = vpack.c.bf16 %v567_v14, %v566_v7  ;;  %v6730_v33 = vsel %vm6705_vm3, %v666_v13, 0 }
  0xe4   :  { %v565_v22 = vmax.f32 %v325_v16, 0.0  ;;  %v6716_v23 = vcombine.high %v958_v18, %v958_v18  ;;  %v337_v24 = vpop.f32.mrf.mxu0  ;;  %v6718_v28 = vcombine.low %v958_v18, %v958_v18  ;;  %v2090_v31 = vrot.slane %v958_v18, 1 }
  0xe5   :  { %v685_v26 = vshrl.u32 %v627_v20, 16  ;;  %v688_v27 = vshll.u32 %v627_v20, 16  ;;  %v6722_v29 = vsel %vm6705_vm3, 0, %v669_v19  ;;  %v1332_v32 = vshll.u32 %v958_v18, 16 }
  0xe6   :  { %10864 = vst [vmem:[#allocation3_spill] sm:$0xff] %v6716_v23  ;;  %10865 = vst [vmem:[#allocation4_spill] sm:$0xff] %v6718_v28  ;;  %v626_v30 = vpack.c.bf16 %v565_v22, %v564_v15  ;;  %2568 = vrot.lane.b32.xlu1 %v6716_v23, %s6517_s23  ;;  %2566 = vrot.lane.b32.xlu0 %v6718_v28, %s6517_s23  ;;  %v1330_v35 = vshrl.u32 %v958_v18, 16  ;;  %v6206_v36 = vpop.f32.mrf.mxu0  ;;  %v2092_v39 = vsel %vm2083_vm5, %v2090_v31, %v2091_v25 }
  0xe7   :  { %1245 = vst.msk [vmem:[#allocation2 + $0x28] sm:$0xf] %vm1239_vm4, %v6716_v23  ;;  %v687_v34 = vrot.slane %v685_v26, 7  ;;  %1244 = vst.msk [vmem:[#allocation2 + $0x20] sm:$0xf] %vm1239_vm4, %v6718_v28  ;;  %v1334_v40 = vrot.slane %v1332_v32, 1  ;;  %v5905_v42 = vcombine.high %v2092_v39, %v2092_v39  ;;  %v5904_v43 = vcombine.low %v2092_v39, %v2092_v39 }
  0xe8   :  { %v678_v37 = vshrl.u32 %v626_v30, 16  ;;  %v681_v38 = vshll.u32 %v626_v30, 16  ;;  %v2087_v44 = vrot.slane %v6722_v29, 1  ;;  %v1339_v45 = vrot.slane %v1337_v21, 1  ;;  %v340_v51 = vpop.f32.mrf.mxu0 }
  0xe9   :  { %v690_v41 = vor.u32 %v688_v27, %v687_v34  ;;  %v6740_v46 = vsel %vm6705_vm3, %v687_v34, 0  ;;  %v1335_v49 = vor.u32 %v1334_v40, %v1330_v35  ;;  %3946 = vst.msk [vmem:[#allocation2 + $0xc] sm:$0xf] %vm1239_vm4, %v5905_v42  ;;  %3945 = vst.msk [vmem:[#allocation2 + $0x4] sm:$0xf] %vm1239_vm4, %v5904_v43  ;;  %v2088_v50 = vrot.slane %v6730_v33, 1 }
  0xea   :  { %v680_v48 = vrot.slane %v678_v37, 7  ;;  %3130 = vrot.lane.b32.xlu1 %v5905_v42, %s6518_s24  ;;  %3128 = vrot.lane.b32.xlu0 %v5904_v43, %s6518_s24  ;;  %v2097_v55 = vrot.slane %v6740_v46, 1  ;;  %v1320_v57 = vshll.u32 %v6722_v29, 16  ;;  %v6755_v58 = vpop.f32.mrf.mxu0  ;;  %v346_v0 = vadd.f32 %v6205_v17, %v6698_v47 }
  0xeb   :  { %v1340_v53 = vsel %vm1304_vm6, %v1335_v49, %v1339_v45  ;;  %v6750_v54 = vsel %vm6705_vm3, 0, %v690_v41  ;;  %v2089_v56 = vsel %vm2083_vm5, %v2087_v44, %v2088_v50  ;;  %v338_v1 = vadd.f32 %v6698_v47, %v337_v24 }
  0xec   :  { %v683_v52 = vor.u32 %v681_v38, %v680_v48  ;;  %v6759_v59 = vsel %vm6705_vm3, %v680_v48, 0  ;;  %v6761_v60 = vcombine.low %v1340_v53, %v1340_v53  ;;  %v6765_v61 = vcombine.low %v6750_v54, %v6750_v54  ;;  %v353_v12 = vpop.f32.mrf.mxu0 }
  0xed   :  { %v6769_v62 = vcombine.high %v6750_v54, %v6750_v54  ;;  %v2096_v3 = vrot.slane %v6750_v54, 1  ;;  %v6780_v4 = vcombine.low %v2089_v56, %v2089_v56  ;;  %v349_v7 = vadd.f32 %v6206_v36, %v6698_v47 }
  0xee   :  { %10866 = vst [vmem:[#allocation5_spill] sm:$0xff] %v6761_v60  ;;  %2311 = vrot.lane.b32.xlu1 %v5905_v42, %s6519_s25  ;;  %2309 = vrot.lane.b32.xlu0 %v5904_v43, %s6519_s25  ;;  %v6775_v63 = vsel %vm6705_vm3, 0, %v683_v52  ;;  %1248 = vst.msk [vmem:[#allocation2 + $0x40] sm:$0xf] %vm1239_vm4, %v6765_v61  ;;  %v570_v8 = vmax.f32 %v346_v0, 0.0  ;;  %v568_v9 = vmax.f32 %v338_v1, 0.0  ;;  %v341_v11 = vadd.f32 %v6698_v47, %v340_v51  ;;  %v6210_v26 = vpop.f32.mrf.mxu0 }
  0xef   :  { %10867 = vst [vmem:[#allocation6_spill] sm:$0xff] %v6780_v4  ;;  %1249 = vst.msk [vmem:[#allocation2 + $0x48] sm:$0xf] %vm1239_vm4, %v6769_v62  ;;  %v6788_v5 = vcombine.high %v6775_v63, %v6775_v63  ;;  %v6792_v6 = vcombine.low %v6775_v63, %v6775_v63  ;;  %v2098_v10 = vsel %vm2083_vm5, %v2096_v3, %v2097_v55  ;;  %v1322_v13 = vrot.slane %v1320_v57, 1 }
  0xf0   :  { %v6801_v14 = vcombine.high %v2098_v10, %v2098_v10  ;;  %v6803_v15 = vcombine.low %v2098_v10, %v2098_v10  ;;  %v571_v16 = vmax.f32 %v349_v7, 0.0  ;;  %v569_v17 = vmax.f32 %v341_v11, 0.0  ;;  %v356_v41 = vpop.f32.mrf.mxu0  ;;  %v67_v7 = vld [vmem:[%s10820_s0 + $0xe0] sm:$0xff] }
  0xf1   :  { %1247 = vst.msk [vmem:[#allocation2 + $0x38] sm:$0xf] %vm1239_vm4, %v6788_v5  ;;  %1246 = vst.msk [vmem:[#allocation2 + $0x30] sm:$0xf] %vm1239_vm4, %v6792_v6  ;;  %v2093_v18 = vrot.slane %v6775_v63, 1  ;;  %v1318_v19 = vshrl.u32 %v6722_v29, 16  ;;  %v6817_v24 = vcombine.high %v2089_v56, %v2089_v56  ;;  %v6828_v38 = vcombine.high %v1340_v53, %v1340_v53 }
  0xf2   :  { %2855 = vrot.lane.b32.xlu0 %v6761_v60, %s6520_s26  ;;  %2305 = vrot.lane.b32.xlu1 %v6780_v4, %s6519_s25  ;;  %3950 = vst.msk [vmem:[#allocation2 + $0x2c] sm:$0xf] %vm1239_vm4, %v6801_v14  ;;  %3949 = vst.msk [vmem:[#allocation2 + $0x24] sm:$0xf] %vm1239_vm4, %v6803_v15  ;;  %v629_v20 = vpack.c.bf16 %v571_v16, %v570_v8  ;;  %v2094_v21 = vrot.slane %v6759_v59, 1  ;;  %v1325_v22 = vshll.u32 %v6730_v33, 16 }
  0xf3   :  { %10868 = vst [vmem:[#allocation7_spill] sm:$0xff] %v6817_v24  ;;  %v628_v25 = vpack.c.bf16 %v569_v17, %v568_v9  ;;  %v1323_v27 = vor.u32 %v1322_v13, %v1318_v19  ;;  %10869 = vst [vmem:[#allocation8_spill] sm:$0xff] %v6828_v38  ;;  %v362_v44 = vadd.f32 %v6755_v58, %v6698_v47  ;;  %v68_v8 = vld [vmem:[%s10820_s0 + $0xe8] sm:$0xff]  ;;  %v70_v19 = vld [vmem:[%s10820_s0 + $0xf8] sm:$0xff] }
  0xf4   :  { %v699_v30 = vshrl.u32 %v629_v20, 16  ;;  %v702_v31 = vshll.u32 %v629_v20, 16  ;;  %v2095_v32 = vsel %vm2083_vm5, %v2093_v18, %v2094_v21  ;;  %v1327_v39 = vrot.slane %v1325_v22, 1  ;;  %v69_v18 = vld [vmem:[%s10820_s0 + $0xf0] sm:$0xff] }
  0xf5   :  { %v692_v34 = vshrl.u32 %v628_v25, 16  ;;  %v695_v35 = vshll.u32 %v628_v25, 16  ;;  %v6824_v36 = vcombine.high %v2095_v32, %v2095_v32  ;;  %v6826_v33 = vcombine.low %v2095_v32, %v2095_v32 }
  0xf6   :  { %1809 = vrot.lane.b32.xlu0 %v6761_v60, %s6521_s27  ;;  %2307 = vrot.lane.b32.xlu1 %v6817_v24, %s6519_s25  ;;  %v701_v37 = vrot.slane %v699_v30, 7  ;;  %v1328_v45 = vsel %vm1304_vm6, %v1323_v27, %v1327_v39  ;;  %v354_v49 = vadd.f32 %v6698_v47, %v353_v12  ;;  %v365_v51 = vadd.f32 %v6210_v26, %v6698_v47 }
  0xf7   :  { %v694_v40 = vrot.slane %v692_v34, 7  ;;  %3948 = vst.msk [vmem:[#allocation2 + $0x1c] sm:$0xf] %vm1239_vm4, %v6824_v36  ;;  %3947 = vst.msk [vmem:[#allocation2 + $0x14] sm:$0xf] %vm1239_vm4, %v6826_v33  ;;  %v357_v52 = vadd.f32 %v6698_v47, %v356_v41  ;;  %v6856_v58 = vcombine.low %v1328_v45, %v1328_v45  ;;  %v574_v3 = vmax.f32 %v362_v44, 0.0 }
  0xf8   :  { %v704_v42 = vor.u32 %v702_v31, %v701_v37  ;;  %v995_v43 = vsel %vm6705_vm3, %v701_v37, 0  ;;  %v572_v11 = vmax.f32 %v354_v49, 0.0  ;;  %v117_v25 = vpack.c.bf16 %v68_v8, %v67_v7 }
  0xf9   :  { %v697_v48 = vor.u32 %v695_v35, %v694_v40  ;;  %v2103_v53 = vrot.slane %v995_v43, 1  ;;  %v6850_v55 = vsel %vm6705_vm3, %v694_v40, 0  ;;  %10870 = vst [vmem:[#allocation9_spill] sm:$0xff] %v6856_v58  ;;  %v1385_v0 = vshll.u32 %v995_v43, 16 }
  0xfa   :  { %3389 = vrot.lane.b32.xlu0 %v6765_v61, %s6522_s28  ;;  %2857 = vrot.lane.b32.xlu1 %v6828_v38, %s6520_s26  ;;  %v962_v50 = vsel %vm6705_vm3, 0, %v704_v42  ;;  %v573_v13 = vmax.f32 %v357_v52, 0.0  ;;  %v2100_v17 = vrot.slane %v6850_v55, 1  ;;  %v118_v37 = vpack.c.bf16 %v70_v19, %v69_v18 }
  0xfb   :  { %v6852_v56 = vcombine.high %v962_v50, %v962_v50  ;;  %v6854_v57 = vcombine.low %v962_v50, %v962_v50  ;;  %v6860_v1 = vsel %vm6705_vm3, 0, %v697_v48  ;;  %v2102_v12 = vrot.slane %v962_v50, 1  ;;  %6223 = vmatprep.mubr.msk.bf16.mxu0 %vm174_vm0, %v117_v25 }
  0xfc   :  { %v6878_v9 = vcombine.high %v6860_v1, %v6860_v1  ;;  %v6882_v10 = vcombine.low %v6860_v1, %v6860_v1  ;;  %v2099_v16 = vrot.slane %v6860_v1, 1  ;;  %v1378_v21 = vshrl.u32 %v962_v50, 16  ;;  %6224 = vmatmul.mubr.msk.bf16.gmra.mxu0 %vm174_vm0, %v118_v37 }
  0xfd   :  { %1253 = vst.msk [vmem:[#allocation2 + $0x68] sm:$0xf] %vm1239_vm4, %v6852_v56  ;;  %1252 = vst.msk [vmem:[#allocation2 + $0x60] sm:$0xf] %vm1239_vm4, %v6854_v57  ;;  %v2104_v20 = vsel %vm2083_vm5, %v2102_v12, %v2103_v53  ;;  %v1380_v22 = vshll.u32 %v962_v50, 16  ;;  %v630_v31 = vpack.c.bf16 %v573_v13, %v572_v11  ;;  %v1387_v32 = vrot.slane %v1385_v0, 1  ;;  %v6213_v50 = vpop.f32.mrf.mxu0 }
  0xfe   :  { %2574 = vrot.lane.b32.xlu0 %v6765_v61, %s6517_s23  ;;  %1811 = vrot.lane.b32.xlu1 %v6828_v38, %s6521_s27  ;;  %v575_v61 = vmax.f32 %v365_v51, 0.0  ;;  %1251 = vst.msk [vmem:[#allocation2 + $0x58] sm:$0xf] %vm1239_vm4, %v6878_v9  ;;  %1250 = vst.msk [vmem:[#allocation2 + $0x50] sm:$0xf] %vm1239_vm4, %v6882_v10  ;;  %v6897_v26 = vcombine.high %v2104_v20, %v2104_v20  ;;  %v6899_v27 = vcombine.low %v2104_v20, %v2104_v20 }
  0xff   :  { %v2101_v34 = vsel %vm2083_vm5, %v2099_v16, %v2100_v17  ;;  %v1382_v35 = vrot.slane %v1380_v22, 1  ;;  %v706_v41 = vshrl.u32 %v630_v31, 16  ;;  %v709_v42 = vshll.u32 %v630_v31, 16  ;;  %v6940_v11 = vpop.f32.mrf.mxu0 }
 0x100   :  { %v631_v30 = vpack.c.bf16 %v575_v61, %v574_v3  ;;  %3954 = vst.msk [vmem:[#allocation2 + $0x4c] sm:$0xf] %vm1239_vm4, %v6897_v26  ;;  %3953 = vst.msk [vmem:[#allocation2 + $0x44] sm:$0xf] %vm1239_vm4, %v6899_v27  ;;  %v6911_v43 = vcombine.high %v1328_v45, %v1328_v45  ;;  %v6913_v44 = vcombine.high %v2101_v34, %v2101_v34  ;;  %v1373_v51 = vshll.u32 %v6850_v55, 16 }
 0x101   :  { %v6915_v48 = vcombine.low %v2101_v34, %v2101_v34  ;;  %v1383_v49 = vor.u32 %v1382_v35, %v1378_v21  ;;  %v708_v53 = vrot.slane %v706_v41, 7  ;;  %v1368_v0 = vshll.u32 %v6860_v1, 16  ;;  %v6214_v25 = vpop.f32.mrf.mxu0 }
 0x102   :  { %3391 = vrot.lane.b32.xlu1 %v6769_v62, %s6522_s28  ;;  %1805 = vrot.lane.b32.xlu0 %v6856_v58, %s6521_s27  ;;  %v713_v39 = vshrl.u32 %v631_v30, 16  ;;  %v716_v40 = vshll.u32 %v631_v30, 16  ;;  %10871 = vst [vmem:[#allocation10_spill] sm:$0xff] %v6911_v43  ;;  %3952 = vst.msk [vmem:[#allocation2 + $0x3c] sm:$0xf] %vm1239_vm4, %v6913_v44  ;;  %v6933_v55 = vcombine.low %v6722_v29, %v6722_v29  ;;  %v1375_v13 = vrot.slane %v1373_v51, 1 }
 0x103   :  { %3951 = vst.msk [vmem:[#allocation2 + $0x34] sm:$0xf] %vm1239_vm4, %v6915_v48  ;;  %v6929_v45 = vsel %vm1304_vm6, %v1383_v49, %v1387_v32  ;;  %v711_v7 = vor.u32 %v709_v42, %v708_v53  ;;  %v1370_v61 = vrot.slane %v1368_v0, 1  ;;  %v6948_v16 = vcombine.high %v6722_v29, %v6722_v29 }
 0x104   :  { %v715_v52 = vrot.slane %v713_v39, 7  ;;  %10872 = vst [vmem:[#allocation11_spill] sm:$0xff] %v6933_v55  ;;  %1242 = vst.msk [vmem:[#allocation2 + $0x10] sm:$0xf] %vm1239_vm4, %v6933_v55  ;;  %v378_v22 = vadd.f32 %v6213_v50, %v6698_v47  ;;  %v6983_v30 = vsel %vm6705_vm3, %v708_v53, 0  ;;  %v381_v34 = vadd.f32 %v6214_v25, %v6698_v47 }
 0x105   :  { %v6964_v18 = vsel %vm6705_vm3, 0, %v711_v7  ;;  %1243 = vst.msk [vmem:[#allocation2 + $0x18] sm:$0xf] %vm1239_vm4, %v6948_v16  ;;  %v1361_v35 = vshll.u32 %v6740_v46, 16  ;;  %v1356_v37 = vshll.u32 %v6750_v54, 16  ;;  %v2106_v46 = vrot.slane %v6983_v30, 1 }
 0x106   :  { %2576 = vrot.lane.b32.xlu1 %v6769_v62, %s6517_s23  ;;  %1807 = vrot.lane.b32.xlu0 %v6911_v43, %s6521_s27  ;;  %v718_v3 = vor.u32 %v716_v40, %v715_v52  ;;  %v1366_v62 = vshrl.u32 %v6860_v1, 16  ;;  %v997_v8 = vsel %vm6705_vm3, %v715_v52, 0  ;;  %v6970_v20 = vcombine.high %v6964_v18, %v6964_v18 }
 0x107   :  { %v2109_v29 = vrot.slane %v997_v8, 1  ;;  %v6974_v21 = vcombine.low %v6964_v18, %v6964_v18  ;;  %v578_v39 = vmax.f32 %v378_v22, 0.0  ;;  %v1409_v40 = vshll.u32 %v997_v8, 16  ;;  %v6358_v22 = vld [vmem:[%s10822_s3 + $0x30] sm:$0xff]  }
 0x108   :  { %v6944_v12 = vsel %vm6705_vm3, 0, %v718_v3  ;;  %v1371_v19 = vor.u32 %v1370_v61, %v1366_v62  ;;  %1255 = vst.msk [vmem:[#allocation2 + $0x78] sm:$0xf] %vm1239_vm4, %v6970_v20  ;;  %v579_v42 = vmax.f32 %v381_v34, 0.0  ;;  %v2105_v49 = vrot.slane %v6964_v18, 1 }
 0x109   :  { %v6956_v1 = vcombine.high %v6944_v12, %v6944_v12  ;;  %v6960_v17 = vcombine.low %v6944_v12, %v6944_v12  ;;  %1254 = vst.msk [vmem:[#allocation2 + $0x70] sm:$0xf] %vm1239_vm4, %v6974_v21  ;;  %v2108_v32 = vrot.slane %v6944_v12, 1  ;;  %v10831_v53 = vmov 0  }
 0x10a   :  { %3387 = vrot.lane.b32.xlu1 %v6788_v5, %s6522_s28  ;;  %3385 = vrot.lane.b32.xlu0 %v6792_v6, %s6522_s28  ;;  %v6986_v31 = vsel %vm1304_vm6, %v1371_v19, %v1375_v13  ;;  %v633_v52 = vpack.c.bf16 %v579_v42, %v578_v39  ;;  %v1402_v0 = vshrl.u32 %v6944_v12, 16  ;;  %v1404_v3 = vshll.u32 %v6944_v12, 16 }
 0x10b   :  { %1257 = vst.msk [vmem:[#allocation2 + $0x88] sm:$0xf] %vm1239_vm4, %v6956_v1  ;;  %1256 = vst.msk [vmem:[#allocation2 + $0x80] sm:$0xf] %vm1239_vm4, %v6960_v17  ;;  %v2110_v41 = vsel %vm2083_vm5, %v2108_v32, %v2109_v29  ;;  %6325 = vmatprep.subr.bf16.mxu1 %v10831_v53  ;;  %4537 = vmatprep.subr.bf16.mxu0 %v10831_v53  ;;  %v1358_v7 = vrot.slane %v1356_v37, 1  ;;  %v1411_v62 = vrot.slane %v1409_v40, 1  ;;  %v372_v40 = vpop.f32.mrf.mxu0 }
 0x10c   :  { %v7002_v50 = vcombine.high %v2110_v41, %v2110_v41  ;;  %v7004_v51 = vcombine.low %v2110_v41, %v2110_v41  ;;  %v1397_v8 = vshll.u32 %v6983_v30, 16  ;;  %v727_v61 = vshrl.u32 %v633_v52, 16  ;;  %6351 = vset.pattern.permute.xlu1 %v10831_v53  ;;  %6352 = vset.pattern.permute.xlu0 %v10831_v53 }
 0x10d   :  { %v1406_v19 = vrot.slane %v1404_v3, 1  ;;  %v730_v25 = vshll.u32 %v633_v52, 16  ;;  %v1392_v32 = vshll.u32 %v6964_v18, 16  ;;  %v1390_v34 = vshrl.u32 %v6964_v18, 16 }
 0x10e   :  { %2572 = vrot.lane.b32.xlu1 %v6788_v5, %s6517_s23  ;;  %2570 = vrot.lane.b32.xlu0 %v6792_v6, %s6517_s23  ;;  %v1354_v5 = vshrl.u32 %v6750_v54, 16  ;;  %v6357_v6 = vld [vmem:[%s10822_s3 + $0x38] sm:$0xff]   ;;  %3958 = vst.msk [vmem:[#allocation2 + $0x6c] sm:$0xf] %vm1239_vm4, %v7002_v50  ;;  %3957 = vst.msk [vmem:[#allocation2 + $0x64] sm:$0xf] %vm1239_vm4, %v7004_v51  ;;  %v2107_v54 = vsel %vm2083_vm5, %v2105_v49, %v2106_v46  ;;  %v373_v46 = vadd.f32 %v6698_v47, %v372_v40 }
 0x10f   :  { %6334 = vmatpush1.bf16.msra.mxu1 %v6357_v6  ;;  %4538 = vmatpush1.bf16.msra.mxu0 %v6357_v6  ;;  %v7025_v13 = vcombine.high %v2107_v54, %v2107_v54  ;;  %v7027_v29 = vcombine.low %v2107_v54, %v2107_v54  ;;  %v7034_v12 = vrot.slane %v727_v61, 7  ;;  %v1407_v30 = vor.u32 %v1406_v19, %v1402_v0  ;;  %v6362_v19 = vld [vmem:[%s10822_s3 + $0x10] sm:$0xff]   ;;  %v6364_v40 = vld [vmem:[%s10822_s3] sm:$0xff]  }
 0x110   :  { %6326 = vmatprep.subr.bf16.mxu1 %v10831_v53  ;;  %4539 = vmatprep.subr.bf16.mxu0 %v10831_v53  ;;  %v1363_v37 = vrot.slane %v1361_v35, 1  ;;  %v1359_v39 = vor.u32 %v1358_v7, %v1354_v5  ;;  %v1394_v42 = vrot.slane %v1392_v32, 1  ;;  %v1399_v49 = vrot.slane %v1397_v8, 1 }
 0x111   :  { %3956 = vst.msk [vmem:[#allocation2 + $0x5c] sm:$0xf] %vm1239_vm4, %v7025_v13  ;;  %3955 = vst.msk [vmem:[#allocation2 + $0x54] sm:$0xf] %vm1239_vm4, %v7027_v29  ;;  %v7055_v41 = vsel %vm1304_vm6, %v1407_v30, %v1411_v62  ;;  %v370_v35 = vadd.f32 %v6698_v47, %v6940_v11  ;;  %v6360_v11 = vld [vmem:[%s10822_s3 + $0x20] sm:$0xff]   ;;  %v577_v8 = vmax.f32 %v373_v46, 0.0 }
 0x112   :  { %3138 = vrot.lane.b32.xlu1 %v6801_v14, %s6518_s24  ;;  %3136 = vrot.lane.b32.xlu0 %v6803_v15, %s6518_s24  ;;  %v1395_v18 = vor.u32 %v1394_v42, %v1390_v34  ;;  %v1364_v5 = vsel %vm1304_vm6, %v1359_v39, %v1363_v37  ;;  %v6363_v34 = vld [vmem:[%s10822_s3 + $0x8] sm:$0xff]   ;;  %v999_v42 = vsel %vm6705_vm3, %v7034_v12, 0 }
 0x113   :  { %6335 = vmatpush1.bf16.msra.mxu1 %v6358_v22  ;;  %4540 = vmatpush1.bf16.msra.mxu0 %v6358_v22  ;;  %v5847_v3 = vcombine.high %v1364_v5, %v1364_v5  ;;  %v5846_v7 = vcombine.low %v1364_v5, %v1364_v5  ;;  %v576_v62 = vmax.f32 %v370_v35, 0.0  ;;  %v1349_v22 = vshll.u32 %v6759_v59, 16 }
 0x114   :  { %6327 = vmatprep.subr.bf16.mxu1 %v10831_v53  ;;  %4541 = vmatprep.subr.bf16.mxu0 %v10831_v53  ;;  %v7072_v6 = vsel %vm1304_vm6, %v1395_v18, %v1399_v49  ;;  %v1433_v35 = vshll.u32 %v999_v42, 16 }
 0x115   :  { %v632_v61 = vpack.c.bf16 %v577_v8, %v576_v62  ;;  %v1351_v59 = vrot.slane %v1349_v22, 1  ;;  %v72_v62 = vld [vmem:[%s10820_s0 + $0x108] sm:$0xff] }
 0x116   :  { %2319 = vrot.lane.b32.xlu1 %v6801_v14, %s6519_s25  ;;  %2317 = vrot.lane.b32.xlu0 %v6803_v15, %s6519_s25  ;;  %v6359_v14 = vld [vmem:[%s10822_s3 + $0x28] sm:$0xff]   ;;  %v732_v15 = vor.u32 %v730_v25, %v7034_v12  ;;  %v1342_v25 = vshrl.u32 %v6775_v63, 16 }
 0x117   :  { %6336 = vmatpush1.bf16.msra.mxu1 %v6359_v14  ;;  %4542 = vmatpush1.bf16.msra.mxu0 %v6359_v14  ;;  %v720_v32 = vshrl.u32 %v632_v61, 16 }
 0x118   :  { %6328 = vmatprep.subr.bf16.mxu1 %v10831_v53  ;;  %4543 = vmatprep.subr.bf16.mxu0 %v10831_v53  ;;  %v7069_v52 = vsel %vm6705_vm3, 0, %v732_v15 }
 0x119   :  { %v7083_v54 = vcombine.high %v7069_v52, %v7069_v52  ;;  %v7087_v0 = vcombine.low %v7069_v52, %v7069_v52  ;;  %v722_v39 = vrot.slane %v720_v32, 7  ;;  %v2114_v32 = vrot.slane %v7069_v52, 1 }
 0x11a   :  { %3134 = vrot.lane.b32.xlu1 %v6824_v36, %s6518_s24  ;;  %3132 = vrot.lane.b32.xlu0 %v6826_v33, %s6518_s24 }
 0x11b   :  { %6337 = vmatpush1.bf16.msra.mxu1 %v6360_v11  ;;  %1261 = vst.msk [vmem:[#allocation2 + $0xa8] sm:$0xf] %vm1239_vm4, %v7083_v54  ;;  %1260 = vst.msk [vmem:[#allocation2 + $0xa0] sm:$0xf] %vm1239_vm4, %v7087_v0  ;;  %4544 = vmatpush1.bf16.msra.mxu0 %v6360_v11  ;;  %v998_v5 = vsel %vm6705_vm3, %v722_v39, 0 }
 0x11c   :  { %6329 = vmatprep.subr.bf16.mxu1 %v10831_v53  ;;  %4545 = vmatprep.subr.bf16.mxu0 %v10831_v53  ;;  %v1421_v8 = vshll.u32 %v998_v5, 16 }
 0x11e   :  { %2315 = vrot.lane.b32.xlu1 %v6824_v36, %s6519_s25  ;;  %2313 = vrot.lane.b32.xlu0 %v6826_v33, %s6519_s25  ;;  %v6361_v36 = vld [vmem:[%s10822_s3 + $0x18] sm:$0xff]   ;;  %v1344_v33 = vshll.u32 %v6775_v63, 16  ;;  %v723_v63 = vshll.u32 %v632_v61, 16  ;;  %v73_v61 = vld [vmem:[%s10820_s0 + $0x110] sm:$0xff] }
 0x11f   :  { %6338 = vmatpush1.bf16.msra.mxu1 %v6361_v36  ;;  %4546 = vmatpush1.bf16.msra.mxu0 %v6361_v36  ;;  %v2112_v36 = vrot.slane %v998_v5, 1 }
 0x120   :  { %6330 = vmatprep.subr.bf16.mxu1 %v10831_v53  ;;  %4547 = vmatprep.subr.bf16.mxu0 %v10831_v53  ;;  %v1346_v30 = vrot.slane %v1344_v33, 1  ;;  %v725_v15 = vor.u32 %v723_v63, %v722_v39  ;;  %v6217_v39 = vpop.f32.mrf.mxu0 }
 0x122   :  { %3642 = vrot.lane.b32.xlu1 %v5847_v3, %s6524_s14  ;;  %3640 = vrot.lane.b32.xlu0 %v5846_v7, %s6524_s14  ;;  %v1347_v37 = vor.u32 %v1346_v30, %v1342_v25  ;;  %v965_v46 = vsel %vm6705_vm3, 0, %v725_v15  ;;  %v1435_v25 = vrot.slane %v1433_v35, 1  ;;  %v1423_v15 = vrot.slane %v1421_v8, 1  ;;  %v385_v5 = vpop.f32.mrf.mxu0 }
 0x123   :  { %6339 = vmatpush1.bf16.msra.mxu1 %v6362_v19  ;;  %4548 = vmatpush1.bf16.msra.mxu0 %v6362_v19  ;;  %v7144_v12 = vcombine.high %v965_v46, %v965_v46  ;;  %v7146_v11 = vcombine.low %v965_v46, %v965_v46  ;;  %v74_v19 = vld [vmem:[%s10820_s0 + $0x118] sm:$0xff]  ;;  %v1416_v22 = vshll.u32 %v965_v46, 16  ;;  %v1414_v63 = vshrl.u32 %v965_v46, 16 }
 0x124   :  { %6331 = vmatprep.subr.bf16.mxu1 %v10831_v53  ;;  %4549 = vmatprep.subr.bf16.mxu0 %v10831_v53  ;;  %v1352_v14 = vsel %vm1304_vm6, %v1347_v37, %v1351_v59  ;;  %v120_v30 = vpack.c.bf16 %v74_v19, %v73_v61  ;;  %v1426_v37 = vshrl.u32 %v7069_v52, 16 }
 0x125   :  { %v5845_v49 = vcombine.high %v1352_v14, %v1352_v14  ;;  %v5844_v18 = vcombine.low %v1352_v14, %v1352_v14  ;;  %1259 = vst.msk [vmem:[#allocation2 + $0x98] sm:$0xf] %vm1239_vm4, %v7144_v12  ;;  %1258 = vst.msk [vmem:[#allocation2 + $0x90] sm:$0xf] %vm1239_vm4, %v7146_v11  ;;  %v1418_v14 = vrot.slane %v1416_v22, 1 }
 0x126   :  { %2865 = vrot.lane.b32.xlu1 %v5847_v3, %s6520_s26  ;;  %2863 = vrot.lane.b32.xlu0 %v5846_v7, %s6520_s26 }
 0x127   :  { %6340 = vmatpush1.bf16.msra.mxu1 %v6363_v34  ;;  %4550 = vmatpush1.bf16.msra.mxu0 %v6363_v34  ;;  %v2111_v34 = vrot.slane %v965_v46, 1  ;;  %v394_v46 = vadd.f32 %v6217_v39, %v6698_v47  ;;  %v1419_v8 = vor.u32 %v1418_v14, %v1414_v63  ;;  %v5851_v14 = vcombine.high %v6929_v45, %v6929_v45 }
 0x128   :  { %6332 = vmatprep.subr.bf16.mxu1 %v10831_v53  ;;  %4551 = vmatprep.subr.bf16.mxu0 %v10831_v53 }
 0x12a   :  { %1819 = vrot.lane.b32.xlu1 %v5847_v3, %s6521_s27  ;;  %1817 = vrot.lane.b32.xlu0 %v5846_v7, %s6521_s27  ;;  %v2115_v3 = vrot.slane %v999_v42, 1  ;;  %v71_v7 = vld [vmem:[%s10820_s0 + $0x100] sm:$0xff]  ;;  %v2113_v42 = vsel %vm2083_vm5, %v2111_v34, %v2112_v36 }
 0x12b   :  { %6341 = vmatpush1.bf16.msra.mxu1 %v6364_v40  ;;  %4552 = vmatpush1.bf16.msra.mxu0 %v6364_v40  ;;  %v119_v33 = vpack.c.bf16 %v72_v62, %v71_v7  ;;  %v7180_v7 = vcombine.low %v2113_v42, %v2113_v42 }
 0x12c   :  { %6333 = vmatprep.subr.bf16.mxu1 %v10831_v53  ;;  %4567 = vmatprep.subr.bf16.mxu0 %v10831_v53  ;;  %v2116_v40 = vsel %vm2083_vm5, %v2114_v32, %v2115_v3  ;;  %v6218_v3 = vpop.f32.mrf.mxu0 }
 0x12d   :  { %6227 = vmatprep.mubr.msk.bf16.mxu0 %vm174_vm0, %v119_v33  ;;  %3959 = vst.msk [vmem:[#allocation2 + $0x74] sm:$0xf] %vm1239_vm4, %v7180_v7  ;;  %v397_v36 = vadd.f32 %v6218_v3, %v6698_v47  ;;  %v7198_v33 = vsel %vm1304_vm6, %v1419_v8, %v1423_v15 }
 0x12e   :  { %3399 = vrot.lane.b32.xlu1 %v6852_v56, %s6522_s28  ;;  %3397 = vrot.lane.b32.xlu0 %v6854_v57, %s6522_s28  ;;  %v388_v22 = vpop.f32.mrf.mxu0 }
 0x12f   :  { %6228 = vmatmul.mubr.msk.bf16.gmra.mxu0 %vm174_vm0, %v120_v30 }
 0x130   :  { %v7323_v28 = vpop.f32.mrf.mxu0 }
 0x132   :  { %2584 = vrot.lane.b32.xlu1 %v6852_v56, %s6517_s23  ;;  %2582 = vrot.lane.b32.xlu0 %v6854_v57, %s6517_s23  ;;  %v1428_v56 = vshll.u32 %v7069_v52, 16  ;;  %v6365_v57 = vld [vmem:[%s10822_s3 + $0x40] sm:$0xff]   ;;  %v7176_v52 = vcombine.low %v2116_v40, %v2116_v40 }
 0x133   :  { %6342 = vmatpush2.bf16.msra.mxu1 %v6365_v57  ;;  %4568 = vmatpush2.bf16.msra.mxu0 %v6365_v57  ;;  %v7174_v57 = vcombine.high %v2116_v40, %v2116_v40 }
 0x134   :  { %v1430_v59 = vrot.slane %v1428_v56, 1  ;;  %v7178_v56 = vcombine.high %v2113_v42, %v2113_v42  ;;  %3961 = vst.msk [vmem:[#allocation2 + $0x84] sm:$0xf] %vm1239_vm4, %v7176_v52 }
 0x135   :  { %3962 = vst.msk [vmem:[#allocation2 + $0x8c] sm:$0xf] %vm1239_vm4, %v7174_v57 }
 0x136   :  { %3638 = vrot.lane.b32.xlu1 %v5845_v49, %s6524_s14  ;;  %3636 = vrot.lane.b32.xlu0 %v5844_v18, %s6524_s14  ;;  %v1431_v35 = vor.u32 %v1430_v59, %v1426_v37  ;;  %3960 = vst.msk [vmem:[#allocation2 + $0x7c] sm:$0xf] %vm1239_vm4, %v7178_v56 }
 0x138   :  { %v7184_v62 = vsel %vm1304_vm6, %v1431_v35, %v1435_v25 }
 0x13a   :  { %2861 = vrot.lane.b32.xlu1 %v5845_v49, %s6520_s26  ;;  %2859 = vrot.lane.b32.xlu0 %v5844_v18, %s6520_s26 }
 0x13e   :  { %1815 = vrot.lane.b32.xlu1 %v5845_v49, %s6521_s27  ;;  %1813 = vrot.lane.b32.xlu0 %v5844_v18, %s6521_s27  ;;  %v582_v49 = vmax.f32 %v394_v46, 0.0  ;;  %v583_v18 = vmax.f32 %v397_v36, 0.0 }
 0x140   :  { %v635_v61 = vpack.c.bf16 %v583_v18, %v582_v49 }
 0x142   :  { %3395 = vrot.lane.b32.xlu1 %v6878_v9, %s6522_s28  ;;  %3393 = vrot.lane.b32.xlu0 %v6882_v10, %s6522_s28  ;;  %v741_v19 = vshrl.u32 %v635_v61, 16  ;;  %v744_v30 = vshll.u32 %v635_v61, 16 }
 0x144   :  { %v743_v25 = vrot.slane %v741_v19, 7 }
 0x146   :  { %2580 = vrot.lane.b32.xlu1 %v6878_v9, %s6517_s23  ;;  %2578 = vrot.lane.b32.xlu0 %v6882_v10, %s6517_s23  ;;  %v386_v9 = vadd.f32 %v6698_v47, %v385_v5  ;;  %v389_v10 = vadd.f32 %v6698_v47, %v388_v22  ;;  %v746_v32 = vor.u32 %v744_v30, %v743_v25  ;;  %v1001_v22 = vsel %vm6705_vm3, %v743_v25, 0 }
 0x147   :  { %v2121_v60 = vrot.slane %v1001_v22, 1 }
 0x148   :  { %v580_v34 = vmax.f32 %v386_v9, 0.0  ;;  %v581_v37 = vmax.f32 %v389_v10, 0.0  ;;  %v7224_v59 = vsel %vm6705_vm3, 0, %v746_v32  ;;  %v5849_v10 = vcombine.high %v6986_v31, %v6986_v31 }
 0x149   :  { %v7232_v47 = vcombine.high %v7224_v59, %v7224_v59  ;;  %v1457_v32 = vshll.u32 %v1001_v22, 16 }
 0x14a   :  { %3146 = vrot.lane.b32.xlu1 %v6897_v26, %s6518_s24  ;;  %3144 = vrot.lane.b32.xlu0 %v6899_v27, %s6518_s24  ;;  %v634_v39 = vpack.c.bf16 %v581_v37, %v580_v34  ;;  %v1452_v34 = vshll.u32 %v7224_v59, 16  ;;  %v75_v37 = vld [vmem:[%s10820_s0 + $0x120] sm:$0xff] }
 0x14b   :  { %1265 = vst.msk [vmem:[#allocation2 + $0xc8] sm:$0xf] %vm1239_vm4, %v7232_v47  ;;  %v1459_v53 = vrot.slane %v1457_v32, 1 }
 0x14c   :  { %v737_v42 = vshll.u32 %v634_v39, 16 }
 0x14e   :  { %2327 = vrot.lane.b32.xlu1 %v6897_v26, %s6519_s25  ;;  %2325 = vrot.lane.b32.xlu0 %v6899_v27, %s6519_s25  ;;  %v7236_v26 = vcombine.low %v7224_v59, %v7224_v59 }
 0x150   :  { %1264 = vst.msk [vmem:[#allocation2 + $0xc0] sm:$0xf] %vm1239_vm4, %v7236_v26 }
 0x152   :  { %3142 = vrot.lane.b32.xlu1 %v6913_v44, %s6518_s24  ;;  %3140 = vrot.lane.b32.xlu0 %v6915_v48, %s6518_s24 }
 0x156   :  { %2323 = vrot.lane.b32.xlu1 %v6913_v44, %s6519_s25  ;;  %2321 = vrot.lane.b32.xlu0 %v6915_v48, %s6519_s25  ;;  %v5850_v44 = vcombine.low %v6929_v45, %v6929_v45  ;;  %v734_v48 = vshrl.u32 %v634_v39, 16  ;;  %v76_v39 = vld [vmem:[%s10820_s0 + $0x128] sm:$0xff] }
 0x158   :  { %v7238_v27 = vpop.permute.xlu1 %2568  ;;  %v7240_v63 = vpop.permute.xlu0 %2566  ;;  %v736_v45 = vrot.slane %v734_v48, 7  ;;  %v78_v48 = vld [vmem:[%s10820_s0 + $0x138] sm:$0xff] }
 0x15a   :  { %3650 = vrot.lane.b32.xlu1 %v5851_v14, %s6524_s14  ;;  %3648 = vrot.lane.b32.xlu0 %v5850_v44, %s6524_s14  ;;  %v739_v46 = vor.u32 %v737_v42, %v736_v45  ;;  %v1000_v30 = vsel %vm6705_vm3, %v736_v45, 0 }
 0x15b   :  { %v1445_v42 = vshll.u32 %v1000_v30, 16 }
 0x15c   :  { %v7252_v15 = vpop.permute.xlu1 %3130  ;;  %v7254_v40 = vpop.permute.xlu0 %3128  ;;  %v967_v36 = vsel %vm6705_vm3, 0, %v739_v46 }
 0x15d   :  { %v7272_v61 = vcombine.high %v967_v36, %v967_v36  ;;  %v7274_v19 = vcombine.low %v967_v36, %v967_v36  ;;  %v2117_v45 = vrot.slane %v967_v36, 1  ;;  %v1438_v22 = vshrl.u32 %v967_v36, 16 }
 0x15e   :  { %2873 = vrot.lane.b32.xlu1 %v5851_v14, %s6520_s26  ;;  %2871 = vrot.lane.b32.xlu0 %v5850_v44, %s6520_s26 }
 0x15f   :  { %1263 = vst.msk [vmem:[#allocation2 + $0xb8] sm:$0xf] %vm1239_vm4, %v7272_v61  ;;  %1262 = vst.msk [vmem:[#allocation2 + $0xb0] sm:$0xf] %vm1239_vm4, %v7274_v19 }
 0x160   :  { %v2312_v35 = vpop.permute.xlu1 %2311  ;;  %v2310_v5 = vpop.permute.xlu0 %2309 }
 0x162   :  { %1827 = vrot.lane.b32.xlu1 %v5851_v14, %s6521_s27  ;;  %1825 = vrot.lane.b32.xlu0 %v5850_v44, %s6521_s27  ;;  %v77_v14 = vld [vmem:[%s10820_s0 + $0x130] sm:$0xff]  ;;  %v121_v44 = vpack.c.bf16 %v76_v39, %v75_v37 }
 0x164   :  { %v7260_v8 = vpop.permute.xlu0 %2855  ;;  %v7262_v3 = vpop.permute.xlu1 %2305  ;;  %6231 = vmatprep.mubr.msk.bf16.mxu0 %vm174_vm0, %v121_v44  ;;  %v1447_v44 = vrot.slane %v1445_v42, 1 }
 0x166   :  { %3407 = vrot.lane.b32.xlu1 %v6956_v1, %s6522_s28  ;;  %3405 = vrot.lane.b32.xlu0 %v6960_v17, %s6522_s28 }
 0x168   :  { %v1810_v49 = vpop.permute.xlu0 %1809  ;;  %v7270_v18 = vpop.permute.xlu1 %2307 }
 0x169   :  { %1992 = vst.msk [vmem:[#allocation2 + $0x20] sm:$0xf] %vm1987_vm7, %v1810_v49 }
 0x16a   :  { %2592 = vrot.lane.b32.xlu1 %v6956_v1, %s6517_s23  ;;  %2590 = vrot.lane.b32.xlu0 %v6960_v17, %s6517_s23  ;;  %2492 = vst.msk [vmem:[#allocation2 + $0x20] sm:$0xf] %vm2487_vm8, %v2310_v5  ;;  %v5848_v1 = vcombine.low %v6986_v31, %v6986_v31  ;;  %v2118_v17 = vrot.slane %v1000_v30, 1  ;;  %v1440_v31 = vshll.u32 %v967_v36, 16  ;;  %v122_v5 = vpack.c.bf16 %v78_v48, %v77_v14 }
 0x16b   :  { %v1450_v30 = vshrl.u32 %v7224_v59, 16  ;;  %v1454_v14 = vrot.slane %v1452_v34, 1 }
 0x16c   :  { %v7290_v9 = vpop.permute.xlu0 %3389  ;;  %v7292_v25 = vpop.permute.xlu1 %2857  ;;  %v2119_v38 = vsel %vm2083_vm5, %v2117_v45, %v2118_v17  ;;  %6232 = vmatmul.mubr.msk.bf16.gmra.mxu0 %vm174_vm0, %v122_v5  ;;  %v1442_v32 = vrot.slane %v1440_v31, 1  ;;  %v2120_v17 = vrot.slane %v7224_v59, 1  ;;  %v7341_v59 = vld [vmem:[%s10821_s2] ss:$0 sm:$0xff] }
 0x16d   :  { %v7319_v37 = vcombine.high %v2119_v38, %v2119_v38  ;;  %v7321_v39 = vcombine.low %v2119_v38, %v2119_v38  ;;  %v401_v38 = vpop.f32.mrf.mxu0  ;;  %v1455_v48 = vor.u32 %v1454_v14, %v1450_v30 }
 0x16e   :  { %3646 = vrot.lane.b32.xlu1 %v5849_v10, %s6524_s14  ;;  %3644 = vrot.lane.b32.xlu0 %v5848_v1, %s6524_s14  ;;  %v1443_v5 = vor.u32 %v1442_v32, %v1438_v22  ;;  %v402_v36 = vadd.f32 %v7341_v59, %v401_v38 }
 0x16f   :  { %3964 = vst.msk [vmem:[#allocation2 + $0x9c] sm:$0xf] %vm1239_vm4, %v7319_v37  ;;  %3963 = vst.msk [vmem:[#allocation2 + $0x94] sm:$0xf] %vm1239_vm4, %v7321_v39  ;;  %v7345_v31 = vsel %vm1304_vm6, %v1455_v48, %v1459_v53  ;;  %v6222_v42 = vpop.f32.mrf.mxu0  ;;  %v410_v48 = vadd.f32 %v7341_v59, %v7323_v28 }
 0x170   :  { %v7313_v46 = vpop.permute.xlu0 %2574  ;;  %v1812_v49 = vpop.permute.xlu1 %1811  ;;  %v7358_v53 = vsel %vm1304_vm6, %v1443_v5, %v1447_v44 }
 0x171   :  { %1993 = vst.msk [vmem:[#allocation2 + $0x28] sm:$0xf] %vm1987_vm7, %v1812_v49  ;;  %v586_v28 = vmax.f32 %v410_v48, 0.0 }
 0x172   :  { %2869 = vrot.lane.b32.xlu1 %v5849_v10, %s6520_s26  ;;  %2867 = vrot.lane.b32.xlu0 %v5848_v1, %s6520_s26  ;;  %2493 = vst.msk [vmem:[#allocation2 + $0x28] sm:$0xf] %vm2487_vm8, %v2312_v35  ;;  %v2122_v35 = vsel %vm2083_vm5, %v2120_v17, %v2121_v60  ;;  %v404_v60 = vpop.f32.mrf.mxu0 }
 0x173   :  { %v7347_v49 = vcombine.high %v2122_v35, %v2122_v35  ;;  %v7349_v30 = vcombine.low %v2122_v35, %v2122_v35 }
 0x174   :  { %v7334_v34 = vpop.permute.xlu1 %3391  ;;  %v1806_v45 = vpop.permute.xlu0 %1805 }
 0x175   :  { %1990 = vst.msk [vmem:[#allocation2 + $0x10] sm:$0xf] %vm1987_vm7, %v1806_v45  ;;  %v413_v45 = vadd.f32 %v7341_v59, %v6222_v42  ;;  %v5855_v42 = vcombine.high %v7055_v41, %v7055_v41 }
 0x176   :  { %2490 = vst.msk [vmem:[#allocation2 + $0x10] sm:$0xf] %vm2487_vm8, %v7262_v3  ;;  %1823 = vrot.lane.b32.xlu1 %v5849_v10, %s6521_s27  ;;  %1821 = vrot.lane.b32.xlu0 %v5848_v1, %s6521_s27  ;;  %v405_v10 = vadd.f32 %v7341_v59, %v404_v60 }
 0x177   :  { %2757 = vst.msk [vmem:[#allocation2 + $0x10] sm:$0xf] %vm2754_vm9, %v7240_v63  ;;  %v584_v63 = vmax.f32 %v402_v36, 0.0  ;;  %v587_v36 = vmax.f32 %v413_v45, 0.0 }
 0x178   :  { %3966 = vst.msk [vmem:[#allocation2 + $0xac] sm:$0xf] %vm1239_vm4, %v7347_v49  ;;  %3965 = vst.msk [vmem:[#allocation2 + $0xa4] sm:$0xf] %vm1239_vm4, %v7349_v30  ;;  %v7364_v14 = vpop.permute.xlu1 %2576  ;;  %v1808_v3 = vpop.permute.xlu0 %1807  ;;  %v585_v1 = vmax.f32 %v405_v10, 0.0  ;;  %v5854_v10 = vcombine.low %v7055_v41, %v7055_v41 }
 0x179   :  { %3046 = vst.msk [vmem:[#allocation2 + $0x10] sm:$0xf] %vm3043_vm10, %v7260_v8 }
 0x17a   :  { %1991 = vst.msk [vmem:[#allocation2 + $0x18] sm:$0xf] %vm1987_vm7, %v1808_v3  ;;  %3403 = vrot.lane.b32.xlu1 %v6970_v20, %s6522_s28  ;;  %3401 = vrot.lane.b32.xlu0 %v6974_v21, %s6522_s28 }
 0x17b   :  { %3319 = vst.msk [vmem:[#allocation2 + $0x10] sm:$0xf] %vm3316_vm11, %v7254_v40 }
 0x17c   :  { %2491 = vst.msk [vmem:[#allocation2 + $0x18] sm:$0xf] %vm2487_vm8, %v7270_v18  ;;  %v3388_v8 = vpop.permute.xlu1 %3387  ;;  %v3386_v40 = vpop.permute.xlu0 %3385  ;;  %v636_v18 = vpack.c.bf16 %v585_v1, %v584_v63 }
 0x17d   :  { %2758 = vst.msk [vmem:[#allocation2 + $0x18] sm:$0xf] %vm2754_vm9, %v7238_v27 }
 0x17e   :  { %3047 = vst.msk [vmem:[#allocation2 + $0x18] sm:$0xf] %vm3043_vm10, %v7292_v25  ;;  %2588 = vrot.lane.b32.xlu1 %v6970_v20, %s6517_s23  ;;  %2586 = vrot.lane.b32.xlu0 %v6974_v21, %s6517_s23  ;;  %v748_v25 = vshrl.u32 %v636_v18, 16  ;;  %v751_v17 = vshll.u32 %v636_v18, 16 }
 0x17f   :  { %3320 = vst.msk [vmem:[#allocation2 + $0x18] sm:$0xf] %vm3316_vm11, %v7252_v15 }
 0x180   :  { %3570 = vst.msk [vmem:[#allocation2 + $0x10] sm:$0xf] %vm3567_vm12, %v3386_v40  ;;  %3571 = vst.msk [vmem:[#allocation2 + $0x18] sm:$0xf] %vm3567_vm12, %v3388_v8  ;;  %v2573_v27 = vpop.permute.xlu1 %2572  ;;  %v2571_v22 = vpop.permute.xlu0 %2570  ;;  %v750_v20 = vrot.slane %v748_v25, 7 }
 0x181   :  { %2760 = vst.msk [vmem:[#allocation2 + $0x28] sm:$0xf] %vm2754_vm9, %v2573_v27  ;;  %2759 = vst.msk [vmem:[#allocation2 + $0x20] sm:$0xf] %vm2754_vm9, %v2571_v22 }
 0x182   :  { %3154 = vrot.lane.b32.xlu1 %v7002_v50, %s6518_s24  ;;  %3152 = vrot.lane.b32.xlu0 %v7004_v51, %s6518_s24  ;;  %v753_v38 = vor.u32 %v751_v17, %v750_v20  ;;  %v7421_v35 = vsel %vm6705_vm3, %v750_v20, 0 }
 0x183   :  { %v1469_v1 = vshll.u32 %v7421_v35, 16 }
 0x184   :  { %v7396_v15 = vpop.permute.xlu1 %3138  ;;  %v7398_v32 = vpop.permute.xlu0 %3136 }
 0x185   :  { %v1471_v18 = vrot.slane %v1469_v1, 1 }
 0x186   :  { %2335 = vrot.lane.b32.xlu1 %v7002_v50, %s6519_s25  ;;  %2333 = vrot.lane.b32.xlu0 %v7004_v51, %s6519_s25  ;;  %v7417_v51 = vsel %vm6705_vm3, 0, %v753_v38 }
 0x187   :  { %v1464_v63 = vshll.u32 %v7417_v51, 16  ;;  %v7447_v8 = vcombine.low %v7417_v51, %v7417_v51  ;;  %v1462_v27 = vshrl.u32 %v7417_v51, 16  ;;  %v2123_v24 = vrot.slane %v7417_v51, 1 }
 0x188   :  { %v2320_v21 = vpop.permute.xlu1 %2319  ;;  %v2318_v44 = vpop.permute.xlu0 %2317 }
 0x189   :  { %1266 = vst.msk [vmem:[#allocation2 + $0xd0] sm:$0xf] %vm1239_vm4, %v7447_v8  ;;  %v1466_v22 = vrot.slane %v1464_v63, 1 }
 0x18a   :  { %3150 = vrot.lane.b32.xlu1 %v7025_v13, %s6518_s24  ;;  %3148 = vrot.lane.b32.xlu0 %v7027_v29, %s6518_s24 }
 0x18b   :  { %v1467_v20 = vor.u32 %v1466_v22, %v1462_v27  ;;  %v5853_v27 = vcombine.high %v7072_v6, %v7072_v6  ;;  %v5852_v22 = vcombine.low %v7072_v6, %v7072_v6  ;;  %v2124_v6 = vrot.slane %v7421_v35, 1 }
 0x18c   :  { %v7411_v5 = vpop.permute.xlu1 %3134  ;;  %v7413_v50 = vpop.permute.xlu0 %3132 }
 0x18d   :  { %v7463_v48 = vsel %vm1304_vm6, %v1467_v20, %v1471_v18  ;;  %v80_v20 = vld [vmem:[%s10820_s0 + $0x148] sm:$0xff] }
 0x18e   :  { %2331 = vrot.lane.b32.xlu1 %v7025_v13, %s6519_s25  ;;  %2329 = vrot.lane.b32.xlu0 %v7027_v29, %s6519_s25  ;;  %v7439_v13 = vcombine.high %v7417_v51, %v7417_v51  ;;  %v637_v29 = vpack.c.bf16 %v587_v36, %v586_v28  ;;  %v2125_v51 = vsel %vm2083_vm5, %v2123_v24, %v2124_v6 }
 0x18f   :  { %v5859_v6 = vcombine.high %v7184_v62, %v7184_v62 }
 0x190   :  { %v7429_v60 = vpop.permute.xlu1 %2315  ;;  %v7431_v3 = vpop.permute.xlu0 %2313  ;;  %1267 = vst.msk [vmem:[#allocation2 + $0xd8] sm:$0xf] %vm1239_vm4, %v7439_v13  ;;  %v755_v25 = vshrl.u32 %v637_v29, 16  ;;  %v758_v28 = vshll.u32 %v637_v29, 16 }
 0x192   :  { %3658 = vrot.lane.b32.xlu1 %v5855_v42, %s6524_s14  ;;  %3656 = vrot.lane.b32.xlu0 %v5854_v10, %s6524_s14  ;;  %v757_v45 = vrot.slane %v755_v25, 7 }
 0x194   :  { %v7449_v41 = vpop.permute.xlu1 %3642  ;;  %v7451_v40 = vpop.permute.xlu0 %3640 }
 0x196   :  { %2881 = vrot.lane.b32.xlu1 %v5855_v42, %s6520_s26  ;;  %2879 = vrot.lane.b32.xlu0 %v5854_v10, %s6520_s26 }
 0x198   :  { %v7458_v17 = vpop.permute.xlu1 %2865  ;;  %v7460_v38 = vpop.permute.xlu0 %2863 }
 0x19a   :  { %1835 = vrot.lane.b32.xlu1 %v5855_v42, %s6521_s27  ;;  %1833 = vrot.lane.b32.xlu0 %v5854_v10, %s6521_s27  ;;  %v760_v42 = vor.u32 %v758_v28, %v757_v45 }
 0x19c   :  { %v1820_v36 = vpop.permute.xlu1 %1819  ;;  %v1818_v63 = vpop.permute.xlu0 %1817 }
 0x19d   :  { %1997 = vst.msk [vmem:[#allocation2 + $0x48] sm:$0xf] %vm1987_vm7, %v1820_v36  ;;  %1996 = vst.msk [vmem:[#allocation2 + $0x40] sm:$0xf] %vm1987_vm7, %v1818_v63  ;;  %v82_v36 = vld [vmem:[%s10820_s0 + $0x158] sm:$0xff] }
 0x19e   :  { %2497 = vst.msk [vmem:[#allocation2 + $0x48] sm:$0xf] %vm2487_vm8, %v2320_v21  ;;  %2496 = vst.msk [vmem:[#allocation2 + $0x40] sm:$0xf] %vm2487_vm8, %v2318_v44  ;;  %3415 = vrot.lane.b32.xlu1 %v7083_v54, %s6522_s28  ;;  %3413 = vrot.lane.b32.xlu0 %v7087_v0, %s6522_s28  ;;  %v970_v21 = vsel %vm6705_vm3, 0, %v760_v42  ;;  %v1003_v44 = vsel %vm6705_vm3, %v757_v45, 0 }
 0x19f   :  { %v1481_v25 = vshll.u32 %v1003_v44, 16  ;;  %v81_v45 = vld [vmem:[%s10820_s0 + $0x150] sm:$0xff]  ;;  %v2127_v63 = vrot.slane %v1003_v44, 1  ;;  %v7512_v58 = vcombine.high %v970_v21, %v970_v21  ;;  %v7514_v43 = vcombine.low %v970_v21, %v970_v21 }
 0x1a0   :  { %v7475_v10 = vpop.permute.xlu1 %3399  ;;  %v7477_v1 = vpop.permute.xlu0 %3397  ;;  %v124_v42 = vpack.c.bf16 %v82_v36, %v81_v45  ;;  %v1474_v55 = vshrl.u32 %v970_v21, 16  ;;  %v5858_v36 = vcombine.low %v7184_v62, %v7184_v62 }
 0x1a1   :  { %v1483_v35 = vrot.slane %v1481_v25, 1  ;;  %1269 = vst.msk [vmem:[#allocation2 + $0xe8] sm:$0xf] %vm1239_vm4, %v7512_v58  ;;  %1268 = vst.msk [vmem:[#allocation2 + $0xe0] sm:$0xf] %vm1239_vm4, %v7514_v43 }
 0x1a2   :  { %2600 = vrot.lane.b32.xlu1 %v7083_v54, %s6517_s23  ;;  %2598 = vrot.lane.b32.xlu0 %v7087_v0, %s6517_s23  ;;  %v1476_v54 = vshll.u32 %v970_v21, 16  ;;  %v79_v0 = vld [vmem:[%s10820_s0 + $0x140] sm:$0xff] }
 0x1a3   :  { %v123_v28 = vpack.c.bf16 %v80_v20, %v79_v0  ;;  %v2126_v0 = vrot.slane %v970_v21, 1 }
 0x1a4   :  { %v7487_v29 = vpop.permute.xlu1 %2584  ;;  %v7489_v18 = vpop.permute.xlu0 %2582  ;;  %v1478_v44 = vrot.slane %v1476_v54, 1 }
 0x1a5   :  { %6235 = vmatprep.mubr.msk.bf16.mxu0 %vm174_vm0, %v123_v28  ;;  %v2128_v54 = vsel %vm2083_vm5, %v2126_v0, %v2127_v63 }
 0x1a6   :  { %3654 = vrot.lane.b32.xlu1 %v5853_v27, %s6524_s14  ;;  %3652 = vrot.lane.b32.xlu0 %v5852_v22, %s6524_s14  ;;  %v1479_v25 = vor.u32 %v1478_v44, %v1474_v55  ;;  %v7531_v45 = vcombine.high %v2128_v54, %v2128_v54  ;;  %v7533_v28 = vcombine.low %v2128_v54, %v2128_v54 }
 0x1a7   :  { %6236 = vmatmul.mubr.msk.bf16.gmra.mxu0 %vm174_vm0, %v124_v42 }
 0x1a8   :  { %v3639_v23 = vpop.permute.xlu1 %3638  ;;  %v3637_v4 = vpop.permute.xlu0 %3636  ;;  %v7542_v24 = vsel %vm1304_vm6, %v1479_v25, %v1483_v35  ;;  %3970 = vst.msk [vmem:[#allocation2 + $0xcc] sm:$0xf] %vm1239_vm4, %v7531_v45  ;;  %3969 = vst.msk [vmem:[#allocation2 + $0xc4] sm:$0xf] %vm1239_vm4, %v7533_v28 }
 0x1a9   :  { %3822 = vst.msk [vmem:[#allocation2 + $0x18] sm:$0xf] %vm3818_vm13, %v3639_v23  ;;  %3821 = vst.msk [vmem:[#allocation2 + $0x10] sm:$0xf] %vm3818_vm13, %v3637_v4  ;;  %v7526_v23 = vcombine.high %v2125_v51, %v2125_v51  ;;  %v7528_v4 = vcombine.low %v2125_v51, %v2125_v51 }
 0x1aa   :  { %2877 = vrot.lane.b32.xlu1 %v5853_v27, %s6520_s26  ;;  %2875 = vrot.lane.b32.xlu0 %v5852_v22, %s6520_s26 }
 0x1ab   :  { %3968 = vst.msk [vmem:[#allocation2 + $0xbc] sm:$0xf] %vm1239_vm4, %v7526_v23  ;;  %3967 = vst.msk [vmem:[#allocation2 + $0xb4] sm:$0xf] %vm1239_vm4, %v7528_v4 }
 0x1ac   :  { %v2862_v21 = vpop.permute.xlu1 %2861  ;;  %v2860_v20 = vpop.permute.xlu0 %2859 }
 0x1ad   :  { %3049 = vst.msk [vmem:[#allocation2 + $0x28] sm:$0xf] %vm3043_vm10, %v2862_v21  ;;  %3048 = vst.msk [vmem:[#allocation2 + $0x20] sm:$0xf] %vm3043_vm10, %v2860_v20 }
 0x1ae   :  { %3322 = vst.msk [vmem:[#allocation2 + $0x28] sm:$0xf] %vm3316_vm11, %v7411_v5  ;;  %3321 = vst.msk [vmem:[#allocation2 + $0x20] sm:$0xf] %vm3316_vm11, %v7413_v50  ;;  %1831 = vrot.lane.b32.xlu1 %v5853_v27, %s6521_s27  ;;  %1829 = vrot.lane.b32.xlu0 %v5852_v22, %s6521_s27  ;;  %v6368_v27 = vld [vmem:[#allocation2 + $0x14] ss:$8 sps:$4 sm:$0xff]  }
 0x1af   :  { %3573 = vst.msk [vmem:[#allocation2 + $0x28] sm:$0xf] %vm3567_vm12, %v7334_v34  ;;  %3572 = vst.msk [vmem:[#allocation2 + $0x20] sm:$0xf] %vm3567_vm12, %v7290_v9  ;;  %6049 = vmatprep.mubr.msk.bf16.mxu1 %vm4440_vm14, %v6368_v27 }
 0x1b0   :  { %3824 = vst.msk [vmem:[#allocation2 + $0x28] sm:$0xf] %vm3818_vm13, %v7449_v41  ;;  %3823 = vst.msk [vmem:[#allocation2 + $0x20] sm:$0xf] %vm3818_vm13, %v7451_v40  ;;  %v1816_v55 = vpop.permute.xlu1 %1815  ;;  %v1814_v5 = vpop.permute.xlu0 %1813  ;;  %v6366_v50 = vld [vmem:[#allocation2 + $0x10] ss:$8 sps:$4 sm:$0xff]  }
 0x1b1   :  { %1995 = vst.msk [vmem:[#allocation2 + $0x38] sm:$0xf] %vm1987_vm7, %v1816_v55  ;;  %1994 = vst.msk [vmem:[#allocation2 + $0x30] sm:$0xf] %vm1987_vm7, %v1814_v5  ;;  %4578 = vmatmul.mubr.bf16.vlgmr.msra.gmra.mxu1 %v6366_v50 }
 0x1b2   :  { %2495 = vst.msk [vmem:[#allocation2 + $0x38] sm:$0xf] %vm2487_vm8, %v7429_v60  ;;  %2494 = vst.msk [vmem:[#allocation2 + $0x30] sm:$0xf] %vm2487_vm8, %v7431_v3  ;;  %3411 = vrot.lane.b32.xlu1 %v7144_v12, %s6522_s28  ;;  %3409 = vrot.lane.b32.xlu0 %v7146_v11, %s6522_s28 }
 0x1b3   :  { %2762 = vst.msk [vmem:[#allocation2 + $0x38] sm:$0xf] %vm2754_vm9, %v7364_v14  ;;  %2761 = vst.msk [vmem:[#allocation2 + $0x30] sm:$0xf] %vm2754_vm9, %v7313_v46  ;;  %v6369_v46 = vld [vmem:[#allocation2 + $0x24] ss:$8 sps:$4 sm:$0xff]  }
 0x1b4   :  { %3051 = vst.msk [vmem:[#allocation2 + $0x38] sm:$0xf] %vm3043_vm10, %v7458_v17  ;;  %3050 = vst.msk [vmem:[#allocation2 + $0x30] sm:$0xf] %vm3043_vm10, %v7460_v38  ;;  %v3396_v9 = vpop.permute.xlu1 %3395  ;;  %v3394_v34 = vpop.permute.xlu0 %3393  ;;  %6050 = vmatprep.mubr.msk.bf16.mxu1 %vm4440_vm14, %v6369_v46 }
 0x1b5   :  { %3324 = vst.msk [vmem:[#allocation2 + $0x38] sm:$0xf] %vm3316_vm11, %v7396_v15  ;;  %3323 = vst.msk [vmem:[#allocation2 + $0x30] sm:$0xf] %vm3316_vm11, %v7398_v32 }
 0x1b6   :  { %3575 = vst.msk [vmem:[#allocation2 + $0x38] sm:$0xf] %vm3567_vm12, %v3396_v9  ;;  %3574 = vst.msk [vmem:[#allocation2 + $0x30] sm:$0xf] %vm3567_vm12, %v3394_v34  ;;  %2596 = vrot.lane.b32.xlu1 %v7144_v12, %s6517_s23  ;;  %2594 = vrot.lane.b32.xlu0 %v7146_v11, %s6517_s23 }
 0x1b7   :  { %v6371_v15 = vld [vmem:[#allocation2 + $0x20] ss:$8 sps:$4 sm:$0xff]  }
 0x1b8   :  { %v2581_v14 = vpop.permute.xlu1 %2580  ;;  %v2579_v60 = vpop.permute.xlu0 %2578 }
 0x1b9   :  { %2764 = vst.msk [vmem:[#allocation2 + $0x48] sm:$0xf] %vm2754_vm9, %v2581_v14  ;;  %2763 = vst.msk [vmem:[#allocation2 + $0x40] sm:$0xf] %vm2754_vm9, %v2579_v60  ;;  %4586 = vmatmul.mubr.bf16.gmra.mxu1 %v6371_v15 }
 0x1ba   :  { %3162 = vrot.lane.b32.xlu1 %v7174_v57, %s6518_s24  ;;  %3160 = vrot.lane.b32.xlu0 %v7176_v52, %s6518_s24 }
 0x1bc   :  { %v7598_v12 = vpop.permute.xlu1 %3146  ;;  %v7600_v32 = vpop.permute.xlu0 %3144 }
 0x1bd   :  { %v6225_v17 = vpop.f32.mrf.mxu0 }
 0x1be   :  { %2343 = vrot.lane.b32.xlu1 %v7174_v57, %s6519_s25  ;;  %2341 = vrot.lane.b32.xlu0 %v7176_v52, %s6519_s25  ;;  %v426_v57 = vadd.f32 %v7341_v59, %v6225_v17 }
 0x1bf   :  { %v417_v52 = vpop.f32.mrf.mxu0 }
 0x1c0   :  { %v2328_v11 = vpop.permute.xlu1 %2327  ;;  %v2326_v3 = vpop.permute.xlu0 %2325  ;;  %v418_v63 = vadd.f32 %v7341_v59, %v417_v52 }
 0x1c1   :  { %v6226_v42 = vpop.f32.mrf.mxu0 }
 0x1c2   :  { %3158 = vrot.lane.b32.xlu1 %v7178_v56, %s6518_s24  ;;  %3156 = vrot.lane.b32.xlu0 %v7180_v7, %s6518_s24  ;;  %v588_v51 = vmax.f32 %v418_v63, 0.0 }
 0x1c3   :  { %v420_v35 = vpop.f32.mrf.mxu0 }
 0x1c4   :  { %v7610_v41 = vpop.permute.xlu1 %3142  ;;  %v7612_v40 = vpop.permute.xlu0 %3140  ;;  %v421_v54 = vadd.f32 %v7341_v59, %v420_v35 }
 0x1c6   :  { %2339 = vrot.lane.b32.xlu1 %v7178_v56, %s6519_s25  ;;  %2337 = vrot.lane.b32.xlu0 %v7180_v7, %s6519_s25  ;;  %v590_v56 = vmax.f32 %v426_v57, 0.0  ;;  %v429_v7 = vadd.f32 %v7341_v59, %v6226_v42  ;;  %v589_v21 = vmax.f32 %v421_v54, 0.0  ;;  %v83_v54 = vld [vmem:[%s10820_s0 + $0x160] sm:$0xff] }
 0x1c8   :  { %v7619_v38 = vpop.permute.xlu1 %2323  ;;  %v7621_v22 = vpop.permute.xlu0 %2321  ;;  %v591_v25 = vmax.f32 %v429_v7, 0.0  ;;  %v638_v50 = vpack.c.bf16 %v589_v21, %v588_v51 }
 0x1ca   :  { %3666 = vrot.lane.b32.xlu1 %v5859_v6, %s6524_s14  ;;  %3664 = vrot.lane.b32.xlu0 %v5858_v36, %s6524_s14  ;;  %v639_v62 = vpack.c.bf16 %v591_v25, %v590_v56  ;;  %v762_v34 = vshrl.u32 %v638_v50, 16  ;;  %v765_v46 = vshll.u32 %v638_v50, 16 }
 0x1cc   :  { %v7631_v44 = vpop.permute.xlu1 %3650  ;;  %v7633_v0 = vpop.permute.xlu0 %3648  ;;  %v769_v5 = vshrl.u32 %v639_v62, 16  ;;  %v772_v9 = vshll.u32 %v639_v62, 16  ;;  %v764_v15 = vrot.slane %v762_v34, 7  ;;  %v84_v62 = vld [vmem:[%s10820_s0 + $0x168] sm:$0xff] }
 0x1cd   :  { %v125_v50 = vpack.c.bf16 %v84_v62, %v83_v54 }
 0x1ce   :  { %2889 = vrot.lane.b32.xlu1 %v5859_v6, %s6520_s26  ;;  %2887 = vrot.lane.b32.xlu0 %v5858_v36, %s6520_s26  ;;  %v771_v27 = vrot.slane %v769_v5, 7  ;;  %v767_v57 = vor.u32 %v765_v46, %v764_v15  ;;  %v1004_v52 = vsel %vm6705_vm3, %v764_v15, 0 }
 0x1cf   :  { %6239 = vmatprep.mubr.msk.bf16.mxu0 %vm174_vm0, %v125_v50 }
 0x1d0   :  { %v7638_v20 = vpop.permute.xlu1 %2873  ;;  %v7640_v55 = vpop.permute.xlu0 %2871  ;;  %v774_v17 = vor.u32 %v772_v9, %v771_v27  ;;  %v971_v42 = vsel %vm6705_vm3, 0, %v767_v57  ;;  %v1005_v25 = vsel %vm6705_vm3, %v771_v27, 0  ;;  %v85_v27 = vld [vmem:[%s10820_s0 + $0x170] sm:$0xff]  ;;  %v86_v9 = vld [vmem:[%s10820_s0 + $0x178] sm:$0xff]  ;;  %v2130_v57 = vrot.slane %v1004_v52, 1 }
 0x1d1   :  { %v1488_v56 = vshll.u32 %v971_v42, 16  ;;  %v7664_v7 = vcombine.high %v971_v42, %v971_v42  ;;  %v7666_v35 = vcombine.low %v971_v42, %v971_v42  ;;  %v2827_v15 = vshll.u32 %v1005_v25, 16 }
 0x1d2   :  { %1843 = vrot.lane.b32.xlu1 %v5859_v6, %s6521_s27  ;;  %1841 = vrot.lane.b32.xlu0 %v5858_v36, %s6521_s27  ;;  %v1493_v6 = vshll.u32 %v1004_v52, 16  ;;  %v7672_v51 = vsel %vm6705_vm3, 0, %v774_v17 }
 0x1d3   :  { %1271 = vst.msk [vmem:[#allocation2 + $0xf8] sm:$0xf] %vm1239_vm4, %v7664_v7  ;;  %1270 = vst.msk [vmem:[#allocation2 + $0xf0] sm:$0xf] %vm1239_vm4, %v7666_v35  ;;  %v1490_v5 = vrot.slane %v1488_v56, 1 }
 0x1d4   :  { %v1828_v14 = vpop.permute.xlu1 %1827  ;;  %v1826_v60 = vpop.permute.xlu0 %1825  ;;  %v1495_v21 = vrot.slane %v1493_v6, 1  ;;  %v3111_v6 = vrot.slane %v1005_v25, 1 }
 0x1d5   :  { %2001 = vst.msk [vmem:[#allocation2 + $0x68] sm:$0xf] %vm1987_vm7, %v1828_v14  ;;  %2000 = vst.msk [vmem:[#allocation2 + $0x60] sm:$0xf] %vm1987_vm7, %v1826_v60  ;;  %v126_v14 = vpack.c.bf16 %v86_v9, %v85_v27  ;;  %v2822_v60 = vshll.u32 %v7672_v51, 16  ;;  %v2129_v27 = vrot.slane %v971_v42, 1 }
 0x1d6   :  { %2501 = vst.msk [vmem:[#allocation2 + $0x68] sm:$0xf] %vm2487_vm8, %v2328_v11  ;;  %2500 = vst.msk [vmem:[#allocation2 + $0x60] sm:$0xf] %vm2487_vm8, %v2326_v3  ;;  %3423 = vrot.lane.b32.xlu1 %v7232_v47, %s6522_s28  ;;  %3421 = vrot.lane.b32.xlu0 %v7236_v26, %s6522_s28  ;;  %v5857_v11 = vcombine.high %v7198_v33, %v7198_v33  ;;  %v5856_v3 = vcombine.low %v7198_v33, %v7198_v33  ;;  %v1486_v33 = vshrl.u32 %v971_v42, 16 }
 0x1d7   :  { %6240 = vmatmul.mubr.msk.bf16.gmra.mxu0 %vm174_vm0, %v126_v14  ;;  %v2824_v50 = vrot.slane %v2822_v60, 1  ;;  %v3110_v9 = vrot.slane %v7672_v51, 1  ;;  %v2131_v52 = vsel %vm2083_vm5, %v2129_v27, %v2130_v57 }
 0x1d8   :  { %v7654_v36 = vpop.permute.xlu1 %3407  ;;  %v7656_v63 = vpop.permute.xlu0 %3405  ;;  %v1491_v17 = vor.u32 %v1490_v5, %v1486_v33  ;;  %v2829_v33 = vrot.slane %v2827_v15, 1  ;;  %v2820_v5 = vshrl.u32 %v7672_v51, 16  ;;  %v7711_v25 = vcombine.high %v2131_v52, %v2131_v52 }
 0x1d9   :  { %v3112_v14 = vsel %vm2083_vm5, %v3110_v9, %v3111_v6  ;;  %v6372_v6 = vld [vmem:[#allocation2 + $0x34] ss:$8 sps:$4 sm:$0xff]  }
 0x1da   :  { %3662 = vrot.lane.b32.xlu1 %v5857_v11, %s6524_s14  ;;  %3660 = vrot.lane.b32.xlu0 %v5856_v3, %s6524_s14  ;;  %v7701_v56 = vsel %vm1304_vm6, %v1491_v17, %v1495_v21  ;;  %v7713_v21 = vcombine.low %v2131_v52, %v2131_v52  ;;  %v2825_v42 = vor.u32 %v2824_v50, %v2820_v5 }
 0x1db   :  { %v7718_v60 = vcombine.low %v3112_v14, %v3112_v14  ;;  %3972 = vst.msk [vmem:[#allocation2 + $0xdc] sm:$0xf] %vm1239_vm4, %v7711_v25  ;;  %6051 = vmatprep.mubr.msk.bf16.mxu1 %vm4440_vm14, %v6372_v6 }
 0x1dc   :  { %v7692_v34 = vpop.permute.xlu1 %2592  ;;  %v7694_v46 = vpop.permute.xlu0 %2590  ;;  %3971 = vst.msk [vmem:[#allocation2 + $0xd4] sm:$0xf] %vm1239_vm4, %v7713_v21 }
 0x1dd   :  { %3973 = vst.msk [vmem:[#allocation2 + $0xe4] sm:$0xf] %vm1239_vm4, %v7718_v60 }
 0x1de   :  { %2885 = vrot.lane.b32.xlu1 %v5857_v11, %s6520_s26  ;;  %2883 = vrot.lane.b32.xlu0 %v5856_v3, %s6520_s26 }
 0x1e0   :  { %v3647_v54 = vpop.permute.xlu1 %3646  ;;  %v3645_v62 = vpop.permute.xlu0 %3644 }
 0x1e1   :  { %3826 = vst.msk [vmem:[#allocation2 + $0x38] sm:$0xf] %vm3818_vm13, %v3647_v54  ;;  %3825 = vst.msk [vmem:[#allocation2 + $0x30] sm:$0xf] %vm3818_vm13, %v3645_v62  ;;  %v7716_v54 = vcombine.high %v3112_v14, %v3112_v14 }
 0x1e2   :  { %1839 = vrot.lane.b32.xlu1 %v5857_v11, %s6521_s27  ;;  %1837 = vrot.lane.b32.xlu0 %v5856_v3, %s6521_s27  ;;  %v7727_v11 = vsel %vm1304_vm6, %v2825_v42, %v2829_v33 }
 0x1e3   :  { %3974 = vst.msk [vmem:[#allocation2 + $0xec] sm:$0xf] %vm1239_vm4, %v7716_v54 }
 0x1e4   :  { %v2870_v17 = vpop.permute.xlu1 %2869  ;;  %v2868_v15 = vpop.permute.xlu0 %2867 }
 0x1e5   :  { %3053 = vst.msk [vmem:[#allocation2 + $0x48] sm:$0xf] %vm3043_vm10, %v2870_v17  ;;  %3052 = vst.msk [vmem:[#allocation2 + $0x40] sm:$0xf] %vm3043_vm10, %v2868_v15 }
 0x1e6   :  { %3326 = vst.msk [vmem:[#allocation2 + $0x48] sm:$0xf] %vm3316_vm11, %v7610_v41  ;;  %3325 = vst.msk [vmem:[#allocation2 + $0x40] sm:$0xf] %vm3316_vm11, %v7612_v40  ;;  %3419 = vrot.lane.b32.xlu1 %v7272_v61, %s6522_s28  ;;  %3417 = vrot.lane.b32.xlu0 %v7274_v19, %s6522_s28 }
 0x1e7   :  { %3577 = vst.msk [vmem:[#allocation2 + $0x48] sm:$0xf] %vm3567_vm12, %v7475_v10  ;;  %3576 = vst.msk [vmem:[#allocation2 + $0x40] sm:$0xf] %vm3567_vm12, %v7477_v1 }
 0x1e8   :  { %3828 = vst.msk [vmem:[#allocation2 + $0x48] sm:$0xf] %vm3818_vm13, %v7631_v44  ;;  %3827 = vst.msk [vmem:[#allocation2 + $0x40] sm:$0xf] %vm3818_vm13, %v7633_v0  ;;  %v1824_v41 = vpop.permute.xlu1 %1823  ;;  %v1822_v40 = vpop.permute.xlu0 %1821  ;;  %v4015_v3 = vld [vmem:[#allocation2 + $0x30] sm:$0xff]  ;;  %v4016_v57 = vld [vmem:[#allocation2 + $0x38] sm:$0xff]  ;;  %v5860_v44 = vcombine.low %v7358_v53, %v7358_v53 }
 0x1e9   :  { %1999 = vst.msk [vmem:[#allocation2 + $0x58] sm:$0xf] %vm1987_vm7, %v1824_v41  ;;  %1998 = vst.msk [vmem:[#allocation2 + $0x50] sm:$0xf] %vm1987_vm7, %v1822_v40  ;;  %v5981_v62 = vcombine.low %v4015_v3, %v4016_v57  ;;  %v10873_v57 = vmov 0  }
 0x1ea   :  { %2499 = vst.msk [vmem:[#allocation2 + $0x58] sm:$0xf] %vm2487_vm8, %v7619_v38  ;;  %2498 = vst.msk [vmem:[#allocation2 + $0x50] sm:$0xf] %vm2487_vm8, %v7621_v22  ;;  %2604 = vrot.lane.b32.xlu1 %v7272_v61, %s6517_s23  ;;  %2602 = vrot.lane.b32.xlu0 %v7274_v19, %s6517_s23  ;;  %v6374_v61 = vld [vmem:[#allocation2 + $0x44] ss:$8 sps:$4 sm:$0xff]  }
 0x1eb   :  { %2766 = vst.msk [vmem:[#allocation2 + $0x58] sm:$0xf] %vm2754_vm9, %v7487_v29  ;;  %2765 = vst.msk [vmem:[#allocation2 + $0x50] sm:$0xf] %vm2754_vm9, %v7489_v18  ;;  %4594 = vmatmul.mubr.bf16.gmra.mxu1 %v5981_v62  ;;  %v7780_v18 = vcombine.high %v7345_v31, %v7345_v31 }
 0x1ec   :  { %3055 = vst.msk [vmem:[#allocation2 + $0x58] sm:$0xf] %vm3043_vm10, %v7638_v20  ;;  %3054 = vst.msk [vmem:[#allocation2 + $0x50] sm:$0xf] %vm3043_vm10, %v7640_v55  ;;  %v3404_v10 = vpop.permute.xlu1 %3403  ;;  %v3402_v1 = vpop.permute.xlu0 %3401  ;;  %6052 = vmatprep.mubr.msk.bf16.mxu1 %vm4440_vm14, %v6374_v61 }
 0x1ed   :  { %3328 = vst.msk [vmem:[#allocation2 + $0x58] sm:$0xf] %vm3316_vm11, %v7598_v12  ;;  %3327 = vst.msk [vmem:[#allocation2 + $0x50] sm:$0xf] %vm3316_vm11, %v7600_v32  ;;  %v7784_v12 = vcombine.low %v7345_v31, %v7345_v31  ;;  %v5861_v31 = vcombine.high %v7358_v53, %v7358_v53 }
 0x1ee   :  { %3579 = vst.msk [vmem:[#allocation2 + $0x58] sm:$0xf] %vm3567_vm12, %v3404_v10  ;;  %3578 = vst.msk [vmem:[#allocation2 + $0x50] sm:$0xf] %vm3567_vm12, %v3402_v1  ;;  %3166 = vrot.lane.b32.xlu1 %v7319_v37, %s6518_s24  ;;  %3164 = vrot.lane.b32.xlu0 %v7321_v39, %s6518_s24 }
 0x1ef   :  { %v6376_v32 = vld [vmem:[#allocation2 + $0x40] ss:$8 sps:$4 sm:$0xff]   ;;  %v6229_v55 = vpop.f32.mrf.mxu0 }
 0x1f0   :  { %v2589_v19 = vpop.permute.xlu1 %2588  ;;  %v2587_v29 = vpop.permute.xlu0 %2586 }
 0x1f1   :  { %2768 = vst.msk [vmem:[#allocation2 + $0x68] sm:$0xf] %vm2754_vm9, %v2589_v19  ;;  %2767 = vst.msk [vmem:[#allocation2 + $0x60] sm:$0xf] %vm2754_vm9, %v2587_v29  ;;  %v433_v5 = vpop.f32.mrf.mxu0 }
 0x1f2   :  { %3674 = vrot.lane.b32.xlu1 %v7780_v18, %s6524_s14  ;;  %3672 = vrot.lane.b32.xlu0 %v7784_v12, %s6524_s14  ;;  %v434_v53 = vadd.f32 %v7341_v59, %v433_v5 }
 0x1f3   :  { %4602 = vmatmul.mubr.bf16.gmra.mxu1 %v6376_v32  ;;  %v6230_v50 = vpop.f32.mrf.mxu0 }
 0x1f4   :  { %v7793_v38 = vpop.permute.xlu1 %3154  ;;  %v7795_v22 = vpop.permute.xlu0 %3152  ;;  %v592_v14 = vmax.f32 %v434_v53, 0.0 }
 0x1f5   :  { %v436_v42 = vpop.f32.mrf.mxu0 }
 0x1f6   :  { %3670 = vrot.lane.b32.xlu1 %v5861_v31, %s6524_s14  ;;  %3668 = vrot.lane.b32.xlu0 %v5860_v44, %s6524_s14  ;;  %v437_v17 = vadd.f32 %v7341_v59, %v436_v42 }
 0x1f8   :  { %v2336_v0 = vpop.permute.xlu1 %2335  ;;  %v2334_v20 = vpop.permute.xlu0 %2333  ;;  %v593_v40 = vmax.f32 %v437_v17, 0.0 }
 0x1fa   :  { %2893 = vrot.lane.b32.xlu1 %v5861_v31, %s6520_s26  ;;  %2891 = vrot.lane.b32.xlu0 %v5860_v44, %s6520_s26  ;;  %v640_v3 = vpack.c.bf16 %v593_v40, %v592_v14 }
 0x1fc   :  { %v7805_v27 = vpop.permute.xlu1 %3150  ;;  %v7807_v33 = vpop.permute.xlu0 %3148  ;;  %v776_v62 = vshrl.u32 %v640_v3, 16  ;;  %v779_v5 = vshll.u32 %v640_v3, 16 }
 0x1fe   :  { %1847 = vrot.lane.b32.xlu1 %v5861_v31, %s6521_s27  ;;  %1845 = vrot.lane.b32.xlu0 %v5860_v44, %s6521_s27  ;;  %v778_v44 = vrot.slane %v776_v62, 7 }
 0x200   :  { %v7812_v9 = vpop.permute.xlu1 %2331  ;;  %v7814_v52 = vpop.permute.xlu0 %2329  ;;  %v781_v62 = vor.u32 %v779_v5, %v778_v44 }
 0x202   :  { %2347 = vrot.lane.b32.xlu1 %v7319_v37, %s6519_s25  ;;  %2345 = vrot.lane.b32.xlu0 %v7321_v39, %s6519_s25  ;;  %v659_v37 = vrot.slane %v10873_v57, 7 }
 0x204   :  { %v7821_v15 = vpop.permute.xlu1 %3658  ;;  %v7823_v41 = vpop.permute.xlu0 %3656  ;;  %v956_v10 = vsel %vm6705_vm3, 0, %v659_v37 }
 0x205   :  { %v7836_v1 = vcombine.high %v956_v10, %v956_v10  ;;  %v7838_v61 = vcombine.low %v956_v10, %v956_v10  ;;  %v1308_v19 = vshll.u32 %v956_v10, 16  ;;  %v2084_v17 = vrot.slane %v956_v10, 1 }
 0x206   :  { %2608 = vrot.lane.b32.xlu1 %v7232_v47, %s6517_s23  ;;  %2606 = vrot.lane.b32.xlu0 %v7236_v26, %s6517_s23  ;;  %v989_v47 = vsel %vm6705_vm3, %v659_v37, 0  ;;  %v1306_v26 = vshrl.u32 %v956_v10, 16  ;;  %v442_v37 = vadd.f32 %v7341_v59, %v6229_v55  ;;  %v88_v10 = vld [vmem:[%s10820_s0 + $0x188] sm:$0xff] }
 0x207   :  { %1241 = vst.msk [vmem:[#allocation2 + $0x8] sm:$0xf] %vm1239_vm4, %v7836_v1  ;;  %1273 = vst.msk [vmem:[#allocation2 + $0x108] sm:$0xf] %vm1239_vm4, %v7836_v1  ;;  %v1313_v29 = vshll.u32 %v989_v47, 16  ;;  %v1310_v53 = vrot.slane %v1308_v19, 1 }
 0x208   :  { %v7830_v6 = vpop.permute.xlu1 %2881  ;;  %v7832_v39 = vpop.permute.xlu0 %2879  ;;  %1240 = vst.msk [vmem:[#allocation2] sm:$0xf] %vm1239_vm4, %v7838_v61  ;;  %1272 = vst.msk [vmem:[#allocation2 + $0x100] sm:$0xf] %vm1239_vm4, %v7838_v61  ;;  %v2085_v40 = vrot.slane %v989_v47, 1  ;;  %v89_v47 = vld [vmem:[%s10820_s0 + $0x190] sm:$0xff] }
 0x209   :  { %v1311_v42 = vor.u32 %v1310_v53, %v1306_v26  ;;  %v1315_v14 = vrot.slane %v1313_v29, 1  ;;  %v87_v26 = vld [vmem:[%s10820_s0 + $0x180] sm:$0xff]  ;;  %v90_v29 = vld [vmem:[%s10820_s0 + $0x198] sm:$0xff] }
 0x20a   :  { %2897 = vrot.lane.b32.xlu1 %v7780_v18, %s6520_s26  ;;  %2895 = vrot.lane.b32.xlu0 %v7784_v12, %s6520_s26  ;;  %v2086_v19 = vsel %vm2083_vm5, %v2084_v17, %v2085_v40  ;;  %v7906_v40 = vsel %vm6705_vm3, 0, %v781_v62 }
 0x20b   :  { %v7884_v55 = vcombine.low %v2086_v19, %v2086_v19 }
 0x20c   :  { %v1836_v32 = vpop.permute.xlu1 %1835  ;;  %v1834_v31 = vpop.permute.xlu0 %1833 }
 0x20d   :  { %2005 = vst.msk [vmem:[#allocation2 + $0x88] sm:$0xf] %vm1987_vm7, %v1836_v32  ;;  %2004 = vst.msk [vmem:[#allocation2 + $0x80] sm:$0xf] %vm1987_vm7, %v1834_v31  ;;  %v7894_v32 = vcombine.high %v7463_v48, %v7463_v48  ;;  %v128_v31 = vpack.c.bf16 %v90_v29, %v89_v47 }
 0x20e   :  { %2505 = vst.msk [vmem:[#allocation2 + $0x88] sm:$0xf] %vm2487_vm8, %v2336_v0  ;;  %2504 = vst.msk [vmem:[#allocation2 + $0x80] sm:$0xf] %vm2487_vm8, %v2334_v20  ;;  %3170 = vrot.lane.b32.xlu1 %v7347_v49, %s6518_s24  ;;  %3168 = vrot.lane.b32.xlu0 %v7349_v30, %s6518_s24  ;;  %v445_v0 = vadd.f32 %v7341_v59, %v6230_v50  ;;  %v7869_v20 = vsel %vm1304_vm6, %v1311_v42, %v1315_v14  ;;  %v594_v14 = vmax.f32 %v442_v37, 0.0 }
 0x20f   :  { %v7882_v59 = vcombine.high %v2086_v19, %v2086_v19  ;;  %v127_v50 = vpack.c.bf16 %v88_v10, %v87_v26  ;;  %v7902_v42 = vcombine.low %v7463_v48, %v7463_v48  ;;  %3975 = vst.msk [vmem:[#allocation2 + $0xf4] sm:$0xf] %vm1239_vm4, %v7884_v55  ;;  %4007 = vst.msk [vmem:[#allocation2 + $0x1f4] sm:$0xf] %vm1239_vm4, %v7884_v55  ;;  %v7928_v37 = vsel %vm6705_vm3, %v778_v44, 0 }
 0x210   :  { %v7862_v3 = vpop.permute.xlu1 %3415  ;;  %v7864_v57 = vpop.permute.xlu0 %3413  ;;  %v595_v17 = vmax.f32 %v445_v0, 0.0  ;;  %v7920_v48 = vcombine.high %v7906_v40, %v7906_v40  ;;  %v7932_v0 = vcombine.low %v7906_v40, %v7906_v40  ;;  %v1500_v44 = vshll.u32 %v7906_v40, 16 }
 0x211   :  { %3976 = vst.msk [vmem:[#allocation2 + $0xfc] sm:$0xf] %vm1239_vm4, %v7882_v59  ;;  %4008 = vst.msk [vmem:[#allocation2 + $0x1fc] sm:$0xf] %vm1239_vm4, %v7882_v59  ;;  %6243 = vmatprep.mubr.msk.bf16.mxu0 %vm174_vm0, %v127_v50  ;;  %v1505_v10 = vshll.u32 %v7928_v37, 16 }
 0x212   :  { %3427 = vrot.lane.b32.xlu1 %v7439_v13, %s6522_s28  ;;  %3425 = vrot.lane.b32.xlu0 %v7447_v8, %s6522_s28  ;;  %1275 = vst.msk [vmem:[#allocation2 + $0x118] sm:$0xf] %vm1239_vm4, %v7920_v48  ;;  %v641_v26 = vpack.c.bf16 %v595_v17, %v594_v14  ;;  %1274 = vst.msk [vmem:[#allocation2 + $0x110] sm:$0xf] %vm1239_vm4, %v7932_v0  ;;  %v1498_v14 = vshrl.u32 %v7906_v40, 16  ;;  %v1502_v17 = vrot.slane %v1500_v44, 1 }
 0x213   :  { %6244 = vmatmul.mubr.msk.bf16.gmra.mxu0 %vm174_vm0, %v128_v31  ;;  %v1507_v31 = vrot.slane %v1505_v10, 1 }
 0x214   :  { %v7896_v5 = vpop.permute.xlu1 %2600  ;;  %v7898_v53 = vpop.permute.xlu0 %2598  ;;  %v783_v29 = vshrl.u32 %v641_v26, 16 }
 0x216   :  { %3678 = vrot.lane.b32.xlu1 %v7894_v32, %s6524_s14  ;;  %3676 = vrot.lane.b32.xlu0 %v7902_v42, %s6524_s14 }
 0x218   :  { %v3655_v62 = vpop.permute.xlu1 %3654  ;;  %v3653_v19 = vpop.permute.xlu0 %3652 }
 0x219   :  { %3830 = vst.msk [vmem:[#allocation2 + $0x58] sm:$0xf] %vm3818_vm13, %v3655_v62  ;;  %3829 = vst.msk [vmem:[#allocation2 + $0x50] sm:$0xf] %vm3818_vm13, %v3653_v19  ;;  %v6377_v62 = vld [vmem:[#allocation2 + $0x54] ss:$8 sps:$4 sm:$0xff]  }
 0x21a   :  { %1851 = vrot.lane.b32.xlu1 %v7780_v18, %s6521_s27  ;;  %1849 = vrot.lane.b32.xlu0 %v7784_v12, %s6521_s27  ;;  %v1503_v18 = vor.u32 %v1502_v17, %v1498_v14  ;;  %v785_v19 = vrot.slane %v783_v29, 7 }
 0x21b   :  { %6053 = vmatprep.mubr.msk.bf16.mxu1 %vm4440_vm14, %v6377_v62 }
 0x21c   :  { %v2878_v50 = vpop.permute.xlu1 %2877  ;;  %v2876_v47 = vpop.permute.xlu0 %2875 }
 0x21d   :  { %3057 = vst.msk [vmem:[#allocation2 + $0x68] sm:$0xf] %vm3043_vm10, %v2878_v50  ;;  %3056 = vst.msk [vmem:[#allocation2 + $0x60] sm:$0xf] %vm3043_vm10, %v2876_v47 }
 0x21e   :  { %3330 = vst.msk [vmem:[#allocation2 + $0x68] sm:$0xf] %vm3316_vm11, %v7805_v27  ;;  %3329 = vst.msk [vmem:[#allocation2 + $0x60] sm:$0xf] %vm3316_vm11, %v7807_v33  ;;  %2351 = vrot.lane.b32.xlu1 %v7347_v49, %s6519_s25  ;;  %2349 = vrot.lane.b32.xlu0 %v7349_v30, %s6519_s25  ;;  %v786_v30 = vshll.u32 %v641_v26, 16 }
 0x21f   :  { %3581 = vst.msk [vmem:[#allocation2 + $0x68] sm:$0xf] %vm3567_vm12, %v7654_v36  ;;  %3580 = vst.msk [vmem:[#allocation2 + $0x60] sm:$0xf] %vm3567_vm12, %v7656_v63  ;;  %v7968_v63 = vsel %vm1304_vm6, %v1503_v18, %v1507_v31 }
 0x220   :  { %3832 = vst.msk [vmem:[#allocation2 + $0x68] sm:$0xf] %vm3818_vm13, %v7821_v15  ;;  %3831 = vst.msk [vmem:[#allocation2 + $0x60] sm:$0xf] %vm3818_vm13, %v7823_v41  ;;  %v1832_v12 = vpop.permute.xlu1 %1831  ;;  %v1830_v27 = vpop.permute.xlu0 %1829  ;;  %v4019_v33 = vld [vmem:[#allocation2 + $0x50] sm:$0xff]  ;;  %v4020_v49 = vld [vmem:[#allocation2 + $0x58] sm:$0xff] }
 0x221   :  { %2003 = vst.msk [vmem:[#allocation2 + $0x78] sm:$0xf] %vm1987_vm7, %v1832_v12  ;;  %2002 = vst.msk [vmem:[#allocation2 + $0x70] sm:$0xf] %vm1987_vm7, %v1830_v27  ;;  %v5985_v36 = vcombine.low %v4019_v33, %v4020_v49  ;;  %v2133_v15 = vrot.slane %v7928_v37, 1  ;;  %v8027_v12 = vcombine.high %v7542_v24, %v7542_v24  ;;  %v8031_v27 = vcombine.low %v7542_v24, %v7542_v24 }
 0x222   :  { %2503 = vst.msk [vmem:[#allocation2 + $0x78] sm:$0xf] %vm2487_vm8, %v7812_v9  ;;  %2502 = vst.msk [vmem:[#allocation2 + $0x70] sm:$0xf] %vm2487_vm8, %v7814_v52  ;;  %2612 = vrot.lane.b32.xlu1 %v7439_v13, %s6517_s23  ;;  %2610 = vrot.lane.b32.xlu0 %v7447_v8, %s6517_s23  ;;  %v788_v8 = vor.u32 %v786_v30, %v785_v19  ;;  %v1007_v52 = vsel %vm6705_vm3, %v785_v19, 0 }
 0x223   :  { %2770 = vst.msk [vmem:[#allocation2 + $0x78] sm:$0xf] %vm2754_vm9, %v7692_v34  ;;  %2769 = vst.msk [vmem:[#allocation2 + $0x70] sm:$0xf] %vm2754_vm9, %v7694_v46  ;;  %4610 = vmatmul.mubr.bf16.gmra.mxu1 %v5985_v36  ;;  %v2132_v34 = vrot.slane %v7906_v40, 1  ;;  %v1517_v40 = vshll.u32 %v1007_v52, 16 }
 0x224   :  { %3059 = vst.msk [vmem:[#allocation2 + $0x78] sm:$0xf] %vm3043_vm10, %v7830_v6  ;;  %3058 = vst.msk [vmem:[#allocation2 + $0x70] sm:$0xf] %vm3043_vm10, %v7832_v39  ;;  %v3412_v13 = vpop.permute.xlu1 %3411  ;;  %v3410_v9 = vpop.permute.xlu0 %3409  ;;  %v6379_v46 = vld [vmem:[#allocation2 + $0x64] ss:$8 sps:$4 sm:$0xff]  }
 0x225   :  { %3332 = vst.msk [vmem:[#allocation2 + $0x78] sm:$0xf] %vm3316_vm11, %v7793_v38  ;;  %3331 = vst.msk [vmem:[#allocation2 + $0x70] sm:$0xf] %vm3316_vm11, %v7795_v22  ;;  %v8002_v38 = vsel %vm2083_vm5, %v2132_v34, %v2133_v15  ;;  %v974_v6 = vsel %vm6705_vm3, 0, %v788_v8  ;;  %6054 = vmatprep.mubr.msk.bf16.mxu1 %vm4440_vm14, %v6379_v46  ;;  %v1519_v10 = vrot.slane %v1517_v40, 1 }
 0x226   :  { %3583 = vst.msk [vmem:[#allocation2 + $0x78] sm:$0xf] %vm3567_vm12, %v3412_v13  ;;  %3582 = vst.msk [vmem:[#allocation2 + $0x70] sm:$0xf] %vm3567_vm12, %v3410_v9  ;;  %2901 = vrot.lane.b32.xlu1 %v7894_v32, %s6520_s26  ;;  %2899 = vrot.lane.b32.xlu0 %v7902_v42, %s6520_s26  ;;  %v1512_v37 = vshll.u32 %v974_v6, 16  ;;  %v2136_v50 = vrot.slane %v1007_v52, 1  ;;  %v8021_v47 = vcombine.high %v974_v6, %v974_v6 }
 0x227   :  { %v6381_v39 = vld [vmem:[#allocation2 + $0x60] ss:$8 sps:$4 sm:$0xff]   ;;  %v8023_v29 = vcombine.low %v974_v6, %v974_v6  ;;  %v1510_v31 = vshrl.u32 %v974_v6, 16  ;;  %v2135_v33 = vrot.slane %v974_v6, 1 }
 0x228   :  { %v2597_v22 = vpop.permute.xlu1 %2596  ;;  %v2595_v41 = vpop.permute.xlu0 %2594  ;;  %v1514_v14 = vrot.slane %v1512_v37, 1  ;;  %1277 = vst.msk [vmem:[#allocation2 + $0x128] sm:$0xf] %vm1239_vm4, %v8021_v47  ;;  %v8056_v8 = vld [vmem:[%s10821_s2] ss:$0 sm:$0xff] }
 0x229   :  { %2772 = vst.msk [vmem:[#allocation2 + $0x88] sm:$0xf] %vm2754_vm9, %v2597_v22  ;;  %2771 = vst.msk [vmem:[#allocation2 + $0x80] sm:$0xf] %vm2754_vm9, %v2595_v41  ;;  %v2137_v19 = vsel %vm2083_vm5, %v2135_v33, %v2136_v50 }
 0x22a   :  { %3174 = vrot.lane.b32.xlu1 %v7526_v23, %s6518_s24  ;;  %3172 = vrot.lane.b32.xlu0 %v7528_v4, %s6518_s24  ;;  %1276 = vst.msk [vmem:[#allocation2 + $0x120] sm:$0xf] %vm1239_vm4, %v8023_v29  ;;  %v1515_v62 = vor.u32 %v1514_v14, %v1510_v31  ;;  %v8045_v36 = vcombine.high %v2137_v19, %v2137_v19 }
 0x22b   :  { %4618 = vmatmul.mubr.bf16.gmra.mxu1 %v6381_v39  ;;  %v8047_v15 = vcombine.low %v2137_v19, %v2137_v19 }
 0x22c   :  { %v8013_v26 = vpop.permute.xlu1 %3162  ;;  %v8015_v44 = vpop.permute.xlu0 %3160  ;;  %v8043_v24 = vsel %vm1304_vm6, %v1515_v62, %v1519_v10  ;;  %3978 = vst.msk [vmem:[#allocation2 + $0x10c] sm:$0xf] %vm1239_vm4, %v8045_v36 }
 0x22d   :  { %v6233_v49 = vpop.f32.mrf.mxu0  ;;  %3977 = vst.msk [vmem:[#allocation2 + $0x104] sm:$0xf] %vm1239_vm4, %v8047_v15 }
 0x22e   :  { %3431 = vrot.lane.b32.xlu1 %v7512_v58, %s6522_s28  ;;  %3429 = vrot.lane.b32.xlu0 %v7514_v43, %s6522_s28 }
 0x22f   :  { %v449_v30 = vpop.f32.mrf.mxu0 }
 0x230   :  { %v2344_v17 = vpop.permute.xlu1 %2343  ;;  %v2342_v18 = vpop.permute.xlu0 %2341  ;;  %v450_v34 = vadd.f32 %v8056_v8, %v449_v30 }
 0x231   :  { %v6234_v46 = vpop.f32.mrf.mxu0 }
 0x232   :  { %3682 = vrot.lane.b32.xlu1 %v8027_v12, %s6524_s14  ;;  %3680 = vrot.lane.b32.xlu0 %v8031_v27, %s6524_s14  ;;  %v596_v6 = vmax.f32 %v450_v34, 0.0 }
 0x233   :  { %v452_v52 = vpop.f32.mrf.mxu0 }
 0x234   :  { %v8049_v13 = vpop.permute.xlu1 %3158  ;;  %v8051_v9 = vpop.permute.xlu0 %3156  ;;  %v453_v39 = vadd.f32 %v8056_v8, %v452_v52 }
 0x236   :  { %1855 = vrot.lane.b32.xlu1 %v7894_v32, %s6521_s27  ;;  %1853 = vrot.lane.b32.xlu0 %v7902_v42, %s6521_s27  ;;  %v597_v40 = vmax.f32 %v453_v39, 0.0  ;;  %v93_v39 = vld [vmem:[%s10820_s0 + $0x1b0] sm:$0xff] }
 0x238   :  { %v8067_v22 = vpop.permute.xlu1 %2339  ;;  %v8069_v41 = vpop.permute.xlu0 %2337  ;;  %v642_v42 = vpack.c.bf16 %v597_v40, %v596_v6  ;;  %v94_v40 = vld [vmem:[%s10820_s0 + $0x1b8] sm:$0xff] }
 0x23a   :  { %2355 = vrot.lane.b32.xlu1 %v7526_v23, %s6519_s25  ;;  %2353 = vrot.lane.b32.xlu0 %v7528_v4, %s6519_s25  ;;  %v790_v10 = vshrl.u32 %v642_v42, 16  ;;  %v793_v4 = vshll.u32 %v642_v42, 16  ;;  %v130_v42 = vpack.c.bf16 %v94_v40, %v93_v39 }
 0x23c   :  { %v8076_v37 = vpop.permute.xlu1 %3666  ;;  %v8078_v32 = vpop.permute.xlu0 %3664  ;;  %v792_v23 = vrot.slane %v790_v10, 7 }
 0x23e   :  { %2616 = vrot.lane.b32.xlu1 %v7512_v58, %s6517_s23  ;;  %2614 = vrot.lane.b32.xlu0 %v7514_v43, %s6517_s23  ;;  %v458_v58 = vadd.f32 %v8056_v8, %v6233_v49  ;;  %v461_v43 = vadd.f32 %v8056_v8, %v6234_v46  ;;  %v795_v62 = vor.u32 %v793_v4, %v792_v23  ;;  %v8122_v52 = vsel %vm6705_vm3, %v792_v23, 0 }
 0x23f   :  { %v8136_v23 = vcombine.low %v7701_v56, %v7701_v56 }
 0x240   :  { %v8084_v50 = vpop.permute.xlu1 %2889  ;;  %v8086_v31 = vpop.permute.xlu0 %2887  ;;  %v598_v34 = vmax.f32 %v458_v58, 0.0  ;;  %v599_v49 = vmax.f32 %v461_v43, 0.0  ;;  %v8118_v46 = vsel %vm6705_vm3, 0, %v795_v62  ;;  %v1529_v58 = vshll.u32 %v8122_v52, 16 }
 0x241   :  { %v8146_v43 = vcombine.high %v8118_v46, %v8118_v46  ;;  %v8154_v62 = vcombine.low %v8118_v46, %v8118_v46  ;;  %v1522_v39 = vshrl.u32 %v8118_v46, 16 }
 0x242   :  { %2905 = vrot.lane.b32.xlu1 %v8027_v12, %s6520_s26  ;;  %2903 = vrot.lane.b32.xlu0 %v8031_v27, %s6520_s26 }
 0x243   :  { %1279 = vst.msk [vmem:[#allocation2 + $0x138] sm:$0xf] %vm1239_vm4, %v8146_v43  ;;  %1278 = vst.msk [vmem:[#allocation2 + $0x130] sm:$0xf] %vm1239_vm4, %v8154_v62 }
 0x244   :  { %v1844_v14 = vpop.permute.xlu1 %1843  ;;  %v1842_v33 = vpop.permute.xlu0 %1841 }
 0x245   :  { %2009 = vst.msk [vmem:[#allocation2 + $0xa8] sm:$0xf] %vm1987_vm7, %v1844_v14  ;;  %2008 = vst.msk [vmem:[#allocation2 + $0xa0] sm:$0xf] %vm1987_vm7, %v1842_v33  ;;  %v8132_v14 = vcombine.high %v7701_v56, %v7701_v56  ;;  %v1524_v33 = vshll.u32 %v8118_v46, 16  ;;  %v643_v56 = vpack.c.bf16 %v599_v49, %v598_v34 }
 0x246   :  { %2509 = vst.msk [vmem:[#allocation2 + $0xa8] sm:$0xf] %vm2487_vm8, %v2344_v17  ;;  %2508 = vst.msk [vmem:[#allocation2 + $0xa0] sm:$0xf] %vm2487_vm8, %v2342_v18  ;;  %3178 = vrot.lane.b32.xlu1 %v7531_v45, %s6518_s24  ;;  %3176 = vrot.lane.b32.xlu0 %v7533_v28, %s6518_s24  ;;  %v91_v17 = vld [vmem:[%s10820_s0 + $0x1a0] sm:$0xff]  ;;  %v92_v18 = vld [vmem:[%s10820_s0 + $0x1a8] sm:$0xff] }
 0x247   :  { %v129_v6 = vpack.c.bf16 %v92_v18, %v91_v17  ;;  %v1526_v34 = vrot.slane %v1524_v33, 1  ;;  %v797_v49 = vshrl.u32 %v643_v56, 16  ;;  %v8229_v33 = vcombine.high %v7672_v51, %v7672_v51 }
 0x248   :  { %v8102_v19 = vpop.permute.xlu1 %3423  ;;  %v8104_v30 = vpop.permute.xlu0 %3421 }
 0x249   :  { %6247 = vmatprep.mubr.msk.bf16.mxu0 %vm174_vm0, %v129_v6  ;;  %v1531_v6 = vrot.slane %v1529_v58, 1  ;;  %v1527_v40 = vor.u32 %v1526_v34, %v1522_v39  ;;  %v8233_v58 = vcombine.low %v7672_v51, %v7672_v51 }
 0x24a   :  { %3435 = vrot.lane.b32.xlu1 %v7664_v7, %s6522_s28  ;;  %3433 = vrot.lane.b32.xlu0 %v7666_v35, %s6522_s28 }
 0x24b   :  { %6248 = vmatmul.mubr.msk.bf16.gmra.mxu0 %vm174_vm0, %v130_v42 }
 0x24c   :  { %v3663_v10 = vpop.permute.xlu1 %3662  ;;  %v3661_v4 = vpop.permute.xlu0 %3660 }
 0x24d   :  { %3834 = vst.msk [vmem:[#allocation2 + $0x78] sm:$0xf] %vm3818_vm13, %v3663_v10  ;;  %3833 = vst.msk [vmem:[#allocation2 + $0x70] sm:$0xf] %vm3818_vm13, %v3661_v4  ;;  %v6382_v10 = vld [vmem:[#allocation2 + $0x74] ss:$8 sps:$4 sm:$0xff]  }
 0x24e   :  { %3686 = vrot.lane.b32.xlu1 %v8132_v14, %s6524_s14  ;;  %3684 = vrot.lane.b32.xlu0 %v8136_v23, %s6524_s14  ;;  %v2139_v4 = vrot.slane %v8122_v52, 1 }
 0x24f   :  { %6055 = vmatprep.mubr.msk.bf16.mxu1 %vm4440_vm14, %v6382_v10 }
 0x250   :  { %v2886_v17 = vpop.permute.xlu1 %2885  ;;  %v2884_v18 = vpop.permute.xlu0 %2883 }
 0x251   :  { %3061 = vst.msk [vmem:[#allocation2 + $0x88] sm:$0xf] %vm3043_vm10, %v2886_v17  ;;  %3060 = vst.msk [vmem:[#allocation2 + $0x80] sm:$0xf] %vm3043_vm10, %v2884_v18 }
 0x252   :  { %3334 = vst.msk [vmem:[#allocation2 + $0x88] sm:$0xf] %vm3316_vm11, %v8049_v13  ;;  %3333 = vst.msk [vmem:[#allocation2 + $0x80] sm:$0xf] %vm3316_vm11, %v8051_v9  ;;  %1859 = vrot.lane.b32.xlu1 %v8027_v12, %s6521_s27  ;;  %1857 = vrot.lane.b32.xlu0 %v8031_v27, %s6521_s27  ;;  %v8182_v27 = vsel %vm1304_vm6, %v1527_v40, %v1531_v6  ;;  %v2138_v6 = vrot.slane %v8118_v46, 1 }
 0x253   :  { %3585 = vst.msk [vmem:[#allocation2 + $0x88] sm:$0xf] %vm3567_vm12, %v7862_v3  ;;  %3584 = vst.msk [vmem:[#allocation2 + $0x80] sm:$0xf] %vm3567_vm12, %v7864_v57  ;;  %v799_v57 = vrot.slane %v797_v49, 7 }
 0x254   :  { %3836 = vst.msk [vmem:[#allocation2 + $0x88] sm:$0xf] %vm3818_vm13, %v8076_v37  ;;  %3835 = vst.msk [vmem:[#allocation2 + $0x80] sm:$0xf] %vm3818_vm13, %v8078_v32  ;;  %v1840_v13 = vpop.permute.xlu1 %1839  ;;  %v1838_v9 = vpop.permute.xlu0 %1837  ;;  %v4023_v12 = vld [vmem:[#allocation2 + $0x70] sm:$0xff]  ;;  %v4024_v42 = vld [vmem:[#allocation2 + $0x78] sm:$0xff]  ;;  %v2140_v51 = vsel %vm2083_vm5, %v2138_v6, %v2139_v4 }
 0x255   :  { %2007 = vst.msk [vmem:[#allocation2 + $0x98] sm:$0xf] %vm1987_vm7, %v1840_v13  ;;  %2006 = vst.msk [vmem:[#allocation2 + $0x90] sm:$0xf] %vm1987_vm7, %v1838_v9  ;;  %v5989_v3 = vcombine.low %v4023_v12, %v4024_v42  ;;  %v800_v37 = vshll.u32 %v643_v56, 16  ;;  %v8249_v46 = vcombine.high %v2140_v51, %v2140_v51  ;;  %v8251_v9 = vcombine.low %v2140_v51, %v2140_v51 }
 0x256   :  { %2507 = vst.msk [vmem:[#allocation2 + $0x98] sm:$0xf] %vm2487_vm8, %v8067_v22  ;;  %2506 = vst.msk [vmem:[#allocation2 + $0x90] sm:$0xf] %vm2487_vm8, %v8069_v41  ;;  %2359 = vrot.lane.b32.xlu1 %v7531_v45, %s6519_s25  ;;  %2357 = vrot.lane.b32.xlu0 %v7533_v28, %s6519_s25  ;;  %v6387_v4 = vld [vmem:[#allocation2 + $0x94] ss:$8 sps:$4 sm:$0xff]  }
 0x257   :  { %2774 = vst.msk [vmem:[#allocation2 + $0x98] sm:$0xf] %vm2754_vm9, %v7896_v5  ;;  %2773 = vst.msk [vmem:[#allocation2 + $0x90] sm:$0xf] %vm2754_vm9, %v7898_v53  ;;  %4626 = vmatmul.mubr.bf16.gmra.mxu1 %v5989_v3  ;;  %v802_v28 = vor.u32 %v800_v37, %v799_v57  ;;  %v6384_v5 = vld [vmem:[#allocation2 + $0x84] ss:$8 sps:$4 sm:$0xff]   ;;  %v8260_v37 = vcombine.low %v7727_v11, %v7727_v11 }
 0x258   :  { %3063 = vst.msk [vmem:[#allocation2 + $0x98] sm:$0xf] %vm3043_vm10, %v8084_v50  ;;  %3062 = vst.msk [vmem:[#allocation2 + $0x90] sm:$0xf] %vm3043_vm10, %v8086_v31  ;;  %v3420_v45 = vpop.permute.xlu1 %3419  ;;  %v3418_v22 = vpop.permute.xlu0 %3417  ;;  %6056 = vmatprep.mubr.msk.bf16.mxu1 %vm4440_vm14, %v6384_v5  ;;  %v8315_v6 = vld [vmem:[%s10823_s4] ss:$0 sm:$0xff] }
 0x259   :  { %3336 = vst.msk [vmem:[#allocation2 + $0x98] sm:$0xf] %vm3316_vm11, %v8013_v26  ;;  %3335 = vst.msk [vmem:[#allocation2 + $0x90] sm:$0xf] %vm3316_vm11, %v8015_v44  ;;  %v1009_v26 = vsel %vm6705_vm3, %v799_v57, 0  ;;  %v8256_v57 = vcombine.high %v7727_v11, %v7727_v11 }
 0x25a   :  { %3587 = vst.msk [vmem:[#allocation2 + $0x98] sm:$0xf] %vm3567_vm12, %v3420_v45  ;;  %3586 = vst.msk [vmem:[#allocation2 + $0x90] sm:$0xf] %vm3567_vm12, %v3418_v22  ;;  %2620 = vrot.lane.b32.xlu1 %v7664_v7, %s6517_s23  ;;  %2618 = vrot.lane.b32.xlu0 %v7666_v35, %s6517_s23  ;;  %v976_v35 = vsel %vm6705_vm3, 0, %v802_v28  ;;  %v1541_v31 = vshll.u32 %v1009_v26, 16 }
 0x25b   :  { %v6386_v7 = vld [vmem:[#allocation2 + $0x80] ss:$8 sps:$4 sm:$0xff]   ;;  %v1536_v50 = vshll.u32 %v976_v35, 16  ;;  %v2142_v56 = vrot.slane %v1009_v26, 1  ;;  %v8236_v39 = vcombine.high %v976_v35, %v976_v35  ;;  %v8238_v34 = vcombine.low %v976_v35, %v976_v35  ;;  %3980 = vst.msk [vmem:[#allocation2 + $0x11c] sm:$0xf] %vm1239_vm4, %v8249_v46 }
 0x25c   :  { %v2605_v53 = vpop.permute.xlu1 %2604  ;;  %v2603_v41 = vpop.permute.xlu0 %2602  ;;  %v1534_v49 = vshrl.u32 %v976_v35, 16  ;;  %v1543_v40 = vrot.slane %v1541_v31, 1  ;;  %v2141_v13 = vrot.slane %v976_v35, 1  ;;  %3979 = vst.msk [vmem:[#allocation2 + $0x114] sm:$0xf] %vm1239_vm4, %v8251_v9 }
 0x25d   :  { %2776 = vst.msk [vmem:[#allocation2 + $0xa8] sm:$0xf] %vm2754_vm9, %v2605_v53  ;;  %2775 = vst.msk [vmem:[#allocation2 + $0xa0] sm:$0xf] %vm2754_vm9, %v2603_v41  ;;  %v1538_v52 = vrot.slane %v1536_v50, 1 }
 0x25e   :  { %2909 = vrot.lane.b32.xlu1 %v8132_v14, %s6520_s26  ;;  %2907 = vrot.lane.b32.xlu0 %v8136_v23, %s6520_s26  ;;  %1281 = vst.msk [vmem:[#allocation2 + $0x148] sm:$0xf] %vm1239_vm4, %v8236_v39  ;;  %1280 = vst.msk [vmem:[#allocation2 + $0x140] sm:$0xf] %vm1239_vm4, %v8238_v34  ;;  %v2143_v42 = vsel %vm2083_vm5, %v2141_v13, %v2142_v56  ;;  %v6389_v13 = vld [vmem:[#allocation2 + $0xa4] ss:$8 sps:$4 sm:$0xff]  }
 0x25f   :  { %4634 = vmatmul.mubr.bf16.gmra.mxu1 %v6386_v7  ;;  %v1539_v12 = vor.u32 %v1538_v52, %v1534_v49  ;;  %v8262_v45 = vcombine.high %v2143_v42, %v2143_v42  ;;  %v8264_v22 = vcombine.low %v2143_v42, %v2143_v42 }
 0x260   :  { %v3167_v44 = vpop.permute.xlu1 %3166  ;;  %v3165_v32 = vpop.permute.xlu0 %3164  ;;  %6057 = vmatprep.mubr.msk.bf16.mxu1 %vm4440_vm14, %v6387_v4 }
 0x261   :  { %v8275_v5 = vsel %vm1304_vm6, %v1539_v12, %v1543_v40  ;;  %3982 = vst.msk [vmem:[#allocation2 + $0x12c] sm:$0xf] %vm1239_vm4, %v8262_v45  ;;  %3981 = vst.msk [vmem:[#allocation2 + $0x124] sm:$0xf] %vm1239_vm4, %v8264_v22 }
 0x262   :  { %3182 = vrot.lane.b32.xlu1 %v7711_v25, %s6518_s24  ;;  %3180 = vrot.lane.b32.xlu0 %v7713_v21, %s6518_s24 }
 0x264   :  { %v3675_v17 = vpop.permute.xlu1 %3674  ;;  %v3673_v18 = vpop.permute.xlu0 %3672 }
 0x266   :  { %3439 = vrot.lane.b32.xlu1 %v8229_v33, %s6522_s28  ;;  %3437 = vrot.lane.b32.xlu0 %v8233_v58, %s6522_s28 }
 0x267   :  { %v8268_v28 = vpop.f32.mrf.mxu0 }
 0x268   :  { %v3671_v10 = vpop.permute.xlu1 %3670  ;;  %v3669_v3 = vpop.permute.xlu0 %3668 }
 0x269   :  { %3838 = vst.msk [vmem:[#allocation2 + $0x98] sm:$0xf] %vm3818_vm13, %v3671_v10  ;;  %3837 = vst.msk [vmem:[#allocation2 + $0x90] sm:$0xf] %vm3818_vm13, %v3669_v3  ;;  %v465_v11 = vpop.f32.mrf.mxu0 }
 0x26a   :  { %3690 = vrot.lane.b32.xlu1 %v8256_v57, %s6524_s14  ;;  %3688 = vrot.lane.b32.xlu0 %v8260_v37, %s6524_s14  ;;  %v466_v7 = vadd.f32 %v8056_v8, %v465_v11 }
 0x26b   :  { %v8288_v35 = vpop.f32.mrf.mxu0 }
 0x26c   :  { %v2894_v53 = vpop.permute.xlu1 %2893  ;;  %v2892_v41 = vpop.permute.xlu0 %2891 }
 0x26d   :  { %3065 = vst.msk [vmem:[#allocation2 + $0xa8] sm:$0xf] %vm3043_vm10, %v2894_v53  ;;  %3064 = vst.msk [vmem:[#allocation2 + $0xa0] sm:$0xf] %vm3043_vm10, %v2892_v41  ;;  %v468_v26 = vpop.f32.mrf.mxu0 }
 0x26e   :  { %3338 = vst.msk [vmem:[#allocation2 + $0xa8] sm:$0xf] %vm3316_vm11, %v3167_v44  ;;  %3337 = vst.msk [vmem:[#allocation2 + $0xa0] sm:$0xf] %vm3316_vm11, %v3165_v32  ;;  %1863 = vrot.lane.b32.xlu1 %v8132_v14, %s6521_s27  ;;  %1861 = vrot.lane.b32.xlu0 %v8136_v23, %s6521_s27  ;;  %v600_v14 = vmax.f32 %v466_v7, 0.0  ;;  %v469_v56 = vadd.f32 %v8056_v8, %v468_v26 }
 0x26f   :  { %3589 = vst.msk [vmem:[#allocation2 + $0xa8] sm:$0xf] %vm3567_vm12, %v8102_v19  ;;  %3588 = vst.msk [vmem:[#allocation2 + $0xa0] sm:$0xf] %vm3567_vm12, %v8104_v30 }
 0x270   :  { %3840 = vst.msk [vmem:[#allocation2 + $0xa8] sm:$0xf] %vm3818_vm13, %v3675_v17  ;;  %3839 = vst.msk [vmem:[#allocation2 + $0xa0] sm:$0xf] %vm3818_vm13, %v3673_v18  ;;  %v1848_v44 = vpop.permute.xlu1 %1847  ;;  %v1846_v50 = vpop.permute.xlu0 %1845  ;;  %v4027_v32 = vld [vmem:[#allocation2 + $0x90] sm:$0xff]  ;;  %v4028_v31 = vld [vmem:[#allocation2 + $0x98] sm:$0xff] }
 0x271   :  { %2011 = vst.msk [vmem:[#allocation2 + $0xb8] sm:$0xf] %vm1987_vm7, %v1848_v44  ;;  %2010 = vst.msk [vmem:[#allocation2 + $0xb0] sm:$0xf] %vm1987_vm7, %v1846_v50  ;;  %v5993_v19 = vcombine.low %v4027_v32, %v4028_v31  ;;  %v601_v30 = vmax.f32 %v469_v56, 0.0  ;;  %v474_v32 = vadd.f32 %v8056_v8, %v8268_v28 }
 0x272   :  { %2363 = vrot.lane.b32.xlu1 %v7711_v25, %s6519_s25  ;;  %2361 = vrot.lane.b32.xlu0 %v7713_v21, %s6519_s25  ;;  %v4579_v25 = vpop.f32.mrf.mxu1 }
 0x273   :  { %4642 = vmatmul.mubr.bf16.gmra.mxu1 %v5993_v19  ;;  %v644_v18 = vpack.c.bf16 %v601_v30, %v600_v14  ;;  %v4580_v51 = vadd.f32 %v8315_v6, %v4579_v25  ;;  %v602_v30 = vmax.f32 %v474_v32, 0.0 }
 0x274   :  { %v2348_v23 = vpop.permute.xlu1 %2347  ;;  %v2346_v17 = vpop.permute.xlu0 %2345  ;;  %6058 = vmatprep.mubr.msk.bf16.mxu1 %vm4440_vm14, %v6389_v13 }
 0x275   :  { %2511 = vst.msk [vmem:[#allocation2 + $0xb8] sm:$0xf] %vm2487_vm8, %v2348_v23  ;;  %2510 = vst.msk [vmem:[#allocation2 + $0xb0] sm:$0xf] %vm2487_vm8, %v2346_v17  ;;  %v804_v21 = vshrl.u32 %v644_v18, 16  ;;  %v4581_v49 = vpop.f32.mrf.mxu1  ;;  %v807_v11 = vshll.u32 %v644_v18, 16 }
 0x276   :  { %2624 = vrot.lane.b32.xlu1 %v8229_v33, %s6517_s23  ;;  %2622 = vrot.lane.b32.xlu0 %v8233_v58, %s6517_s23  ;;  %v4828_v41 = vmax.f32 %v4580_v51, 0.0  ;;  %v96_v17 = vld [vmem:[%s10820_s0 + $0x1c8] sm:$0xff]  ;;  %v97_v49 = vld [vmem:[%s10820_s0 + $0x1d0] sm:$0xff] }
 0x277   :  { %v4029_v40 = vld [vmem:[#allocation2 + $0xa0] sm:$0xff]  ;;  %v4030_v52 = vld [vmem:[#allocation2 + $0xa8] sm:$0xff]  ;;  %v4582_v3 = vpop.f32.mrf.mxu1  ;;  %v806_v58 = vrot.slane %v804_v21, 7 }
 0x278   :  { %v2609_v12 = vpop.permute.xlu1 %2608  ;;  %v2607_v42 = vpop.permute.xlu0 %2606  ;;  %v5995_v10 = vcombine.low %v4029_v40, %v4030_v52  ;;  %v4583_v33 = vadd.f32 %v8315_v6, %v4582_v3 }
 0x279   :  { %2778 = vst.msk [vmem:[#allocation2 + $0xb8] sm:$0xf] %vm2754_vm9, %v2609_v12  ;;  %2777 = vst.msk [vmem:[#allocation2 + $0xb0] sm:$0xf] %vm2754_vm9, %v2607_v42  ;;  %v4584_v53 = vpop.f32.mrf.mxu1  ;;  %v809_v31 = vor.u32 %v807_v11, %v806_v58  ;;  %v8366_v25 = vsel %vm6705_vm3, %v806_v58, 0 }
 0x27a   :  { %2913 = vrot.lane.b32.xlu1 %v8256_v57, %s6520_s26  ;;  %2911 = vrot.lane.b32.xlu0 %v8260_v37, %s6520_s26  ;;  %v4829_v7 = vmax.f32 %v4583_v33, 0.0  ;;  %v477_v57 = vadd.f32 %v8056_v8, %v8288_v35  ;;  %v5839_v35 = vcombine.high %v7869_v20, %v7869_v20 }
 0x27b   :  { %4650 = vmatmul.mubr.bf16.gmra.mxu1 %v5995_v10  ;;  %v4587_v50 = vpop.f32.mrf.mxu1  ;;  %v1553_v10 = vshll.u32 %v8366_v25, 16 }
 0x27c   :  { %v2898_v26 = vpop.permute.xlu1 %2897  ;;  %v2896_v44 = vpop.permute.xlu0 %2895  ;;  %v8336_v37 = vpack.c.bf16 %v4829_v7, %v4828_v41  ;;  %v4588_v14 = vadd.f32 %v8315_v6, %v4587_v50  ;;  %v603_v23 = vmax.f32 %v477_v57, 0.0 }
 0x27d   :  { %3067 = vst.msk [vmem:[#allocation2 + $0xb8] sm:$0xf] %vm3043_vm10, %v2898_v26  ;;  %3066 = vst.msk [vmem:[#allocation2 + $0xb0] sm:$0xf] %vm3043_vm10, %v2896_v44  ;;  %v4589_v4 = vpop.f32.mrf.mxu1  ;;  %v1555_v7 = vrot.slane %v1553_v10, 1 }
 0x27e   :  { %3186 = vrot.lane.b32.xlu1 %v7716_v54, %s6518_s24  ;;  %3184 = vrot.lane.b32.xlu0 %v7718_v60, %s6518_s24  ;;  %v5838_v54 = vcombine.low %v7869_v20, %v7869_v20  ;;  %v95_v60 = vld [vmem:[%s10820_s0 + $0x1c0] sm:$0xff]  ;;  %v8362_v20 = vsel %vm6705_vm3, 0, %v809_v31  ;;  %v645_v58 = vpack.c.bf16 %v603_v23, %v602_v30  ;;  %v6391_v30 = vld [vmem:[#allocation2 + $0xb4] ss:$8 sps:$4 sm:$0xff]  }
 0x27f   :  { %v4590_v28 = vpop.f32.mrf.mxu1  ;;  %v131_v21 = vpack.c.bf16 %v96_v17, %v95_v60  ;;  %v1548_v42 = vshll.u32 %v8362_v20, 16  ;;  %v8382_v3 = vcombine.high %v8362_v20, %v8362_v20  ;;  %v8390_v11 = vcombine.low %v8362_v20, %v8362_v20  ;;  %6059 = vmatprep.mubr.msk.bf16.mxu1 %vm4440_vm14, %v6391_v30 }
 0x280   :  { %v3171_v56 = vpop.permute.xlu1 %3170  ;;  %v3169_v19 = vpop.permute.xlu0 %3168  ;;  %v4591_v18 = vadd.f32 %v8315_v6, %v4590_v28  ;;  %v1546_v26 = vshrl.u32 %v8362_v20, 16  ;;  %v811_v50 = vshrl.u32 %v645_v58, 16  ;;  %v2144_v10 = vrot.slane %v8362_v20, 1 }
 0x281   :  { %3340 = vst.msk [vmem:[#allocation2 + $0xb8] sm:$0xf] %vm3316_vm11, %v3171_v56  ;;  %3339 = vst.msk [vmem:[#allocation2 + $0xb0] sm:$0xf] %vm3316_vm11, %v3169_v19  ;;  %v4592_v40 = vpop.f32.mrf.mxu1  ;;  %6251 = vmatprep.mubr.msk.bf16.mxu0 %vm174_vm0, %v131_v21  ;;  %v1550_v44 = vrot.slane %v1548_v42, 1  ;;  %v814_v56 = vshll.u32 %v645_v58, 16 }
 0x282   :  { %3443 = vrot.lane.b32.xlu1 %v7836_v1, %s6522_s28  ;;  %3441 = vrot.lane.b32.xlu0 %v7838_v61, %s6522_s28  ;;  %v98_v1 = vld [vmem:[%s10820_s0 + $0x1d8] sm:$0xff]  ;;  %v4830_v61 = vmax.f32 %v4588_v14, 0.0  ;;  %v4831_v13 = vmax.f32 %v4591_v18, 0.0  ;;  %1283 = vst.msk [vmem:[#allocation2 + $0x158] sm:$0xf] %vm1239_vm4, %v8382_v3  ;;  %v813_v14 = vrot.slane %v811_v50, 7 }
 0x283   :  { %v132_v52 = vpack.c.bf16 %v98_v1, %v97_v49  ;;  %1282 = vst.msk [vmem:[#allocation2 + $0x150] sm:$0xf] %vm1239_vm4, %v8390_v11  ;;  %v1551_v32 = vor.u32 %v1550_v44, %v1546_v26 }
 0x284   :  { %v3428_v51 = vpop.permute.xlu1 %3427  ;;  %v3426_v12 = vpop.permute.xlu0 %3425  ;;  %v8384_v33 = vpack.c.bf16 %v4831_v13, %v4830_v61  ;;  %v816_v60 = vor.u32 %v814_v56, %v813_v14  ;;  %v1011_v18 = vsel %vm6705_vm3, %v813_v14, 0  ;;  %v8436_v61 = vcombine.high %v7968_v63, %v7968_v63 }
 0x285   :  { %3591 = vst.msk [vmem:[#allocation2 + $0xb8] sm:$0xf] %vm3567_vm12, %v3428_v51  ;;  %3590 = vst.msk [vmem:[#allocation2 + $0xb0] sm:$0xf] %vm3567_vm12, %v3426_v12  ;;  %6252 = vmatmul.mubr.msk.bf16.gmra.mxu0 %vm174_vm0, %v132_v52  ;;  %v8404_v4 = vsel %vm1304_vm6, %v1551_v32, %v1555_v7  ;;  %v1565_v40 = vshll.u32 %v1011_v18, 16  ;;  %v10875_v52 = vld [vmem:[#allocation10_spill] sm:$0xff]  ;;  %v8440_v13 = vcombine.low %v7968_v63, %v7968_v63 }
 0x286   :  { %3694 = vrot.lane.b32.xlu1 %v5839_v35, %s6524_s14  ;;  %3692 = vrot.lane.b32.xlu0 %v5838_v54, %s6524_s14  ;;  %v2148_v51 = vrot.slane %v1011_v18, 1 }
 0x288   :  { %v3679_v53 = vpop.permute.xlu1 %3678  ;;  %v3677_v41 = vpop.permute.xlu0 %3676 }
 0x289   :  { %3842 = vst.msk [vmem:[#allocation2 + $0xb8] sm:$0xf] %vm3818_vm13, %v3679_v53  ;;  %3841 = vst.msk [vmem:[#allocation2 + $0xb0] sm:$0xf] %vm3818_vm13, %v3677_v41 }
 0x28a   :  { %1803 = vrot.lane.b32.xlu1 %v5839_v35, %s6521_s27  ;;  %1801 = vrot.lane.b32.xlu0 %v5838_v54, %s6521_s27 }
 0x28c   :  { %v1852_v57 = vpop.permute.xlu1 %1851  ;;  %v1850_v31 = vpop.permute.xlu0 %1849 }
 0x28d   :  { %2013 = vst.msk [vmem:[#allocation2 + $0xc8] sm:$0xf] %vm1987_vm7, %v1852_v57  ;;  %2012 = vst.msk [vmem:[#allocation2 + $0xc0] sm:$0xf] %vm1987_vm7, %v1850_v31 }
 0x28e   :  { %2303 = vrot.lane.b32.xlu1 %v7882_v59, %s6519_s25  ;;  %2301 = vrot.lane.b32.xlu0 %v7884_v55, %s6519_s25  ;;  %v10874_v59 = vld [vmem:[#allocation11_spill] sm:$0xff] }
 0x290   :  { %v2352_v19 = vpop.permute.xlu1 %2351  ;;  %v2350_v28 = vpop.permute.xlu0 %2349  ;;  %v4031_v35 = vld [vmem:[#allocation2 + $0xb0] sm:$0xff]  ;;  %v4032_v54 = vld [vmem:[#allocation2 + $0xb8] sm:$0xff] }
 0x291   :  { %2513 = vst.msk [vmem:[#allocation2 + $0xc8] sm:$0xf] %vm2487_vm8, %v2352_v19  ;;  %2512 = vst.msk [vmem:[#allocation2 + $0xc0] sm:$0xf] %vm2487_vm8, %v2350_v28  ;;  %v5997_v23 = vcombine.low %v4031_v35, %v4032_v54  ;;  %v10877_v35 = vld [vmem:[#allocation7_spill] sm:$0xff]  ;;  %v10878_v54 = vld [vmem:[#allocation6_spill] sm:$0xff] }
 0x292   :  { %2564 = vrot.lane.b32.xlu1 %v6948_v16, %s6517_s23  ;;  %2562 = vrot.lane.b32.xlu0 %v10874_v59, %s6517_s23  ;;  %v978_v16 = vsel %vm6705_vm3, 0, %v816_v60  ;;  %v8488_v60 = vcombine.high %v8002_v38, %v8002_v38 }
 0x293   :  { %4658 = vmatmul.mubr.bf16.gmra.mxu1 %v5997_v23  ;;  %v1560_v1 = vshll.u32 %v978_v16, 16  ;;  %v8443_v58 = vcombine.high %v978_v16, %v978_v16  ;;  %v8445_v53 = vcombine.low %v978_v16, %v978_v16  ;;  %v1558_v41 = vshrl.u32 %v978_v16, 16 }
 0x294   :  { %v2613_v55 = vpop.permute.xlu1 %2612  ;;  %v2611_v17 = vpop.permute.xlu0 %2610  ;;  %v2147_v26 = vrot.slane %v978_v16, 1 }
 0x295   :  { %2780 = vst.msk [vmem:[#allocation2 + $0xc8] sm:$0xf] %vm2754_vm9, %v2613_v55  ;;  %2779 = vst.msk [vmem:[#allocation2 + $0xc0] sm:$0xf] %vm2754_vm9, %v2611_v17  ;;  %v1562_v7 = vrot.slane %v1560_v1, 1  ;;  %v8492_v55 = vcombine.low %v8002_v38, %v8002_v38  ;;  %v10879_v38 = vld [vmem:[#allocation3_spill] sm:$0xff] }
 0x296   :  { %2628 = vrot.lane.b32.xlu1 %v7920_v48, %s6517_s23  ;;  %2626 = vrot.lane.b32.xlu0 %v7932_v0, %s6517_s23  ;;  %v10876_v48 = vld [vmem:[#allocation9_spill] sm:$0xff]  ;;  %v2145_v0 = vrot.slane %v8366_v25, 1  ;;  %v1567_v25 = vrot.slane %v1565_v40, 1  ;;  %1285 = vst.msk [vmem:[#allocation2 + $0x168] sm:$0xf] %vm1239_vm4, %v8443_v58  ;;  %v2149_v57 = vsel %vm2083_vm5, %v2147_v26, %v2148_v51  ;;  %v10880_v40 = vld [vmem:[#allocation4_spill] sm:$0xff] }
 0x297   :  { %1284 = vst.msk [vmem:[#allocation2 + $0x160] sm:$0xf] %vm1239_vm4, %v8445_v53  ;;  %v8458_v20 = vpop.f32.mrf.mxu0  ;;  %v1563_v32 = vor.u32 %v1562_v7, %v1558_v41  ;;  %v8465_v56 = vcombine.high %v2149_v57, %v2149_v57  ;;  %v8467_v19 = vcombine.low %v2149_v57, %v2149_v57 }
 0x298   :  { %v2902_v21 = vpop.permute.xlu1 %2901  ;;  %v2900_v49 = vpop.permute.xlu0 %2899  ;;  %v2146_v63 = vsel %vm2083_vm5, %v2144_v10, %v2145_v0  ;;  %v102_v10 = vld [vmem:[%s10820_s0 + $0x1f8] sm:$0xff] }
 0x299   :  { %3069 = vst.msk [vmem:[#allocation2 + $0xc8] sm:$0xf] %vm3043_vm10, %v2902_v21  ;;  %3068 = vst.msk [vmem:[#allocation2 + $0xc0] sm:$0xf] %vm3043_vm10, %v2900_v49  ;;  %v8460_v44 = vcombine.high %v2146_v63, %v2146_v63  ;;  %v8462_v50 = vcombine.low %v2146_v63, %v2146_v63  ;;  %v8476_v28 = vsel %vm1304_vm6, %v1563_v32, %v1567_v25  ;;  %v481_v30 = vpop.f32.mrf.mxu0  ;;  %v6393_v63 = vld [vmem:[#allocation2 + $0xc4] ss:$8 sps:$4 sm:$0xff]  }
 0x29a   :  { %2853 = vrot.lane.b32.xlu1 %v10875_v52, %s6520_s26  ;;  %2851 = vrot.lane.b32.xlu0 %v10876_v48, %s6520_s26  ;;  %3986 = vst.msk [vmem:[#allocation2 + $0x14c] sm:$0xf] %vm1239_vm4, %v8465_v56  ;;  %3985 = vst.msk [vmem:[#allocation2 + $0x144] sm:$0xf] %vm1239_vm4, %v8467_v19  ;;  %v482_v16 = vadd.f32 %v8056_v8, %v481_v30  ;;  %v99_v52 = vld [vmem:[%s10820_s0 + $0x1e0] sm:$0xff]  ;;  %v100_v48 = vld [vmem:[%s10820_s0 + $0x1e8] sm:$0xff] }
 0x29b   :  { %3984 = vst.msk [vmem:[#allocation2 + $0x13c] sm:$0xf] %vm1239_vm4, %v8460_v44  ;;  %3983 = vst.msk [vmem:[#allocation2 + $0x134] sm:$0xf] %vm1239_vm4, %v8462_v50  ;;  %v6242_v17 = vpop.f32.mrf.mxu0  ;;  %6060 = vmatprep.mubr.msk.bf16.mxu1 %vm4440_vm14, %v6393_v63 }
 0x29c   :  { %v3175_v12 = vpop.permute.xlu1 %3174  ;;  %v3173_v42 = vpop.permute.xlu0 %3172  ;;  %v604_v0 = vmax.f32 %v482_v16, 0.0 }
 0x29d   :  { %3342 = vst.msk [vmem:[#allocation2 + $0xc8] sm:$0xf] %vm3316_vm11, %v3175_v12  ;;  %3341 = vst.msk [vmem:[#allocation2 + $0xc0] sm:$0xf] %vm3316_vm11, %v3173_v42  ;;  %v484_v18 = vpop.f32.mrf.mxu0  ;;  %v133_v12 = vpack.c.bf16 %v100_v48, %v99_v52  ;;  %v101_v42 = vld [vmem:[%s10820_s0 + $0x1f0] sm:$0xff] }
 0x29e   :  { %2917 = vrot.lane.b32.xlu1 %v8436_v61, %s6520_s26  ;;  %2915 = vrot.lane.b32.xlu0 %v8440_v13, %s6520_s26  ;;  %v485_v1 = vadd.f32 %v8056_v8, %v484_v18  ;;  %v134_v32 = vpack.c.bf16 %v102_v10, %v101_v42  ;;  %v10881_v18 = vld [vmem:[#allocation8_spill] sm:$0xff]  ;;  %v490_v10 = vadd.f32 %v8056_v8, %v8458_v20 }
 0x29f   :  { %6255 = vmatprep.mubr.msk.bf16.mxu0 %vm174_vm0, %v133_v12 }
 0x2a0   :  { %v3432_v31 = vpop.permute.xlu1 %3431  ;;  %v3430_v14 = vpop.permute.xlu0 %3429  ;;  %v605_v51 = vmax.f32 %v485_v1, 0.0  ;;  %6256 = vmatmul.mubr.msk.bf16.gmra.mxu0 %vm174_vm0, %v134_v32 }
 0x2a1   :  { %3593 = vst.msk [vmem:[#allocation2 + $0xc8] sm:$0xf] %vm3567_vm12, %v3432_v31  ;;  %3592 = vst.msk [vmem:[#allocation2 + $0xc0] sm:$0xf] %vm3567_vm12, %v3430_v14 }
 0x2a2   :  { %3126 = vrot.lane.b32.xlu1 %v10877_v35, %s6518_s24  ;;  %3124 = vrot.lane.b32.xlu0 %v10878_v54, %s6518_s24  ;;  %v646_v35 = vpack.c.bf16 %v605_v51, %v604_v0  ;;  %v8539_v0 = vcombine.high %v8043_v24, %v8043_v24  ;;  %v8543_v51 = vcombine.low %v8043_v24, %v8043_v24 }
 0x2a4   :  { %v3683_v23 = vpop.permute.xlu1 %3682  ;;  %v3681_v59 = vpop.permute.xlu0 %3680  ;;  %v818_v1 = vshrl.u32 %v646_v35, 16 }
 0x2a5   :  { %3844 = vst.msk [vmem:[#allocation2 + $0xc8] sm:$0xf] %vm3818_vm13, %v3683_v23  ;;  %3843 = vst.msk [vmem:[#allocation2 + $0xc0] sm:$0xf] %vm3818_vm13, %v3681_v59 }
 0x2a6   :  { %3190 = vrot.lane.b32.xlu1 %v8488_v60, %s6518_s24  ;;  %3188 = vrot.lane.b32.xlu0 %v8492_v55, %s6518_s24 }
 0x2a8   :  { %v1856_v21 = vpop.permute.xlu1 %1855  ;;  %v1854_v49 = vpop.permute.xlu0 %1853 }
 0x2a9   :  { %2015 = vst.msk [vmem:[#allocation2 + $0xd8] sm:$0xf] %vm1987_vm7, %v1856_v21  ;;  %2014 = vst.msk [vmem:[#allocation2 + $0xd0] sm:$0xf] %vm1987_vm7, %v1854_v49  ;;  %v10882_v21 = vld [vmem:[#allocation5_spill] sm:$0xff] }
 0x2aa   :  { %3383 = vrot.lane.b32.xlu1 %v10879_v38, %s6522_s28  ;;  %3381 = vrot.lane.b32.xlu0 %v10880_v40, %s6522_s28 }
 0x2ab   :  { %v4595_v57 = vpop.f32.mrf.mxu1 }
 0x2ac   :  { %v2356_v41 = vpop.permute.xlu1 %2355  ;;  %v2354_v25 = vpop.permute.xlu0 %2353  ;;  %v4033_v7 = vld [vmem:[#allocation2 + $0xc0] sm:$0xff]  ;;  %v4034_v26 = vld [vmem:[#allocation2 + $0xc8] sm:$0xff]  ;;  %v4596_v54 = vadd.f32 %v8315_v6, %v4595_v57 }
 0x2ad   :  { %2515 = vst.msk [vmem:[#allocation2 + $0xd8] sm:$0xf] %vm2487_vm8, %v2356_v41  ;;  %2514 = vst.msk [vmem:[#allocation2 + $0xd0] sm:$0xf] %vm2487_vm8, %v2354_v25  ;;  %v5999_v31 = vcombine.low %v4033_v7, %v4034_v26  ;;  %v4597_v14 = vpop.f32.mrf.mxu1  ;;  %v493_v41 = vadd.f32 %v8056_v8, %v6242_v17  ;;  %v820_v25 = vrot.slane %v818_v1, 7  ;;  %v821_v7 = vshll.u32 %v646_v35, 16 }
 0x2ae   :  { %3447 = vrot.lane.b32.xlu1 %v8021_v47, %s6522_s28  ;;  %3445 = vrot.lane.b32.xlu0 %v8023_v29, %s6522_s28  ;;  %v4832_v38 = vmax.f32 %v4596_v54, 0.0  ;;  %v606_v8 = vmax.f32 %v490_v10, 0.0 }
 0x2af   :  { %4666 = vmatmul.mubr.bf16.gmra.mxu1 %v5999_v31  ;;  %v4598_v59 = vpop.f32.mrf.mxu1  ;;  %v607_v20 = vmax.f32 %v493_v41, 0.0  ;;  %v823_v14 = vor.u32 %v821_v7, %v820_v25 }
 0x2b0   :  { %v2617_v30 = vpop.permute.xlu1 %2616  ;;  %v2615_v23 = vpop.permute.xlu0 %2614  ;;  %v4599_v16 = vadd.f32 %v8315_v6, %v4598_v59 }
 0x2b1   :  { %2782 = vst.msk [vmem:[#allocation2 + $0xd8] sm:$0xf] %vm2754_vm9, %v2617_v30  ;;  %2781 = vst.msk [vmem:[#allocation2 + $0xd0] sm:$0xf] %vm2754_vm9, %v2615_v23  ;;  %v4600_v49 = vpop.f32.mrf.mxu1 }
 0x2b2   :  { %3634 = vrot.lane.b32.xlu1 %v10881_v18, %s6524_s14  ;;  %3632 = vrot.lane.b32.xlu0 %v10882_v21, %s6524_s14  ;;  %v4833_v40 = vmax.f32 %v4599_v16, 0.0  ;;  %v8578_v16 = vsel %vm6705_vm3, %v820_v25, 0 }
 0x2b3   :  { %v4603_v12 = vpop.f32.mrf.mxu1 }
 0x2b4   :  { %v2906_v52 = vpop.permute.xlu1 %2905  ;;  %v2904_v48 = vpop.permute.xlu0 %2903  ;;  %v8547_v42 = vpack.c.bf16 %v4833_v40, %v4832_v38  ;;  %v4604_v26 = vadd.f32 %v8315_v6, %v4603_v12  ;;  %v1577_v38 = vshll.u32 %v8578_v16, 16 }
 0x2b5   :  { %3071 = vst.msk [vmem:[#allocation2 + $0xd8] sm:$0xf] %vm3043_vm10, %v2906_v52  ;;  %3070 = vst.msk [vmem:[#allocation2 + $0xd0] sm:$0xf] %vm3043_vm10, %v2904_v48  ;;  %v4605_v24 = vpop.f32.mrf.mxu1 }
 0x2b6   :  { %3698 = vrot.lane.b32.xlu1 %v8539_v0, %s6524_s14  ;;  %3696 = vrot.lane.b32.xlu0 %v8543_v51, %s6524_s14  ;;  %v4834_v35 = vmax.f32 %v4604_v26, 0.0  ;;  %v1579_v48 = vrot.slane %v1577_v38, 1  ;;  %v6395_v26 = vld [vmem:[#allocation2 + $0xd4] ss:$8 sps:$4 sm:$0xff]  }
 0x2b7   :  { %v4606_v57 = vpop.f32.mrf.mxu1  ;;  %6061 = vmatprep.mubr.msk.bf16.mxu1 %vm4440_vm14, %v6395_v26 }
 0x2b8   :  { %v3179_v63 = vpop.permute.xlu1 %3178  ;;  %v3177_v32 = vpop.permute.xlu0 %3176  ;;  %v4607_v31 = vadd.f32 %v8315_v6, %v4606_v57 }
 0x2b9   :  { %3344 = vst.msk [vmem:[#allocation2 + $0xd8] sm:$0xf] %vm3316_vm11, %v3179_v63  ;;  %3343 = vst.msk [vmem:[#allocation2 + $0xd0] sm:$0xf] %vm3316_vm11, %v3177_v32  ;;  %v4608_v17 = vpop.f32.mrf.mxu1 }
 0x2ba   :  { %1867 = vrot.lane.b32.xlu1 %v8436_v61, %s6521_s27  ;;  %1865 = vrot.lane.b32.xlu0 %v8440_v13, %s6521_s27  ;;  %v4835_v54 = vmax.f32 %v4607_v31, 0.0  ;;  %v647_v61 = vpack.c.bf16 %v607_v20, %v606_v8  ;;  %v8574_v13 = vsel %vm6705_vm3, 0, %v823_v14 }
 0x2bb   :  { %v8582_v49 = vcombine.high %v8574_v13, %v8574_v13  ;;  %v1572_v1 = vshll.u32 %v8574_v13, 16  ;;  %v1570_v12 = vshrl.u32 %v8574_v13, 16 }
 0x2bc   :  { %v3436_v30 = vpop.permute.xlu1 %3435  ;;  %v3434_v23 = vpop.permute.xlu0 %3433  ;;  %v8566_v59 = vpack.c.bf16 %v4835_v54, %v4834_v35 }
 0x2bd   :  { %3595 = vst.msk [vmem:[#allocation2 + $0xd8] sm:$0xf] %vm3567_vm12, %v3436_v30  ;;  %3594 = vst.msk [vmem:[#allocation2 + $0xd0] sm:$0xf] %vm3567_vm12, %v3434_v23  ;;  %v1574_v10 = vrot.slane %v1572_v1, 1  ;;  %v8629_v30 = vcombine.high %v8182_v27, %v8182_v27  ;;  %v8633_v23 = vcombine.low %v8182_v27, %v8182_v27  ;;  %v2150_v27 = vrot.slane %v8574_v13, 1 }
 0x2be   :  { %2367 = vrot.lane.b32.xlu1 %v8488_v60, %s6519_s25  ;;  %2365 = vrot.lane.b32.xlu0 %v8492_v55, %s6519_s25  ;;  %v8586_v60 = vcombine.low %v8574_v13, %v8574_v13  ;;  %v825_v55 = vshrl.u32 %v647_v61, 16  ;;  %1287 = vst.msk [vmem:[#allocation2 + $0x178] sm:$0xf] %vm1239_vm4, %v8582_v49 }
 0x2bf   :  { %v1575_v63 = vor.u32 %v1574_v10, %v1570_v12 }
 0x2c0   :  { %v3687_v18 = vpop.permute.xlu1 %3686  ;;  %v3685_v21 = vpop.permute.xlu0 %3684  ;;  %1286 = vst.msk [vmem:[#allocation2 + $0x170] sm:$0xf] %vm1239_vm4, %v8586_v60 }
 0x2c1   :  { %3846 = vst.msk [vmem:[#allocation2 + $0xd8] sm:$0xf] %vm3818_vm13, %v3687_v18  ;;  %3845 = vst.msk [vmem:[#allocation2 + $0xd0] sm:$0xf] %vm3818_vm13, %v3685_v21  ;;  %v8614_v31 = vsel %vm1304_vm6, %v1575_v63, %v1579_v48  ;;  %v2151_v21 = vrot.slane %v8578_v16, 1 }
 0x2c2   :  { %2632 = vrot.lane.b32.xlu1 %v8021_v47, %s6517_s23  ;;  %2630 = vrot.lane.b32.xlu0 %v8023_v29, %s6517_s23  ;;  %v828_v47 = vshll.u32 %v647_v61, 16  ;;  %v827_v29 = vrot.slane %v825_v55, 7 }
 0x2c3   :  { %v2152_v13 = vsel %vm2083_vm5, %v2150_v27, %v2151_v21 }
 0x2c4   :  { %v1860_v40 = vpop.permute.xlu1 %1859  ;;  %v1858_v52 = vpop.permute.xlu0 %1857  ;;  %v830_v57 = vor.u32 %v828_v47, %v827_v29  ;;  %v1013_v14 = vsel %vm6705_vm3, %v827_v29, 0  ;;  %v8660_v16 = vcombine.high %v2152_v13, %v2152_v13 }
 0x2c5   :  { %2017 = vst.msk [vmem:[#allocation2 + $0xe8] sm:$0xf] %vm1987_vm7, %v1860_v40  ;;  %2016 = vst.msk [vmem:[#allocation2 + $0xe0] sm:$0xf] %vm1987_vm7, %v1858_v52  ;;  %v1589_v18 = vshll.u32 %v1013_v14, 16  ;;  %v2154_v55 = vrot.slane %v1013_v14, 1 }
 0x2c6   :  { %2921 = vrot.lane.b32.xlu1 %v8539_v0, %s6520_s26  ;;  %2919 = vrot.lane.b32.xlu0 %v8543_v51, %s6520_s26  ;;  %v980_v17 = vsel %vm6705_vm3, 0, %v830_v57  ;;  %3988 = vst.msk [vmem:[#allocation2 + $0x15c] sm:$0xf] %vm1239_vm4, %v8660_v16  ;;  %v8689_v57 = vld [vmem:[%s10821_s2] ss:$0 sm:$0xff] }
 0x2c7   :  { %v1584_v61 = vshll.u32 %v980_v17, 16  ;;  %v8643_v40 = vcombine.high %v980_v17, %v980_v17  ;;  %v8645_v52 = vcombine.low %v980_v17, %v980_v17  ;;  %v1582_v47 = vshrl.u32 %v980_v17, 16 }
 0x2c8   :  { %v2360_v41 = vpop.permute.xlu1 %2359  ;;  %v2358_v24 = vpop.permute.xlu0 %2357  ;;  %v4035_v25 = vld [vmem:[#allocation2 + $0xd0] sm:$0xff]  ;;  %v4036_v7 = vld [vmem:[#allocation2 + $0xd8] sm:$0xff]  ;;  %v1591_v29 = vrot.slane %v1589_v18, 1  ;;  %v2153_v10 = vrot.slane %v980_v17, 1 }
 0x2c9   :  { %2517 = vst.msk [vmem:[#allocation2 + $0xe8] sm:$0xf] %vm2487_vm8, %v2360_v41  ;;  %2516 = vst.msk [vmem:[#allocation2 + $0xe0] sm:$0xf] %vm2487_vm8, %v2358_v24  ;;  %v6001_v32 = vcombine.low %v4035_v25, %v4036_v7  ;;  %v1586_v12 = vrot.slane %v1584_v61, 1  ;;  %v8662_v41 = vcombine.low %v2152_v13, %v2152_v13 }
 0x2ca   :  { %3194 = vrot.lane.b32.xlu1 %v8045_v36, %s6518_s24  ;;  %3192 = vrot.lane.b32.xlu0 %v8047_v15, %s6518_s24  ;;  %1289 = vst.msk [vmem:[#allocation2 + $0x188] sm:$0xf] %vm1239_vm4, %v8643_v40  ;;  %1288 = vst.msk [vmem:[#allocation2 + $0x180] sm:$0xf] %vm1239_vm4, %v8645_v52  ;;  %v2155_v25 = vsel %vm2083_vm5, %v2153_v10, %v2154_v55 }
 0x2cb   :  { %4674 = vmatmul.mubr.bf16.gmra.mxu1 %v6001_v32  ;;  %v1587_v24 = vor.u32 %v1586_v12, %v1582_v47  ;;  %v8665_v26 = vcombine.high %v2155_v25, %v2155_v25  ;;  %3987 = vst.msk [vmem:[#allocation2 + $0x154] sm:$0xf] %vm1239_vm4, %v8662_v41 }
 0x2cc   :  { %v2621_v8 = vpop.permute.xlu1 %2620  ;;  %v2619_v20 = vpop.permute.xlu0 %2618 }
 0x2cd   :  { %2784 = vst.msk [vmem:[#allocation2 + $0xe8] sm:$0xf] %vm2754_vm9, %v2621_v8  ;;  %2783 = vst.msk [vmem:[#allocation2 + $0xe0] sm:$0xf] %vm2754_vm9, %v2619_v20  ;;  %v8676_v32 = vsel %vm1304_vm6, %v1587_v24, %v1591_v29 }
 0x2ce   :  { %3451 = vrot.lane.b32.xlu1 %v8146_v43, %s6522_s28  ;;  %3449 = vrot.lane.b32.xlu0 %v8154_v62, %s6522_s28  ;;  %3990 = vst.msk [vmem:[#allocation2 + $0x16c] sm:$0xf] %vm1239_vm4, %v8665_v26 }
 0x2d0   :  { %v2910_v35 = vpop.permute.xlu1 %2909  ;;  %v2908_v54 = vpop.permute.xlu0 %2907 }
 0x2d1   :  { %3073 = vst.msk [vmem:[#allocation2 + $0xe8] sm:$0xf] %vm3043_vm10, %v2910_v35  ;;  %3072 = vst.msk [vmem:[#allocation2 + $0xe0] sm:$0xf] %vm3043_vm10, %v2908_v54 }
 0x2d2   :  { %3702 = vrot.lane.b32.xlu1 %v8629_v30, %s6524_s14  ;;  %3700 = vrot.lane.b32.xlu0 %v8633_v23, %s6524_s14 }
 0x2d3   :  { %v8649_v48 = vpop.f32.mrf.mxu0 }
 0x2d4   :  { %v3183_v1 = vpop.permute.xlu1 %3182  ;;  %v3181_v38 = vpop.permute.xlu0 %3180 }
 0x2d5   :  { %3346 = vst.msk [vmem:[#allocation2 + $0xe8] sm:$0xf] %vm3316_vm11, %v3183_v1  ;;  %3345 = vst.msk [vmem:[#allocation2 + $0xe0] sm:$0xf] %vm3316_vm11, %v3181_v38  ;;  %v497_v63 = vpop.f32.mrf.mxu0  ;;  %v6397_v38 = vld [vmem:[#allocation2 + $0xe4] ss:$8 sps:$4 sm:$0xff]  }
 0x2d6   :  { %1871 = vrot.lane.b32.xlu1 %v8539_v0, %s6521_s27  ;;  %1869 = vrot.lane.b32.xlu0 %v8543_v51, %s6521_s27  ;;  %v8667_v51 = vcombine.low %v2155_v25, %v2155_v25  ;;  %v498_v8 = vadd.f32 %v8689_v57, %v497_v63 }
 0x2d7   :  { %v6246_v20 = vpop.f32.mrf.mxu0  ;;  %6062 = vmatprep.mubr.msk.bf16.mxu1 %vm4440_vm14, %v6397_v38 }
 0x2d8   :  { %v3440_v7 = vpop.permute.xlu1 %3439  ;;  %v3438_v0 = vpop.permute.xlu0 %3437  ;;  %3989 = vst.msk [vmem:[#allocation2 + $0x164] sm:$0xf] %vm1239_vm4, %v8667_v51 }
 0x2d9   :  { %3597 = vst.msk [vmem:[#allocation2 + $0xe8] sm:$0xf] %vm3567_vm12, %v3440_v7  ;;  %3596 = vst.msk [vmem:[#allocation2 + $0xe0] sm:$0xf] %vm3567_vm12, %v3438_v0 }
 0x2da   :  { %2371 = vrot.lane.b32.xlu1 %v8045_v36, %s6519_s25  ;;  %2369 = vrot.lane.b32.xlu0 %v8047_v15, %s6519_s25  ;;  %v500_v36 = vpop.f32.mrf.mxu0  ;;  %v608_v15 = vmax.f32 %v498_v8, 0.0 }
 0x2db   :  { %v501_v35 = vadd.f32 %v8689_v57, %v500_v36 }
 0x2dc   :  { %v3691_v17 = vpop.permute.xlu1 %3690  ;;  %v3689_v14 = vpop.permute.xlu0 %3688 }
 0x2dd   :  { %3848 = vst.msk [vmem:[#allocation2 + $0xe8] sm:$0xf] %vm3818_vm13, %v3691_v17  ;;  %3847 = vst.msk [vmem:[#allocation2 + $0xe0] sm:$0xf] %vm3818_vm13, %v3689_v14  ;;  %v609_v18 = vmax.f32 %v501_v35, 0.0  ;;  %v8722_v35 = vcombine.high %v8275_v5, %v8275_v5 }
 0x2de   :  { %2636 = vrot.lane.b32.xlu1 %v8146_v43, %s6517_s23  ;;  %2634 = vrot.lane.b32.xlu0 %v8154_v62, %s6517_s23 }
 0x2df   :  { %v648_v43 = vpack.c.bf16 %v609_v18, %v608_v15  ;;  %v506_v18 = vadd.f32 %v8689_v57, %v8649_v48 }
 0x2e0   :  { %v1864_v54 = vpop.permute.xlu1 %1863  ;;  %v1862_v61 = vpop.permute.xlu0 %1861 }
 0x2e1   :  { %2019 = vst.msk [vmem:[#allocation2 + $0xf8] sm:$0xf] %vm1987_vm7, %v1864_v54  ;;  %2018 = vst.msk [vmem:[#allocation2 + $0xf0] sm:$0xf] %vm1987_vm7, %v1862_v61  ;;  %v832_v12 = vshrl.u32 %v648_v43, 16  ;;  %v835_v8 = vshll.u32 %v648_v43, 16  ;;  %v8726_v54 = vcombine.low %v8275_v5, %v8275_v5  ;;  %v509_v43 = vadd.f32 %v8689_v57, %v6246_v20 }
 0x2e2   :  { %2925 = vrot.lane.b32.xlu1 %v8629_v30, %s6520_s26  ;;  %2923 = vrot.lane.b32.xlu0 %v8633_v23, %s6520_s26  ;;  %v610_v20 = vmax.f32 %v506_v18, 0.0 }
 0x2e3   :  { %v4611_v27 = vpop.f32.mrf.mxu1  ;;  %v834_v63 = vrot.slane %v832_v12, 7 }
 0x2e4   :  { %v2364_v21 = vpop.permute.xlu1 %2363  ;;  %v2362_v62 = vpop.permute.xlu0 %2361  ;;  %v4037_v55 = vld [vmem:[#allocation2 + $0xe0] sm:$0xff]  ;;  %v4038_v1 = vld [vmem:[#allocation2 + $0xe8] sm:$0xff]  ;;  %v4612_v10 = vadd.f32 %v8315_v6, %v4611_v27  ;;  %v611_v27 = vmax.f32 %v509_v43, 0.0 }
 0x2e5   :  { %2519 = vst.msk [vmem:[#allocation2 + $0xf8] sm:$0xf] %vm2487_vm8, %v2364_v21  ;;  %2518 = vst.msk [vmem:[#allocation2 + $0xf0] sm:$0xf] %vm2487_vm8, %v2362_v62  ;;  %v6003_v47 = vcombine.low %v4037_v55, %v4038_v1  ;;  %v4613_v29 = vpop.f32.mrf.mxu1  ;;  %v837_v62 = vor.u32 %v835_v8, %v834_v63 }
 0x2e6   :  { %3198 = vrot.lane.b32.xlu1 %v8249_v46, %s6518_s24  ;;  %3196 = vrot.lane.b32.xlu0 %v8251_v9, %s6518_s24  ;;  %v4836_v17 = vmax.f32 %v4612_v10, 0.0  ;;  %v8749_v29 = vsel %vm6705_vm3, %v834_v63, 0 }
 0x2e7   :  { %4682 = vmatmul.mubr.bf16.gmra.mxu1 %v6003_v47  ;;  %v4614_v25 = vpop.f32.mrf.mxu1  ;;  %v8753_v10 = vsel %vm6705_vm3, 0, %v837_v62 }
 0x2e8   :  { %v2625_v13 = vpop.permute.xlu1 %2624  ;;  %v2623_v24 = vpop.permute.xlu0 %2622  ;;  %v4615_v7 = vadd.f32 %v8315_v6, %v4614_v25 }
 0x2e9   :  { %2786 = vst.msk [vmem:[#allocation2 + $0xf8] sm:$0xf] %vm2754_vm9, %v2625_v13  ;;  %2785 = vst.msk [vmem:[#allocation2 + $0xf0] sm:$0xf] %vm2754_vm9, %v2623_v24  ;;  %v4616_v0 = vpop.f32.mrf.mxu1 }
 0x2ea   :  { %3455 = vrot.lane.b32.xlu1 %v8236_v39, %s6522_s28  ;;  %3453 = vrot.lane.b32.xlu0 %v8238_v34, %s6522_s28  ;;  %v4837_v14 = vmax.f32 %v4615_v7, 0.0  ;;  %v1596_v0 = vshll.u32 %v8753_v10, 16 }
 0x2eb   :  { %v4619_v61 = vpop.f32.mrf.mxu1 }
 0x2ec   :  { %v2914_v36 = vpop.permute.xlu1 %2913  ;;  %v2912_v15 = vpop.permute.xlu0 %2911  ;;  %v8733_v21 = vpack.c.bf16 %v4837_v14, %v4836_v17  ;;  %v4620_v55 = vadd.f32 %v8315_v6, %v4619_v61 }
 0x2ed   :  { %3075 = vst.msk [vmem:[#allocation2 + $0xf8] sm:$0xf] %vm3043_vm10, %v2914_v36  ;;  %3074 = vst.msk [vmem:[#allocation2 + $0xf0] sm:$0xf] %vm3043_vm10, %v2912_v15  ;;  %v4621_v5 = vpop.f32.mrf.mxu1  ;;  %v1594_v36 = vshrl.u32 %v8753_v10, 16  ;;  %v1598_v15 = vrot.slane %v1596_v0, 1  ;;  %v8828_v0 = vcombine.high %v8404_v4, %v8404_v4 }
 0x2ee   :  { %3706 = vrot.lane.b32.xlu1 %v8722_v35, %s6524_s14  ;;  %3704 = vrot.lane.b32.xlu0 %v8726_v54, %s6524_s14  ;;  %v4838_v13 = vmax.f32 %v4620_v55, 0.0 }
 0x2ef   :  { %v4622_v48 = vpop.f32.mrf.mxu1 }
 0x2f0   :  { %v3187_v1 = vpop.permute.xlu1 %3186  ;;  %v3185_v38 = vpop.permute.xlu0 %3184  ;;  %v4623_v47 = vadd.f32 %v8315_v6, %v4622_v48  ;;  %v6399_v48 = vld [vmem:[#allocation2 + $0xf4] ss:$8 sps:$4 sm:$0xff]  }
 0x2f1   :  { %3348 = vst.msk [vmem:[#allocation2 + $0xf8] sm:$0xf] %vm3316_vm11, %v3187_v1  ;;  %3347 = vst.msk [vmem:[#allocation2 + $0xf0] sm:$0xf] %vm3316_vm11, %v3185_v38  ;;  %v4624_v12 = vpop.f32.mrf.mxu1  ;;  %6063 = vmatprep.mubr.msk.bf16.mxu1 %vm4440_vm14, %v6399_v48 }
 0x2f2   :  { %1875 = vrot.lane.b32.xlu1 %v8629_v30, %s6521_s27  ;;  %1873 = vrot.lane.b32.xlu0 %v8633_v23, %s6521_s27  ;;  %v4839_v24 = vmax.f32 %v4623_v47, 0.0  ;;  %v649_v30 = vpack.c.bf16 %v611_v27, %v610_v20  ;;  %v1601_v23 = vshll.u32 %v8749_v29, 16 }
 0x2f4   :  { %v8755_v25 = vpop.permute.xlu1 %3443  ;;  %v8757_v6 = vpop.permute.xlu0 %3441  ;;  %v8764_v7 = vpack.c.bf16 %v4839_v24, %v4838_v13  ;;  %v839_v17 = vshrl.u32 %v649_v30, 16  ;;  %v1603_v14 = vrot.slane %v1601_v23, 1  ;;  %v842_v43 = vshll.u32 %v649_v30, 16 }
 0x2f5   :  { %10883 = vst [vmem:[#allocation11_spill] sm:$0xff] %v8757_v6  ;;  %3599 = vst.msk [vmem:[#allocation2 + $0xf8] sm:$0xf] %vm3567_vm12, %v8755_v25 }
 0x2f6   :  { %3598 = vst.msk [vmem:[#allocation2 + $0xf0] sm:$0xf] %vm3567_vm12, %v8757_v6  ;;  %2375 = vrot.lane.b32.xlu1 %v8249_v46, %s6519_s25  ;;  %2373 = vrot.lane.b32.xlu0 %v8251_v9, %s6519_s25  ;;  %v8785_v46 = vcombine.high %v8753_v10, %v8753_v10  ;;  %v8789_v9 = vcombine.low %v8753_v10, %v8753_v10 }
 0x2f8   :  { %v8771_v63 = vpop.permute.xlu1 %3694  ;;  %v8773_v8 = vpop.permute.xlu0 %3692  ;;  %1291 = vst.msk [vmem:[#allocation2 + $0x198] sm:$0xf] %vm1239_vm4, %v8785_v46  ;;  %1290 = vst.msk [vmem:[#allocation2 + $0x190] sm:$0xf] %vm1239_vm4, %v8789_v9 }
 0x2f9   :  { %10884 = vst [vmem:[#allocation10_spill] sm:$0xff] %v8773_v8  ;;  %3850 = vst.msk [vmem:[#allocation2 + $0xf8] sm:$0xf] %vm3818_vm13, %v8771_v63 }
 0x2fa   :  { %3849 = vst.msk [vmem:[#allocation2 + $0xf0] sm:$0xf] %vm3818_vm13, %v8773_v8  ;;  %2640 = vrot.lane.b32.xlu1 %v8236_v39, %s6517_s23  ;;  %2638 = vrot.lane.b32.xlu0 %v8238_v34, %s6517_s23  ;;  %v1599_v39 = vor.u32 %v1598_v15, %v1594_v36  ;;  %v841_v34 = vrot.slane %v839_v17, 7  ;;  %v8832_v17 = vcombine.low %v8404_v4, %v8404_v4  ;;  %v2157_v15 = vrot.slane %v8749_v29, 1 }
 0x2fb   :  { %v2156_v4 = vrot.slane %v8753_v10, 1 }
 0x2fc   :  { %v1804_v61 = vpop.permute.xlu1 %1803  ;;  %v1802_v18 = vpop.permute.xlu0 %1801  ;;  %v8805_v5 = vsel %vm1304_vm6, %v1599_v39, %v1603_v14  ;;  %v844_v27 = vor.u32 %v842_v43, %v841_v34  ;;  %v1015_v24 = vsel %vm6705_vm3, %v841_v34, 0 }
 0x2fd   :  { %1989 = vst.msk [vmem:[#allocation2 + $0x8] sm:$0xf] %vm1987_vm7, %v1804_v61  ;;  %2021 = vst.msk [vmem:[#allocation2 + $0x108] sm:$0xf] %vm1987_vm7, %v1804_v61  ;;  %v1613_v36 = vshll.u32 %v1015_v24, 16  ;;  %v2160_v61 = vrot.slane %v1015_v24, 1  ;;  %v2158_v29 = vsel %vm2083_vm5, %v2156_v4, %v2157_v15 }
 0x2fe   :  { %1988 = vst.msk [vmem:[#allocation2] sm:$0xf] %vm1987_vm7, %v1802_v18  ;;  %2020 = vst.msk [vmem:[#allocation2 + $0x100] sm:$0xf] %vm1987_vm7, %v1802_v18  ;;  %2929 = vrot.lane.b32.xlu1 %v8722_v35, %s6520_s26  ;;  %2927 = vrot.lane.b32.xlu0 %v8726_v54, %s6520_s26  ;;  %v982_v13 = vsel %vm6705_vm3, 0, %v844_v27  ;;  %v8859_v10 = vcombine.high %v2158_v29, %v2158_v29 }
 0x2ff   :  { %v1608_v14 = vshll.u32 %v982_v13, 16  ;;  %v8842_v34 = vcombine.high %v982_v13, %v982_v13  ;;  %v8844_v43 = vcombine.low %v982_v13, %v982_v13  ;;  %v2159_v48 = vrot.slane %v982_v13, 1 }
 0x300   :  { %v2304_v62 = vpop.permute.xlu1 %2303  ;;  %v2302_v55 = vpop.permute.xlu0 %2301  ;;  %v4040_v38 = vld [vmem:[#allocation2 + $0xf8] sm:$0xff]  ;;  %3992 = vst.msk [vmem:[#allocation2 + $0x17c] sm:$0xf] %vm1239_vm4, %v8859_v10 }
 0x301   :  { %v4039_v1 = vld [vmem:[#allocation2 + $0xf0] sm:$0xff]  ;;  %2489 = vst.msk [vmem:[#allocation2 + $0x8] sm:$0xf] %vm2487_vm8, %v2304_v62  ;;  %2521 = vst.msk [vmem:[#allocation2 + $0x108] sm:$0xf] %vm2487_vm8, %v2304_v62  ;;  %v1606_v62 = vshrl.u32 %v982_v13, 16 }
 0x302   :  { %2488 = vst.msk [vmem:[#allocation2] sm:$0xf] %vm2487_vm8, %v2302_v55  ;;  %2520 = vst.msk [vmem:[#allocation2 + $0x100] sm:$0xf] %vm2487_vm8, %v2302_v55  ;;  %v6005_v20 = vcombine.low %v4039_v1, %v4040_v38  ;;  %3202 = vrot.lane.b32.xlu1 %v8262_v45, %s6518_s24  ;;  %3200 = vrot.lane.b32.xlu0 %v8264_v22, %s6518_s24  ;;  %v1615_v55 = vrot.slane %v1613_v36, 1  ;;  %v1610_v38 = vrot.slane %v1608_v14, 1 }
 0x303   :  { %1293 = vst.msk [vmem:[#allocation2 + $0x1a8] sm:$0xf] %vm1239_vm4, %v8842_v34  ;;  %1292 = vst.msk [vmem:[#allocation2 + $0x1a0] sm:$0xf] %vm1239_vm4, %v8844_v43 }
 0x304   :  { %v2565_v47 = vpop.permute.xlu1 %2564  ;;  %v2563_v12 = vpop.permute.xlu0 %2562  ;;  %4690 = vmatmul.mubr.bf16.gmra.mxu1 %v6005_v20  ;;  %v8861_v20 = vcombine.low %v2158_v29, %v2158_v29  ;;  %v1611_v27 = vor.u32 %v1610_v38, %v1606_v62 }
 0x305   :  { %2756 = vst.msk [vmem:[#allocation2 + $0x8] sm:$0xf] %vm2754_vm9, %v2565_v47  ;;  %2755 = vst.msk [vmem:[#allocation2] sm:$0xf] %vm2754_vm9, %v2563_v12  ;;  %v2161_v47 = vsel %vm2083_vm5, %v2159_v48, %v2160_v61 }
 0x306   :  { %3459 = vrot.lane.b32.xlu1 %v8382_v3, %s6522_s28  ;;  %3457 = vrot.lane.b32.xlu0 %v8390_v11, %s6522_s28  ;;  %v8864_v13 = vcombine.high %v2161_v47, %v2161_v47  ;;  %3991 = vst.msk [vmem:[#allocation2 + $0x174] sm:$0xf] %vm1239_vm4, %v8861_v20 }
 0x308   :  { %v2629_v30 = vpop.permute.xlu1 %2628  ;;  %v2627_v23 = vpop.permute.xlu0 %2626  ;;  %3994 = vst.msk [vmem:[#allocation2 + $0x18c] sm:$0xf] %vm1239_vm4, %v8864_v13 }
 0x309   :  { %2788 = vst.msk [vmem:[#allocation2 + $0x108] sm:$0xf] %vm2754_vm9, %v2629_v30  ;;  %2787 = vst.msk [vmem:[#allocation2 + $0x100] sm:$0xf] %vm2754_vm9, %v2627_v23  ;;  %v8875_v30 = vsel %vm1304_vm6, %v1611_v27, %v1615_v55  ;;  %v8902_v55 = vld [vmem:[%s10823_s4] ss:$0 sm:$0xff] }
 0x30a   :  { %3710 = vrot.lane.b32.xlu1 %v8828_v0, %s6524_s14  ;;  %3708 = vrot.lane.b32.xlu0 %v8832_v17, %s6524_s14 }
 0x30b   :  { %v8848_v1 = vpop.f32.mrf.mxu0 }
 0x30c   :  { %v2854_v18 = vpop.permute.xlu1 %2853  ;;  %v2852_v39 = vpop.permute.xlu0 %2851 }
 0x30d   :  { %3045 = vst.msk [vmem:[#allocation2 + $0x8] sm:$0xf] %vm3043_vm10, %v2854_v18  ;;  %3044 = vst.msk [vmem:[#allocation2] sm:$0xf] %vm3043_vm10, %v2852_v39  ;;  %v513_v24 = vpop.f32.mrf.mxu0 }
 0x30e   :  { %1879 = vrot.lane.b32.xlu1 %v8722_v35, %s6521_s27  ;;  %1877 = vrot.lane.b32.xlu0 %v8726_v54, %s6521_s27  ;;  %v8866_v54 = vcombine.low %v2161_v47, %v2161_v47  ;;  %v514_v23 = vadd.f32 %v8689_v57, %v513_v24 }
 0x30f   :  { %v6250_v14 = vpop.f32.mrf.mxu0 }
 0x310   :  { %v2918_v12 = vpop.permute.xlu1 %2917  ;;  %v2916_v35 = vpop.permute.xlu0 %2915  ;;  %3993 = vst.msk [vmem:[#allocation2 + $0x184] sm:$0xf] %vm1239_vm4, %v8866_v54 }
 0x311   :  { %3077 = vst.msk [vmem:[#allocation2 + $0x108] sm:$0xf] %vm3043_vm10, %v2918_v12  ;;  %3076 = vst.msk [vmem:[#allocation2 + $0x100] sm:$0xf] %vm3043_vm10, %v2916_v35 }
 0x312   :  { %2379 = vrot.lane.b32.xlu1 %v8262_v45, %s6519_s25  ;;  %2377 = vrot.lane.b32.xlu0 %v8264_v22, %s6519_s25  ;;  %v516_v45 = vpop.f32.mrf.mxu0  ;;  %v612_v22 = vmax.f32 %v514_v23, 0.0 }
 0x313   :  { %v517_v61 = vadd.f32 %v8689_v57, %v516_v45 }
 0x314   :  { %v3127_v36 = vpop.permute.xlu1 %3126  ;;  %v3125_v15 = vpop.permute.xlu0 %3124 }
 0x315   :  { %3318 = vst.msk [vmem:[#allocation2 + $0x8] sm:$0xf] %vm3316_vm11, %v3127_v36  ;;  %3317 = vst.msk [vmem:[#allocation2] sm:$0xf] %vm3316_vm11, %v3125_v15  ;;  %v613_v62 = vmax.f32 %v517_v61, 0.0 }
 0x316   :  { %2644 = vrot.lane.b32.xlu1 %v8382_v3, %s6517_s23  ;;  %2642 = vrot.lane.b32.xlu0 %v8390_v11, %s6517_s23 }
 0x317   :  { %v4627_v4 = vpop.f32.mrf.mxu1  ;;  %v650_v11 = vpack.c.bf16 %v613_v62, %v612_v22 }
 0x318   :  { %v3191_v18 = vpop.permute.xlu1 %3190  ;;  %v3189_v39 = vpop.permute.xlu0 %3188  ;;  %v4628_v38 = vadd.f32 %v8902_v55, %v4627_v4 }
 0x319   :  { %3350 = vst.msk [vmem:[#allocation2 + $0x108] sm:$0xf] %vm3316_vm11, %v3191_v18  ;;  %3349 = vst.msk [vmem:[#allocation2 + $0x100] sm:$0xf] %vm3316_vm11, %v3189_v39  ;;  %v4629_v3 = vpop.f32.mrf.mxu1  ;;  %v846_v35 = vshrl.u32 %v650_v11, 16  ;;  %v849_v39 = vshll.u32 %v650_v11, 16  ;;  %v522_v11 = vadd.f32 %v8689_v57, %v8848_v1 }
 0x31a   :  { %2933 = vrot.lane.b32.xlu1 %v8828_v0, %s6520_s26  ;;  %2931 = vrot.lane.b32.xlu0 %v8832_v17, %s6520_s26  ;;  %v4840_v24 = vmax.f32 %v4628_v38, 0.0  ;;  %v8923_v38 = vcombine.high %v8476_v28, %v8476_v28 }
 0x31b   :  { %v4630_v27 = vpop.f32.mrf.mxu1  ;;  %v848_v18 = vrot.slane %v846_v35, 7  ;;  %v614_v1 = vmax.f32 %v522_v11, 0.0 }
 0x31c   :  { %v3384_v48 = vpop.permute.xlu1 %3383  ;;  %v3382_v29 = vpop.permute.xlu0 %3381  ;;  %v4631_v47 = vadd.f32 %v8902_v55, %v4630_v27  ;;  %v525_v27 = vadd.f32 %v8689_v57, %v6250_v14 }
 0x31d   :  { %3569 = vst.msk [vmem:[#allocation2 + $0x8] sm:$0xf] %vm3567_vm12, %v3384_v48  ;;  %3568 = vst.msk [vmem:[#allocation2] sm:$0xf] %vm3567_vm12, %v3382_v29  ;;  %v4632_v12 = vpop.f32.mrf.mxu1  ;;  %v8927_v48 = vcombine.low %v8476_v28, %v8476_v28 }
 0x31e   :  { %3206 = vrot.lane.b32.xlu1 %v8460_v44, %s6518_s24  ;;  %3204 = vrot.lane.b32.xlu0 %v8462_v50, %s6518_s24  ;;  %v4841_v23 = vmax.f32 %v4631_v47, 0.0  ;;  %v851_v12 = vor.u32 %v849_v39, %v848_v18  ;;  %v615_v14 = vmax.f32 %v525_v27, 0.0 }
 0x31f   :  { %v4635_v45 = vpop.f32.mrf.mxu1 }
 0x320   :  { %v3448_v36 = vpop.permute.xlu1 %3447  ;;  %v3446_v15 = vpop.permute.xlu0 %3445  ;;  %v8914_v22 = vpack.c.bf16 %v4841_v23, %v4840_v24  ;;  %v4636_v4 = vadd.f32 %v8902_v55, %v4635_v45  ;;  %v8949_v45 = vsel %vm6705_vm3, %v848_v18, 0 }
 0x321   :  { %3601 = vst.msk [vmem:[#allocation2 + $0x108] sm:$0xf] %vm3567_vm12, %v3448_v36  ;;  %3600 = vst.msk [vmem:[#allocation2 + $0x100] sm:$0xf] %vm3567_vm12, %v3446_v15  ;;  %v4637_v61 = vpop.f32.mrf.mxu1 }
 0x322   :  { %3463 = vrot.lane.b32.xlu1 %v8443_v58, %s6522_s28  ;;  %3461 = vrot.lane.b32.xlu0 %v8445_v53, %s6522_s28  ;;  %v4842_v35 = vmax.f32 %v4636_v4, 0.0  ;;  %v8953_v61 = vsel %vm6705_vm3, 0, %v851_v12 }
 0x323   :  { %v4638_v29 = vpop.f32.mrf.mxu1 }
 0x324   :  { %v3635_v62 = vpop.permute.xlu1 %3634  ;;  %v3633_v3 = vpop.permute.xlu0 %3632  ;;  %v4639_v47 = vadd.f32 %v8902_v55, %v4638_v29  ;;  %v1625_v29 = vshll.u32 %v8949_v45, 16 }
 0x325   :  { %3820 = vst.msk [vmem:[#allocation2 + $0x8] sm:$0xf] %vm3818_vm13, %v3635_v62  ;;  %3819 = vst.msk [vmem:[#allocation2] sm:$0xf] %vm3818_vm13, %v3633_v3  ;;  %v4640_v28 = vpop.f32.mrf.mxu1  ;;  %v6403_v3 = vld [vmem:[#allocation2 + $0x4] ss:$8 sps:$4 sm:$0xff]  }
 0x326   :  { %3714 = vrot.lane.b32.xlu1 %v8923_v38, %s6524_s14  ;;  %3712 = vrot.lane.b32.xlu0 %v8927_v48, %s6524_s14  ;;  %v4843_v24 = vmax.f32 %v4639_v47, 0.0  ;;  %v6404_v28 = vld [vmem:[#allocation2 + $0x104] ss:$8 sps:$4 sm:$0xff]  }
 0x327   :  { %6048 = vmatprep.mubr.msk.bf16.mxu0 %vm4440_vm14, %v6403_v3  ;;  %6064 = vmatprep.mubr.msk.bf16.mxu1 %vm4440_vm14, %v6404_v28 }
 0x328   :  { %v3699_v23 = vpop.permute.xlu1 %3698  ;;  %v3697_v36 = vpop.permute.xlu0 %3696  ;;  %v8941_v15 = vpack.c.bf16 %v4843_v24, %v4842_v35  ;;  %v8976_v24 = vcombine.low %v8953_v61, %v8953_v61 }
 0x329   :  { %3852 = vst.msk [vmem:[#allocation2 + $0x108] sm:$0xf] %vm3818_vm13, %v3699_v23  ;;  %3851 = vst.msk [vmem:[#allocation2 + $0x100] sm:$0xf] %vm3818_vm13, %v3697_v36  ;;  %v1618_v23 = vshrl.u32 %v8953_v61, 16 }
 0x32a   :  { %1883 = vrot.lane.b32.xlu1 %v8828_v0, %s6521_s27  ;;  %1881 = vrot.lane.b32.xlu0 %v8832_v17, %s6521_s27  ;;  %v651_v0 = vpack.c.bf16 %v615_v14, %v614_v1  ;;  %v1620_v17 = vshll.u32 %v8953_v61, 16  ;;  %1294 = vst.msk [vmem:[#allocation2 + $0x1b0] sm:$0xf] %vm1239_vm4, %v8976_v24 }
 0x32c   :  { %v1868_v39 = vpop.permute.xlu1 %1867  ;;  %v1866_v4 = vpop.permute.xlu0 %1865  ;;  %v6401_v62 = vld [vmem:[#allocation2] ss:$8 sps:$4 sm:$0xff]   ;;  %v853_v35 = vshrl.u32 %v651_v0, 16  ;;  %v1622_v36 = vrot.slane %v1620_v17, 1 }
 0x32d   :  { %2023 = vst.msk [vmem:[#allocation2 + $0x118] sm:$0xf] %vm1987_vm7, %v1868_v39  ;;  %2022 = vst.msk [vmem:[#allocation2 + $0x110] sm:$0xf] %vm1987_vm7, %v1866_v4  ;;  %4570 = vmatmul.mubr.bf16.vlgmr.msra.gmra.mxu0 %v6401_v62  ;;  %v856_v4 = vshll.u32 %v651_v0, 16 }
 0x32e   :  { %2383 = vrot.lane.b32.xlu1 %v8460_v44, %s6519_s25  ;;  %2381 = vrot.lane.b32.xlu0 %v8462_v50, %s6519_s25  ;;  %v1627_v44 = vrot.slane %v1625_v29, 1  ;;  %v8972_v50 = vcombine.high %v8953_v61, %v8953_v61  ;;  %v855_v39 = vrot.slane %v853_v35, 7 }
 0x330   :  { %v2368_v18 = vpop.permute.xlu1 %2367  ;;  %v2366_v11 = vpop.permute.xlu0 %2365  ;;  %v4041_v27 = vld [vmem:[#allocation2 + $0x100] sm:$0xff]  ;;  %v4042_v47 = vld [vmem:[#allocation2 + $0x108] sm:$0xff]  ;;  %1295 = vst.msk [vmem:[#allocation2 + $0x1b8] sm:$0xf] %vm1239_vm4, %v8972_v50  ;;  %v858_v0 = vor.u32 %v856_v4, %v855_v39 }
 0x331   :  { %2523 = vst.msk [vmem:[#allocation2 + $0x118] sm:$0xf] %vm2487_vm8, %v2368_v18  ;;  %2522 = vst.msk [vmem:[#allocation2 + $0x110] sm:$0xf] %vm2487_vm8, %v2366_v11  ;;  %v6007_v12 = vcombine.low %v4041_v27, %v4042_v47 }
 0x332   :  { %2648 = vrot.lane.b32.xlu1 %v8443_v58, %s6517_s23  ;;  %2646 = vrot.lane.b32.xlu0 %v8445_v53, %s6517_s23  ;;  %v1623_v58 = vor.u32 %v1622_v36, %v1618_v23 }
 0x333   :  { %4698 = vmatmul.mubr.bf16.gmra.mxu1 %v6007_v12  ;;  %v4643_v53 = vpop.f32.mrf.mxu1 }
 0x334   :  { %v2633_v1 = vpop.permute.xlu1 %2632  ;;  %v2631_v14 = vpop.permute.xlu0 %2630  ;;  %v8991_v62 = vsel %vm1304_vm6, %v1623_v58, %v1627_v44  ;;  %v4644_v29 = vadd.f32 %v8902_v55, %v4643_v53 }
 0x335   :  { %2790 = vst.msk [vmem:[#allocation2 + $0x118] sm:$0xf] %vm2754_vm9, %v2633_v1  ;;  %2789 = vst.msk [vmem:[#allocation2 + $0x110] sm:$0xf] %vm2754_vm9, %v2631_v14  ;;  %v4645_v3 = vpop.f32.mrf.mxu1  ;;  %v984_v1 = vsel %vm6705_vm3, 0, %v858_v0  ;;  %v1017_v14 = vsel %vm6705_vm3, %v855_v39, 0 }
 0x336   :  { %2937 = vrot.lane.b32.xlu1 %v8923_v38, %s6520_s26  ;;  %2935 = vrot.lane.b32.xlu0 %v8927_v48, %s6520_s26  ;;  %v4844_v28 = vmax.f32 %v4644_v29, 0.0  ;;  %v9016_v29 = vcombine.high %v8614_v31, %v8614_v31  ;;  %v1637_v39 = vshll.u32 %v1017_v14, 16  ;;  %v2163_v0 = vrot.slane %v8949_v45, 1 }
 0x337   :  { %v4646_v11 = vpop.f32.mrf.mxu1  ;;  %v1630_v45 = vshrl.u32 %v984_v1, 16 }
 0x338   :  { %v2922_v17 = vpop.permute.xlu1 %2921  ;;  %v2920_v18 = vpop.permute.xlu0 %2919  ;;  %v4647_v27 = vadd.f32 %v8902_v55, %v4646_v11  ;;  %v1632_v11 = vshll.u32 %v984_v1, 16 }
 0x339   :  { %3079 = vst.msk [vmem:[#allocation2 + $0x118] sm:$0xf] %vm3043_vm10, %v2922_v17  ;;  %3078 = vst.msk [vmem:[#allocation2 + $0x110] sm:$0xf] %vm3043_vm10, %v2920_v18  ;;  %v4648_v47 = vpop.f32.mrf.mxu1  ;;  %v9020_v17 = vcombine.low %v8614_v31, %v8614_v31 }
 0x33a   :  { %3210 = vrot.lane.b32.xlu1 %v8465_v56, %s6518_s24  ;;  %3208 = vrot.lane.b32.xlu0 %v8467_v19, %s6518_s24  ;;  %v4845_v12 = vmax.f32 %v4647_v27, 0.0 }
 0x33b   :  { %v4651_v23 = vpop.f32.mrf.mxu1 }
 0x33c   :  { %v3195_v35 = vpop.permute.xlu1 %3194  ;;  %v3193_v44 = vpop.permute.xlu0 %3192  ;;  %v9003_v36 = vpack.c.bf16 %v4845_v12, %v4844_v28  ;;  %v4652_v58 = vadd.f32 %v8902_v55, %v4651_v23  ;;  %v2166_v28 = vrot.slane %v1017_v14, 1  ;;  %v2162_v23 = vrot.slane %v8953_v61, 1 }
 0x33d   :  { %3352 = vst.msk [vmem:[#allocation2 + $0x118] sm:$0xf] %vm3316_vm11, %v3195_v35  ;;  %3351 = vst.msk [vmem:[#allocation2 + $0x110] sm:$0xf] %vm3316_vm11, %v3193_v44  ;;  %v4653_v53 = vpop.f32.mrf.mxu1 }
 0x33e   :  { %3467 = vrot.lane.b32.xlu1 %v8582_v49, %s6522_s28  ;;  %3465 = vrot.lane.b32.xlu0 %v8586_v60, %s6522_s28  ;;  %v4846_v47 = vmax.f32 %v4652_v58, 0.0  ;;  %v9031_v53 = vcombine.high %v984_v1, %v984_v1  ;;  %v1634_v58 = vrot.slane %v1632_v11, 1  ;;  %v2164_v61 = vsel %vm2083_vm5, %v2162_v23, %v2163_v0 }
 0x33f   :  { %v4654_v18 = vpop.f32.mrf.mxu1  ;;  %v9052_v11 = vcombine.low %v2164_v61, %v2164_v61 }
 0x340   :  { %v3452_v4 = vpop.permute.xlu1 %3451  ;;  %v3450_v3 = vpop.permute.xlu0 %3449  ;;  %v4655_v27 = vadd.f32 %v8902_v55, %v4654_v18  ;;  %1297 = vst.msk [vmem:[#allocation2 + $0x1c8] sm:$0xf] %vm1239_vm4, %v9031_v53 }
 0x341   :  { %3603 = vst.msk [vmem:[#allocation2 + $0x118] sm:$0xf] %vm3567_vm12, %v3452_v4  ;;  %3602 = vst.msk [vmem:[#allocation2 + $0x110] sm:$0xf] %vm3567_vm12, %v3450_v3  ;;  %v4656_v31 = vpop.f32.mrf.mxu1  ;;  %v9033_v4 = vcombine.low %v984_v1, %v984_v1  ;;  %v1639_v3 = vrot.slane %v1637_v39, 1  ;;  %v9050_v39 = vcombine.high %v2164_v61, %v2164_v61 }
 0x342   :  { %3718 = vrot.lane.b32.xlu1 %v9016_v29, %s6524_s14  ;;  %3716 = vrot.lane.b32.xlu0 %v9020_v17, %s6524_s14  ;;  %v4847_v12 = vmax.f32 %v4655_v27, 0.0  ;;  %v2165_v31 = vrot.slane %v984_v1, 1  ;;  %v1635_v1 = vor.u32 %v1634_v58, %v1630_v45  ;;  %3995 = vst.msk [vmem:[#allocation2 + $0x194] sm:$0xf] %vm1239_vm4, %v9052_v11 }
 0x343   :  { %1296 = vst.msk [vmem:[#allocation2 + $0x1c0] sm:$0xf] %vm1239_vm4, %v9033_v4  ;;  %3996 = vst.msk [vmem:[#allocation2 + $0x19c] sm:$0xf] %vm1239_vm4, %v9050_v39 }
 0x344   :  { %v3703_v35 = vpop.permute.xlu1 %3702  ;;  %v3701_v44 = vpop.permute.xlu0 %3700  ;;  %v9039_v14 = vpack.c.bf16 %v4847_v12, %v4846_v47  ;;  %v2167_v27 = vsel %vm2083_vm5, %v2165_v31, %v2166_v28  ;;  %v6406_v31 = vld [vmem:[#allocation2 + $0x114] ss:$8 sps:$4 sm:$0xff]  }
 0x345   :  { %3854 = vst.msk [vmem:[#allocation2 + $0x118] sm:$0xf] %vm3818_vm13, %v3703_v35  ;;  %3853 = vst.msk [vmem:[#allocation2 + $0x110] sm:$0xf] %vm3818_vm13, %v3701_v44  ;;  %v9037_v18 = vpop.f32.mrf.mxu0  ;;  %v9055_v12 = vcombine.high %v2167_v27, %v2167_v27  ;;  %v9066_v35 = vsel %vm1304_vm6, %v1635_v1, %v1639_v3  ;;  %6065 = vmatprep.mubr.msk.bf16.mxu1 %vm4440_vm14, %v6406_v31 }
 0x346   :  { %1887 = vrot.lane.b32.xlu1 %v8923_v38, %s6521_s27  ;;  %1885 = vrot.lane.b32.xlu0 %v8927_v48, %s6521_s27  ;;  %v9057_v48 = vcombine.low %v2167_v27, %v2167_v27 }
 0x347   :  { %v529_v0 = vpop.f32.mrf.mxu0  ;;  %3998 = vst.msk [vmem:[#allocation2 + $0x1ac] sm:$0xf] %vm1239_vm4, %v9055_v12 }
 0x348   :  { %v1872_v47 = vpop.permute.xlu1 %1871  ;;  %v1870_v38 = vpop.permute.xlu0 %1869  ;;  %3997 = vst.msk [vmem:[#allocation2 + $0x1a4] sm:$0xf] %vm1239_vm4, %v9057_v48  ;;  %v530_v28 = vadd.f32 %v8689_v57, %v529_v0 }
 0x349   :  { %2025 = vst.msk [vmem:[#allocation2 + $0x128] sm:$0xf] %vm1987_vm7, %v1872_v47  ;;  %2024 = vst.msk [vmem:[#allocation2 + $0x120] sm:$0xf] %vm1987_vm7, %v1870_v38  ;;  %v6254_v44 = vpop.f32.mrf.mxu0 }
 0x34a   :  { %2387 = vrot.lane.b32.xlu1 %v8465_v56, %s6519_s25  ;;  %2385 = vrot.lane.b32.xlu0 %v8467_v19, %s6519_s25  ;;  %v616_v61 = vmax.f32 %v530_v28, 0.0 }
 0x34b   :  { %v532_v19 = vpop.f32.mrf.mxu0 }
 0x34c   :  { %v2372_v23 = vpop.permute.xlu1 %2371  ;;  %v2370_v45 = vpop.permute.xlu0 %2369  ;;  %v4043_v58 = vld [vmem:[#allocation2 + $0x110] sm:$0xff]  ;;  %v4044_v3 = vld [vmem:[#allocation2 + $0x118] sm:$0xff]  ;;  %v533_v1 = vadd.f32 %v8689_v57, %v532_v19 }
 0x34d   :  { %2525 = vst.msk [vmem:[#allocation2 + $0x128] sm:$0xf] %vm2487_vm8, %v2372_v23  ;;  %2524 = vst.msk [vmem:[#allocation2 + $0x120] sm:$0xf] %vm2487_vm8, %v2370_v45  ;;  %v6009_v56 = vcombine.low %v4043_v58, %v4044_v3 }
 0x34e   :  { %2652 = vrot.lane.b32.xlu1 %v8582_v49, %s6517_s23  ;;  %2650 = vrot.lane.b32.xlu0 %v8586_v60, %s6517_s23  ;;  %v617_v38 = vmax.f32 %v533_v1, 0.0 }
 0x34f   :  { %4706 = vmatmul.mubr.bf16.gmra.mxu1 %v6009_v56 }
 0x350   :  { %v2637_v27 = vpop.permute.xlu1 %2636  ;;  %v2635_v47 = vpop.permute.xlu0 %2634  ;;  %v652_v49 = vpack.c.bf16 %v617_v38, %v616_v61 }
 0x351   :  { %2792 = vst.msk [vmem:[#allocation2 + $0x128] sm:$0xf] %vm2754_vm9, %v2637_v27  ;;  %2791 = vst.msk [vmem:[#allocation2 + $0x120] sm:$0xf] %vm2754_vm9, %v2635_v47 }
 0x352   :  { %2941 = vrot.lane.b32.xlu1 %v9016_v29, %s6520_s26  ;;  %2939 = vrot.lane.b32.xlu0 %v9020_v17, %s6520_s26  ;;  %v860_v23 = vshrl.u32 %v652_v49, 16  ;;  %v863_v1 = vshll.u32 %v652_v49, 16  ;;  %v538_v49 = vadd.f32 %v8689_v57, %v9037_v18 }
 0x353   :  { %v4659_v28 = vpop.f32.mrf.mxu1 }
 0x354   :  { %v2926_v60 = vpop.permute.xlu1 %2925  ;;  %v2924_v0 = vpop.permute.xlu0 %2923  ;;  %v4660_v58 = vadd.f32 %v8902_v55, %v4659_v28  ;;  %v862_v61 = vrot.slane %v860_v23, 7  ;;  %v9107_v28 = vcombine.high %v8676_v32, %v8676_v32  ;;  %v618_v18 = vmax.f32 %v538_v49, 0.0 }
 0x355   :  { %3081 = vst.msk [vmem:[#allocation2 + $0x128] sm:$0xf] %vm3043_vm10, %v2926_v60  ;;  %3080 = vst.msk [vmem:[#allocation2 + $0x120] sm:$0xf] %vm3043_vm10, %v2924_v0  ;;  %v4661_v45 = vpop.f32.mrf.mxu1 }
 0x356   :  { %3214 = vrot.lane.b32.xlu1 %v8660_v16, %s6518_s24  ;;  %3212 = vrot.lane.b32.xlu0 %v8662_v41, %s6518_s24  ;;  %v4848_v47 = vmax.f32 %v4660_v58, 0.0  ;;  %v9111_v45 = vcombine.low %v8676_v32, %v8676_v32  ;;  %v541_v58 = vadd.f32 %v8689_v57, %v6254_v44  ;;  %v9136_v57 = vsel %vm6705_vm3, %v862_v61, 0 }
 0x357   :  { %v4662_v56 = vpop.f32.mrf.mxu1 }
 0x358   :  { %v3199_v3 = vpop.permute.xlu1 %3198  ;;  %v3197_v31 = vpop.permute.xlu0 %3196  ;;  %v4663_v19 = vadd.f32 %v8902_v55, %v4662_v56  ;;  %v619_v56 = vmax.f32 %v541_v58, 0.0  ;;  %v6408_v58 = vld [vmem:[#allocation2 + $0x124] ss:$8 sps:$4 sm:$0xff]  }
 0x359   :  { %3354 = vst.msk [vmem:[#allocation2 + $0x128] sm:$0xf] %vm3316_vm11, %v3199_v3  ;;  %3353 = vst.msk [vmem:[#allocation2 + $0x120] sm:$0xf] %vm3316_vm11, %v3197_v31  ;;  %v4664_v27 = vpop.f32.mrf.mxu1  ;;  %v865_v3 = vor.u32 %v863_v1, %v862_v61  ;;  %6066 = vmatprep.mubr.msk.bf16.mxu1 %vm4440_vm14, %v6408_v58 }
 0x35a   :  { %3471 = vrot.lane.b32.xlu1 %v8643_v40, %s6522_s28  ;;  %3469 = vrot.lane.b32.xlu0 %v8645_v52, %s6522_s28  ;;  %v4849_v38 = vmax.f32 %v4663_v19, 0.0  ;;  %v653_v61 = vpack.c.bf16 %v619_v56, %v618_v18 }
 0x35b   :  { %v9132_v19 = vsel %vm6705_vm3, 0, %v865_v3 }
 0x35c   :  { %v3456_v60 = vpop.permute.xlu1 %3455  ;;  %v3454_v0 = vpop.permute.xlu0 %3453  ;;  %v9117_v23 = vpack.c.bf16 %v4849_v38, %v4848_v47  ;;  %v9144_v27 = vcombine.high %v9132_v19, %v9132_v19  ;;  %v9152_v47 = vcombine.low %v9132_v19, %v9132_v19  ;;  %v1642_v3 = vshrl.u32 %v9132_v19, 16 }
 0x35d   :  { %3605 = vst.msk [vmem:[#allocation2 + $0x128] sm:$0xf] %vm3567_vm12, %v3456_v60  ;;  %3604 = vst.msk [vmem:[#allocation2 + $0x120] sm:$0xf] %vm3567_vm12, %v3454_v0 }
 0x35e   :  { %3722 = vrot.lane.b32.xlu1 %v9107_v28, %s6524_s14  ;;  %3720 = vrot.lane.b32.xlu0 %v9111_v45, %s6524_s14  ;;  %1299 = vst.msk [vmem:[#allocation2 + $0x1d8] sm:$0xf] %vm1239_vm4, %v9144_v27  ;;  %1298 = vst.msk [vmem:[#allocation2 + $0x1d0] sm:$0xf] %vm1239_vm4, %v9152_v47 }
 0x360   :  { %v3707_v32 = vpop.permute.xlu1 %3706  ;;  %v3705_v31 = vpop.permute.xlu0 %3704 }
 0x361   :  { %3856 = vst.msk [vmem:[#allocation2 + $0x128] sm:$0xf] %vm3818_vm13, %v3707_v32  ;;  %3855 = vst.msk [vmem:[#allocation2 + $0x120] sm:$0xf] %vm3818_vm13, %v3705_v31  ;;  %v867_v31 = vshrl.u32 %v653_v61, 16 }
 0x362   :  { %1891 = vrot.lane.b32.xlu1 %v9016_v29, %s6521_s27  ;;  %1889 = vrot.lane.b32.xlu0 %v9020_v17, %s6521_s27  ;;  %v1644_v29 = vshll.u32 %v9132_v19, 16  ;;  %v1649_v17 = vshll.u32 %v9136_v57, 16 }
 0x364   :  { %v1876_v44 = vpop.permute.xlu1 %1875  ;;  %v1874_v1 = vpop.permute.xlu0 %1873  ;;  %v1646_v32 = vrot.slane %v1644_v29, 1 }
 0x365   :  { %2027 = vst.msk [vmem:[#allocation2 + $0x138] sm:$0xf] %vm1987_vm7, %v1876_v44  ;;  %2026 = vst.msk [vmem:[#allocation2 + $0x130] sm:$0xf] %vm1987_vm7, %v1874_v1 }
 0x366   :  { %2391 = vrot.lane.b32.xlu1 %v8660_v16, %s6519_s25  ;;  %2389 = vrot.lane.b32.xlu0 %v8662_v41, %s6519_s25  ;;  %v1651_v41 = vrot.slane %v1649_v17, 1  ;;  %v1647_v18 = vor.u32 %v1646_v32, %v1642_v3  ;;  %v9193_v32 = vpop.f32.mrf.mxu0 }
 0x368   :  { %v2376_v38 = vpop.permute.xlu1 %2375  ;;  %v2374_v60 = vpop.permute.xlu0 %2373  ;;  %v4045_v0 = vld [vmem:[#allocation2 + $0x120] sm:$0xff]  ;;  %v4046_v49 = vld [vmem:[#allocation2 + $0x128] sm:$0xff]  ;;  %v9169_v1 = vsel %vm1304_vm6, %v1647_v18, %v1651_v41 }
 0x369   :  { %2527 = vst.msk [vmem:[#allocation2 + $0x138] sm:$0xf] %vm2487_vm8, %v2376_v38  ;;  %2526 = vst.msk [vmem:[#allocation2 + $0x130] sm:$0xf] %vm2487_vm8, %v2374_v60  ;;  %v6011_v16 = vcombine.low %v4045_v0, %v4046_v49 }
 0x36a   :  { %2656 = vrot.lane.b32.xlu1 %v8643_v40, %s6517_s23  ;;  %2654 = vrot.lane.b32.xlu0 %v8645_v52, %s6517_s23  ;;  %v869_v40 = vrot.slane %v867_v31, 7  ;;  %v870_v52 = vshll.u32 %v653_v61, 16 }
 0x36b   :  { %4714 = vmatmul.mubr.bf16.gmra.mxu1 %v6011_v16 }
 0x36c   :  { %v2641_v56 = vpop.permute.xlu1 %2640  ;;  %v2639_v44 = vpop.permute.xlu0 %2638  ;;  %v872_v60 = vor.u32 %v870_v52, %v869_v40  ;;  %v1019_v18 = vsel %vm6705_vm3, %v869_v40, 0 }
 0x36d   :  { %2794 = vst.msk [vmem:[#allocation2 + $0x138] sm:$0xf] %vm2754_vm9, %v2641_v56  ;;  %2793 = vst.msk [vmem:[#allocation2 + $0x130] sm:$0xf] %vm2754_vm9, %v2639_v44  ;;  %v1661_v40 = vshll.u32 %v1019_v18, 16  ;;  %v2172_v8 = vrot.slane %v1019_v18, 1 }
 0x36e   :  { %2945 = vrot.lane.b32.xlu1 %v9107_v28, %s6520_s26  ;;  %2943 = vrot.lane.b32.xlu0 %v9111_v45, %s6520_s26  ;;  %v9191_v3 = vsel %vm6705_vm3, 0, %v872_v60 }
 0x36f   :  { %v4667_v38 = vpop.f32.mrf.mxu1  ;;  %v1656_v60 = vshll.u32 %v9191_v3, 16 }
 0x370   :  { %v2930_v29 = vpop.permute.xlu1 %2929  ;;  %v2928_v17 = vpop.permute.xlu0 %2927  ;;  %v4668_v49 = vadd.f32 %v8902_v55, %v4667_v38  ;;  %v9203_v38 = vcombine.low %v8805_v5, %v8805_v5 }
 0x371   :  { %3083 = vst.msk [vmem:[#allocation2 + $0x138] sm:$0xf] %vm3043_vm10, %v2930_v29  ;;  %3082 = vst.msk [vmem:[#allocation2 + $0x130] sm:$0xf] %vm3043_vm10, %v2928_v17  ;;  %v4669_v0 = vpop.f32.mrf.mxu1  ;;  %v9199_v17 = vcombine.high %v8805_v5, %v8805_v5  ;;  %v6420_v5 = vld [vmem:[%s10824_s5] sm:$0xff]  }
 0x372   :  { %3218 = vrot.lane.b32.xlu1 %v8665_v26, %s6518_s24  ;;  %3216 = vrot.lane.b32.xlu0 %v8667_v51, %s6518_s24  ;;  %v4850_v56 = vmax.f32 %v4668_v49, 0.0  ;;  %v2169_v49 = vrot.slane %v9136_v57, 1  ;;  %v9227_v57 = vcombine.low %v9191_v3, %v9191_v3 }
 0x373   :  { %v4670_v61 = vpop.f32.mrf.mxu1  ;;  %6259 = vmatprep.subr.bf16.mxu0 %v6420_v5 }
 0x374   :  { %v3203_v58 = vpop.permute.xlu1 %3202  ;;  %v3201_v16 = vpop.permute.xlu0 %3200  ;;  %v4671_v41 = vadd.f32 %v8902_v55, %v4670_v61  ;;  %6260 = vmatpush3.bf16.msra.mxu0 %v6420_v5  ;;  %1300 = vst.msk [vmem:[#allocation2 + $0x1e0] sm:$0xf] %vm1239_vm4, %v9227_v57  ;;  %v6450_v5 = vld [vmem:[%s10821_s2] ss:$0 sm:$0xff] }
 0x375   :  { %3356 = vst.msk [vmem:[#allocation2 + $0x138] sm:$0xf] %vm3316_vm11, %v3203_v58  ;;  %3355 = vst.msk [vmem:[#allocation2 + $0x130] sm:$0xf] %vm3316_vm11, %v3201_v16  ;;  %v4672_v31 = vpop.f32.mrf.mxu1  ;;  %v545_v58 = vpop.f32.mrf.mxu0 }
 0x376   :  { %3475 = vrot.lane.b32.xlu1 %v8785_v46, %s6522_s28  ;;  %3473 = vrot.lane.b32.xlu0 %v8789_v9, %s6522_s28  ;;  %v4851_v44 = vmax.f32 %v4671_v41, 0.0  ;;  %v2168_v41 = vrot.slane %v9132_v19, 1  ;;  %v9223_v31 = vcombine.high %v9191_v3, %v9191_v3  ;;  %v1663_v19 = vrot.slane %v1661_v40, 1 }
 0x378   :  { %v3460_v52 = vpop.permute.xlu1 %3459  ;;  %v3458_v29 = vpop.permute.xlu0 %3457  ;;  %v9208_v0 = vpack.c.bf16 %v4851_v44, %v4850_v56  ;;  %v1654_v56 = vshrl.u32 %v9191_v3, 16  ;;  %v1658_v44 = vrot.slane %v1656_v60, 1  ;;  %1301 = vst.msk [vmem:[#allocation2 + $0x1e8] sm:$0xf] %vm1239_vm4, %v9223_v31 }
 0x379   :  { %3607 = vst.msk [vmem:[#allocation2 + $0x138] sm:$0xf] %vm3567_vm12, %v3460_v52  ;;  %3606 = vst.msk [vmem:[#allocation2 + $0x130] sm:$0xf] %vm3567_vm12, %v3458_v29  ;;  %v9234_v52 = vpop.f32.mrf.mxu0  ;;  %v2170_v29 = vsel %vm2083_vm5, %v2168_v41, %v2169_v49  ;;  %v2171_v49 = vrot.slane %v9191_v3, 1  ;;  %v546_v41 = vadd.f32 %v6450_v5, %v545_v58 }
 0x37a   :  { %3726 = vrot.lane.b32.xlu1 %v9199_v17, %s6524_s14  ;;  %3724 = vrot.lane.b32.xlu0 %v9203_v38, %s6524_s14 }
 0x37b   :  { %v548_v40 = vpop.f32.mrf.mxu0  ;;  %v2173_v6 = vsel %vm2083_vm5, %v2171_v49, %v2172_v8  ;;  %v620_v58 = vmax.f32 %v546_v41, 0.0 }
 0x37c   :  { %v3711_v16 = vpop.permute.xlu1 %3710  ;;  %v3709_v61 = vpop.permute.xlu0 %3708  ;;  %v9267_v3 = vcombine.low %v2173_v6, %v2173_v6 }
 0x37d   :  { %3858 = vst.msk [vmem:[#allocation2 + $0x138] sm:$0xf] %vm3818_vm13, %v3711_v16  ;;  %3857 = vst.msk [vmem:[#allocation2 + $0x130] sm:$0xf] %vm3818_vm13, %v3709_v61  ;;  %v9237_v16 = vcombine.high %v2170_v29, %v2170_v29  ;;  %v9239_v61 = vcombine.low %v2170_v29, %v2170_v29 }
 0x37e   :  { %1895 = vrot.lane.b32.xlu1 %v9107_v28, %s6521_s27  ;;  %1893 = vrot.lane.b32.xlu0 %v9111_v45, %s6521_s27  ;;  %v1659_v45 = vor.u32 %v1658_v44, %v1654_v56  ;;  %v549_v56 = vadd.f32 %v6450_v5, %v548_v40  ;;  %4001 = vst.msk [vmem:[#allocation2 + $0x1c4] sm:$0xf] %vm1239_vm4, %v9267_v3 }
 0x37f   :  { %4000 = vst.msk [vmem:[#allocation2 + $0x1bc] sm:$0xf] %vm1239_vm4, %v9237_v16  ;;  %3999 = vst.msk [vmem:[#allocation2 + $0x1b4] sm:$0xf] %vm1239_vm4, %v9239_v61 }
 0x380   :  { %v1880_v28 = vpop.permute.xlu1 %1879  ;;  %v1878_v60 = vpop.permute.xlu0 %1877  ;;  %v9256_v18 = vsel %vm1304_vm6, %v1659_v45, %v1663_v19  ;;  %v9265_v19 = vcombine.high %v2173_v6, %v2173_v6  ;;  %v621_v45 = vmax.f32 %v549_v56, 0.0 }
 0x381   :  { %2029 = vst.msk [vmem:[#allocation2 + $0x148] sm:$0xf] %vm1987_vm7, %v1880_v28  ;;  %2028 = vst.msk [vmem:[#allocation2 + $0x140] sm:$0xf] %vm1987_vm7, %v1878_v60 }
 0x382   :  { %2395 = vrot.lane.b32.xlu1 %v8665_v26, %s6519_s25  ;;  %2393 = vrot.lane.b32.xlu0 %v8667_v51, %s6519_s25  ;;  %v6410_v26 = vld [vmem:[#allocation2 + $0x134] ss:$8 sps:$4 sm:$0xff]   ;;  %4002 = vst.msk [vmem:[#allocation2 + $0x1cc] sm:$0xf] %vm1239_vm4, %v9265_v19  ;;  %v654_v6 = vpack.c.bf16 %v621_v45, %v620_v58 }
 0x383   :  { %6067 = vmatprep.mubr.msk.bf16.mxu1 %vm4440_vm14, %v6410_v26 }
 0x384   :  { %v2380_v44 = vpop.permute.xlu1 %2379  ;;  %v2378_v29 = vpop.permute.xlu0 %2377  ;;  %v4047_v28 = vld [vmem:[#allocation2 + $0x130] sm:$0xff]  ;;  %v4048_v60 = vld [vmem:[#allocation2 + $0x138] sm:$0xff]  ;;  %v874_v56 = vshrl.u32 %v654_v6, 16  ;;  %v877_v45 = vshll.u32 %v654_v6, 16  ;;  %v557_v6 = vadd.f32 %v6450_v5, %v9234_v52 }
 0x385   :  { %2529 = vst.msk [vmem:[#allocation2 + $0x148] sm:$0xf] %vm2487_vm8, %v2380_v44  ;;  %2528 = vst.msk [vmem:[#allocation2 + $0x140] sm:$0xf] %vm2487_vm8, %v2378_v29  ;;  %v6013_v51 = vcombine.low %v4047_v28, %v4048_v60 }
 0x386   :  { %2660 = vrot.lane.b32.xlu1 %v8785_v46, %s6517_s23  ;;  %2658 = vrot.lane.b32.xlu0 %v8789_v9, %s6517_s23  ;;  %v876_v58 = vrot.slane %v874_v56, 7 }
 0x387   :  { %4722 = vmatmul.mubr.bf16.gmra.mxu1 %v6013_v51 }
 0x388   :  { %v2645_v8 = vpop.permute.xlu1 %2644  ;;  %v2643_v40 = vpop.permute.xlu0 %2642  ;;  %v9328_v52 = vsel %vm6705_vm3, %v876_v58, 0 }
 0x389   :  { %2796 = vst.msk [vmem:[#allocation2 + $0x148] sm:$0xf] %vm2754_vm9, %v2645_v8  ;;  %2795 = vst.msk [vmem:[#allocation2 + $0x140] sm:$0xf] %vm2754_vm9, %v2643_v40 }
 0x38a   :  { %2949 = vrot.lane.b32.xlu1 %v9199_v17, %s6520_s26  ;;  %2947 = vrot.lane.b32.xlu0 %v9203_v38, %s6520_s26 }
 0x38b   :  { %v4675_v49 = vpop.f32.mrf.mxu1 }
 0x38c   :  { %v2934_v46 = vpop.permute.xlu1 %2933  ;;  %v2932_v9 = vpop.permute.xlu0 %2931  ;;  %v4676_v44 = vadd.f32 %v8902_v55, %v4675_v49  ;;  %v9300_v49 = vcombine.high %v8875_v30, %v8875_v30 }
 0x38d   :  { %3085 = vst.msk [vmem:[#allocation2 + $0x148] sm:$0xf] %vm3043_vm10, %v2934_v46  ;;  %3084 = vst.msk [vmem:[#allocation2 + $0x140] sm:$0xf] %vm3043_vm10, %v2932_v9  ;;  %v4677_v41 = vpop.f32.mrf.mxu1 }
 0x38e   :  { %3222 = vrot.lane.b32.xlu1 %v8859_v10, %s6518_s24  ;;  %3220 = vrot.lane.b32.xlu0 %v8861_v20, %s6518_s24  ;;  %v4852_v8 = vmax.f32 %v4676_v44, 0.0  ;;  %v9304_v41 = vcombine.low %v8875_v30, %v8875_v30  ;;  %v879_v44 = vor.u32 %v877_v45, %v876_v58 }
 0x38f   :  { %v4678_v60 = vpop.f32.mrf.mxu1 }
 0x390   :  { %v3207_v29 = vpop.permute.xlu1 %3206  ;;  %v3205_v28 = vpop.permute.xlu0 %3204  ;;  %v4679_v26 = vadd.f32 %v8902_v55, %v4678_v60 }
 0x391   :  { %3358 = vst.msk [vmem:[#allocation2 + $0x148] sm:$0xf] %vm3316_vm11, %v3207_v29  ;;  %3357 = vst.msk [vmem:[#allocation2 + $0x140] sm:$0xf] %vm3316_vm11, %v3205_v28  ;;  %v4680_v51 = vpop.f32.mrf.mxu1  ;;  %v554_v29 = vadd.f32 %v6450_v5, %v9193_v32  ;;  %v9324_v32 = vsel %vm6705_vm3, 0, %v879_v44 }
 0x392   :  { %3479 = vrot.lane.b32.xlu1 %v8842_v34, %s6522_s28  ;;  %3477 = vrot.lane.b32.xlu0 %v8844_v43, %s6522_s28  ;;  %v4853_v40 = vmax.f32 %v4679_v26, 0.0  ;;  %v623_v26 = vmax.f32 %v557_v6, 0.0  ;;  %v9340_v58 = vcombine.high %v9324_v32, %v9324_v32 }
 0x393   :  { %v622_v60 = vmax.f32 %v554_v29, 0.0 }
 0x394   :  { %v3464_v46 = vpop.permute.xlu1 %3463  ;;  %v3462_v9 = vpop.permute.xlu0 %3461  ;;  %v9310_v56 = vpack.c.bf16 %v4853_v40, %v4852_v8  ;;  %v9344_v8 = vcombine.low %v9324_v32, %v9324_v32  ;;  %1303 = vst.msk [vmem:[#allocation2 + $0x1f8] sm:$0xf] %vm1239_vm4, %v9340_v58 }
 0x395   :  { %3609 = vst.msk [vmem:[#allocation2 + $0x148] sm:$0xf] %vm3567_vm12, %v3464_v46  ;;  %3608 = vst.msk [vmem:[#allocation2 + $0x140] sm:$0xf] %vm3567_vm12, %v3462_v9  ;;  %v655_v45 = vpack.c.bf16 %v623_v26, %v622_v60 }
 0x396   :  { %3730 = vrot.lane.b32.xlu1 %v9300_v49, %s6524_s14  ;;  %3728 = vrot.lane.b32.xlu0 %v9304_v41, %s6524_s14  ;;  %1302 = vst.msk [vmem:[#allocation2 + $0x1f0] sm:$0xf] %vm1239_vm4, %v9344_v8 }
 0x397   :  { %v881_v6 = vshrl.u32 %v655_v45, 16 }
 0x398   :  { %v3715_v28 = vpop.permute.xlu1 %3714  ;;  %v3713_v30 = vpop.permute.xlu0 %3712 }
 0x399   :  { %3860 = vst.msk [vmem:[#allocation2 + $0x148] sm:$0xf] %vm3818_vm13, %v3715_v28  ;;  %3859 = vst.msk [vmem:[#allocation2 + $0x140] sm:$0xf] %vm3818_vm13, %v3713_v30  ;;  %v1666_v28 = vshrl.u32 %v9324_v32, 16 }
 0x39a   :  { %1899 = vrot.lane.b32.xlu1 %v9199_v17, %s6521_s27  ;;  %1897 = vrot.lane.b32.xlu0 %v9203_v38, %s6521_s27  ;;  %v1668_v17 = vshll.u32 %v9324_v32, 16  ;;  %v1673_v38 = vshll.u32 %v9328_v52, 16 }
 0x39c   :  { %v1884_v5 = vpop.permute.xlu1 %1883  ;;  %v1882_v51 = vpop.permute.xlu0 %1881  ;;  %v1675_v44 = vrot.slane %v1673_v38, 1  ;;  %v1670_v30 = vrot.slane %v1668_v17, 1 }
 0x39d   :  { %2031 = vst.msk [vmem:[#allocation2 + $0x158] sm:$0xf] %vm1987_vm7, %v1884_v5  ;;  %2030 = vst.msk [vmem:[#allocation2 + $0x150] sm:$0xf] %vm1987_vm7, %v1882_v51 }
 0x39e   :  { %2399 = vrot.lane.b32.xlu1 %v8859_v10, %s6519_s25  ;;  %2397 = vrot.lane.b32.xlu0 %v8861_v20, %s6519_s25  ;;  %v6412_v10 = vld [vmem:[#allocation2 + $0x144] ss:$8 sps:$4 sm:$0xff]   ;;  %v1671_v5 = vor.u32 %v1670_v30, %v1666_v28 }
 0x39f   :  { %6068 = vmatprep.mubr.msk.bf16.mxu1 %vm4440_vm14, %v6412_v10 }
 0x3a0   :  { %v2384_v40 = vpop.permute.xlu1 %2383  ;;  %v2382_v46 = vpop.permute.xlu0 %2381  ;;  %v4049_v9 = vld [vmem:[#allocation2 + $0x140] sm:$0xff]  ;;  %v4050_v29 = vld [vmem:[#allocation2 + $0x148] sm:$0xff]  ;;  %v9365_v51 = vsel %vm1304_vm6, %v1671_v5, %v1675_v44 }
 0x3a1   :  { %2531 = vst.msk [vmem:[#allocation2 + $0x158] sm:$0xf] %vm2487_vm8, %v2384_v40  ;;  %2530 = vst.msk [vmem:[#allocation2 + $0x150] sm:$0xf] %vm2487_vm8, %v2382_v46  ;;  %v6015_v20 = vcombine.low %v4049_v9, %v4050_v29 }
 0x3a2   :  { %2664 = vrot.lane.b32.xlu1 %v8842_v34, %s6517_s23  ;;  %2662 = vrot.lane.b32.xlu0 %v8844_v43, %s6517_s23  ;;  %v883_v34 = vrot.slane %v881_v6, 7  ;;  %v884_v43 = vshll.u32 %v655_v45, 16 }
 0x3a3   :  { %4730 = vmatmul.mubr.bf16.gmra.mxu1 %v6015_v20 }
 0x3a4   :  { %v2649_v60 = vpop.permute.xlu1 %2648  ;;  %v2647_v26 = vpop.permute.xlu0 %2646  ;;  %v886_v46 = vor.u32 %v884_v43, %v883_v34  ;;  %v1021_v28 = vsel %vm6705_vm3, %v883_v34, 0 }
 0x3a5   :  { %2798 = vst.msk [vmem:[#allocation2 + $0x158] sm:$0xf] %vm2754_vm9, %v2649_v60  ;;  %2797 = vst.msk [vmem:[#allocation2 + $0x150] sm:$0xf] %vm2754_vm9, %v2647_v26  ;;  %v2839_v34 = vshll.u32 %v1021_v28, 16 }
 0x3a6   :  { %2953 = vrot.lane.b32.xlu1 %v9300_v49, %s6520_s26  ;;  %2951 = vrot.lane.b32.xlu0 %v9304_v41, %s6520_s26  ;;  %v9383_v44 = vsel %vm6705_vm3, 0, %v886_v46  ;;  %v3114_v46 = vrot.slane %v1021_v28, 1 }
 0x3a7   :  { %v4683_v40 = vpop.f32.mrf.mxu1  ;;  %v2834_v2 = vshll.u32 %v9383_v44, 16 }
 0x3a8   :  { %v2938_v17 = vpop.permute.xlu1 %2937  ;;  %v2936_v38 = vpop.permute.xlu0 %2935  ;;  %v4684_v45 = vadd.f32 %v8902_v55, %v4683_v40  ;;  %v2175_v40 = vrot.slane %v9328_v52, 1 }
 0x3a9   :  { %3087 = vst.msk [vmem:[#allocation2 + $0x158] sm:$0xf] %vm3043_vm10, %v2938_v17  ;;  %3086 = vst.msk [vmem:[#allocation2 + $0x150] sm:$0xf] %vm3043_vm10, %v2936_v38  ;;  %v4685_v9 = vpop.f32.mrf.mxu1  ;;  %v9393_v17 = vcombine.low %v8991_v62, %v8991_v62 }
 0x3aa   :  { %3226 = vrot.lane.b32.xlu1 %v8864_v13, %s6518_s24  ;;  %3224 = vrot.lane.b32.xlu0 %v8866_v54, %s6518_s24  ;;  %v4854_v60 = vmax.f32 %v4684_v45, 0.0  ;;  %v2174_v45 = vrot.slane %v9324_v32, 1 }
 0x3ab   :  { %v4686_v20 = vpop.f32.mrf.mxu1 }
 0x3ac   :  { %v3211_v29 = vpop.permute.xlu1 %3210  ;;  %v3209_v10 = vpop.permute.xlu0 %3208  ;;  %v4687_v6 = vadd.f32 %v8902_v55, %v4686_v20  ;;  %v9389_v55 = vcombine.high %v8991_v62, %v8991_v62  ;;  %v2836_v20 = vrot.slane %v2834_v2, 1  ;;  %v2176_v52 = vsel %vm2083_vm5, %v2174_v45, %v2175_v40 }
 0x3ad   :  { %3360 = vst.msk [vmem:[#allocation2 + $0x158] sm:$0xf] %vm3316_vm11, %v3211_v29  ;;  %3359 = vst.msk [vmem:[#allocation2 + $0x150] sm:$0xf] %vm3316_vm11, %v3209_v10  ;;  %v4688_v30 = vpop.f32.mrf.mxu1  ;;  %v2832_v29 = vshrl.u32 %v9383_v44, 16  ;;  %v2841_v10 = vrot.slane %v2839_v34, 1  ;;  %v9415_v28 = vcombine.high %v2176_v52, %v2176_v52  ;;  %v9417_v32 = vcombine.low %v2176_v52, %v2176_v52 }
 0x3ae   :  { %3483 = vrot.lane.b32.xlu1 %v8972_v50, %s6522_s28  ;;  %3481 = vrot.lane.b32.xlu0 %v8976_v24, %s6522_s28  ;;  %v4855_v26 = vmax.f32 %v4687_v6, 0.0  ;;  %v3113_v6 = vrot.slane %v9383_v44, 1 }
 0x3af   :  { %v2837_v30 = vor.u32 %v2836_v20, %v2832_v29  ;;  %4004 = vst.msk [vmem:[#allocation2 + $0x1dc] sm:$0xf] %vm1239_vm4, %v9415_v28  ;;  %4003 = vst.msk [vmem:[#allocation2 + $0x1d4] sm:$0xf] %vm1239_vm4, %v9417_v32 }
 0x3b0   :  { %v3468_v5 = vpop.permute.xlu1 %3467  ;;  %v3466_v43 = vpop.permute.xlu0 %3465  ;;  %v9398_v38 = vpack.c.bf16 %v4855_v26, %v4854_v60  ;;  %v3115_v60 = vsel %vm2083_vm5, %v3113_v6, %v3114_v46 }
 0x3b1   :  { %3611 = vst.msk [vmem:[#allocation2 + $0x158] sm:$0xf] %vm3567_vm12, %v3468_v5  ;;  %3610 = vst.msk [vmem:[#allocation2 + $0x150] sm:$0xf] %vm3567_vm12, %v3466_v43  ;;  %v9420_v43 = vcombine.high %v3115_v60, %v3115_v60  ;;  %v9422_v2 = vcombine.low %v3115_v60, %v3115_v60 }
 0x3b2   :  { %3734 = vrot.lane.b32.xlu1 %v9389_v55, %s6524_s14  ;;  %3732 = vrot.lane.b32.xlu0 %v9393_v17, %s6524_s14 }
 0x3b3   :  { %4006 = vst.msk [vmem:[#allocation2 + $0x1ec] sm:$0xf] %vm1239_vm4, %v9420_v43  ;;  %4005 = vst.msk [vmem:[#allocation2 + $0x1e4] sm:$0xf] %vm1239_vm4, %v9422_v2 }
 0x3b4   :  { %v3719_v62 = vpop.permute.xlu1 %3718  ;;  %v3717_v9 = vpop.permute.xlu0 %3716 }
 0x3b5   :  { %3862 = vst.msk [vmem:[#allocation2 + $0x158] sm:$0xf] %vm3818_vm13, %v3719_v62  ;;  %3861 = vst.msk [vmem:[#allocation2 + $0x150] sm:$0xf] %vm3818_vm13, %v3717_v9  ;;  %v6414_v62 = vld [vmem:[#allocation2 + $0x154] ss:$8 sps:$4 sm:$0xff]  }
 0x3b6   :  { %1903 = vrot.lane.b32.xlu1 %v9300_v49, %s6521_s27  ;;  %1901 = vrot.lane.b32.xlu0 %v9304_v41, %s6521_s27  ;;  %v9431_v49 = vsel %vm1304_vm6, %v2837_v30, %v2841_v10  ;;  %v9463_v10 = vld [vmem:[%s10823_s4] ss:$0 sm:$0xff] }
 0x3b7   :  { %6069 = vmatprep.mubr.msk.bf16.mxu1 %vm4440_vm14, %v6414_v62  ;;  %v5892_v62 = vcombine.low %v9066_v35, %v9066_v35 }
 0x3b8   :  { %v1888_v26 = vpop.permute.xlu1 %1887  ;;  %v1886_v5 = vpop.permute.xlu0 %1885 }
 0x3b9   :  { %2033 = vst.msk [vmem:[#allocation2 + $0x168] sm:$0xf] %vm1987_vm7, %v1888_v26  ;;  %2032 = vst.msk [vmem:[#allocation2 + $0x160] sm:$0xf] %vm1987_vm7, %v1886_v5 }
 0x3ba   :  { %2403 = vrot.lane.b32.xlu1 %v8864_v13, %s6519_s25  ;;  %2401 = vrot.lane.b32.xlu0 %v8866_v54, %s6519_s25 }
 0x3bc   :  { %v2388_v41 = vpop.permute.xlu1 %2387  ;;  %v2386_v34 = vpop.permute.xlu0 %2385  ;;  %v4051_v40 = vld [vmem:[#allocation2 + $0x150] sm:$0xff]  ;;  %v4052_v46 = vld [vmem:[#allocation2 + $0x158] sm:$0xff] }
 0x3bd   :  { %2533 = vst.msk [vmem:[#allocation2 + $0x168] sm:$0xf] %vm2487_vm8, %v2388_v41  ;;  %2532 = vst.msk [vmem:[#allocation2 + $0x160] sm:$0xf] %vm2487_vm8, %v2386_v34  ;;  %v6017_v9 = vcombine.low %v4051_v40, %v4052_v46  ;;  %v5893_v46 = vcombine.high %v9066_v35, %v9066_v35 }
 0x3be   :  { %2668 = vrot.lane.b32.xlu1 %v8972_v50, %s6517_s23  ;;  %2666 = vrot.lane.b32.xlu0 %v8976_v24, %s6517_s23 }
 0x3bf   :  { %4738 = vmatmul.mubr.bf16.gmra.mxu1 %v6017_v9 }
 0x3c0   :  { %v2653_v13 = vpop.permute.xlu1 %2652  ;;  %v2651_v54 = vpop.permute.xlu0 %2650 }
 0x3c1   :  { %2800 = vst.msk [vmem:[#allocation2 + $0x168] sm:$0xf] %vm2754_vm9, %v2653_v13  ;;  %2799 = vst.msk [vmem:[#allocation2 + $0x160] sm:$0xf] %vm2754_vm9, %v2651_v54 }
 0x3c2   :  { %2957 = vrot.lane.b32.xlu1 %v9389_v55, %s6520_s26  ;;  %2955 = vrot.lane.b32.xlu0 %v9393_v17, %s6520_s26 }
 0x3c4   :  { %v2942_v45 = vpop.permute.xlu1 %2941  ;;  %v2940_v50 = vpop.permute.xlu0 %2939 }
 0x3c5   :  { %3089 = vst.msk [vmem:[#allocation2 + $0x168] sm:$0xf] %vm3043_vm10, %v2942_v45  ;;  %3088 = vst.msk [vmem:[#allocation2 + $0x160] sm:$0xf] %vm3043_vm10, %v2940_v50  ;;  %v4691_v24 = vpop.f32.mrf.mxu1 }
 0x3c6   :  { %3230 = vrot.lane.b32.xlu1 %v9050_v39, %s6518_s24  ;;  %3228 = vrot.lane.b32.xlu0 %v9052_v11, %s6518_s24  ;;  %v4692_v20 = vadd.f32 %v9463_v10, %v4691_v24 }
 0x3c7   :  { %v4693_v29 = vpop.f32.mrf.mxu1 }
 0x3c8   :  { %v3215_v6 = vpop.permute.xlu1 %3214  ;;  %v3213_v52 = vpop.permute.xlu0 %3212  ;;  %v4856_v5 = vmax.f32 %v4692_v20, 0.0 }
 0x3c9   :  { %3362 = vst.msk [vmem:[#allocation2 + $0x168] sm:$0xf] %vm3316_vm11, %v3215_v6  ;;  %3361 = vst.msk [vmem:[#allocation2 + $0x160] sm:$0xf] %vm3316_vm11, %v3213_v52  ;;  %v4694_v30 = vpop.f32.mrf.mxu1 }
 0x3ca   :  { %v4695_v60 = vadd.f32 %v9463_v10, %v4694_v30  ;;  %3487 = vrot.lane.b32.xlu1 %v9031_v53, %s6522_s28  ;;  %3485 = vrot.lane.b32.xlu0 %v9033_v4, %s6522_s28 }
 0x3cb   :  { %v4696_v26 = vpop.f32.mrf.mxu1 }
 0x3cc   :  { %v4857_v41 = vmax.f32 %v4695_v60, 0.0  ;;  %v3472_v34 = vpop.permute.xlu1 %3471  ;;  %v3470_v40 = vpop.permute.xlu0 %3469  ;;  %v9520_v26 = vcombine.high %v9169_v1, %v9169_v1 }
 0x3cd   :  { %3613 = vst.msk [vmem:[#allocation2 + $0x168] sm:$0xf] %vm3567_vm12, %v3472_v34  ;;  %3612 = vst.msk [vmem:[#allocation2 + $0x160] sm:$0xf] %vm3567_vm12, %v3470_v40 }
 0x3ce   :  { %v9479_v9 = vpack.c.bf16 %v4857_v41, %v4856_v5  ;;  %3738 = vrot.lane.b32.xlu1 %v5893_v46, %s6524_s14  ;;  %3736 = vrot.lane.b32.xlu0 %v5892_v62, %s6524_s14  ;;  %v9524_v5 = vcombine.low %v9169_v1, %v9169_v1 }
 0x3d0   :  { %v3723_v13 = vpop.permute.xlu1 %3722  ;;  %v3721_v54 = vpop.permute.xlu0 %3720 }
 0x3d1   :  { %3864 = vst.msk [vmem:[#allocation2 + $0x168] sm:$0xf] %vm3818_vm13, %v3723_v13  ;;  %3863 = vst.msk [vmem:[#allocation2 + $0x160] sm:$0xf] %vm3818_vm13, %v3721_v54 }
 0x3d2   :  { %1907 = vrot.lane.b32.xlu1 %v9389_v55, %s6521_s27  ;;  %1905 = vrot.lane.b32.xlu0 %v9393_v17, %s6521_s27  ;;  %v6416_v55 = vld [vmem:[#allocation2 + $0x164] ss:$8 sps:$4 sm:$0xff]  }
 0x3d3   :  { %6070 = vmatprep.mubr.msk.bf16.mxu1 %vm4440_vm14, %v6416_v55 }
 0x3d4   :  { %v1892_v35 = vpop.permute.xlu1 %1891  ;;  %v1890_v45 = vpop.permute.xlu0 %1889 }
 0x3d5   :  { %2035 = vst.msk [vmem:[#allocation2 + $0x178] sm:$0xf] %vm1987_vm7, %v1892_v35  ;;  %2034 = vst.msk [vmem:[#allocation2 + $0x170] sm:$0xf] %vm1987_vm7, %v1890_v45 }
 0x3d6   :  { %2407 = vrot.lane.b32.xlu1 %v9050_v39, %s6519_s25  ;;  %2405 = vrot.lane.b32.xlu0 %v9052_v11, %s6519_s25 }
 0x3d8   :  { %v2392_v50 = vpop.permute.xlu1 %2391  ;;  %v2390_v24 = vpop.permute.xlu0 %2389  ;;  %v4053_v29 = vld [vmem:[#allocation2 + $0x160] sm:$0xff]  ;;  %v4054_v20 = vld [vmem:[#allocation2 + $0x168] sm:$0xff] }
 0x3d9   :  { %2535 = vst.msk [vmem:[#allocation2 + $0x178] sm:$0xf] %vm2487_vm8, %v2392_v50  ;;  %2534 = vst.msk [vmem:[#allocation2 + $0x170] sm:$0xf] %vm2487_vm8, %v2390_v24  ;;  %v6019_v17 = vcombine.low %v4053_v29, %v4054_v20  ;;  %v6418_v24 = vld [vmem:[#allocation2 + $0x174] ss:$8 sps:$4 sm:$0xff]  }
 0x3da   :  { %2672 = vrot.lane.b32.xlu1 %v9031_v53, %s6517_s23  ;;  %2670 = vrot.lane.b32.xlu0 %v9033_v4, %s6517_s23 }
 0x3db   :  { %4746 = vmatmul.mubr.bf16.gmra.mxu1 %v6019_v17 }
 0x3dc   :  { %v2657_v39 = vpop.permute.xlu1 %2656  ;;  %v2655_v11 = vpop.permute.xlu0 %2654  ;;  %6071 = vmatprep.mubr.msk.bf16.mxu1 %vm4440_vm14, %v6418_v24  ;;  %v9651_v24 = vcombine.high %v9365_v51, %v9365_v51 }
 0x3dd   :  { %2802 = vst.msk [vmem:[#allocation2 + $0x178] sm:$0xf] %vm2754_vm9, %v2657_v39  ;;  %2801 = vst.msk [vmem:[#allocation2 + $0x170] sm:$0xf] %vm2754_vm9, %v2655_v11 }
 0x3de   :  { %2961 = vrot.lane.b32.xlu1 %v5893_v46, %s6520_s26  ;;  %2959 = vrot.lane.b32.xlu0 %v5892_v62, %s6520_s26 }
 0x3e0   :  { %v2946_v6 = vpop.permute.xlu1 %2945  ;;  %v2944_v52 = vpop.permute.xlu0 %2943 }
 0x3e1   :  { %3091 = vst.msk [vmem:[#allocation2 + $0x178] sm:$0xf] %vm3043_vm10, %v2946_v6  ;;  %3090 = vst.msk [vmem:[#allocation2 + $0x170] sm:$0xf] %vm3043_vm10, %v2944_v52 }
 0x3e2   :  { %3234 = vrot.lane.b32.xlu1 %v9055_v12, %s6518_s24  ;;  %3232 = vrot.lane.b32.xlu0 %v9057_v48, %s6518_s24 }
 0x3e4   :  { %v3219_v53 = vpop.permute.xlu1 %3218  ;;  %v3217_v4 = vpop.permute.xlu0 %3216 }
 0x3e5   :  { %3364 = vst.msk [vmem:[#allocation2 + $0x178] sm:$0xf] %vm3316_vm11, %v3219_v53  ;;  %3363 = vst.msk [vmem:[#allocation2 + $0x170] sm:$0xf] %vm3316_vm11, %v3217_v4 }
 0x3e6   :  { %3491 = vrot.lane.b32.xlu1 %v9144_v27, %s6522_s28  ;;  %3489 = vrot.lane.b32.xlu0 %v9152_v47, %s6522_s28 }
 0x3e8   :  { %v3476_v30 = vpop.permute.xlu1 %3475  ;;  %v3474_v60 = vpop.permute.xlu0 %3473 }
 0x3e9   :  { %3615 = vst.msk [vmem:[#allocation2 + $0x178] sm:$0xf] %vm3567_vm12, %v3476_v30  ;;  %3614 = vst.msk [vmem:[#allocation2 + $0x170] sm:$0xf] %vm3567_vm12, %v3474_v60 }
 0x3ea   :  { %3742 = vrot.lane.b32.xlu1 %v9520_v26, %s6524_s14  ;;  %3740 = vrot.lane.b32.xlu0 %v9524_v5, %s6524_s14 }
 0x3ec   :  { %v3727_v41 = vpop.permute.xlu1 %3726  ;;  %v3725_v34 = vpop.permute.xlu0 %3724 }
 0x3ed   :  { %3866 = vst.msk [vmem:[#allocation2 + $0x178] sm:$0xf] %vm3818_vm13, %v3727_v41  ;;  %3865 = vst.msk [vmem:[#allocation2 + $0x170] sm:$0xf] %vm3818_vm13, %v3725_v34  ;;  %v4571_v40 = vpop.f32.mrf.mxu0  ;;  %v9586_v34 = vcombine.low %v9256_v18, %v9256_v18 }
 0x3ee   :  { %1911 = vrot.lane.b32.xlu1 %v5893_v46, %s6521_s27  ;;  %1909 = vrot.lane.b32.xlu0 %v5892_v62, %s6521_s27  ;;  %v4572_v35 = vadd.f32 %v9463_v10, %v4571_v40 }
 0x3ef   :  { %v4573_v54 = vpop.f32.mrf.mxu0 }
 0x3f0   :  { %v1896_v1 = vpop.permute.xlu1 %1895  ;;  %v1894_v13 = vpop.permute.xlu0 %1893 }
 0x3f1   :  { %2037 = vst.msk [vmem:[#allocation2 + $0x188] sm:$0xf] %vm1987_vm7, %v1896_v1  ;;  %2036 = vst.msk [vmem:[#allocation2 + $0x180] sm:$0xf] %vm1987_vm7, %v1894_v13  ;;  %v4574_v46 = vpop.f32.mrf.mxu0 }
 0x3f2   :  { %2411 = vrot.lane.b32.xlu1 %v9055_v12, %s6519_s25  ;;  %2409 = vrot.lane.b32.xlu0 %v9057_v48, %s6519_s25  ;;  %v4575_v29 = vadd.f32 %v9463_v10, %v4574_v46  ;;  %v4826_v48 = vmax.f32 %v4572_v35, 0.0  ;;  %v6421_v35 = vld [vmem:[#allocation2 + $0x184] ss:$8 sps:$4 sm:$0xff]  }
 0x3f3   :  { %v9545_v55 = vpop.f32.mrf.mxu1  ;;  %v4576_v12 = vpop.f32.mrf.mxu0 }
 0x3f4   :  { %v2396_v45 = vpop.permute.xlu1 %2395  ;;  %v4055_v50 = vld [vmem:[#allocation2 + $0x170] sm:$0xff]  ;;  %v4056_v62 = vld [vmem:[#allocation2 + $0x178] sm:$0xff]  ;;  %v2394_v20 = vpop.permute.xlu0 %2393  ;;  %v4827_v39 = vmax.f32 %v4575_v29, 0.0 }
 0x3f5   :  { %2537 = vst.msk [vmem:[#allocation2 + $0x188] sm:$0xf] %vm2487_vm8, %v2396_v45  ;;  %v6021_v17 = vcombine.low %v4055_v50, %v4056_v62  ;;  %2536 = vst.msk [vmem:[#allocation2 + $0x180] sm:$0xf] %vm2487_vm8, %v2394_v20  ;;  %v4701_v11 = vpop.f32.mrf.mxu1 }
 0x3f6   :  { %2676 = vrot.lane.b32.xlu1 %v9144_v27, %s6517_s23  ;;  %2674 = vrot.lane.b32.xlu0 %v9152_v47, %s6517_s23  ;;  %v4890_v52 = vpack.c.bf16 %v4827_v39, %v4826_v48  ;;  %v4700_v39 = vadd.f32 %v9463_v10, %v9545_v55 }
 0x3f7   :  { %4754 = vmatmul.mubr.bf16.gmra.mxu1 %v6021_v17  ;;  %v9554_v4 = vpop.f32.mrf.mxu1 }
 0x3f8   :  { %v2661_v6 = vpop.permute.xlu1 %2660  ;;  %v2659_v53 = vpop.permute.xlu0 %2658  ;;  %6261 = vmatprep.mubr.msk.bf16.mxu0 %vm4440_vm14, %v4890_v52  ;;  %6072 = vmatprep.mubr.msk.bf16.mxu1 %vm4440_vm14, %v6421_v35 }
 0x3f9   :  { %2804 = vst.msk [vmem:[#allocation2 + $0x188] sm:$0xf] %vm2754_vm9, %v2661_v6  ;;  %2803 = vst.msk [vmem:[#allocation2 + $0x180] sm:$0xf] %vm2754_vm9, %v2659_v53  ;;  %v4704_v27 = vpop.f32.mrf.mxu1  ;;  %6262 = vmatmul.mubr.msk.bf16.vlgmr.msra.gmra.mxu0 %vm4440_vm14, %v8336_v37 }
 0x3fa   :  { %2965 = vrot.lane.b32.xlu1 %v9520_v26, %s6520_s26  ;;  %2963 = vrot.lane.b32.xlu0 %v9524_v5, %s6520_s26 }
 0x3fb   :  { %6265 = vmatprep.mubr.msk.bf16.mxu0 %vm4440_vm14, %v8384_v33  ;;  %v9582_v33 = vcombine.high %v9256_v18, %v9256_v18 }
 0x3fc   :  { %v2950_v47 = vpop.permute.xlu1 %2949  ;;  %v2948_v30 = vpop.permute.xlu0 %2947 }
 0x3fd   :  { %3093 = vst.msk [vmem:[#allocation2 + $0x188] sm:$0xf] %vm3043_vm10, %v2950_v47  ;;  %3092 = vst.msk [vmem:[#allocation2 + $0x180] sm:$0xf] %vm3043_vm10, %v2948_v30 }
 0x3fe   :  { %3238 = vrot.lane.b32.xlu1 %v9237_v16, %s6518_s24  ;;  %3236 = vrot.lane.b32.xlu0 %v9239_v61, %s6518_s24 }
 0x400   :  { %v3223_v60 = vpop.permute.xlu1 %3222  ;;  %v3221_v41 = vpop.permute.xlu0 %3220 }
 0x401   :  { %3366 = vst.msk [vmem:[#allocation2 + $0x188] sm:$0xf] %vm3316_vm11, %v3223_v60  ;;  %3365 = vst.msk [vmem:[#allocation2 + $0x180] sm:$0xf] %vm3316_vm11, %v3221_v41  ;;  %6266 = vmatmul.mubr.msk.bf16.gmra.mxu0 %vm4440_vm14, %v8547_v42 }
 0x402   :  { %3495 = vrot.lane.b32.xlu1 %v9223_v31, %s6522_s28  ;;  %3493 = vrot.lane.b32.xlu0 %v9227_v57, %s6522_s28 }
 0x403   :  { %6269 = vmatprep.mubr.msk.bf16.mxu0 %vm4440_vm14, %v8566_v59 }
 0x404   :  { %v3480_v37 = vpop.permute.xlu1 %3479  ;;  %v3478_v1 = vpop.permute.xlu0 %3477 }
 0x405   :  { %3617 = vst.msk [vmem:[#allocation2 + $0x188] sm:$0xf] %vm3567_vm12, %v3480_v37  ;;  %3616 = vst.msk [vmem:[#allocation2 + $0x180] sm:$0xf] %vm3567_vm12, %v3478_v1 }
 0x406   :  { %3746 = vrot.lane.b32.xlu1 %v9582_v33, %s6524_s14  ;;  %3744 = vrot.lane.b32.xlu0 %v9586_v34, %s6524_s14 }
 0x408   :  { %v3731_v42 = vpop.permute.xlu1 %3730  ;;  %v3729_v40 = vpop.permute.xlu0 %3728 }
 0x409   :  { %3868 = vst.msk [vmem:[#allocation2 + $0x188] sm:$0xf] %vm3818_vm13, %v3731_v42  ;;  %3867 = vst.msk [vmem:[#allocation2 + $0x180] sm:$0xf] %vm3818_vm13, %v3729_v40  ;;  %6270 = vmatmul.mubr.msk.bf16.gmra.mxu0 %vm4440_vm14, %v8733_v21  ;;  %v5964_v40 = vcombine.low %v9383_v44, %v9383_v44 }
 0x40a   :  { %1915 = vrot.lane.b32.xlu1 %v9520_v26, %s6521_s27  ;;  %1913 = vrot.lane.b32.xlu0 %v9524_v5, %s6521_s27 }
 0x40b   :  { %6273 = vmatprep.mubr.msk.bf16.mxu0 %vm4440_vm14, %v8764_v7 }
 0x40c   :  { %v1900_v59 = vpop.permute.xlu1 %1899  ;;  %v1898_v18 = vpop.permute.xlu0 %1897 }
 0x40d   :  { %2039 = vst.msk [vmem:[#allocation2 + $0x198] sm:$0xf] %vm1987_vm7, %v1900_v59  ;;  %2038 = vst.msk [vmem:[#allocation2 + $0x190] sm:$0xf] %vm1987_vm7, %v1898_v18 }
 0x40e   :  { %2415 = vrot.lane.b32.xlu1 %v9237_v16, %s6519_s25  ;;  %2413 = vrot.lane.b32.xlu0 %v9239_v61, %s6519_s25 }
 0x40f   :  { %v9612_v5 = vpop.f32.mrf.mxu1 }
 0x410   :  { %v2400_v26 = vpop.permute.xlu1 %2399  ;;  %v4058_v13 = vld [vmem:[#allocation2 + $0x188] sm:$0xff]  ;;  %v2398_v21 = vpop.permute.xlu0 %2397  ;;  %v4057_v54 = vld [vmem:[#allocation2 + $0x180] sm:$0xff]  ;;  %v4708_v30 = vadd.f32 %v9463_v10, %v9612_v5 }
 0x411   :  { %2539 = vst.msk [vmem:[#allocation2 + $0x198] sm:$0xf] %vm2487_vm8, %v2400_v26  ;;  %2538 = vst.msk [vmem:[#allocation2 + $0x190] sm:$0xf] %vm2487_vm8, %v2398_v21  ;;  %v4709_v7 = vpop.f32.mrf.mxu1  ;;  %v6023_v16 = vcombine.low %v4057_v54, %v4058_v13  ;;  %6274 = vmatmul.mubr.msk.bf16.gmra.mxu0 %vm4440_vm14, %v8914_v22  ;;  %v5969_v21 = vcombine.high %v9431_v49, %v9431_v49 }
 0x412   :  { %2680 = vrot.lane.b32.xlu1 %v9223_v31, %s6517_s23  ;;  %2678 = vrot.lane.b32.xlu0 %v9227_v57, %s6517_s23  ;;  %v4860_v1 = vmax.f32 %v4708_v30, 0.0 }
 0x413   :  { %v9621_v45 = vpop.f32.mrf.mxu1  ;;  %4762 = vmatmul.mubr.bf16.gmra.mxu1 %v6023_v16  ;;  %6277 = vmatprep.mubr.msk.bf16.mxu0 %vm4440_vm14, %v8941_v15 }
 0x414   :  { %v2665_v61 = vpop.permute.xlu1 %2664  ;;  %v2663_v46 = vpop.permute.xlu0 %2662  ;;  %v4711_v27 = vadd.f32 %v9463_v10, %v9621_v45 }
 0x415   :  { %2806 = vst.msk [vmem:[#allocation2 + $0x198] sm:$0xf] %vm2754_vm9, %v2665_v61  ;;  %2805 = vst.msk [vmem:[#allocation2 + $0x190] sm:$0xf] %vm2754_vm9, %v2663_v46  ;;  %v4712_v31 = vpop.f32.mrf.mxu1 }
 0x416   :  { %2969 = vrot.lane.b32.xlu1 %v9582_v33, %s6520_s26  ;;  %2967 = vrot.lane.b32.xlu0 %v9586_v34, %s6520_s26 }
 0x418   :  { %v2954_v57 = vpop.permute.xlu1 %2953  ;;  %v2952_v50 = vpop.permute.xlu0 %2951 }
 0x419   :  { %3095 = vst.msk [vmem:[#allocation2 + $0x198] sm:$0xf] %vm3043_vm10, %v2954_v57  ;;  %3094 = vst.msk [vmem:[#allocation2 + $0x190] sm:$0xf] %vm3043_vm10, %v2952_v50  ;;  %6278 = vmatmul.mubr.msk.bf16.gmra.mxu0 %vm4440_vm14, %v9003_v36  ;;  %v9655_v36 = vcombine.low %v9365_v51, %v9365_v51  ;;  %v6425_v50 = vld [vmem:[#allocation2 + $0x1a4] ss:$8 sps:$4 sm:$0xff]  }
 0x41a   :  { %3242 = vrot.lane.b32.xlu1 %v9265_v19, %s6518_s24  ;;  %3240 = vrot.lane.b32.xlu0 %v9267_v3, %s6518_s24 }
 0x41b   :  { %6281 = vmatprep.mubr.msk.bf16.mxu0 %vm4440_vm14, %v9039_v14 }
 0x41c   :  { %v3227_v22 = vpop.permute.xlu1 %3226  ;;  %v3225_v15 = vpop.permute.xlu0 %3224 }
 0x41d   :  { %3368 = vst.msk [vmem:[#allocation2 + $0x198] sm:$0xf] %vm3316_vm11, %v3227_v22  ;;  %3367 = vst.msk [vmem:[#allocation2 + $0x190] sm:$0xf] %vm3316_vm11, %v3225_v15 }
 0x41e   :  { %3499 = vrot.lane.b32.xlu1 %v9340_v58, %s6522_s28  ;;  %3497 = vrot.lane.b32.xlu0 %v9344_v8, %s6522_s28 }
 0x420   :  { %v3484_v62 = vpop.permute.xlu1 %3483  ;;  %v3482_v14 = vpop.permute.xlu0 %3481 }
 0x421   :  { %3619 = vst.msk [vmem:[#allocation2 + $0x198] sm:$0xf] %vm3567_vm12, %v3484_v62  ;;  %3618 = vst.msk [vmem:[#allocation2 + $0x190] sm:$0xf] %vm3567_vm12, %v3482_v14  ;;  %6282 = vmatmul.mubr.msk.bf16.gmra.mxu0 %vm4440_vm14, %v9117_v23  ;;  %v4703_v23 = vadd.f32 %v9463_v10, %v9554_v4  ;;  %v4858_v4 = vmax.f32 %v4700_v39, 0.0 }
 0x422   :  { %3750 = vrot.lane.b32.xlu1 %v9651_v24, %s6524_s14  ;;  %3748 = vrot.lane.b32.xlu0 %v9655_v36, %s6524_s14 }
 0x423   :  { %6285 = vmatprep.mubr.msk.bf16.mxu0 %vm4440_vm14, %v9208_v0  ;;  %v4859_v52 = vmax.f32 %v4703_v23, 0.0 }
 0x424   :  { %v3735_v29 = vpop.permute.xlu1 %3734  ;;  %v3733_v20 = vpop.permute.xlu0 %3732 }
 0x425   :  { %3870 = vst.msk [vmem:[#allocation2 + $0x198] sm:$0xf] %vm3818_vm13, %v3735_v29  ;;  %3869 = vst.msk [vmem:[#allocation2 + $0x190] sm:$0xf] %vm3818_vm13, %v3733_v20 }
 0x426   :  { %1919 = vrot.lane.b32.xlu1 %v9582_v33, %s6521_s27  ;;  %1917 = vrot.lane.b32.xlu0 %v9586_v34, %s6521_s27  ;;  %v4861_v33 = vmax.f32 %v4711_v27, 0.0 }
 0x428   :  { %v1904_v51 = vpop.permute.xlu1 %1903  ;;  %v1902_v17 = vpop.permute.xlu0 %1901  ;;  %v4907_v26 = vpack.c.bf16 %v4861_v33, %v4860_v1 }
 0x429   :  { %2041 = vst.msk [vmem:[#allocation2 + $0x1a8] sm:$0xf] %vm1987_vm7, %v1904_v51  ;;  %2040 = vst.msk [vmem:[#allocation2 + $0x1a0] sm:$0xf] %vm1987_vm7, %v1902_v17  ;;  %6286 = vmatmul.mubr.msk.bf16.gmra.mxu0 %vm4440_vm14, %v9310_v56 }
 0x42a   :  { %2419 = vrot.lane.b32.xlu1 %v9265_v19, %s6519_s25  ;;  %2417 = vrot.lane.b32.xlu0 %v9267_v3, %s6519_s25  ;;  %v6423_v3 = vld [vmem:[#allocation2 + $0x194] ss:$8 sps:$4 sm:$0xff]  }
 0x42b   :  { %v4715_v12 = vpop.f32.mrf.mxu1  ;;  %6289 = vmatprep.mubr.msk.bf16.mxu0 %vm4440_vm14, %v9398_v38  ;;  %6073 = vmatprep.mubr.msk.bf16.mxu1 %vm4440_vm14, %v6423_v3 }
 0x42c   :  { %v2404_v0 = vpop.permute.xlu1 %2403  ;;  %v4060_v48 = vld [vmem:[#allocation2 + $0x198] sm:$0xff]  ;;  %v2402_v11 = vpop.permute.xlu0 %2401  ;;  %v4059_v19 = vld [vmem:[#allocation2 + $0x190] sm:$0xff]  ;;  %v4716_v41 = vadd.f32 %v9463_v10, %v4715_v12 }
 0x42d   :  { %2541 = vst.msk [vmem:[#allocation2 + $0x1a8] sm:$0xf] %vm2487_vm8, %v2404_v0  ;;  %2540 = vst.msk [vmem:[#allocation2 + $0x1a0] sm:$0xf] %vm2487_vm8, %v2402_v11  ;;  %v4717_v56 = vpop.f32.mrf.mxu1  ;;  %v6025_v6 = vcombine.low %v4059_v19, %v4060_v48 }
 0x42e   :  { %2684 = vrot.lane.b32.xlu1 %v9340_v58, %s6517_s23  ;;  %2682 = vrot.lane.b32.xlu0 %v9344_v8, %s6517_s23  ;;  %v4906_v8 = vpack.c.bf16 %v4859_v52, %v4858_v4  ;;  %v4862_v59 = vmax.f32 %v4716_v41, 0.0 }
 0x42f   :  { %v4718_v53 = vpop.f32.mrf.mxu1  ;;  %4770 = vmatmul.mubr.bf16.gmra.mxu1 %v6025_v6 }
 0x430   :  { %v2669_v55 = vpop.permute.xlu1 %2668  ;;  %v2667_v38 = vpop.permute.xlu0 %2666  ;;  %v4719_v47 = vadd.f32 %v9463_v10, %v4718_v53  ;;  %6074 = vmatprep.mubr.msk.bf16.mxu1 %vm4440_vm14, %v6425_v50  ;;  %v6427_v53 = vld [vmem:[#allocation2 + $0x1b4] ss:$8 sps:$4 sm:$0xff]  }
 0x431   :  { %2808 = vst.msk [vmem:[#allocation2 + $0x1a8] sm:$0xf] %vm2754_vm9, %v2669_v55  ;;  %2807 = vst.msk [vmem:[#allocation2 + $0x1a0] sm:$0xf] %vm2754_vm9, %v2667_v38  ;;  %v4720_v58 = vpop.f32.mrf.mxu1  ;;  %6290 = vmatmul.mubr.msk.bf16.gmra.mxu0 %vm4440_vm14, %v9479_v9  ;;  %v5965_v9 = vcombine.high %v9383_v44, %v9383_v44  ;;  %v5968_v44 = vcombine.low %v9431_v49, %v9431_v49 }
 0x432   :  { %2973 = vrot.lane.b32.xlu1 %v9651_v24, %s6520_s26  ;;  %2971 = vrot.lane.b32.xlu0 %v9655_v36, %s6520_s26  ;;  %v4863_v34 = vmax.f32 %v4719_v47, 0.0 }
 0x433   :  { %6293 = vmatprep.mubr.msk.bf16.mxu0 %vm4440_vm14, %v4906_v8 }
 0x434   :  { %v2958_v60 = vpop.permute.xlu1 %2957  ;;  %v2956_v37 = vpop.permute.xlu0 %2955  ;;  %v4908_v5 = vpack.c.bf16 %v4863_v34, %v4862_v59 }
 0x435   :  { %3097 = vst.msk [vmem:[#allocation2 + $0x1a8] sm:$0xf] %vm3043_vm10, %v2958_v60  ;;  %3096 = vst.msk [vmem:[#allocation2 + $0x1a0] sm:$0xf] %vm3043_vm10, %v2956_v37 }
 0x436   :  { %3246 = vrot.lane.b32.xlu1 %v9415_v28, %s6518_s24  ;;  %3244 = vrot.lane.b32.xlu0 %v9417_v32, %s6518_s24 }
 0x438   :  { %v3231_v42 = vpop.permute.xlu1 %3230  ;;  %v3229_v18 = vpop.permute.xlu0 %3228 }
 0x439   :  { %3370 = vst.msk [vmem:[#allocation2 + $0x1a8] sm:$0xf] %vm3316_vm11, %v3231_v42  ;;  %3369 = vst.msk [vmem:[#allocation2 + $0x1a0] sm:$0xf] %vm3316_vm11, %v3229_v18  ;;  %6294 = vmatmul.mubr.msk.bf16.gmra.mxu0 %vm4440_vm14, %v4907_v26 }
 0x43a   :  { %3503 = vrot.lane.b32.xlu1 %v5965_v9, %s6522_s28  ;;  %3501 = vrot.lane.b32.xlu0 %v5964_v40, %s6522_s28 }
 0x43b   :  { %6297 = vmatprep.mubr.msk.bf16.mxu0 %vm4440_vm14, %v4908_v5 }
 0x43c   :  { %v3488_v13 = vpop.permute.xlu1 %3487  ;;  %v3486_v54 = vpop.permute.xlu0 %3485 }
 0x43d   :  { %3621 = vst.msk [vmem:[#allocation2 + $0x1a8] sm:$0xf] %vm3567_vm12, %v3488_v13  ;;  %3620 = vst.msk [vmem:[#allocation2 + $0x1a0] sm:$0xf] %vm3567_vm12, %v3486_v54 }
 0x43e   :  { %3754 = vrot.lane.b32.xlu1 %v5969_v21, %s6524_s14  ;;  %3752 = vrot.lane.b32.xlu0 %v5968_v44, %s6524_s14 }
 0x440   :  { %v3739_v35 = vpop.permute.xlu1 %3738  ;;  %v3737_v7 = vpop.permute.xlu0 %3736 }
 0x441   :  { %3872 = vst.msk [vmem:[#allocation2 + $0x1a8] sm:$0xf] %vm3818_vm13, %v3739_v35  ;;  %3871 = vst.msk [vmem:[#allocation2 + $0x1a0] sm:$0xf] %vm3818_vm13, %v3737_v7 }
 0x442   :  { %1923 = vrot.lane.b32.xlu1 %v9651_v24, %s6521_s27  ;;  %1921 = vrot.lane.b32.xlu0 %v9655_v36, %s6521_s27 }
 0x444   :  { %v1908_v49 = vpop.permute.xlu1 %1907  ;;  %v1906_v16 = vpop.permute.xlu0 %1905 }
 0x445   :  { %2043 = vst.msk [vmem:[#allocation2 + $0x1b8] sm:$0xf] %vm1987_vm7, %v1908_v49  ;;  %2042 = vst.msk [vmem:[#allocation2 + $0x1b0] sm:$0xf] %vm1987_vm7, %v1906_v16  ;;  %v6429_v49 = vld [vmem:[#allocation2 + $0x1c4] ss:$8 sps:$4 sm:$0xff]  }
 0x446   :  { %2423 = vrot.lane.b32.xlu1 %v9415_v28, %s6519_s25  ;;  %2421 = vrot.lane.b32.xlu0 %v9417_v32, %s6519_s25 }
 0x447   :  { %v4723_v45 = vpop.f32.mrf.mxu1 }
 0x448   :  { %v2408_v61 = vpop.permute.xlu1 %2407  ;;  %v4062_v46 = vld [vmem:[#allocation2 + $0x1a8] sm:$0xff]  ;;  %v2406_v31 = vpop.permute.xlu0 %2405  ;;  %v4061_v57 = vld [vmem:[#allocation2 + $0x1a0] sm:$0xff]  ;;  %v4724_v28 = vadd.f32 %v9463_v10, %v4723_v45 }
 0x449   :  { %2543 = vst.msk [vmem:[#allocation2 + $0x1b8] sm:$0xf] %vm2487_vm8, %v2408_v61  ;;  %2542 = vst.msk [vmem:[#allocation2 + $0x1b0] sm:$0xf] %vm2487_vm8, %v2406_v31  ;;  %v4725_v22 = vpop.f32.mrf.mxu1  ;;  %v6027_v15 = vcombine.low %v4061_v57, %v4062_v46 }
 0x44a   :  { %2688 = vrot.lane.b32.xlu1 %v5965_v9, %s6517_s23  ;;  %2686 = vrot.lane.b32.xlu0 %v5964_v40, %s6517_s23  ;;  %v4864_v29 = vmax.f32 %v4724_v28, 0.0 }
 0x44b   :  { %v4726_v62 = vpop.f32.mrf.mxu1  ;;  %4778 = vmatmul.mubr.bf16.gmra.mxu1 %v6027_v15 }
 0x44c   :  { %v2673_v32 = vpop.permute.xlu1 %2672  ;;  %v2671_v24 = vpop.permute.xlu0 %2670  ;;  %v4727_v36 = vadd.f32 %v9463_v10, %v4726_v62  ;;  %6075 = vmatprep.mubr.msk.bf16.mxu1 %vm4440_vm14, %v6427_v53 }
 0x44d   :  { %2810 = vst.msk [vmem:[#allocation2 + $0x1b8] sm:$0xf] %vm2754_vm9, %v2673_v32  ;;  %2809 = vst.msk [vmem:[#allocation2 + $0x1b0] sm:$0xf] %vm2754_vm9, %v2671_v24  ;;  %v4728_v14 = vpop.f32.mrf.mxu1 }
 0x44e   :  { %2977 = vrot.lane.b32.xlu1 %v5969_v21, %s6520_s26  ;;  %2975 = vrot.lane.b32.xlu0 %v5968_v44, %s6520_s26  ;;  %v4865_v20 = vmax.f32 %v4727_v36, 0.0 }
 0x450   :  { %v2962_v51 = vpop.permute.xlu1 %2961  ;;  %v4909_v17 = vpack.c.bf16 %v4865_v20, %v4864_v29  ;;  %v2960_v23 = vpop.permute.xlu0 %2959 }
 0x451   :  { %3099 = vst.msk [vmem:[#allocation2 + $0x1b8] sm:$0xf] %vm3043_vm10, %v2962_v51  ;;  %3098 = vst.msk [vmem:[#allocation2 + $0x1b0] sm:$0xf] %vm3043_vm10, %v2960_v23 }
 0x452   :  { %3250 = vrot.lane.b32.xlu1 %v9420_v43, %s6518_s24  ;;  %3248 = vrot.lane.b32.xlu0 %v9422_v2, %s6518_s24 }
 0x453   :  { %6298 = vmatmul.mubr.msk.bf16.gmra.mxu0 %vm4440_vm14, %v4909_v17 }
 0x454   :  { %v3235_v0 = vpop.permute.xlu1 %3234  ;;  %v3233_v12 = vpop.permute.xlu0 %3232 }
 0x455   :  { %3372 = vst.msk [vmem:[#allocation2 + $0x1b8] sm:$0xf] %vm3316_vm11, %v3235_v0  ;;  %3371 = vst.msk [vmem:[#allocation2 + $0x1b0] sm:$0xf] %vm3316_vm11, %v3233_v12 }
 0x458   :  { %v3492_v48 = vpop.permute.xlu1 %3491  ;;  %v3490_v39 = vpop.permute.xlu0 %3489 }
 0x459   :  { %3623 = vst.msk [vmem:[#allocation2 + $0x1b8] sm:$0xf] %vm3567_vm12, %v3492_v48  ;;  %3622 = vst.msk [vmem:[#allocation2 + $0x1b0] sm:$0xf] %vm3567_vm12, %v3490_v39 }
 0x45c   :  { %v3743_v11 = vpop.permute.xlu1 %3742  ;;  %v3741_v43 = vpop.permute.xlu0 %3740 }
 0x45d   :  { %3874 = vst.msk [vmem:[#allocation2 + $0x1b8] sm:$0xf] %vm3818_vm13, %v3743_v11  ;;  %3873 = vst.msk [vmem:[#allocation2 + $0x1b0] sm:$0xf] %vm3818_vm13, %v3741_v43 }
 0x460   :  { %v1912_v2 = vpop.permute.xlu1 %1911  ;;  %v1910_v19 = vpop.permute.xlu0 %1909 }
 0x461   :  { %2045 = vst.msk [vmem:[#allocation2 + $0x1c8] sm:$0xf] %vm1987_vm7, %v1912_v2  ;;  %2044 = vst.msk [vmem:[#allocation2 + $0x1c0] sm:$0xf] %vm1987_vm7, %v1910_v19  ;;  %v6431_v2 = vld [vmem:[#allocation2 + $0x1d4] ss:$8 sps:$4 sm:$0xff]  }
 0x463   :  { %v4731_v56 = vpop.f32.mrf.mxu1 }
 0x464   :  { %v2412_v3 = vpop.permute.xlu1 %2411  ;;  %v4064_v6 = vld [vmem:[#allocation2 + $0x1b8] sm:$0xff]  ;;  %v2410_v52 = vpop.permute.xlu0 %2409  ;;  %v4063_v55 = vld [vmem:[#allocation2 + $0x1b0] sm:$0xff]  ;;  %v4732_v27 = vadd.f32 %v9463_v10, %v4731_v56 }
 0x465   :  { %2545 = vst.msk [vmem:[#allocation2 + $0x1c8] sm:$0xf] %vm2487_vm8, %v2412_v3  ;;  %2544 = vst.msk [vmem:[#allocation2 + $0x1c0] sm:$0xf] %vm2487_vm8, %v2410_v52  ;;  %v4733_v4 = vpop.f32.mrf.mxu1  ;;  %v6029_v38 = vcombine.low %v4063_v55, %v4064_v6 }
 0x466   :  { %v4866_v41 = vmax.f32 %v4732_v27, 0.0 }
 0x467   :  { %v4734_v8 = vpop.f32.mrf.mxu1  ;;  %4786 = vmatmul.mubr.bf16.gmra.mxu1 %v6029_v38 }
 0x468   :  { %v2677_v58 = vpop.permute.xlu1 %2676  ;;  %v2675_v47 = vpop.permute.xlu0 %2674  ;;  %v4735_v30 = vadd.f32 %v9463_v10, %v4734_v8  ;;  %6076 = vmatprep.mubr.msk.bf16.mxu1 %vm4440_vm14, %v6429_v49 }
 0x469   :  { %2812 = vst.msk [vmem:[#allocation2 + $0x1c8] sm:$0xf] %vm2754_vm9, %v2677_v58  ;;  %2811 = vst.msk [vmem:[#allocation2 + $0x1c0] sm:$0xf] %vm2754_vm9, %v2675_v47  ;;  %v4736_v60 = vpop.f32.mrf.mxu1 }
 0x46a   :  { %v4867_v37 = vmax.f32 %v4735_v30, 0.0 }
 0x46c   :  { %v2966_v33 = vpop.permute.xlu1 %2965  ;;  %v4910_v34 = vpack.c.bf16 %v4867_v37, %v4866_v41  ;;  %v2964_v1 = vpop.permute.xlu0 %2963 }
 0x46d   :  { %3101 = vst.msk [vmem:[#allocation2 + $0x1c8] sm:$0xf] %vm3043_vm10, %v2966_v33  ;;  %3100 = vst.msk [vmem:[#allocation2 + $0x1c0] sm:$0xf] %vm3043_vm10, %v2964_v1 }
 0x46e   :  { %6301 = vmatprep.mubr.msk.bf16.mxu0 %vm4440_vm14, %v4910_v34 }
 0x470   :  { %v3239_v42 = vpop.permute.xlu1 %3238  ;;  %v3237_v9 = vpop.permute.xlu0 %3236 }
 0x471   :  { %3374 = vst.msk [vmem:[#allocation2 + $0x1c8] sm:$0xf] %vm3316_vm11, %v3239_v42  ;;  %3373 = vst.msk [vmem:[#allocation2 + $0x1c0] sm:$0xf] %vm3316_vm11, %v3237_v9 }
 0x474   :  { %v3496_v40 = vpop.permute.xlu1 %3495  ;;  %v3494_v59 = vpop.permute.xlu0 %3493 }
 0x475   :  { %3625 = vst.msk [vmem:[#allocation2 + $0x1c8] sm:$0xf] %vm3567_vm12, %v3496_v40  ;;  %3624 = vst.msk [vmem:[#allocation2 + $0x1c0] sm:$0xf] %vm3567_vm12, %v3494_v59 }
 0x478   :  { %v3747_v18 = vpop.permute.xlu1 %3746  ;;  %v3745_v26 = vpop.permute.xlu0 %3744 }
 0x479   :  { %3876 = vst.msk [vmem:[#allocation2 + $0x1c8] sm:$0xf] %vm3818_vm13, %v3747_v18  ;;  %3875 = vst.msk [vmem:[#allocation2 + $0x1c0] sm:$0xf] %vm3818_vm13, %v3745_v26 }
 0x47c   :  { %v1916_v5 = vpop.permute.xlu1 %1915  ;;  %v1914_v13 = vpop.permute.xlu0 %1913 }
 0x47d   :  { %2047 = vst.msk [vmem:[#allocation2 + $0x1d8] sm:$0xf] %vm1987_vm7, %v1916_v5  ;;  %2046 = vst.msk [vmem:[#allocation2 + $0x1d0] sm:$0xf] %vm1987_vm7, %v1914_v13  ;;  %v6433_v5 = vld [vmem:[#allocation2 + $0x1e4] ss:$8 sps:$4 sm:$0xff]  }
 0x47f   :  { %v4739_v44 = vpop.f32.mrf.mxu1 }
 0x480   :  { %v2416_v21 = vpop.permute.xlu1 %2415  ;;  %v4066_v54 = vld [vmem:[#allocation2 + $0x1c8] sm:$0xff]  ;;  %v2414_v35 = vpop.permute.xlu0 %2413  ;;  %v4065_v7 = vld [vmem:[#allocation2 + $0x1c0] sm:$0xff]  ;;  %v4740_v45 = vadd.f32 %v9463_v10, %v4739_v44 }
 0x481   :  { %2547 = vst.msk [vmem:[#allocation2 + $0x1d8] sm:$0xf] %vm2487_vm8, %v2416_v21  ;;  %2546 = vst.msk [vmem:[#allocation2 + $0x1d0] sm:$0xf] %vm2487_vm8, %v2414_v35  ;;  %v4741_v16 = vpop.f32.mrf.mxu1  ;;  %v6031_v61 = vcombine.low %v4065_v7, %v4066_v54 }
 0x482   :  { %v4868_v15 = vmax.f32 %v4740_v45, 0.0 }
 0x483   :  { %v4742_v31 = vpop.f32.mrf.mxu1  ;;  %4794 = vmatmul.mubr.bf16.gmra.mxu1 %v6031_v61 }
 0x484   :  { %v2681_v46 = vpop.permute.xlu1 %2680  ;;  %v2679_v57 = vpop.permute.xlu0 %2678  ;;  %v4743_v50 = vadd.f32 %v9463_v10, %v4742_v31  ;;  %6077 = vmatprep.mubr.msk.bf16.mxu1 %vm4440_vm14, %v6431_v2 }
 0x485   :  { %2814 = vst.msk [vmem:[#allocation2 + $0x1d8] sm:$0xf] %vm2754_vm9, %v2681_v46  ;;  %2813 = vst.msk [vmem:[#allocation2 + $0x1d0] sm:$0xf] %vm2754_vm9, %v2679_v57  ;;  %v4744_v22 = vpop.f32.mrf.mxu1 }
 0x486   :  { %v4869_v28 = vmax.f32 %v4743_v50, 0.0  ;;  %v9835_v22 = vld [vmem:[%s10825_s6] ss:$0 sm:$0xff] }
 0x488   :  { %v2970_v32 = vpop.permute.xlu1 %2969  ;;  %v4911_v62 = vpack.c.bf16 %v4869_v28, %v4868_v15  ;;  %v2968_v24 = vpop.permute.xlu0 %2967 }
 0x489   :  { %3103 = vst.msk [vmem:[#allocation2 + $0x1d8] sm:$0xf] %vm3043_vm10, %v2970_v32  ;;  %3102 = vst.msk [vmem:[#allocation2 + $0x1d0] sm:$0xf] %vm3043_vm10, %v2968_v24 }
 0x48a   :  { %6302 = vmatmul.mubr.msk.bf16.gmra.mxu0 %vm4440_vm14, %v4911_v62 }
 0x48c   :  { %v3243_v36 = vpop.permute.xlu1 %3242  ;;  %v3241_v14 = vpop.permute.xlu0 %3240 }
 0x48d   :  { %3376 = vst.msk [vmem:[#allocation2 + $0x1d8] sm:$0xf] %vm3316_vm11, %v3243_v36  ;;  %3375 = vst.msk [vmem:[#allocation2 + $0x1d0] sm:$0xf] %vm3316_vm11, %v3241_v14 }
 0x490   :  { %v3500_v29 = vpop.permute.xlu1 %3499  ;;  %v3498_v20 = vpop.permute.xlu0 %3497 }
 0x491   :  { %3627 = vst.msk [vmem:[#allocation2 + $0x1d8] sm:$0xf] %vm3567_vm12, %v3500_v29  ;;  %3626 = vst.msk [vmem:[#allocation2 + $0x1d0] sm:$0xf] %vm3567_vm12, %v3498_v20 }
 0x494   :  { %v3751_v51 = vpop.permute.xlu1 %3750  ;;  %v3749_v17 = vpop.permute.xlu0 %3748 }
 0x495   :  { %3878 = vst.msk [vmem:[#allocation2 + $0x1d8] sm:$0xf] %vm3818_vm13, %v3751_v51  ;;  %3877 = vst.msk [vmem:[#allocation2 + $0x1d0] sm:$0xf] %vm3818_vm13, %v3749_v17 }
 0x498   :  { %v1920_v23 = vpop.permute.xlu1 %1919  ;;  %v1918_v0 = vpop.permute.xlu0 %1917 }
 0x499   :  { %2049 = vst.msk [vmem:[#allocation2 + $0x1e8] sm:$0xf] %vm1987_vm7, %v1920_v23  ;;  %2048 = vst.msk [vmem:[#allocation2 + $0x1e0] sm:$0xf] %vm1987_vm7, %v1918_v0  ;;  %v10885_v0 = vld [vmem:[#allocation11_spill] sm:$0xff] }
 0x49b   :  { %v4747_v48 = vpop.f32.mrf.mxu1 }
 0x49c   :  { %v2420_v12 = vpop.permute.xlu1 %2419  ;;  %v4068_v39 = vld [vmem:[#allocation2 + $0x1d8] sm:$0xff]  ;;  %v2418_v11 = vpop.permute.xlu0 %2417  ;;  %v4067_v43 = vld [vmem:[#allocation2 + $0x1d0] sm:$0xff]  ;;  %v4748_v56 = vadd.f32 %v9463_v10, %v4747_v48 }
 0x49d   :  { %2549 = vst.msk [vmem:[#allocation2 + $0x1e8] sm:$0xf] %vm2487_vm8, %v2420_v12  ;;  %2548 = vst.msk [vmem:[#allocation2 + $0x1e0] sm:$0xf] %vm2487_vm8, %v2418_v11  ;;  %v4749_v19 = vpop.f32.mrf.mxu1  ;;  %v6033_v3 = vcombine.low %v4067_v43, %v4068_v39  ;;  %v10886_v39 = vld [vmem:[#allocation10_spill] sm:$0xff] }
 0x49e   :  { %v4870_v38 = vmax.f32 %v4748_v56, 0.0 }
 0x49f   :  { %v4750_v52 = vpop.f32.mrf.mxu1  ;;  %4802 = vmatmul.mubr.bf16.gmra.mxu1 %v6033_v3 }
 0x4a0   :  { %v2685_v6 = vpop.permute.xlu1 %2684  ;;  %v2683_v55 = vpop.permute.xlu0 %2682  ;;  %v4751_v53 = vadd.f32 %v9463_v10, %v4750_v52  ;;  %6078 = vmatprep.mubr.msk.bf16.mxu1 %vm4440_vm14, %v6433_v5 }
 0x4a1   :  { %2816 = vst.msk [vmem:[#allocation2 + $0x1e8] sm:$0xf] %vm2754_vm9, %v2685_v6  ;;  %2815 = vst.msk [vmem:[#allocation2 + $0x1e0] sm:$0xf] %vm2754_vm9, %v2683_v55  ;;  %v4752_v4 = vpop.f32.mrf.mxu1 }
 0x4a2   :  { %v4871_v27 = vmax.f32 %v4751_v53, 0.0 }
 0x4a4   :  { %v2974_v58 = vpop.permute.xlu1 %2973  ;;  %v4912_v8 = vpack.c.bf16 %v4871_v27, %v4870_v38  ;;  %v2972_v47 = vpop.permute.xlu0 %2971 }
 0x4a5   :  { %3105 = vst.msk [vmem:[#allocation2 + $0x1e8] sm:$0xf] %vm3043_vm10, %v2974_v58  ;;  %3104 = vst.msk [vmem:[#allocation2 + $0x1e0] sm:$0xf] %vm3043_vm10, %v2972_v47  ;;  %v6435_v58 = vld [vmem:[#allocation2 + $0x1f4] ss:$8 sps:$4 sm:$0xff]  }
 0x4a6   :  { %6305 = vmatprep.mubr.msk.bf16.mxu0 %vm4440_vm14, %v4912_v8 }
 0x4a8   :  { %v3247_v30 = vpop.permute.xlu1 %3246  ;;  %v3245_v60 = vpop.permute.xlu0 %3244 }
 0x4a9   :  { %3378 = vst.msk [vmem:[#allocation2 + $0x1e8] sm:$0xf] %vm3316_vm11, %v3247_v30  ;;  %3377 = vst.msk [vmem:[#allocation2 + $0x1e0] sm:$0xf] %vm3316_vm11, %v3245_v60 }
 0x4ac   :  { %v3504_v41 = vpop.permute.xlu1 %3503  ;;  %v3502_v37 = vpop.permute.xlu0 %3501 }
 0x4ad   :  { %3629 = vst.msk [vmem:[#allocation2 + $0x1e8] sm:$0xf] %vm3567_vm12, %v3504_v41  ;;  %3628 = vst.msk [vmem:[#allocation2 + $0x1e0] sm:$0xf] %vm3567_vm12, %v3502_v37 }
 0x4b0   :  { %v3755_v33 = vpop.permute.xlu1 %3754  ;;  %v3753_v34 = vpop.permute.xlu0 %3752 }
 0x4b1   :  { %3880 = vst.msk [vmem:[#allocation2 + $0x1e8] sm:$0xf] %vm3818_vm13, %v3755_v33  ;;  %3879 = vst.msk [vmem:[#allocation2 + $0x1e0] sm:$0xf] %vm3818_vm13, %v3753_v34 }
 0x4b4   :  { %v1924_v1 = vpop.permute.xlu1 %1923  ;;  %v1922_v42 = vpop.permute.xlu0 %1921 }
 0x4b5   :  { %2051 = vst.msk [vmem:[#allocation2 + $0x1f8] sm:$0xf] %vm1987_vm7, %v1924_v1  ;;  %2050 = vst.msk [vmem:[#allocation2 + $0x1f0] sm:$0xf] %vm1987_vm7, %v1922_v42 }
 0x4b7   :  { %v4755_v40 = vpop.f32.mrf.mxu1 }
 0x4b8   :  { %v2424_v9 = vpop.permute.xlu1 %2423  ;;  %v4070_v59 = vld [vmem:[#allocation2 + $0x1e8] sm:$0xff]  ;;  %v2422_v18 = vpop.permute.xlu0 %2421  ;;  %v4069_v26 = vld [vmem:[#allocation2 + $0x1e0] sm:$0xff]  ;;  %v4756_v44 = vadd.f32 %v9463_v10, %v4755_v40 }
 0x4b9   :  { %2551 = vst.msk [vmem:[#allocation2 + $0x1f8] sm:$0xf] %vm2487_vm8, %v2424_v9  ;;  %2550 = vst.msk [vmem:[#allocation2 + $0x1f0] sm:$0xf] %vm2487_vm8, %v2422_v18  ;;  %v4757_v13 = vpop.f32.mrf.mxu1  ;;  %v6035_v21 = vcombine.low %v4069_v26, %v4070_v59  ;;  %v6263_v16 = vpop.f32.mrf.mxu0 }
 0x4ba   :  { %v4872_v45 = vmax.f32 %v4756_v44, 0.0  ;;  %v9844_v62 = vadd.f32 %v6263_v16, %v9835_v22  ;;  %v9910_v44 = vld [vmem:[%s10823_s4] ss:$0 sm:$0xff] }
 0x4bb   :  { %v4758_v35 = vpop.f32.mrf.mxu1  ;;  %4810 = vmatmul.mubr.bf16.gmra.mxu1 %v6035_v21  ;;  %v5067_v31 = vpop.f32.mrf.mxu0 }
 0x4bc   :  { %v2689_v54 = vpop.permute.xlu1 %2688  ;;  %v2687_v7 = vpop.permute.xlu0 %2686  ;;  %v4759_v49 = vadd.f32 %v9463_v10, %v4758_v35  ;;  %v9839_v10 = vadd.f32 %v9835_v22, %v5067_v31  ;;  %v5325_v48 = vsel %vm174_vm0, %v9844_v62, 0.0  ;;  %6079 = vmatprep.mubr.msk.bf16.mxu1 %vm4440_vm14, %v6435_v58 }
 0x4bd   :  { %2818 = vst.msk [vmem:[#allocation2 + $0x1f8] sm:$0xf] %vm2754_vm9, %v2689_v54  ;;  %2817 = vst.msk [vmem:[#allocation2 + $0x1f0] sm:$0xf] %vm2754_vm9, %v2687_v7  ;;  %v4760_v61 = vpop.f32.mrf.mxu1  ;;  %v6264_v28 = vpop.f32.mrf.mxu0 }
 0x4be   :  { %v4873_v46 = vmax.f32 %v4759_v49, 0.0  ;;  %v5322_v20 = vsel %vm174_vm0, %v9839_v10, 0.0  ;;  %v9853_v51 = vadd.f32 %v6264_v28, %v9835_v22 }
 0x4bf   :  { %v5070_v32 = vpop.f32.mrf.mxu0 }
 0x4c0   :  { %v2978_v57 = vpop.permute.xlu1 %2977  ;;  %v4913_v50 = vpack.c.bf16 %v4873_v46, %v4872_v45  ;;  %v2976_v15 = vpop.permute.xlu0 %2975  ;;  %v9847_v24 = vadd.f32 %v9835_v22, %v5070_v32  ;;  %v5327_v2 = vsel %vm174_vm0, %v9853_v51, 0.0 }
 0x4c1   :  { %3107 = vst.msk [vmem:[#allocation2 + $0x1f8] sm:$0xf] %vm3043_vm10, %v2978_v57  ;;  %3106 = vst.msk [vmem:[#allocation2 + $0x1f0] sm:$0xf] %vm3043_vm10, %v2976_v15  ;;  %v6267_v29 = vpop.f32.mrf.mxu0 }
 0x4c2   :  { %6306 = vmatmul.mubr.msk.bf16.gmra.mxu0 %vm4440_vm14, %v4913_v50  ;;  %v5323_v17 = vsel %vm174_vm0, %v9847_v24, 0.0  ;;  %v9874_v3 = vadd.f32 %v6267_v29, %v9835_v22 }
 0x4c3   :  { %v5324_v23 = vadd.f32 %v5323_v17, %v5322_v20  ;;  %v5083_v12 = vpop.f32.mrf.mxu0 }
 0x4c4   :  { %v3251_v36 = vpop.permute.xlu1 %3250  ;;  %v3249_v14 = vpop.permute.xlu0 %3248  ;;  %v9869_v11 = vadd.f32 %v9835_v22, %v5083_v12  ;;  %v5333_v47 = vsel %vm174_vm0, %v9874_v3, 0.0 }
 0x4c5   :  { %3380 = vst.msk [vmem:[#allocation2 + $0x1f8] sm:$0xf] %vm3316_vm11, %v3251_v36  ;;  %3379 = vst.msk [vmem:[#allocation2 + $0x1f0] sm:$0xf] %vm3316_vm11, %v3249_v14  ;;  %v6268_v43 = vpop.f32.mrf.mxu0 }
 0x4c6   :  { %3631 = vst.msk [vmem:[#allocation2 + $0x1f8] sm:$0xf] %vm3567_vm12, %v8755_v25  ;;  %3630 = vst.msk [vmem:[#allocation2 + $0x1f0] sm:$0xf] %vm3567_vm12, %v10885_v0  ;;  %v5326_v25 = vadd.f32 %v5325_v48, %v5324_v23  ;;  %v5329_v56 = vsel %vm174_vm0, %v9869_v11, 0.0  ;;  %v9882_v53 = vadd.f32 %v6268_v43, %v9835_v22 }
 0x4c7   :  { %3882 = vst.msk [vmem:[#allocation2 + $0x1f8] sm:$0xf] %vm3818_vm13, %v8771_v63  ;;  %3881 = vst.msk [vmem:[#allocation2 + $0x1f0] sm:$0xf] %vm3818_vm13, %v10886_v39  ;;  %v5086_v63 = vpop.f32.mrf.mxu0 }
 0x4c8   :  { %v5328_v19 = vadd.f32 %v5327_v2, %v5326_v25  ;;  %v9879_v6 = vadd.f32 %v9835_v22, %v5086_v63  ;;  %v5335_v37 = vsel %vm174_vm0, %v9882_v53, 0.0 }
 0x4c9   :  { %v6271_v55 = vpop.f32.mrf.mxu0 }
 0x4ca   :  { %v5330_v52 = vadd.f32 %v5329_v56, %v5328_v19  ;;  %v5331_v4 = vsel %vm174_vm0, %v9879_v6, 0.0  ;;  %v9895_v1 = vadd.f32 %v6271_v55, %v9835_v22 }
 0x4cb   :  { %v5099_v27 = vpop.f32.mrf.mxu0 }
 0x4cc   :  { %v5332_v38 = vadd.f32 %v5331_v4, %v5330_v52  ;;  %v9889_v30 = vadd.f32 %v9835_v22, %v5099_v27  ;;  %v5341_v7 = vsel %vm174_vm0, %v9895_v1, 0.0 }
 0x4cd   :  { %v6272_v41 = vpop.f32.mrf.mxu0 }
 0x4ce   :  { %v6437_v8 = vld [vmem:[#allocation2 + $0x1f0] ss:$8 sps:$4 sm:$0xff]   ;;  %v5334_v60 = vadd.f32 %v5333_v47, %v5332_v38  ;;  %v5337_v42 = vsel %vm174_vm0, %v9889_v30, 0.0  ;;  %v9903_v26 = vadd.f32 %v6272_v41, %v9835_v22 }
 0x4cf   :  { %4818 = vmatmul.mubr.bf16.gmra.mxu1 %v6437_v8  ;;  %v5102_v34 = vpop.f32.mrf.mxu0 }
 0x4d0   :  { %v5336_v33 = vadd.f32 %v5335_v37, %v5334_v60  ;;  %v9900_v9 = vadd.f32 %v9835_v22, %v5102_v34  ;;  %v5343_v31 = vsel %vm174_vm0, %v9903_v26, 0.0 }
 0x4d1   :  { %v6275_v18 = vpop.f32.mrf.mxu0 }
 0x4d2   :  { %v5338_v59 = vadd.f32 %v5337_v42, %v5336_v33  ;;  %v5339_v5 = vsel %vm174_vm0, %v9900_v9, 0.0  ;;  %v9922_v36 = vadd.f32 %v6275_v18, %v9835_v22 }
 0x4d3   :  { %v4763_v40 = vpop.f32.mrf.mxu1  ;;  %v5115_v35 = vpop.f32.mrf.mxu0 }
 0x4d4   :  { %v5340_v21 = vadd.f32 %v5339_v5, %v5338_v59  ;;  %v4764_v54 = vadd.f32 %v9910_v44, %v4763_v40  ;;  %v9916_v49 = vadd.f32 %v9835_v22, %v5115_v35  ;;  %v5349_v25 = vsel %vm174_vm0, %v9922_v36, 0.0 }
 0x4d5   :  { %v4765_v13 = vpop.f32.mrf.mxu1  ;;  %v6276_v46 = vpop.f32.mrf.mxu0 }
 0x4d6   :  { %v5342_v61 = vadd.f32 %v5341_v7, %v5340_v21  ;;  %v4874_v50 = vmax.f32 %v4764_v54, 0.0  ;;  %v5345_v14 = vsel %vm174_vm0, %v9916_v49, 0.0  ;;  %v9930_v0 = vadd.f32 %v6276_v46, %v9835_v22 }
 0x4d7   :  { %v4766_v16 = vpop.f32.mrf.mxu1  ;;  %v5118_v32 = vpop.f32.mrf.mxu0 }
 0x4d8   :  { %v4767_v45 = vadd.f32 %v9910_v44, %v4766_v16  ;;  %v5344_v15 = vadd.f32 %v5343_v31, %v5342_v61  ;;  %v9927_v29 = vadd.f32 %v9835_v22, %v5118_v32  ;;  %v5351_v63 = vsel %vm174_vm0, %v9930_v0, 0.0 }
 0x4d9   :  { %v4768_v57 = vpop.f32.mrf.mxu1  ;;  %v6279_v23 = vpop.f32.mrf.mxu0 }
 0x4da   :  { %v4875_v28 = vmax.f32 %v4767_v45, 0.0  ;;  %v5346_v20 = vadd.f32 %v5345_v14, %v5344_v15  ;;  %v5347_v12 = vsel %vm174_vm0, %v9927_v29, 0.0  ;;  %v9943_v55 = vadd.f32 %v6279_v23, %v9835_v22 }
 0x4db   :  { %v5131_v39 = vpop.f32.mrf.mxu0 }
 0x4dc   :  { %v4914_v17 = vpack.c.bf16 %v4875_v28, %v4874_v50  ;;  %v5348_v48 = vadd.f32 %v5347_v12, %v5346_v20  ;;  %v9938_v43 = vadd.f32 %v9835_v22, %v5131_v39  ;;  %v5357_v37 = vsel %vm174_vm0, %v9943_v55, 0.0 }
 0x4dd   :  { %v6280_v19 = vpop.f32.mrf.mxu0 }
 0x4de   :  { %6309 = vmatprep.mubr.msk.bf16.mxu0 %vm4440_vm14, %v4914_v17  ;;  %v5350_v2 = vadd.f32 %v5349_v25, %v5348_v48  ;;  %v5353_v4 = vsel %vm174_vm0, %v9938_v43, 0.0  ;;  %v9951_v8 = vadd.f32 %v6280_v19, %v9835_v22 }
 0x4df   :  { %v5134_v52 = vpop.f32.mrf.mxu0 }
 0x4e0   :  { %v5352_v56 = vadd.f32 %v5351_v63, %v5350_v2  ;;  %v9948_v38 = vadd.f32 %v9835_v22, %v5134_v52  ;;  %v5359_v40 = vsel %vm174_vm0, %v9951_v8, 0.0 }
 0x4e1   :  { %v6283_v58 = vpop.f32.mrf.mxu0 }
 0x4e2   :  { %v5354_v27 = vadd.f32 %v5353_v4, %v5352_v56  ;;  %v5355_v47 = vsel %vm174_vm0, %v9948_v38, 0.0  ;;  %v9963_v5 = vadd.f32 %v6283_v58, %v9835_v22 }
 0x4e3   :  { %v5147_v41 = vpop.f32.mrf.mxu0 }
 0x4e4   :  { %v5356_v60 = vadd.f32 %v5355_v47, %v5354_v27  ;;  %v9958_v33 = vadd.f32 %v9835_v22, %v5147_v41  ;;  %v5365_v46 = vsel %vm174_vm0, %v9963_v5, 0.0 }
 0x4e5   :  { %v6284_v42 = vpop.f32.mrf.mxu0 }
 0x4e6   :  { %v5358_v34 = vadd.f32 %v5357_v37, %v5356_v60  ;;  %v5361_v13 = vsel %vm174_vm0, %v9958_v33, 0.0  ;;  %v9971_v7 = vadd.f32 %v6284_v42, %v9835_v22 }
 0x4e7   :  { %v5150_v18 = vpop.f32.mrf.mxu0 }
 0x4e8   :  { %v5360_v59 = vadd.f32 %v5359_v40, %v5358_v34  ;;  %v9968_v21 = vadd.f32 %v9835_v22, %v5150_v18  ;;  %v5367_v28 = vsel %vm174_vm0, %v9971_v7, 0.0 }
 0x4e9   :  { %v6287_v35 = vpop.f32.mrf.mxu0 }
 0x4ea   :  { %v5362_v54 = vadd.f32 %v5361_v13, %v5360_v59  ;;  %v5363_v16 = vsel %vm174_vm0, %v9968_v21, 0.0  ;;  %v9984_v23 = vadd.f32 %v6287_v35, %v9835_v22 }
 0x4eb   :  { %v5163_v45 = vpop.f32.mrf.mxu0 }
 0x4ec   :  { %v5364_v61 = vadd.f32 %v5363_v16, %v5362_v54  ;;  %v9978_v31 = vadd.f32 %v9835_v22, %v5163_v45  ;;  %v5373_v60 = vsel %vm174_vm0, %v9984_v23, 0.0 }
 0x4ed   :  { %v6288_v15 = vpop.f32.mrf.mxu0 }
 0x4ee   :  { %v5366_v50 = vadd.f32 %v5365_v46, %v5364_v61  ;;  %v5369_v12 = vsel %vm174_vm0, %v9978_v31, 0.0  ;;  %v9993_v63 = vadd.f32 %v6288_v15, %v9835_v22 }
 0x4ef   :  { %v4771_v57 = vpop.f32.mrf.mxu1  ;;  %v5166_v17 = vpop.f32.mrf.mxu0 }
 0x4f0   :  { %v5368_v14 = vadd.f32 %v5367_v28, %v5366_v50  ;;  %v4772_v20 = vadd.f32 %v9910_v44, %v4771_v57  ;;  %v9989_v48 = vadd.f32 %v9835_v22, %v5166_v17  ;;  %v5375_v40 = vsel %vm174_vm0, %v9993_v63, 0.0 }
 0x4f1   :  { %v4773_v32 = vpop.f32.mrf.mxu1  ;;  %v6291_v19 = vpop.f32.mrf.mxu0 }
 0x4f2   :  { %v5370_v25 = vadd.f32 %v5369_v12, %v5368_v14  ;;  %v5371_v56 = vsel %vm174_vm0, %v9989_v48, 0.0  ;;  %v4876_v4 = vmax.f32 %v4772_v20, 0.0  ;;  %v10006_v13 = vadd.f32 %v6291_v19, %v9835_v22 }
 0x4f3   :  { %v4774_v39 = vpop.f32.mrf.mxu1  ;;  %v5179_v47 = vpop.f32.mrf.mxu0 }
 0x4f4   :  { %v4775_v2 = vadd.f32 %v9910_v44, %v4774_v39  ;;  %v5372_v27 = vadd.f32 %v5371_v56, %v5370_v25  ;;  %v10000_v41 = vadd.f32 %v9835_v22, %v5179_v47  ;;  %v5381_v57 = vsel %vm174_vm0, %v10006_v13, 0.0 }
 0x4f5   :  { %v4776_v52 = vpop.f32.mrf.mxu1  ;;  %v6292_v42 = vpop.f32.mrf.mxu0 }
 0x4f6   :  { %v4877_v58 = vmax.f32 %v4775_v2, 0.0  ;;  %v5374_v37 = vadd.f32 %v5373_v60, %v5372_v27  ;;  %v5377_v54 = vsel %vm174_vm0, %v10000_v41, 0.0  ;;  %v10014_v61 = vadd.f32 %v6292_v42, %v9835_v22  ;;  %v10026_v52 = vld [vmem:[%s10826_s7] sm:$0xf] }
 0x4f7   :  { %v5182_v18 = vpop.f32.mrf.mxu0 }
 0x4f8   :  { %v4915_v34 = vpack.c.bf16 %v4877_v58, %v4876_v4  ;;  %v5376_v59 = vadd.f32 %v5375_v40, %v5374_v37  ;;  %v10011_v35 = vadd.f32 %v9835_v22, %v5182_v18  ;;  %v5383_v15 = vsel %vm174_vm0, %v10014_v61, 0.0 }
 0x4fa   :  { %6310 = vmatmul.mubr.msk.bf16.gmra.mxu0 %vm4440_vm14, %v4915_v34  ;;  %v5378_v16 = vadd.f32 %v5377_v54, %v5376_v59  ;;  %v5379_v45 = vsel %vm174_vm0, %v10011_v35, 0.0  ;;  %v6114_v59 = vld [vmem:[%s10827_s8] ss:$0 sm:$0xff] }
 0x4fc   :  { %v5380_v46 = vadd.f32 %v5379_v45, %v5378_v16 }
 0x4fe   :  { %v5382_v50 = vadd.f32 %v5381_v57, %v5380_v46 }
 0x500   :  { %v5384_v28 = vadd.f32 %v5383_v15, %v5382_v50 }
 0x502   :  { %v5385_v32 = vrot.slane %v5384_v28, 4 }
 0x504   :  { %v5386_v14 = vadd.f32 %v5385_v32, %v5384_v28 }
 0x506   :  { %v5387_v20 = vrot.slane %v5386_v14, 2 }
 0x508   :  { %v5388_v17 = vadd.f32 %v5387_v20, %v5386_v14 }
 0x50a   :  { %v5389_v39 = vrot.slane %v5388_v17, 1 }
 0x50b   :  { %v4779_v12 = vpop.f32.mrf.mxu1 }
 0x50c   :  { %v4780_v2 = vadd.f32 %v9910_v44, %v4779_v12  ;;  %v5390_v19 = vadd.f32 %v5389_v39, %v5388_v17 }
 0x50d   :  { %v4781_v25 = vpop.f32.mrf.mxu1 }
 0x50e   :  { %v5461_v27 = vmul.f32 0.00390625, %v5390_v19  ;;  %v4878_v47 = vmax.f32 %v4780_v2, 0.0 }
 0x50f   :  { %v4782_v56 = vpop.f32.mrf.mxu1 }
 0x510   :  { %v4783_v4 = vadd.f32 %v9910_v44, %v4782_v56  ;;  %v5464_v37 = vmul.f32 %v10026_v52, %v5461_v27 }
 0x511   :  { %v4784_v58 = vpop.f32.mrf.mxu1 }
 0x512   :  { %v4879_v60 = vmax.f32 %v4783_v4, 0.0  ;;  %v5467_v42 = vsel %vm5466_vm15, %v5464_v37, 0.0 }
 0x513   :  { %5468 = vadd.xlane.f32.xlu0 %v5467_v42 }
 0x514   :  { %v4916_v34 = vpack.c.bf16 %v4879_v60, %v4878_v47 }
 0x516   :  { %6313 = vmatprep.mubr.msk.bf16.mxu0 %vm4440_vm14, %v4916_v34 }
 0x527   :  { %v4787_v40 = vpop.f32.mrf.mxu1 }
 0x528   :  { %v4788_v54 = vadd.f32 %v9910_v44, %v4787_v40 }
 0x529   :  { %v4789_v18 = vpop.f32.mrf.mxu1  ;;  %5480 = vbcast.lane.b32.xlu0 %v6114_v59, 256 }
 0x52a   :  { %v4880_v57 = vmax.f32 %v4788_v54, 0.0 }
 0x52b   :  { %v4790_v16 = vpop.f32.mrf.mxu1 }
 0x52c   :  { %v4791_v45 = vadd.f32 %v9910_v44, %v4790_v16 }
 0x52d   :  { %v4792_v46 = vpop.f32.mrf.mxu1 }
 0x52e   :  { %v4881_v50 = vmax.f32 %v4791_v45, 0.0 }
 0x530   :  { %v4917_v15 = vpack.c.bf16 %v4881_v50, %v4880_v57 }
 0x532   :  { %6314 = vmatmul.mubr.msk.bf16.gmra.mxu0 %vm4440_vm14, %v4917_v15 }
 0x543   :  { %v4795_v28 = vpop.f32.mrf.mxu1 }
 0x544   :  { %v4796_v14 = vadd.f32 %v9910_v44, %v4795_v28 }
 0x545   :  { %v4797_v32 = vpop.f32.mrf.mxu1 }
 0x546   :  { %v4882_v39 = vmax.f32 %v4796_v14, 0.0 }
 0x547   :  { %v4798_v20 = vpop.f32.mrf.mxu1 }
 0x548   :  { %v4799_v17 = vadd.f32 %v9910_v44, %v4798_v20 }
 0x549   :  { %v4800_v12 = vpop.f32.mrf.mxu1 }
 0x54a   :  { %v4883_v25 = vmax.f32 %v4799_v17, 0.0 }
 0x54c   :  { %v4918_v2 = vpack.c.bf16 %v4883_v25, %v4882_v39  ;;  %v6295_v25 = vpop.f32.mrf.mxu0 }
 0x54e   :  { %6317 = vmatprep.mubr.msk.bf16.mxu0 %vm4440_vm14, %v4918_v2  ;;  %v5195_v2 = vpop.f32.mrf.mxu0 }
 0x55f   :  { %v4803_v19 = vpop.f32.mrf.mxu1 }
 0x560   :  { %v4804_v4 = vadd.f32 %v9910_v44, %v4803_v19  ;;  %v6296_v19 = vpop.f32.mrf.mxu0 }
 0x561   :  { %v4805_v56 = vpop.f32.mrf.mxu1 }
 0x562   :  { %v4884_v60 = vmax.f32 %v4804_v4, 0.0  ;;  %v5198_v56 = vpop.f32.mrf.mxu0 }
 0x563   :  { %v4806_v27 = vpop.f32.mrf.mxu1 }
 0x564   :  { %v4807_v58 = vadd.f32 %v9910_v44, %v4806_v27  ;;  %v6299_v4 = vpop.f32.mrf.mxu0 }
 0x565   :  { %v4808_v47 = vpop.f32.mrf.mxu1 }
 0x566   :  { %v4885_v37 = vmax.f32 %v4807_v58, 0.0  ;;  %v5211_v27 = vpop.f32.mrf.mxu0 }
 0x568   :  { %v4919_v34 = vpack.c.bf16 %v4885_v37, %v4884_v60  ;;  %v6300_v58 = vpop.f32.mrf.mxu0  ;;  %v10051_v60 = vadd.f32 %v9835_v22, %v5198_v56 }
 0x569   :  { %v10086_v56 = vadd.f32 %v6300_v58, %v9835_v22 }
 0x56a   :  { %6318 = vmatmul.mubr.msk.bf16.gmra.mxu0 %vm4440_vm14, %v4919_v34  ;;  %v5214_v47 = vpop.f32.mrf.mxu0  ;;  %v5392_v34 = vsel %vm174_vm0, %v10051_v60, 0.0 }
 0x56c   :  { %v6303_v37 = vpop.f32.mrf.mxu0 }
 0x57b   :  { %v4811_v42 = vpop.f32.mrf.mxu1 }
 0x57c   :  { %v4812_v59 = vadd.f32 %v9910_v44, %v4811_v42  ;;  %v5227_v42 = vpop.f32.mrf.mxu0 }
 0x57d   :  { %v4813_v40 = vpop.f32.mrf.mxu1 }
 0x57e   :  { %v4886_v45 = vmax.f32 %v4812_v59, 0.0  ;;  %v10059_v40 = vadd.f32 %v6295_v25, %v9835_v22 }
 0x57f   :  { %v4814_v18 = vpop.f32.mrf.mxu1 }
 0x580   :  { %v4815_v54 = vadd.f32 %v9910_v44, %v4814_v18 }
 0x581   :  { %v4816_v16 = vpop.f32.mrf.mxu1 }
 0x582   :  { %v4887_v46 = vmax.f32 %v4815_v54, 0.0  ;;  %v6304_v54 = vpop.f32.mrf.mxu0  ;;  %v5394_v16 = vsel %vm174_vm0, %v10059_v40, 0.0 }
 0x584   :  { %v4920_v57 = vpack.c.bf16 %v4887_v46, %v4886_v45  ;;  %v10066_v45 = vadd.f32 %v6296_v19, %v9835_v22  ;;  %v10069_v46 = vadd.f32 %v9835_v22, %v5211_v27  ;;  %v10089_v27 = vadd.f32 %v9835_v22, %v5227_v42 }
 0x585   :  { %v10101_v42 = vadd.f32 %v6303_v37, %v9835_v22 }
 0x586   :  { %6321 = vmatprep.mubr.msk.bf16.mxu0 %vm4440_vm14, %v4920_v57 }
 0x587   :  { %10887 = vst [vmem:[#allocation9_spill] sm:$0xff] %v10101_v42 }
 0x58f   :  { %v4819_v50 = vpop.f32.mrf.mxu1 }
 0x590   :  { %v4820_v28 = vadd.f32 %v9910_v44, %v4819_v50  ;;  %v10072_v50 = vadd.f32 %v9835_v22, %v5214_v47 }
 0x591   :  { %v4821_v15 = vpop.f32.mrf.mxu1 }
 0x592   :  { %v4888_v17 = vmax.f32 %v4820_v28, 0.0  ;;  %v5230_v15 = vpop.f32.mrf.mxu0  ;;  %v5396_v28 = vsel %vm174_vm0, %v10066_v45, 0.0 }
 0x593   :  { %v4822_v32 = vpop.f32.mrf.mxu1 }
 0x594   :  { %v4823_v14 = vadd.f32 %v9910_v44, %v4822_v32  ;;  %v10054_v44 = vadd.f32 %v9835_v22, %v5195_v2  ;;  %v5398_v32 = vsel %vm174_vm0, %v10069_v46, 0.0 }
 0x595   :  { %v4824_v20 = vpop.f32.mrf.mxu1 }
 0x596   :  { %v4889_v12 = vmax.f32 %v4823_v14, 0.0  ;;  %v5391_v59 = vsel %vm174_vm0, %v10054_v44, 0.0  ;;  %v6307_v20 = vpop.f32.mrf.mxu0 }
 0x597   :  { %v5393_v18 = vadd.f32 %v5392_v34, %v5391_v59  ;;  %v10092_v59 = vadd.f32 %v9835_v22, %v5230_v15  ;;  %v5410_v15 = vsel %vm174_vm0, %v10101_v42, 0.0 }
 0x598   :  { %v4921_v39 = vpack.c.bf16 %v4889_v12, %v4888_v17  ;;  %v5400_v17 = vsel %vm174_vm0, %v10072_v50, 0.0  ;;  %v5243_v2 = vpop.f32.mrf.mxu0 }
 0x599   :  { %v5395_v57 = vadd.f32 %v5394_v16, %v5393_v18  ;;  %v5406_v18 = vsel %vm174_vm0, %v10089_v27, 0.0  ;;  %v5408_v58 = vsel %vm174_vm0, %v10092_v59, 0.0 }
 0x59a   :  { %6322 = vmatmul.mubr.msk.bf16.gmra.mxu0 %vm4440_vm14, %v4921_v39  ;;  %v10081_v39 = vadd.f32 %v6299_v4, %v9835_v22  ;;  %v6308_v34 = vpop.f32.mrf.mxu0  ;;  %v5404_v4 = vsel %vm174_vm0, %v10086_v56, 0.0 }
 0x59b   :  { %v5397_v14 = vadd.f32 %v5396_v28, %v5395_v57  ;;  %v10126_v42 = vadd.f32 %v6308_v34, %v9835_v22 }
 0x59c   :  { %v5402_v19 = vsel %vm174_vm0, %v10081_v39, 0.0  ;;  %v5246_v57 = vpop.f32.mrf.mxu0 }
 0x59d   :  { %v5399_v12 = vadd.f32 %v5398_v32, %v5397_v14  ;;  %10891 = vst [vmem:[#allocation4_spill] sm:$0xff] %v10126_v42 }
 0x59f   :  { %v5401_v25 = vadd.f32 %v5400_v17, %v5399_v12  ;;  %v10106_v12 = vadd.f32 %v6304_v54, %v9835_v22 }
 0x5a1   :  { %v5403_v47 = vadd.f32 %v5402_v19, %v5401_v25  ;;  %10888 = vst [vmem:[#allocation7_spill] sm:$0xff] %v10106_v12  ;;  %v10109_v25 = vadd.f32 %v9835_v22, %v5243_v2  ;;  %v5412_v37 = vsel %vm174_vm0, %v10106_v12, 0.0  ;;  %v10121_v2 = vadd.f32 %v6307_v20, %v9835_v22 }
 0x5a2   :  { %v5420_v20 = vsel %vm174_vm0, %v10126_v42, 0.0 }
 0x5a3   :  { %v5405_v16 = vadd.f32 %v5404_v4, %v5403_v47  ;;  %v10112_v47 = vadd.f32 %v9835_v22, %v5246_v57  ;;  %10890 = vst [vmem:[#allocation3_spill] sm:$0xff] %v10121_v2  ;;  %v5418_v57 = vsel %vm174_vm0, %v10121_v2, 0.0 }
 0x5a5   :  { %v5407_v28 = vadd.f32 %v5406_v18, %v5405_v16  ;;  %10889 = vst [vmem:[#allocation6_spill] sm:$0xff] %v10112_v47  ;;  %v5414_v18 = vsel %vm174_vm0, %v10109_v25, 0.0 }
 0x5a7   :  { %v5409_v14 = vadd.f32 %v5408_v58, %v5407_v28  ;;  %v5416_v58 = vsel %vm174_vm0, %v10112_v47, 0.0 }
 0x5a9   :  { %v5411_v19 = vadd.f32 %v5410_v15, %v5409_v14 }
 0x5ab   :  { %v5413_v16 = vadd.f32 %v5412_v37, %v5411_v19 }
 0x5ad   :  { %v5415_v54 = vadd.f32 %v5414_v18, %v5413_v16 }
 0x5af   :  { %v5417_v14 = vadd.f32 %v5416_v58, %v5415_v54 }
 0x5b1   :  { %v5419_v19 = vadd.f32 %v5418_v57, %v5417_v14 }
 0x5b3   :  { %v5421_v16 = vadd.f32 %v5420_v20, %v5419_v19 }
 0x5ba   :  { %v6311_v32 = vpop.f32.mrf.mxu0 }
 0x5bc   :  { %v5259_v17 = vpop.f32.mrf.mxu0 }
 0x5bd   :  { %v10129_v12 = vadd.f32 %v9835_v22, %v5259_v17  ;;  %v10141_v17 = vadd.f32 %v6311_v32, %v9835_v22 }
 0x5be   :  { %v6312_v4 = vpop.f32.mrf.mxu0 }
 0x5bf   :  { %10892 = vst [vmem:[#allocation8_spill] sm:$0xff] %v10129_v12  ;;  %v5422_v18 = vsel %vm174_vm0, %v10129_v12, 0.0  ;;  %10894 = vst [vmem:[#allocation11_spill] sm:$0xff] %v10141_v17  ;;  %v10146_v42 = vadd.f32 %v6312_v4, %v9835_v22 }
 0x5c0   :  { %v5262_v28 = vpop.f32.mrf.mxu0  ;;  %v5423_v54 = vadd.f32 %v5422_v18, %v5421_v16 }
 0x5c1   :  { %v10132_v47 = vadd.f32 %v9835_v22, %v5262_v28  ;;  %v5426_v28 = vsel %vm174_vm0, %v10141_v17, 0.0  ;;  %10895 = vst [vmem:[#allocation10_spill] sm:$0xff] %v10146_v42  ;;  %v5428_v32 = vsel %vm174_vm0, %v10146_v42, 0.0 }
 0x5c3   :  { %10893 = vst [vmem:[#allocation5_spill] sm:$0xff] %v10132_v47  ;;  %v5424_v34 = vsel %vm174_vm0, %v10132_v47, 0.0 }
 0x5c4   :  { %v5425_v14 = vadd.f32 %v5424_v34, %v5423_v54 }
 0x5c6   :  { %v5427_v19 = vadd.f32 %v5426_v28, %v5425_v14 }
 0x5c8   :  { %v5429_v34 = vadd.f32 %v5428_v32, %v5427_v19 }
 0x5f2   :  { %v6315_v15 = vpop.f32.mrf.mxu0 }
 0x5f4   :  { %v5275_v37 = vpop.f32.mrf.mxu0 }
 0x5f5   :  { %v10149_v12 = vadd.f32 %v9835_v22, %v5275_v37  ;;  %v10161_v37 = vadd.f32 %v6315_v15, %v9835_v22 }
 0x5f6   :  { %v6316_v58 = vpop.f32.mrf.mxu0 }
 0x5f7   :  { %v5430_v16 = vsel %vm174_vm0, %v10149_v12, 0.0  ;;  %10896 = vst [vmem:[#allocation12_spill] sm:$0xff] %v10161_v37  ;;  %v10166_v47 = vadd.f32 %v6316_v58, %v9835_v22 }
 0x5f8   :  { %v5278_v57 = vpop.f32.mrf.mxu0  ;;  %v5431_v4 = vadd.f32 %v5430_v16, %v5429_v34 }
 0x5f9   :  { %v10152_v20 = vadd.f32 %v9835_v22, %v5278_v57  ;;  %v5434_v57 = vsel %vm174_vm0, %v10161_v37, 0.0  ;;  %10897 = vst [vmem:[#allocation13_spill] sm:$0xff] %v10166_v47  ;;  %v5436_v16 = vsel %vm174_vm0, %v10166_v47, 0.0 }
 0x5fb   :  { %v5432_v54 = vsel %vm174_vm0, %v10152_v20, 0.0 }
 0x5fc   :  { %v5433_v14 = vadd.f32 %v5432_v54, %v5431_v4 }
 0x5fe   :  { %v5435_v19 = vadd.f32 %v5434_v57, %v5433_v14 }
 0x600   :  { %v5437_v34 = vadd.f32 %v5436_v16, %v5435_v19 }
 0x62a   :  { %v6319_v2 = vpop.f32.mrf.mxu0 }
 0x62b   :  { %v10181_v58 = vadd.f32 %v6319_v2, %v9835_v22 }
 0x62c   :  { %v5291_v18 = vpop.f32.mrf.mxu0 }
 0x62d   :  { %v10169_v42 = vadd.f32 %v9835_v22, %v5291_v18  ;;  %10900 = vst [vmem:[#allocation16_spill] sm:$0xff] %v10181_v58  ;;  %v5442_v14 = vsel %vm174_vm0, %v10181_v58, 0.0 }
 0x62e   :  { %v6320_v17 = vpop.f32.mrf.mxu0 }
 0x62f   :  { %10898 = vst [vmem:[#allocation14_spill] sm:$0xff] %v10169_v42  ;;  %v5438_v15 = vsel %vm174_vm0, %v10169_v42, 0.0 }
 0x630   :  { %v5294_v28 = vpop.f32.mrf.mxu0  ;;  %v5439_v4 = vadd.f32 %v5438_v15, %v5437_v34 }
 0x631   :  { %v10172_v32 = vadd.f32 %v9835_v22, %v5294_v28  ;;  %v10186_v28 = vadd.f32 %v6320_v17, %v9835_v22 }
 0x633   :  { %10899 = vst [vmem:[#allocation15_spill] sm:$0xff] %v10172_v32  ;;  %v5440_v54 = vsel %vm174_vm0, %v10172_v32, 0.0  ;;  %10901 = vst [vmem:[#allocation17_spill] sm:$0xff] %v10186_v28  ;;  %v5444_v16 = vsel %vm174_vm0, %v10186_v28, 0.0 }
 0x634   :  { %v5441_v18 = vadd.f32 %v5440_v54, %v5439_v4 }
 0x636   :  { %v5443_v57 = vadd.f32 %v5442_v14, %v5441_v18 }
 0x638   :  { %v5445_v15 = vadd.f32 %v5444_v16, %v5443_v57 }
 0x65a   :  { %v6323_v37 = vpop.f32.mrf.mxu0 }
 0x65b   :  { %v10196_v54 = vadd.f32 %v6323_v37, %v9835_v22 }
 0x65c   :  { %v5307_v47 = vpop.f32.mrf.mxu0 }
 0x65d   :  { %v10189_v42 = vadd.f32 %v9835_v22, %v5307_v47  ;;  %10903 = vst [vmem:[#allocation19_spill] sm:$0xff] %v10196_v54  ;;  %v5450_v28 = vsel %vm174_vm0, %v10196_v54, 0.0 }
 0x65e   :  { %v6324_v19 = vpop.f32.mrf.mxu0 }
 0x65f   :  { %10902 = vst [vmem:[#allocation18_spill] sm:$0xff] %v10189_v42  ;;  %v5446_v2 = vsel %vm174_vm0, %v10189_v42, 0.0  ;;  %v10202_v18 = vadd.f32 %v6324_v19, %v9835_v22 }
 0x660   :  { %v5310_v34 = vpop.f32.mrf.mxu0  ;;  %v5447_v4 = vadd.f32 %v5446_v2, %v5445_v15 }
 0x661   :  { %v10199_v17 = vadd.f32 %v9835_v22, %v5310_v34  ;;  %10905 = vst [vmem:[#allocation21_spill] sm:$0xff] %v10202_v18  ;;  %v5452_v57 = vsel %vm174_vm0, %v10202_v18, 0.0 }
 0x663   :  { %10904 = vst [vmem:[#allocation20_spill] sm:$0xff] %v10199_v17  ;;  %v5448_v47 = vsel %vm174_vm0, %v10199_v17, 0.0 }
 0x664   :  { %v5449_v14 = vadd.f32 %v5448_v47, %v5447_v4  ;;  %v5469_v4 = vpop.xlane.xlu0 %5468 }
 0x666   :  { %v5451_v42 = vadd.f32 %v5450_v28, %v5449_v14 }
 0x668   :  { %v5453_v37 = vadd.f32 %v5452_v57, %v5451_v42  ;;  %v5481_v47 = vpop.permute.xlu0 %5480  ;;  %v10215_v42 = vld [vmem:[%s10828_s9] sm:$0xf] }
 0x669   :  { %v5483_v54 = vadd.f32 %v5481_v47, %v5469_v4 }
 0x66a   :  { %v5454_v16 = vrot.slane %v5453_v37, 4 }
 0x66b   :  { %v5485_v28 = vmax.f32 %v5483_v54, 0.0 }
 0x66c   :  { %v5455_v58 = vadd.f32 %v5454_v16, %v5453_v37 }
 0x66e   :  { %v5456_v34 = vrot.slane %v5455_v58, 2 }
 0x670   :  { %v5457_v32 = vadd.f32 %v5456_v34, %v5455_v58 }
 0x672   :  { %v5458_v2 = vrot.slane %v5457_v32, 1 }
 0x674   :  { %v5459_v15 = vadd.f32 %v5458_v2, %v5457_v32  ;;  %v10222_v2 = vld [vmem:[%s10829_s10] ss:$0 sm:$0xff] }
 0x676   :  { %v5462_v22 = vmul.f32 0.00390625, %v5459_v15 }
 0x678   :  { %v5465_v19 = vmul.f32 %v10026_v52, %v5462_v22 }
 0x67a   :  { %v5470_v17 = vsel %vm5466_vm15, %v5465_v19, 0.0 }
 0x67b   :  { %5471 = vadd.xlane.f32.xlu1 %v5470_v17 }
 0x68c   :  { %5490 = vperm.xlu1 %6351, %v5485_v28  }
 0x704   :  { %v5472_v14 = vpop.xlane.xlu1 %5471 }
 0x705   :  { %v5484_v18 = vadd.f32 %v5481_v47, %v5472_v14  ;;  %v5535_v47 = vlaneseq }
 0x707   :  { %v5486_v58 = vmax.f32 %v5484_v18, 0.0  ;;  %v10225_v28 = vshrl.u32 %v5535_v47, 7  ;;  %v6459_v47 = vld [vmem:[%s10820_s0 + $0x30] sm:$0xff] }
 0x708   :  { %v5491_v32 = vpop.permute.xlu1 %5490 }
 0x709   :  { %v5498_v57 = vmul.f32 %v5491_v32, %v10215_v42  ;;  %5495 = vperm.xlu0 %6352, %v5486_v58   ;;  %v5537_v14 = vsub.s32 0, %v10225_v28 }
 0x70b   :  { %v5500_v52 = vsel %vm5466_vm15, %v5498_v57, 0.0 }
 0x70c   :  { %v5501_v17 = vrot.slane %v5500_v52, 4 }
 0x70e   :  { %v5502_v37 = vadd.f32 %v5501_v17, %v5500_v52 }
 0x710   :  { %v5503_v16 = vrot.slane %v5502_v37, 2 }
 0x712   :  { %v5504_v34 = vadd.f32 %v5503_v16, %v5502_v37 }
 0x714   :  { %v5505_v54 = vrot.slane %v5504_v34, 1 }
 0x716   :  { %v5506_v15 = vadd.f32 %v5505_v54, %v5504_v34 }
 0x718   :  { %v5521_v22 = vadd.f32 %v10222_v2, %v5506_v15 }
 0x71a   :  { %v6116_v18 = vmul.f32 -1.442695, %v5521_v22 }
 0x71c   :  { %6438 = vpow2.f32 %v6116_v18 }
 0x729   :  { %v6439_v19 = vpop.eup %6438 }
 0x72a   :  { %v5529_v4 = vadd.f32 1.0, %v6439_v19  ;;  %v6458_v19 = vld [vmem:[%s10820_s0 + $0x28] sm:$0xff] }
 0x72c   :  { %6440 = vrcp.f32 %v5529_v4 }
 0x739   :  { %v6441_v58 = vpop.eup %6440 }
 0x73a   :  { %v5538_v32 = vrot.slane %v6441_v58, %v5537_v14 }
 0x73c   :  { %v5543_v57 = vmul.f32 %v5538_v32, %v9839_v10  ;;  %v5544_v52 = vmul.f32 %v5538_v32, %v9847_v24  ;;  %v5545_v17 = vmul.f32 %v5538_v32, %v9844_v62  ;;  %v5546_v37 = vmul.f32 %v5538_v32, %v9853_v51 }
 0x73d   :  { %v5547_v16 = vmul.f32 %v5538_v32, %v9869_v11  ;;  %v5548_v34 = vmul.f32 %v5538_v32, %v9879_v6  ;;  %v5549_v54 = vmul.f32 %v5538_v32, %v9874_v3  ;;  %v5550_v15 = vmul.f32 %v5538_v32, %v9882_v53 }
 0x73e   :  { %v5551_v22 = vmul.f32 %v5538_v32, %v9889_v30  ;;  %v5552_v18 = vmul.f32 %v5538_v32, %v9900_v9  ;;  %v5553_v10 = vmul.f32 %v5538_v32, %v9895_v1  ;;  %v5554_v24 = vmul.f32 %v5538_v32, %v9903_v26 }
 0x73f   :  { %v5555_v62 = vmul.f32 %v5538_v32, %v9916_v49  ;;  %v5556_v51 = vmul.f32 %v5538_v32, %v9927_v29  ;;  %v5557_v11 = vmul.f32 %v5538_v32, %v9922_v36  ;;  %v5558_v6 = vmul.f32 %v5538_v32, %v9930_v0 }
 0x740   :  { %v5559_v3 = vmul.f32 %v5538_v32, %v9938_v43  ;;  %v5560_v53 = vmul.f32 %v5538_v32, %v9948_v38  ;;  %v5561_v30 = vmul.f32 %v5538_v32, %v9943_v55  ;;  %v5562_v9 = vmul.f32 %v5538_v32, %v9951_v8 }
 0x741   :  { %v10251_v1 = vmul.f32 %v5538_v32, %v9958_v33  ;;  %v10254_v26 = vmul.f32 %v5538_v32, %v9968_v21  ;;  %v10257_v49 = vmul.f32 %v5538_v32, %v9963_v5  ;;  %v10260_v36 = vmul.f32 %v5538_v32, %v9971_v7  ;;  %v6453_v21 = vld [vmem:[%s10820_s0] sm:$0xff] }
 0x742   :  { %v10263_v29 = vmul.f32 %v5538_v32, %v9978_v31  ;;  %v10266_v0 = vmul.f32 %v5538_v32, %v9989_v48  ;;  %v10269_v43 = vmul.f32 %v5538_v32, %v9984_v23  ;;  %v10272_v55 = vmul.f32 %v5538_v32, %v9993_v63  ;;  %v6454_v31 = vld [vmem:[%s10820_s0 + $0x8] sm:$0xff]  ;;  %v6455_v48 = vld [vmem:[%s10820_s0 + $0x10] sm:$0xff] }
 0x743   :  { %v10275_v38 = vmul.f32 %v5538_v32, %v10000_v41  ;;  %v10278_v8 = vmul.f32 %v5538_v32, %v10011_v35  ;;  %v10281_v33 = vmul.f32 %v5538_v32, %v10006_v13  ;;  %v10284_v5 = vmul.f32 %v5538_v32, %v10014_v61  ;;  %v6456_v41 = vld [vmem:[%s10820_s0 + $0x18] sm:$0xff]  ;;  %v6457_v35 = vld [vmem:[%s10820_s0 + $0x20] sm:$0xff] }
 0x744   :  { %v5607_v7 = vadd.f32 %v6453_v21, %v5543_v57  ;;  %v5608_v23 = vadd.f32 %v6454_v31, %v5544_v52  ;;  %v5609_v63 = vadd.f32 %v6455_v48, %v5545_v17  ;;  %v5610_v13 = vadd.f32 %v6456_v41, %v5546_v37  ;;  %v6460_v32 = vld [vmem:[%s10820_s0 + $0x38] sm:$0xff]  ;;  %v6461_v52 = vld [vmem:[%s10820_s0 + $0x40] sm:$0xff]  ;;  %v6462_v37 = vld [vmem:[%s10820_s0 + $0x48] sm:$0xff] }
 0x745   :  { %v5611_v61 = vadd.f32 %v6457_v35, %v5547_v16  ;;  %v5612_v4 = vadd.f32 %v6458_v19, %v5548_v34  ;;  %v5613_v58 = vadd.f32 %v6459_v47, %v5549_v54  ;;  %v5614_v57 = vadd.f32 %v6460_v32, %v5550_v15  ;;  %v6463_v34 = vld [vmem:[%s10820_s0 + $0x50] sm:$0xff]  ;;  %v6464_v21 = vld [vmem:[%s10820_s0 + $0x58] sm:$0xff] }
 0x746   :  { %v5615_v17 = vadd.f32 %v6461_v52, %v5551_v22  ;;  %v5616_v16 = vadd.f32 %v6462_v37, %v5552_v18  ;;  %v5617_v54 = vadd.f32 %v6463_v34, %v5553_v10  ;;  %v5618_v15 = vadd.f32 %v6464_v21, %v5554_v24  ;;  %5671 = vst.msk [vmem:[%s10830_s11] sm:$0xff] %vm174_vm0, %v5607_v7  ;;  %v6465_v22 = vld [vmem:[%s10820_s0 + $0x60] sm:$0xff]  ;;  %v6466_v10 = vld [vmem:[%s10820_s0 + $0x68] sm:$0xff]  ;;  %v6467_v7 = vld [vmem:[%s10820_s0 + $0x70] sm:$0xff] }
 0x747   :  { %5672 = vst.msk [vmem:[%s10830_s11 + $0x8] sm:$0xff] %vm174_vm0, %v5608_v23  ;;  %5673 = vst.msk [vmem:[%s10830_s11 + $0x10] sm:$0xff] %vm174_vm0, %v5609_v63  ;;  %v5619_v18 = vadd.f32 %v6465_v22, %v5555_v62  ;;  %v5620_v24 = vadd.f32 %v6466_v10, %v5556_v51  ;;  %v5621_v31 = vadd.f32 %v6467_v7, %v5557_v11  ;;  %v6468_v23 = vld [vmem:[%s10820_s0 + $0x78] sm:$0xff]  ;;  %v6469_v62 = vld [vmem:[%s10820_s0 + $0x80] sm:$0xff] }
 0x748   :  { %5674 = vst.msk [vmem:[%s10830_s11 + $0x18] sm:$0xff] %vm174_vm0, %v5610_v13  ;;  %v5622_v48 = vadd.f32 %v6468_v23, %v5558_v6  ;;  %5675 = vst.msk [vmem:[%s10830_s11 + $0x20] sm:$0xff] %vm174_vm0, %v5611_v61  ;;  %v5623_v51 = vadd.f32 %v6469_v62, %v5559_v3  ;;  %v6470_v11 = vld [vmem:[%s10820_s0 + $0x88] sm:$0xff]  ;;  %v6471_v63 = vld [vmem:[%s10820_s0 + $0x90] sm:$0xff] }
 0x749   :  { %5676 = vst.msk [vmem:[%s10830_s11 + $0x28] sm:$0xff] %vm174_vm0, %v5612_v4  ;;  %5677 = vst.msk [vmem:[%s10830_s11 + $0x30] sm:$0xff] %vm174_vm0, %v5613_v58  ;;  %v5624_v6 = vadd.f32 %v6470_v11, %v5560_v53  ;;  %v5625_v41 = vadd.f32 %v6471_v63, %v5561_v30  ;;  %v6472_v13 = vld [vmem:[%s10820_s0 + $0x98] sm:$0xff]  ;;  %v6473_v3 = vld [vmem:[%s10820_s0 + $0xa0] sm:$0xff] }
 0x74a   :  { %5678 = vst.msk [vmem:[%s10830_s11 + $0x38] sm:$0xff] %vm174_vm0, %v5614_v57  ;;  %v5626_v35 = vadd.f32 %v6472_v13, %v5562_v9  ;;  %5679 = vst.msk [vmem:[%s10830_s11 + $0x40] sm:$0xff] %vm174_vm0, %v5615_v17  ;;  %v5627_v53 = vadd.f32 %v6473_v3, %v10251_v1  ;;  %v6474_v30 = vld [vmem:[%s10820_s0 + $0xa8] sm:$0xff]  ;;  %v6475_v61 = vld [vmem:[%s10820_s0 + $0xb0] sm:$0xff] }
 0x74b   :  { %5680 = vst.msk [vmem:[%s10830_s11 + $0x48] sm:$0xff] %vm174_vm0, %v5616_v16  ;;  %5681 = vst.msk [vmem:[%s10830_s11 + $0x50] sm:$0xff] %vm174_vm0, %v5617_v54  ;;  %v5628_v9 = vadd.f32 %v6474_v30, %v10254_v26  ;;  %v5629_v19 = vadd.f32 %v6475_v61, %v10257_v49  ;;  %v6476_v4 = vld [vmem:[%s10820_s0 + $0xb8] sm:$0xff]  ;;  %v6477_v1 = vld [vmem:[%s10820_s0 + $0xc0] sm:$0xff] }
 0x74c   :  { %5682 = vst.msk [vmem:[%s10830_s11 + $0x58] sm:$0xff] %vm174_vm0, %v5618_v15  ;;  %v5630_v47 = vadd.f32 %v6476_v4, %v10260_v36  ;;  %5683 = vst.msk [vmem:[%s10830_s11 + $0x60] sm:$0xff] %vm174_vm0, %v5619_v18  ;;  %v5631_v26 = vadd.f32 %v6477_v1, %v10263_v29  ;;  %v6478_v49 = vld [vmem:[%s10820_s0 + $0xc8] sm:$0xff]  ;;  %v6479_v58 = vld [vmem:[%s10820_s0 + $0xd0] sm:$0xff] }
 0x74d   :  { %5684 = vst.msk [vmem:[%s10830_s11 + $0x68] sm:$0xff] %vm174_vm0, %v5620_v24  ;;  %5685 = vst.msk [vmem:[%s10830_s11 + $0x70] sm:$0xff] %vm174_vm0, %v5621_v31  ;;  %v5632_v36 = vadd.f32 %v6478_v49, %v10266_v0  ;;  %v5633_v32 = vadd.f32 %v6479_v58, %v10269_v43  ;;  %v6480_v57 = vld [vmem:[%s10820_s0 + $0xd8] sm:$0xff]  ;;  %v6481_v29 = vld [vmem:[%s10820_s0 + $0xe0] sm:$0xff] }
 0x74e   :  { %5686 = vst.msk [vmem:[%s10830_s11 + $0x78] sm:$0xff] %vm174_vm0, %v5622_v48  ;;  %v5634_v52 = vadd.f32 %v6480_v57, %v10272_v55  ;;  %5687 = vst.msk [vmem:[%s10830_s11 + $0x80] sm:$0xff] %vm174_vm0, %v5623_v51  ;;  %v5635_v0 = vadd.f32 %v6481_v29, %v10275_v38  ;;  %v6482_v43 = vld [vmem:[%s10820_s0 + $0xe8] sm:$0xff]  ;;  %v6483_v17 = vld [vmem:[%s10820_s0 + $0xf0] sm:$0xff] }
 0x74f   :  { %5688 = vst.msk [vmem:[%s10830_s11 + $0x88] sm:$0xff] %vm174_vm0, %v5624_v6  ;;  %5689 = vst.msk [vmem:[%s10830_s11 + $0x90] sm:$0xff] %vm174_vm0, %v5625_v41  ;;  %v5636_v55 = vadd.f32 %v6482_v43, %v10278_v8  ;;  %v5637_v37 = vadd.f32 %v6483_v17, %v10281_v33  ;;  %v6484_v16 = vld [vmem:[%s10820_s0 + $0xf8] sm:$0xff]  ;;  %v10910_v30 = vld [vmem:[#allocation4_spill] sm:$0xff] }
 0x750   :  { %5690 = vst.msk [vmem:[%s10830_s11 + $0x98] sm:$0xff] %vm174_vm0, %v5626_v35  ;;  %v5638_v34 = vadd.f32 %v6484_v16, %v10284_v5  ;;  %5691 = vst.msk [vmem:[%s10830_s11 + $0xa0] sm:$0xff] %vm174_vm0, %v5627_v53  ;;  %v10907_v35 = vld [vmem:[#allocation7_spill] sm:$0xff]  ;;  %v10908_v3 = vld [vmem:[#allocation6_spill] sm:$0xff] }
 0x751   :  { %5692 = vst.msk [vmem:[%s10830_s11 + $0xa8] sm:$0xff] %vm174_vm0, %v5628_v9  ;;  %5693 = vst.msk [vmem:[%s10830_s11 + $0xb0] sm:$0xff] %vm174_vm0, %v5629_v19  ;;  %v10909_v53 = vld [vmem:[#allocation3_spill] sm:$0xff]  ;;  %v10911_v9 = vld [vmem:[#allocation8_spill] sm:$0xff] }
 0x752   :  { %5694 = vst.msk [vmem:[%s10830_s11 + $0xb8] sm:$0xff] %vm174_vm0, %v5630_v47  ;;  %5695 = vst.msk [vmem:[%s10830_s11 + $0xc0] sm:$0xff] %vm174_vm0, %v5631_v26  ;;  %v10912_v61 = vld [vmem:[#allocation5_spill] sm:$0xff]  ;;  %v10913_v19 = vld [vmem:[#allocation11_spill] sm:$0xff] }
 0x753   :  { %5696 = vst.msk [vmem:[%s10830_s11 + $0xc8] sm:$0xff] %vm174_vm0, %v5632_v36  ;;  %5697 = vst.msk [vmem:[%s10830_s11 + $0xd0] sm:$0xff] %vm174_vm0, %v5633_v32  ;;  %v10914_v4 = vld [vmem:[#allocation10_spill] sm:$0xff]  ;;  %v10916_v49 = vld [vmem:[#allocation13_spill] sm:$0xff] }
 0x754   :  { %5698 = vst.msk [vmem:[%s10830_s11 + $0xd8] sm:$0xff] %vm174_vm0, %v5634_v52  ;;  %5699 = vst.msk [vmem:[%s10830_s11 + $0xe0] sm:$0xff] %vm174_vm0, %v5635_v0  ;;  %v10917_v58 = vld [vmem:[#allocation14_spill] sm:$0xff]  ;;  %v10918_v57 = vld [vmem:[#allocation15_spill] sm:$0xff] }
 0x755   :  { %5700 = vst.msk [vmem:[%s10830_s11 + $0xe8] sm:$0xff] %vm174_vm0, %v5636_v55  ;;  %5701 = vst.msk [vmem:[%s10830_s11 + $0xf0] sm:$0xff] %vm174_vm0, %v5637_v37  ;;  %v10919_v29 = vld [vmem:[#allocation16_spill] sm:$0xff]  ;;  %v10923_v16 = vld [vmem:[#allocation19_spill] sm:$0xff] }
 0x756   :  { %5702 = vst.msk [vmem:[%s10830_s11 + $0xf8] sm:$0xff] %vm174_vm0, %v5638_v34  ;;  %v10922_v17 = vld [vmem:[#allocation20_spill] sm:$0xff] }
 0x784   :  { %v5496_v38 = vpop.permute.xlu0 %5495 }
 0x785   :  { %v5499_v8 = vmul.f32 %v5496_v38, %v10215_v42  ;;  %v10924_v38 = vld [vmem:[#allocation21_spill] sm:$0xff] }
 0x787   :  { %v5507_v33 = vsel %vm5466_vm15, %v5499_v8, 0.0 }
 0x788   :  { %v5508_v5 = vrot.slane %v5507_v33, 4 }
 0x78a   :  { %v5509_v54 = vadd.f32 %v5508_v5, %v5507_v33  ;;  %v6485_v33 = vld [vmem:[%s10820_s0 + $0x100] sm:$0xff] }
 0x78c   :  { %v5510_v21 = vrot.slane %v5509_v54, 2 }
 0x78e   :  { %v5511_v15 = vadd.f32 %v5510_v21, %v5509_v54  ;;  %v6486_v54 = vld [vmem:[%s10820_s0 + $0x108] sm:$0xff] }
 0x790   :  { %v5512_v22 = vrot.slane %v5511_v15, 1 }
 0x792   :  { %v5513_v18 = vadd.f32 %v5512_v22, %v5511_v15  ;;  %v6487_v15 = vld [vmem:[%s10820_s0 + $0x110] sm:$0xff] }
 0x794   :  { %v5522_v10 = vadd.f32 %v10222_v2, %v5513_v18  ;;  %v6488_v18 = vld [vmem:[%s10820_s0 + $0x118] sm:$0xff] }
 0x796   :  { %v6117_v24 = vmul.f32 -1.442695, %v5522_v10 }
 0x798   :  { %6442 = vpow2.f32 %v6117_v24  ;;  %v6489_v24 = vld [vmem:[%s10820_s0 + $0x120] sm:$0xff] }
 0x7a5   :  { %v6443_v7 = vpop.eup %6442 }
 0x7a6   :  { %v5530_v31 = vadd.f32 1.0, %v6443_v7 }
 0x7a8   :  { %6444 = vrcp.f32 %v5530_v31  ;;  %v6490_v31 = vld [vmem:[%s10820_s0 + $0x128] sm:$0xff] }
 0x7b5   :  { %v6445_v23 = vpop.eup %6444 }
 0x7b6   :  { %v5542_v48 = vrot.slane %v6445_v23, %v5537_v14  ;;  %v10906_v14 = vld [vmem:[#allocation9_spill] sm:$0xff] }
 0x7b8   :  { %v5575_v42 = vmul.f32 %v5542_v48, %v10054_v44  ;;  %v5576_v62 = vmul.f32 %v5542_v48, %v10051_v60  ;;  %v5577_v51 = vmul.f32 %v5542_v48, %v10059_v40  ;;  %v5578_v11 = vmul.f32 %v5542_v48, %v10066_v45 }
 0x7b9   :  { %v5579_v6 = vmul.f32 %v5542_v48, %v10069_v46  ;;  %v5580_v2 = vmul.f32 %v5542_v48, %v10072_v50  ;;  %v5581_v63 = vmul.f32 %v5542_v48, %v10081_v39  ;;  %v5582_v41 = vmul.f32 %v5542_v48, %v10086_v56 }
 0x7ba   :  { %v5583_v13 = vmul.f32 %v5542_v48, %v10089_v27  ;;  %v5584_v28 = vmul.f32 %v5542_v48, %v10092_v59  ;;  %v5585_v44 = vmul.f32 %v5542_v48, %v10906_v14  ;;  %v5586_v60 = vmul.f32 %v5542_v48, %v10907_v35  ;;  %v6494_v14 = vld [vmem:[%s10820_s0 + $0x148] sm:$0xff]  ;;  %v6495_v35 = vld [vmem:[%s10820_s0 + $0x150] sm:$0xff] }
 0x7bb   :  { %v5587_v40 = vmul.f32 %v5542_v48, %v10109_v25  ;;  %v5588_v45 = vmul.f32 %v5542_v48, %v10908_v3  ;;  %v5589_v46 = vmul.f32 %v5542_v48, %v10909_v53  ;;  %v5590_v50 = vmul.f32 %v5542_v48, %v10910_v30  ;;  %v10915_v25 = vld [vmem:[#allocation12_spill] sm:$0xff]  ;;  %v6496_v3 = vld [vmem:[%s10820_s0 + $0x158] sm:$0xff]  ;;  %v6499_v53 = vld [vmem:[%s10820_s0 + $0x170] sm:$0xff] }
 0x7bc   :  { %v5591_v39 = vmul.f32 %v5542_v48, %v10911_v9  ;;  %v5592_v56 = vmul.f32 %v5542_v48, %v10912_v61  ;;  %v5593_v27 = vmul.f32 %v5542_v48, %v10913_v19  ;;  %v5594_v59 = vmul.f32 %v5542_v48, %v10914_v4  ;;  %v6500_v9 = vld [vmem:[%s10820_s0 + $0x178] sm:$0xff]  ;;  %v6503_v19 = vld [vmem:[%s10820_s0 + $0x190] sm:$0xff] }
 0x7bd   :  { %v10548_v47 = vmul.f32 %v5542_v48, %v10149_v12  ;;  %v10551_v1 = vmul.f32 %v5542_v48, %v10152_v20  ;;  %v10554_v26 = vmul.f32 %v5542_v48, %v10915_v25  ;;  %v10557_v36 = vmul.f32 %v5542_v48, %v10916_v49  ;;  %v10920_v12 = vld [vmem:[#allocation17_spill] sm:$0xff]  ;;  %v10921_v20 = vld [vmem:[#allocation18_spill] sm:$0xff] }
 0x7be   :  { %v10560_v32 = vmul.f32 %v5542_v48, %v10917_v58  ;;  %v10563_v52 = vmul.f32 %v5542_v48, %v10918_v57  ;;  %v10566_v0 = vmul.f32 %v5542_v48, %v10919_v29  ;;  %v10569_v43 = vmul.f32 %v5542_v48, %v10920_v12  ;;  %v6504_v25 = vld [vmem:[%s10820_s0 + $0x198] sm:$0xff]  ;;  %v6507_v58 = vld [vmem:[%s10820_s0 + $0x1b0] sm:$0xff] }
 0x7bf   :  { %v10572_v55 = vmul.f32 %v5542_v48, %v10921_v20  ;;  %v10575_v37 = vmul.f32 %v5542_v48, %v10922_v17  ;;  %v10578_v34 = vmul.f32 %v5542_v48, %v10923_v16  ;;  %v10581_v8 = vmul.f32 %v5542_v48, %v10924_v38  ;;  %v6491_v48 = vld [vmem:[%s10820_s0 + $0x130] sm:$0xff]  ;;  %v6508_v29 = vld [vmem:[%s10820_s0 + $0x1b8] sm:$0xff] }
 0x7c0   :  { %v5639_v5 = vadd.f32 %v6485_v33, %v5575_v42  ;;  %v5640_v21 = vadd.f32 %v6486_v54, %v5576_v62  ;;  %v5641_v22 = vadd.f32 %v6487_v15, %v5577_v51  ;;  %v5642_v10 = vadd.f32 %v6488_v18, %v5578_v11  ;;  %v6492_v62 = vld [vmem:[%s10820_s0 + $0x138] sm:$0xff]  ;;  %v6493_v11 = vld [vmem:[%s10820_s0 + $0x140] sm:$0xff]  ;;  %v6511_v20 = vld [vmem:[%s10820_s0 + $0x1d0] sm:$0xff] }
 0x7c1   :  { %v5643_v7 = vadd.f32 %v6489_v24, %v5579_v6  ;;  %v5644_v23 = vadd.f32 %v6490_v31, %v5580_v2  ;;  %v5645_v42 = vadd.f32 %v6491_v48, %v5581_v63  ;;  %v5646_v51 = vadd.f32 %v6492_v62, %v5582_v41  ;;  %v6512_v16 = vld [vmem:[%s10820_s0 + $0x1d8] sm:$0xff]  ;;  %v6515_v33 = vld [vmem:[%s10820_s0 + $0x1f0] sm:$0xff] }
 0x7c2   :  { %v5647_v6 = vadd.f32 %v6493_v11, %v5583_v13  ;;  %v5648_v2 = vadd.f32 %v6494_v14, %v5584_v28  ;;  %v5649_v63 = vadd.f32 %v6495_v35, %v5585_v44  ;;  %v5650_v41 = vadd.f32 %v6496_v3, %v5586_v60  ;;  %5703 = vst.msk [vmem:[%s10830_s11 + $0x100] sm:$0xff] %vm174_vm0, %v5639_v5  ;;  %v6497_v13 = vld [vmem:[%s10820_s0 + $0x160] sm:$0xff]  ;;  %v6498_v44 = vld [vmem:[%s10820_s0 + $0x168] sm:$0xff]  ;;  %v6516_v54 = vld [vmem:[%s10820_s0 + $0x1f8] sm:$0xff] }
 0x7c3   :  { %5704 = vst.msk [vmem:[%s10830_s11 + $0x108] sm:$0xff] %vm174_vm0, %v5640_v21  ;;  %5705 = vst.msk [vmem:[%s10830_s11 + $0x110] sm:$0xff] %vm174_vm0, %v5641_v22  ;;  %v5651_v28 = vadd.f32 %v6497_v13, %v5587_v40  ;;  %v5652_v60 = vadd.f32 %v6498_v44, %v5588_v45  ;;  %v5653_v30 = vadd.f32 %v6499_v53, %v5589_v46  ;;  %v6501_v40 = vld [vmem:[%s10820_s0 + $0x180] sm:$0xff]  ;;  %v6502_v46 = vld [vmem:[%s10820_s0 + $0x188] sm:$0xff] }
 0x7c4   :  { %5706 = vst.msk [vmem:[%s10830_s11 + $0x118] sm:$0xff] %vm174_vm0, %v5642_v10  ;;  %v5654_v61 = vadd.f32 %v6500_v9, %v5590_v50  ;;  %5707 = vst.msk [vmem:[%s10830_s11 + $0x120] sm:$0xff] %vm174_vm0, %v5643_v7  ;;  %v5655_v45 = vadd.f32 %v6501_v40, %v5591_v39  ;;  %v5656_v50 = vadd.f32 %v6502_v46, %v5592_v56  ;;  %v6505_v39 = vld [vmem:[%s10820_s0 + $0x1a0] sm:$0xff] }
 0x7c5   :  { %5708 = vst.msk [vmem:[%s10830_s11 + $0x128] sm:$0xff] %vm174_vm0, %v5644_v23  ;;  %5709 = vst.msk [vmem:[%s10830_s11 + $0x130] sm:$0xff] %vm174_vm0, %v5645_v42  ;;  %v5657_v4 = vadd.f32 %v6503_v19, %v5593_v27  ;;  %v5658_v49 = vadd.f32 %v6504_v25, %v5594_v59  ;;  %v5659_v56 = vadd.f32 %v6505_v39, %v10548_v47  ;;  %v6506_v27 = vld [vmem:[%s10820_s0 + $0x1a8] sm:$0xff]  ;;  %v6509_v47 = vld [vmem:[%s10820_s0 + $0x1c0] sm:$0xff] }
 0x7c6   :  { %5710 = vst.msk [vmem:[%s10830_s11 + $0x138] sm:$0xff] %vm174_vm0, %v5646_v51  ;;  %5711 = vst.msk [vmem:[%s10830_s11 + $0x140] sm:$0xff] %vm174_vm0, %v5647_v6  ;;  %v5660_v59 = vadd.f32 %v6506_v27, %v10551_v1  ;;  %v5661_v57 = vadd.f32 %v6507_v58, %v10554_v26  ;;  %v5662_v12 = vadd.f32 %v6508_v29, %v10557_v36  ;;  %v6510_v26 = vld [vmem:[%s10820_s0 + $0x1c8] sm:$0xff] }
 0x7c7   :  { %5712 = vst.msk [vmem:[%s10830_s11 + $0x148] sm:$0xff] %vm174_vm0, %v5648_v2  ;;  %5713 = vst.msk [vmem:[%s10830_s11 + $0x150] sm:$0xff] %vm174_vm0, %v5649_v63  ;;  %v5663_v1 = vadd.f32 %v6509_v47, %v10560_v32  ;;  %v5664_v36 = vadd.f32 %v6510_v26, %v10563_v52  ;;  %v5665_v17 = vadd.f32 %v6511_v20, %v10566_v0  ;;  %v6513_v32 = vld [vmem:[%s10820_s0 + $0x1e0] sm:$0xff]  ;;  %v6514_v0 = vld [vmem:[%s10820_s0 + $0x1e8] sm:$0xff] }
 0x7c8   :  { %5714 = vst.msk [vmem:[%s10830_s11 + $0x158] sm:$0xff] %vm174_vm0, %v5650_v41  ;;  %5715 = vst.msk [vmem:[%s10830_s11 + $0x160] sm:$0xff] %vm174_vm0, %v5651_v28  ;;  %v5666_v38 = vadd.f32 %v6512_v16, %v10569_v43  ;;  %v5667_v52 = vadd.f32 %v6513_v32, %v10572_v55  ;;  %v5668_v43 = vadd.f32 %v6514_v0, %v10575_v37 }
 0x7c9   :  { %5716 = vst.msk [vmem:[%s10830_s11 + $0x168] sm:$0xff] %vm174_vm0, %v5652_v60  ;;  %5717 = vst.msk [vmem:[%s10830_s11 + $0x170] sm:$0xff] %vm174_vm0, %v5653_v30  ;;  %v5669_v5 = vadd.f32 %v6515_v33, %v10578_v34  ;;  %v5670_v21 = vadd.f32 %v6516_v54, %v10581_v8 }
 0x7ca   :  { %5718 = vst.msk [vmem:[%s10830_s11 + $0x178] sm:$0xff] %vm174_vm0, %v5654_v61  ;;  %5719 = vst.msk [vmem:[%s10830_s11 + $0x180] sm:$0xff] %vm174_vm0, %v5655_v45 }
 0x7cb   :  { %5720 = vst.msk [vmem:[%s10830_s11 + $0x188] sm:$0xff] %vm174_vm0, %v5656_v50  ;;  %5721 = vst.msk [vmem:[%s10830_s11 + $0x190] sm:$0xff] %vm174_vm0, %v5657_v4 }
 0x7cc   :  { %5722 = vst.msk [vmem:[%s10830_s11 + $0x198] sm:$0xff] %vm174_vm0, %v5658_v49  ;;  %5723 = vst.msk [vmem:[%s10830_s11 + $0x1a0] sm:$0xff] %vm174_vm0, %v5659_v56 }
 0x7cd   :  { %5724 = vst.msk [vmem:[%s10830_s11 + $0x1a8] sm:$0xff] %vm174_vm0, %v5660_v59  ;;  %5725 = vst.msk [vmem:[%s10830_s11 + $0x1b0] sm:$0xff] %vm174_vm0, %v5661_v57 }
 0x7ce   :  { %5726 = vst.msk [vmem:[%s10830_s11 + $0x1b8] sm:$0xff] %vm174_vm0, %v5662_v12  ;;  %5727 = vst.msk [vmem:[%s10830_s11 + $0x1c0] sm:$0xff] %vm174_vm0, %v5663_v1 }
 0x7cf   :  { %5728 = vst.msk [vmem:[%s10830_s11 + $0x1c8] sm:$0xff] %vm174_vm0, %v5664_v36  ;;  %5729 = vst.msk [vmem:[%s10830_s11 + $0x1d0] sm:$0xff] %vm174_vm0, %v5665_v17 }
 0x7d0   :  { %5730 = vst.msk [vmem:[%s10830_s11 + $0x1d8] sm:$0xff] %vm174_vm0, %v5666_v38  ;;  %5731 = vst.msk [vmem:[%s10830_s11 + $0x1e0] sm:$0xff] %vm174_vm0, %v5667_v52 }
 0x7d1   :  { %5732 = vst.msk [vmem:[%s10830_s11 + $0x1e8] sm:$0xff] %vm174_vm0, %v5668_v43  ;;  %5733 = vst.msk [vmem:[%s10830_s11 + $0x1f0] sm:$0xff] %vm174_vm0, %v5669_v5 }
 0x7d2   :  { %5734 = vst.msk [vmem:[%s10830_s11 + $0x1f8] sm:$0xff] %vm174_vm0, %v5670_v21 }

</bundles_post_ra>
